<compile_context>
chip_gen: v6e
topology: v6e:2x2x1
jax: 0.10.0
libtpu: 0.0.40
codegen_flags: <defaults>
</compile_context>

<pallas_src>
import jax
import jax.numpy as jnp
from jax.experimental import pallas as pl
from jax.experimental.pallas import tpu as pltpu


FC_DIM = (1000, 500, 250, 100, 1)
_MIB = 1024 * 1024


def _round_up(n, m):
    return ((n + m - 1) // m) * m


def _pad2(a, rows, cols):
    return jnp.pad(a, ((0, rows - a.shape[0]), (0, cols - a.shape[1])))


def _vmem_capacity_bytes():
    """Physical VMEM of the attached TPU; falls back to the most constrained
    generation (v7x, 64 MiB) if the query is unavailable."""
    try:
        return int(pltpu.get_tpu_info().vmem_capacity_bytes)
    except Exception:
        return 64 * _MIB


def _vmem_estimate(bt, tk, dims):
    """Working-set estimate (bytes), assuming double-buffered blocks."""
    d1, d2, d3, d4, d5 = dims
    return (
        2 * (bt * tk + tk * d1) * 2                                # streamed x / we (bf16)
        + 2 * (d1 * d2 + d2 * d3 + d3 * d4 + d4 * d5) * 2          # head weights (bf16)
        + 2 * (d1 + d2 + d3 + d4 + d5) * 4                         # biases (f32)
        + 2 * bt * d5 * 4                                          # output buffers
        + bt * d1 * 4                                              # f32 accumulator
    )


def _select_k_tile(k, vmem_cap):
    # 128 MiB generations (v5e/v6e) can afford tk=8192; v7x (64 MiB) uses 4096.
    big_vmem = vmem_cap >= 100 * _MIB
    return min(8192 if big_vmem else 4096, _round_up(k, 128))


def _select_batch_tile(batch, tk, dims, vmem_cap):
    """Largest batch tile that fits ~3/4 of physical VMEM; minimizes the number
    of batch tiles (each one re-streams the full encoder weight from HBM)."""
    budget = (vmem_cap * 3) // 4
    big_vmem = vmem_cap >= 100 * _MIB          # v5e / v6e (128 MiB physical)
    two_cores = not big_vmem                   # v7x heuristic: 64 MiB VMEM, 2 TCs/chip

    bt_cap = 512 if big_vmem else 256
    bt = min(bt_cap, _round_up(batch, 8))

    # v7x: if the whole batch fits in one tile but each half would still be
    # MXU-sized (>=128 rows), split into two tiles so the "parallel" batch
    # axis feeds both TensorCores.
    # TODO(synk): for small batches on v7x a d1 (encoder-output) split with an
    # unfused head would be needed to use the second core; not done here.
    if two_cores and batch >= 256 and _round_up(batch, bt) // bt == 1:
        bt = _round_up(-(-batch // 2), 8)

    # Shrink until the double-buffered working set fits the VMEM budget.
    while _vmem_estimate(bt, tk, dims) > budget and bt > 8:
        bt = max(8, _round_up(bt // 2, 8))
    return bt


def pvb_pretrain_kernel(x_ref, we_ref, be_ref,
                        w1_ref, b1_ref, w2_ref, b2_ref,
                        w3_ref, b3_ref, w4_ref, b4_ref,
                        out_ref, acc_ref):
    """K-tiled encoder projection + fused 4-layer Linear head.

    grid = (batch_tile, k_tile).  x/we stream per K tile; the small head
    weights have constant index maps and stay VMEM-resident.
    """
    k = pl.program_id(1)

    @pl.when(k == 0)
    def _():
        acc_ref[...] = jnp.zeros_like(acc_ref)

    # Streamed encoder matmul: bf16 inputs, f32 accumulation in scratch.
    acc_ref[...] += jnp.dot(x_ref[...], we_ref[...],
                            preferred_element_type=jnp.float32)

    @pl.when(k == pl.num_programs(1) - 1)
    def _():
        # TODO(synk): the real `convnext_model` encoder is an externally
        # injected module; this dense projection to fc_dim[0] stands in for it.
        feat = acc_ref[...] + be_ref[...]
        h = jnp.dot(feat.astype(w1_ref.dtype), w1_ref[...],
                    preferred_element_type=jnp.float32) + b1_ref[...]
        h = jnp.dot(h.astype(w2_ref.dtype), w2_ref[...],
                    preferred_element_type=jnp.float32) + b2_ref[...]
        h = jnp.dot(h.astype(w3_ref.dtype), w3_ref[...],
                    preferred_element_type=jnp.float32) + b3_ref[...]
        h = jnp.dot(h.astype(w4_ref.dtype), w4_ref[...],
                    preferred_element_type=jnp.float32) + b4_ref[...]
        out_ref[...] = h.astype(out_ref.dtype)


def prepare_params(params, fc_dim=FC_DIM, tk=None):
    """One-time pad + bf16 cast of the weights, hoisted out of the per-call
    forward path.  Also fixes the K tile so the encoder weight is padded to an
    exact multiple of it exactly once."""
    (we, be), (w1, b1), (w2, b2), (w3, b3), (w4, b4) = params
    k = we.shape[0]
    dims = tuple(_round_up(d, 128) for d in fc_dim)
    d1, d2, d3, d4, d5 = dims
    if tk is None:
        tk = _select_k_tile(k, _vmem_capacity_bytes())
    k_pad = _round_up(k, tk)
    return dict(
        k=k, tk=tk, dims=dims,
        we=_pad2(we, k_pad, d1).astype(jnp.bfloat16),
        be=_pad2(be, 1, d1).astype(jnp.float32),
        w1=_pad2(w1, d1, d2).astype(jnp.bfloat16),
        b1=_pad2(b1, 1, d2).astype(jnp.float32),
        w2=_pad2(w2, d2, d3).astype(jnp.bfloat16),
        b2=_pad2(b2, 1, d3).astype(jnp.float32),
        w3=_pad2(w3, d3, d4).astype(jnp.bfloat16),
        b3=_pad2(b3, 1, d4).astype(jnp.float32),
        w4=_pad2(w4, d4, d5).astype(jnp.bfloat16),
        b4=_pad2(b4, 1, d5).astype(jnp.float32),
    )


def pvb_pretrain_forward(x_nchw, prepared):
    """x_nchw: [B, C, H, W] float32.  `prepared` = prepare_params(params).
    Returns [B, 1] float32."""
    B = x_nchw.shape[0]
    K = x_nchw.size // B
    assert K == prepared["k"], (K, prepared["k"])

    dims = prepared["dims"]
    d1, d2, d3, d4, d5 = dims
    tk = prepared["tk"]
    k_pad = prepared["we"].shape[0]

    vmem_cap = _vmem_capacity_bytes()
    bt = _select_batch_tile(B, tk, dims, vmem_cap)
    b_pad = _round_up(B, bt)
    nb = b_pad // bt
    nk = k_pad // tk

    # Per-call activation pad + bf16 cast (cheap vs. the hoisted weight prep).
    # NOTE: activations are intentionally bf16 on the MXU (f32 accumulation);
    # this matches reference_forward but differs slightly from pure-f32 torch.
    x_p = _pad2(x_nchw.reshape(B, K).astype(jnp.bfloat16), b_pad, k_pad)

    vmem_est = _vmem_estimate(bt, tk, dims)
    vmem_limit = int(min((vmem_cap * 3) // 4, max(2 * vmem_est, 8 * _MIB)))

    flops = 2 * b_pad * (k_pad * d1 + d1 * d2 + d2 * d3 + d3 * d4 + d4 * d5)
    head_bytes = sum(int(prepared[n].size) * prepared[n].dtype.itemsize
                     for n in ("w1", "w2", "w3", "w4",
                               "be", "b1", "b2", "b3", "b4"))
    bytes_accessed = (
        int(x_p.size) * x_p.dtype.itemsize
        # The streamed encoder weight is re-read once per batch tile.
        + nb * int(prepared["we"].size) * prepared["we"].dtype.itemsize
        + head_bytes
        + b_pad * d5 * 4)

    const = lambda b, k: (0, 0)

    def _head_spec(shape, single_buffer):
        if single_buffer:
            # Resident block: index never changes, one buffer suffices.
            return pl.BlockSpec(shape, const, pipeline_mode=pl.Buffered(1))
        return pl.BlockSpec(shape, const)

    def _run(single_buffer_head):
        in_specs = [
            pl.BlockSpec((bt, tk), lambda b, k: (b, k)),   # x: batch x K tile
            pl.BlockSpec((tk, d1), lambda b, k: (k, 0)),   # streamed encoder weight
            _head_spec((1, d1), single_buffer_head),       # encoder bias
            _head_spec((d1, d2), single_buffer_head),      # fc head (VMEM resident)
            _head_spec((1, d2), single_buffer_head),
            _head_spec((d2, d3), single_buffer_head),
            _head_spec((1, d3), single_buffer_head),
            _head_spec((d3, d4), single_buffer_head),
            _head_spec((1, d4), single_buffer_head),
            _head_spec((d4, d5), single_buffer_head),
            _head_spec((1, d5), single_buffer_head),
        ]
        return pl.pallas_call(
            pvb_pretrain_kernel,
            out_shape=jax.ShapeDtypeStruct((b_pad, d5), jnp.float32),
            grid=(nb, nk),
            in_specs=in_specs,
            out_specs=pl.BlockSpec((bt, d5), lambda b, k: (b, 0)),
            scratch_shapes=[pltpu.VMEM((bt, d1), jnp.float32)],
            compiler_params=pltpu.CompilerParams(
                dimension_semantics=("parallel", "arbitrary"),
                vmem_limit_bytes=vmem_limit,
            ),
            cost_estimate=pl.CostEstimate(
                flops=flops, transcendentals=0, bytes_accessed=bytes_accessed),
        )(x_p, prepared["we"], prepared["be"],
          prepared["w1"], prepared["b1"], prepared["w2"], prepared["b2"],
          prepared["w3"], prepared["b3"], prepared["w4"], prepared["b4"])

    try:
        out_p = _run(True)
    except Exception:
        # pl.Buffered(1) for the resident head blocks is unsupported on this
        # jax/libtpu combination -> fall back to default double buffering.
        out_p = _run(False)

    return out_p[:B, :FC_DIM[-1]]


def init_linear(key, fan_in, fan_out):
    """PyTorch nn.Linear default init (uniform +-1/sqrt(fan_in)); weight is
    returned already transposed to [in, out], bias as [1, out], f32 master."""
    kw, kb = jax.random.split(key)
    bound = 1.0 / jnp.sqrt(jnp.asarray(fan_in, jnp.float32))
    w = jax.random.uniform(kw, (fan_in, fan_out), jnp.float32, -bound, bound)
    b = jax.random.uniform(kb, (1, fan_out), jnp.float32, -bound, bound)
    return w, b


def make_params(key, in_features, fc_dim=FC_DIM):
    keys = jax.random.split(key, 5)
    enc = init_linear(keys[0], in_features, fc_dim[0])   # encoder stand-in
    l1 = init_linear(keys[1], fc_dim[0], fc_dim[1])
    l2 = init_linear(keys[2], fc_dim[1], fc_dim[2])
    l3 = init_linear(keys[3], fc_dim[2], fc_dim[3])
    l4 = init_linear(keys[4], fc_dim[3], fc_dim[4])
    return (enc, l1, l2, l3, l4)


def reference_forward(x_nchw, params):
    """Pure-JAX reference mirroring the kernel numerics (bf16 operands,
    f32 accumulation, f32 bias add)."""
    B = x_nchw.shape[0]
    h = x_nchw.reshape(B, -1)
    for (w, b) in params:
        h = jnp.dot(h.astype(jnp.bfloat16).astype(jnp.float32),
                    w.astype(jnp.bfloat16).astype(jnp.float32),
                    preferred_element_type=jnp.float32) + b
    return h


if __name__ == "__main__":
    key = jax.random.PRNGKey(0)
    kx, kp = jax.random.split(key)

    # Small shapes consistent with the module: batch=2, channels=4, spatial=16.
    B, C, H, W = 2, 4, 16, 16
    x = jax.random.normal(kx, (B, C, H, W), jnp.float32)

    params = make_params(kp, in_features=C * H * W, fc_dim=FC_DIM)

    # Weight pad + bf16 cast happens ONCE here (hoisted out of the forward).
    # tk=512 forces 2 K-steps at this toy size to exercise the streamed
    # accumulator pipeline; real encoder-sized inputs use the auto-picked tk.
    prepared = prepare_params(params, tk=512)

    out = pvb_pretrain_forward(x, prepared)
    out = jax.block_until_ready(out)

    ref = reference_forward(x, params)
    assert out.shape == (B, 1), out.shape
    assert jnp.allclose(out, ref, rtol=1e-3, atol=1e-3), (out, ref)

    print("KERNEL_OK")
</pallas_src>

<mosaic_0001>
module attributes {stable_mosaic.version = 11 : i64} {
  func.func @pvb_pretrain_kernel(%arg0: i32, %arg1: i32, %arg2: memref<8x512xbf16, #tpu.memory_space<vmem>>, %arg3: memref<512x1024xbf16, #tpu.memory_space<vmem>>, %arg4: memref<1x1024xf32, #tpu.memory_space<vmem>>, %arg5: memref<1024x512xbf16, #tpu.memory_space<vmem>>, %arg6: memref<1x512xf32, #tpu.memory_space<vmem>>, %arg7: memref<512x256xbf16, #tpu.memory_space<vmem>>, %arg8: memref<1x256xf32, #tpu.memory_space<vmem>>, %arg9: memref<256x128xbf16, #tpu.memory_space<vmem>>, %arg10: memref<1x128xf32, #tpu.memory_space<vmem>>, %arg11: memref<128x128xbf16, #tpu.memory_space<vmem>>, %arg12: memref<1x128xf32, #tpu.memory_space<vmem>>, %arg13: memref<8x128xf32, #tpu.memory_space<vmem>>, %arg14: memref<8x1024xf32, #tpu.memory_space<vmem>>) attributes {dimension_semantics = [#tpu.dimension_semantics<parallel>, #tpu.dimension_semantics<arbitrary>], iteration_bounds = array<i64: 1, 2>, scalar_prefetch = 0 : i64, scratch_operands = 1 : i64, tpu.core_type = #tpu.core_type<tc>, window_params = [{transform_indices = @transform_0, window_bounds = array<i64: 8, 512>}, {transform_indices = @transform_1, window_bounds = array<i64: 512, 1024>}, {pipeline_mode = #tpu.pipeline_mode<synchronous>, transform_indices = @transform_2, window_bounds = array<i64: 1, 1024>}, {pipeline_mode = #tpu.pipeline_mode<synchronous>, transform_indices = @transform_3, window_bounds = array<i64: 1024, 512>}, {pipeline_mode = #tpu.pipeline_mode<synchronous>, transform_indices = @transform_4, window_bounds = array<i64: 1, 512>}, {pipeline_mode = #tpu.pipeline_mode<synchronous>, transform_indices = @transform_5, window_bounds = array<i64: 512, 256>}, {pipeline_mode = #tpu.pipeline_mode<synchronous>, transform_indices = @transform_6, window_bounds = array<i64: 1, 256>}, {pipeline_mode = #tpu.pipeline_mode<synchronous>, transform_indices = @transform_7, window_bounds = array<i64: 256, 128>}, {pipeline_mode = #tpu.pipeline_mode<synchronous>, transform_indices = @transform_8, window_bounds = array<i64: 1, 128>}, {pipeline_mode = #tpu.pipeline_mode<synchronous>, transform_indices = @transform_9, window_bounds = array<i64: 128, 128>}, {pipeline_mode = #tpu.pipeline_mode<synchronous>, transform_indices = @transform_10, window_bounds = array<i64: 1, 128>}, {transform_indices = @transform_11, window_bounds = array<i64: 8, 128>}]} {
    %c0_i32 = arith.constant 0 : i32
    %0 = arith.cmpi eq, %arg1, %c0_i32 : i32
    %1 = arith.extui %0 : i1 to i32
    %c0_i32_0 = arith.constant 0 : i32
    %2 = arith.cmpi ne, %1, %c0_i32_0 : i32
    scf.if %2 {
      %cst_9 = arith.constant 0.000000e+00 : f32
      %12 = vector.broadcast %cst_9 : f32 to vector<8x1024xf32>
      %c0_10 = arith.constant 0 : index
      %c0_11 = arith.constant 0 : index
      %13 = vector.load %arg14[%c0_10, %c0_11] : memref<8x1024xf32, #tpu.memory_space<vmem>>, vector<8x1024xf32>
      tpu.vector_store %arg14[%c0_10, %c0_11], %12 {strides = array<i32>} : memref<8x1024xf32, #tpu.memory_space<vmem>>, vector<8x1024xf32>,
    } else {
    }
    %c0 = arith.constant 0 : index
    %c0_1 = arith.constant 0 : index
    %3 = vector.load %arg14[%c0, %c0_1] : memref<8x1024xf32, #tpu.memory_space<vmem>>, vector<8x1024xf32>
    %c0_2 = arith.constant 0 : index
    %c0_3 = arith.constant 0 : index
    %4 = vector.load %arg2[%c0_2, %c0_3] : memref<8x512xbf16, #tpu.memory_space<vmem>>, vector<8x512xbf16>
    %c0_4 = arith.constant 0 : index
    %c0_5 = arith.constant 0 : index
    %5 = vector.load %arg3[%c0_4, %c0_5] : memref<512x1024xbf16, #tpu.memory_space<vmem>>, vector<512x1024xbf16>
    %cst = arith.constant dense<0.000000e+00> : vector<8x1024xf32>
    %6 = tpu.matmul %4, %5, %cst {dimension_numbers = #tpu.dot_dimension_numbers<[1], [0], [0], [1], [0, 0, 1, 1], [], []>} : vector<8x512xbf16>, vector<512x1024xbf16>, vector<8x1024xf32> -> vector<8x1024xf32>
    %7 = arith.addf %3, %6 : vector<8x1024xf32>
    %c0_6 = arith.constant 0 : index
    %c0_7 = arith.constant 0 : index
    %8 = vector.load %arg14[%c0_6, %c0_7] : memref<8x1024xf32, #tpu.memory_space<vmem>>, vector<8x1024xf32>
    tpu.vector_store %arg14[%c0_6, %c0_7], %7 {strides = array<i32>} : memref<8x1024xf32, #tpu.memory_space<vmem>>, vector<8x1024xf32>,
    %c1_i32 = arith.constant 1 : i32
    %9 = arith.cmpi eq, %arg1, %c1_i32 : i32
    %10 = arith.extui %9 : i1 to i32
    %c0_i32_8 = arith.constant 0 : i32
    %11 = arith.cmpi ne, %10, %c0_i32_8 : i32
    scf.if %11 {
      %c0_9 = arith.constant 0 : index
      %c0_10 = arith.constant 0 : index
      %12 = vector.load %arg14[%c0_9, %c0_10] : memref<8x1024xf32, #tpu.memory_space<vmem>>, vector<8x1024xf32>
      %c0_11 = arith.constant 0 : index
      %c0_12 = arith.constant 0 : index
      %13 = vector.load %arg4[%c0_11, %c0_12] : memref<1x1024xf32, #tpu.memory_space<vmem>>, vector<1x1024xf32>
      %14 = vector.broadcast %13 : vector<1x1024xf32> to vector<8x1024xf32>
      %15 = arith.addf %12, %14 : vector<8x1024xf32>
      %16 = arith.truncf %15 : vector<8x1024xf32> to vector<8x1024xbf16>
      %c0_13 = arith.constant 0 : index
      %c0_14 = arith.constant 0 : index
      %17 = vector.load %arg5[%c0_13, %c0_14] : memref<1024x512xbf16, #tpu.memory_space<vmem>>, vector<1024x512xbf16>
      %cst_15 = arith.constant dense<0.000000e+00> : vector<8x512xf32>
      %18 = tpu.matmul %16, %17, %cst_15 {dimension_numbers = #tpu.dot_dimension_numbers<[1], [0], [0], [1], [0, 0, 1, 1], [], []>} : vector<8x1024xbf16>, vector<1024x512xbf16>, vector<8x512xf32> -> vector<8x512xf32>
      %c0_16 = arith.constant 0 : index
      %c0_17 = arith.constant 0 : index
      %19 = vector.load %arg6[%c0_16, %c0_17] : memref<1x512xf32, #tpu.memory_space<vmem>>, vector<1x512xf32>
      %20 = vector.broadcast %19 : vector<1x512xf32> to vector<8x512xf32>
      %21 = arith.addf %18, %20 : vector<8x512xf32>
      %22 = arith.truncf %21 : vector<8x512xf32> to vector<8x512xbf16>
      %c0_18 = arith.constant 0 : index
      %c0_19 = arith.constant 0 : index
      %23 = vector.load %arg7[%c0_18, %c0_19] : memref<512x256xbf16, #tpu.memory_space<vmem>>, vector<512x256xbf16>
      %cst_20 = arith.constant dense<0.000000e+00> : vector<8x256xf32>
      %24 = tpu.matmul %22, %23, %cst_20 {dimension_numbers = #tpu.dot_dimension_numbers<[1], [0], [0], [1], [0, 0, 1, 1], [], []>} : vector<8x512xbf16>, vector<512x256xbf16>, vector<8x256xf32> -> vector<8x256xf32>
      %c0_21 = arith.constant 0 : index
      %c0_22 = arith.constant 0 : index
      %25 = vector.load %arg8[%c0_21, %c0_22] : memref<1x256xf32, #tpu.memory_space<vmem>>, vector<1x256xf32>
      %26 = vector.broadcast %25 : vector<1x256xf32> to vector<8x256xf32>
      %27 = arith.addf %24, %26 : vector<8x256xf32>
      %28 = arith.truncf %27 : vector<8x256xf32> to vector<8x256xbf16>
      %c0_23 = arith.constant 0 : index
      %c0_24 = arith.constant 0 : index
      %29 = vector.load %arg9[%c0_23, %c0_24] : memref<256x128xbf16, #tpu.memory_space<vmem>>, vector<256x128xbf16>
      %cst_25 = arith.constant dense<0.000000e+00> : vector<8x128xf32>
      %30 = tpu.matmul %28, %29, %cst_25 {dimension_numbers = #tpu.dot_dimension_numbers<[1], [0], [0], [1], [0, 0, 1, 1], [], []>} : vector<8x256xbf16>, vector<256x128xbf16>, vector<8x128xf32> -> vector<8x128xf32>
      %c0_26 = arith.constant 0 : index
      %c0_27 = arith.constant 0 : index
      %31 = vector.load %arg10[%c0_26, %c0_27] : memref<1x128xf32, #tpu.memory_space<vmem>>, vector<1x128xf32>
      %32 = vector.broadcast %31 : vector<1x128xf32> to vector<8x128xf32>
      %33 = arith.addf %30, %32 : vector<8x128xf32>
      %34 = arith.truncf %33 : vector<8x128xf32> to vector<8x128xbf16>
      %c0_28 = arith.constant 0 : index
      %c0_29 = arith.constant 0 : index
      %35 = vector.load %arg11[%c0_28, %c0_29] : memref<128x128xbf16, #tpu.memory_space<vmem>>, vector<128x128xbf16>
      %cst_30 = arith.constant dense<0.000000e+00> : vector<8x128xf32>
      %36 = tpu.matmul %34, %35, %cst_30 {dimension_numbers = #tpu.dot_dimension_numbers<[1], [0], [0], [1], [0, 0, 1, 1], [], []>} : vector<8x128xbf16>, vector<128x128xbf16>, vector<8x128xf32> -> vector<8x128xf32>
      %c0_31 = arith.constant 0 : index
      %c0_32 = arith.constant 0 : index
      %37 = vector.load %arg12[%c0_31, %c0_32] : memref<1x128xf32, #tpu.memory_space<vmem>>, vector<1x128xf32>
      %38 = vector.broadcast %37 : vector<1x128xf32> to vector<8x128xf32>
      %39 = arith.addf %36, %38 : vector<8x128xf32>
      %c0_33 = arith.constant 0 : index
      %c0_34 = arith.constant 0 : index
      %40 = vector.load %arg13[%c0_33, %c0_34] : memref<8x128xf32, #tpu.memory_space<vmem>>, vector<8x128xf32>
      tpu.vector_store %arg13[%c0_33, %c0_34], %39 {strides = array<i32>} : memref<8x128xf32, #tpu.memory_space<vmem>>, vector<8x128xf32>,
    } else {
    }
    return
  }
  func.func @transform_0(%arg0: i32, %arg1: i32) -> (i32, i32) {
    %c0_i32 = arith.constant 0 : i32
    return %arg0, %arg1 : i32, i32
  }
  func.func @transform_1(%arg0: i32, %arg1: i32) -> (i32, i32) {
    %c0_i32 = arith.constant 0 : i32
    %c0_i32_0 = arith.constant 0 : i32
    return %arg1, %c0_i32 : i32, i32
  }
  func.func @transform_2(%arg0: i32, %arg1: i32) -> (i32, i32) {
    %c0_i32 = arith.constant 0 : i32
    %c0_i32_0 = arith.constant 0 : i32
    %c0_i32_1 = arith.constant 0 : i32
    return %c0_i32, %c0_i32_0 : i32, i32
  }
  func.func @transform_3(%arg0: i32, %arg1: i32) -> (i32, i32) {
    %c0_i32 = arith.constant 0 : i32
    %c0_i32_0 = arith.constant 0 : i32
    %c0_i32_1 = arith.constant 0 : i32
    return %c0_i32, %c0_i32_0 : i32, i32
  }
  func.func @transform_4(%arg0: i32, %arg1: i32) -> (i32, i32) {
    %c0_i32 = arith.constant 0 : i32
    %c0_i32_0 = arith.constant 0 : i32
    %c0_i32_1 = arith.constant 0 : i32
    return %c0_i32, %c0_i32_0 : i32, i32
  }
  func.func @transform_5(%arg0: i32, %arg1: i32) -> (i32, i32) {
    %c0_i32 = arith.constant 0 : i32
    %c0_i32_0 = arith.constant 0 : i32
    %c0_i32_1 = arith.constant 0 : i32
    return %c0_i32, %c0_i32_0 : i32, i32
  }
  func.func @transform_6(%arg0: i32, %arg1: i32) -> (i32, i32) {
    %c0_i32 = arith.constant 0 : i32
    %c0_i32_0 = arith.constant 0 : i32
    %c0_i32_1 = arith.constant 0 : i32
    return %c0_i32, %c0_i32_0 : i32, i32
  }
  func.func @transform_7(%arg0: i32, %arg1: i32) -> (i32, i32) {
    %c0_i32 = arith.constant 0 : i32
    %c0_i32_0 = arith.constant 0 : i32
    %c0_i32_1 = arith.constant 0 : i32
    return %c0_i32, %c0_i32_0 : i32, i32
  }
  func.func @transform_8(%arg0: i32, %arg1: i32) -> (i32, i32) {
    %c0_i32 = arith.constant 0 : i32
    %c0_i32_0 = arith.constant 0 : i32
    %c0_i32_1 = arith.constant 0 : i32
    return %c0_i32, %c0_i32_0 : i32, i32
  }
  func.func @transform_9(%arg0: i32, %arg1: i32) -> (i32, i32) {
    %c0_i32 = arith.constant 0 : i32
    %c0_i32_0 = arith.constant 0 : i32
    %c0_i32_1 = arith.constant 0 : i32
    return %c0_i32, %c0_i32_0 : i32, i32
  }
  func.func @transform_10(%arg0: i32, %arg1: i32) -> (i32, i32) {
    %c0_i32 = arith.constant 0 : i32
    %c0_i32_0 = arith.constant 0 : i32
    %c0_i32_1 = arith.constant 0 : i32
    return %c0_i32, %c0_i32_0 : i32, i32
  }
  func.func @transform_11(%arg0: i32, %arg1: i32) -> (i32, i32) {
    %c0_i32 = arith.constant 0 : i32
    %c0_i32_0 = arith.constant 0 : i32
    return %arg0, %c0_i32 : i32, i32
  }
}

module attributes {stable_mosaic.version = 11 : i64} {
  func.func @pvb_pretrain_kernel(%arg0: i32, %arg1: i32, %arg2: memref<8x512xbf16, #tpu.memory_space<vmem>>, %arg3: memref<512x1024xbf16, #tpu.memory_space<vmem>>, %arg4: memref<1x1024xf32, #tpu.memory_space<vmem>>, %arg5: memref<1024x512xbf16, #tpu.memory_space<vmem>>, %arg6: memref<1x512xf32, #tpu.memory_space<vmem>>, %arg7: memref<512x256xbf16, #tpu.memory_space<vmem>>, %arg8: memref<1x256xf32, #tpu.memory_space<vmem>>, %arg9: memref<256x128xbf16, #tpu.memory_space<vmem>>, %arg10: memref<1x128xf32, #tpu.memory_space<vmem>>, %arg11: memref<128x128xbf16, #tpu.memory_space<vmem>>, %arg12: memref<1x128xf32, #tpu.memory_space<vmem>>, %arg13: memref<8x128xf32, #tpu.memory_space<vmem>>, %arg14: memref<8x1024xf32, #tpu.memory_space<vmem>>) attributes {dimension_semantics = [#tpu.dimension_semantics<parallel>, #tpu.dimension_semantics<arbitrary>], iteration_bounds = array<i64: 1, 2>, scalar_prefetch = 0 : i64, scratch_operands = 1 : i64, tpu.core_type = #tpu.core_type<tc>, window_params = [{transform_indices = @transform_0, window_bounds = array<i64: 8, 512>}, {transform_indices = @transform_1, window_bounds = array<i64: 512, 1024>}, {pipeline_mode = #tpu.pipeline_mode<synchronous>, transform_indices = @transform_2, window_bounds = array<i64: 1, 1024>}, {pipeline_mode = #tpu.pipeline_mode<synchronous>, transform_indices = @transform_3, window_bounds = array<i64: 1024, 512>}, {pipeline_mode = #tpu.pipeline_mode<synchronous>, transform_indices = @transform_4, window_bounds = array<i64: 1, 512>}, {pipeline_mode = #tpu.pipeline_mode<synchronous>, transform_indices = @transform_5, window_bounds = array<i64: 512, 256>}, {pipeline_mode = #tpu.pipeline_mode<synchronous>, transform_indices = @transform_6, window_bounds = array<i64: 1, 256>}, {pipeline_mode = #tpu.pipeline_mode<synchronous>, transform_indices = @transform_7, window_bounds = array<i64: 256, 128>}, {pipeline_mode = #tpu.pipeline_mode<synchronous>, transform_indices = @transform_8, window_bounds = array<i64: 1, 128>}, {pipeline_mode = #tpu.pipeline_mode<synchronous>, transform_indices = @transform_9, window_bounds = array<i64: 128, 128>}, {pipeline_mode = #tpu.pipeline_mode<synchronous>, transform_indices = @transform_10, window_bounds = array<i64: 1, 128>}, {transform_indices = @transform_11, window_bounds = array<i64: 8, 128>}]} {
    %c0_i32 = arith.constant 0 : i32
    %0 = arith.cmpi eq, %arg1, %c0_i32 : i32
    %1 = arith.extui %0 : i1 to i32
    %c0_i32_0 = arith.constant 0 : i32
    %2 = arith.cmpi ne, %1, %c0_i32_0 : i32
    scf.if %2 {
      %cst_9 = arith.constant 0.000000e+00 : f32
      %12 = vector.broadcast %cst_9 : f32 to vector<8x1024xf32>
      %c0_10 = arith.constant 0 : index
      %c0_11 = arith.constant 0 : index
      %13 = vector.load %arg14[%c0_10, %c0_11] : memref<8x1024xf32, #tpu.memory_space<vmem>>, vector<8x1024xf32>
      tpu.vector_store %arg14[%c0_10, %c0_11], %12 {strides = array<i32>} : memref<8x1024xf32, #tpu.memory_space<vmem>>, vector<8x1024xf32>,
    } else {
    }
    %c0 = arith.constant 0 : index
    %c0_1 = arith.constant 0 : index
    %3 = vector.load %arg14[%c0, %c0_1] : memref<8x1024xf32, #tpu.memory_space<vmem>>, vector<8x1024xf32>
    %c0_2 = arith.constant 0 : index
    %c0_3 = arith.constant 0 : index
    %4 = vector.load %arg2[%c0_2, %c0_3] : memref<8x512xbf16, #tpu.memory_space<vmem>>, vector<8x512xbf16>
    %c0_4 = arith.constant 0 : index
    %c0_5 = arith.constant 0 : index
    %5 = vector.load %arg3[%c0_4, %c0_5] : memref<512x1024xbf16, #tpu.memory_space<vmem>>, vector<512x1024xbf16>
    %cst = arith.constant dense<0.000000e+00> : vector<8x1024xf32>
    %6 = tpu.matmul %4, %5, %cst {dimension_numbers = #tpu.dot_dimension_numbers<[1], [0], [0], [1], [0, 0, 1, 1], [], []>} : vector<8x512xbf16>, vector<512x1024xbf16>, vector<8x1024xf32> -> vector<8x1024xf32>
    %7 = arith.addf %3, %6 : vector<8x1024xf32>
    %c0_6 = arith.constant 0 : index
    %c0_7 = arith.constant 0 : index
    %8 = vector.load %arg14[%c0_6, %c0_7] : memref<8x1024xf32, #tpu.memory_space<vmem>>, vector<8x1024xf32>
    tpu.vector_store %arg14[%c0_6, %c0_7], %7 {strides = array<i32>} : memref<8x1024xf32, #tpu.memory_space<vmem>>, vector<8x1024xf32>,
    %c1_i32 = arith.constant 1 : i32
    %9 = arith.cmpi eq, %arg1, %c1_i32 : i32
    %10 = arith.extui %9 : i1 to i32
    %c0_i32_8 = arith.constant 0 : i32
    %11 = arith.cmpi ne, %10, %c0_i32_8 : i32
    scf.if %11 {
      %c0_9 = arith.constant 0 : index
      %c0_10 = arith.constant 0 : index
      %12 = vector.load %arg14[%c0_9, %c0_10] : memref<8x1024xf32, #tpu.memory_space<vmem>>, vector<8x1024xf32>
      %c0_11 = arith.constant 0 : index
      %c0_12 = arith.constant 0 : index
      %13 = vector.load %arg4[%c0_11, %c0_12] : memref<1x1024xf32, #tpu.memory_space<vmem>>, vector<1x1024xf32>
      %14 = vector.broadcast %13 : vector<1x1024xf32> to vector<8x1024xf32>
      %15 = arith.addf %12, %14 : vector<8x1024xf32>
      %16 = arith.truncf %15 : vector<8x1024xf32> to vector<8x1024xbf16>
      %c0_13 = arith.constant 0 : index
      %c0_14 = arith.constant 0 : index
      %17 = vector.load %arg5[%c0_13, %c0_14] : memref<1024x512xbf16, #tpu.memory_space<vmem>>, vector<1024x512xbf16>
      %cst_15 = arith.constant dense<0.000000e+00> : vector<8x512xf32>
      %18 = tpu.matmul %16, %17, %cst_15 {dimension_numbers = #tpu.dot_dimension_numbers<[1], [0], [0], [1], [0, 0, 1, 1], [], []>} : vector<8x1024xbf16>, vector<1024x512xbf16>, vector<8x512xf32> -> vector<8x512xf32>
      %c0_16 = arith.constant 0 : index
      %c0_17 = arith.constant 0 : index
      %19 = vector.load %arg6[%c0_16, %c0_17] : memref<1x512xf32, #tpu.memory_space<vmem>>, vector<1x512xf32>
      %20 = vector.broadcast %19 : vector<1x512xf32> to vector<8x512xf32>
      %21 = arith.addf %18, %20 : vector<8x512xf32>
      %22 = arith.truncf %21 : vector<8x512xf32> to vector<8x512xbf16>
      %c0_18 = arith.constant 0 : index
      %c0_19 = arith.constant 0 : index
      %23 = vector.load %arg7[%c0_18, %c0_19] : memref<512x256xbf16, #tpu.memory_space<vmem>>, vector<512x256xbf16>
      %cst_20 = arith.constant dense<0.000000e+00> : vector<8x256xf32>
      %24 = tpu.matmul %22, %23, %cst_20 {dimension_numbers = #tpu.dot_dimension_numbers<[1], [0], [0], [1], [0, 0, 1, 1], [], []>} : vector<8x512xbf16>, vector<512x256xbf16>, vector<8x256xf32> -> vector<8x256xf32>
      %c0_21 = arith.constant 0 : index
      %c0_22 = arith.constant 0 : index
      %25 = vector.load %arg8[%c0_21, %c0_22] : memref<1x256xf32, #tpu.memory_space<vmem>>, vector<1x256xf32>
      %26 = vector.broadcast %25 : vector<1x256xf32> to vector<8x256xf32>
      %27 = arith.addf %24, %26 : vector<8x256xf32>
      %28 = arith.truncf %27 : vector<8x256xf32> to vector<8x256xbf16>
      %c0_23 = arith.constant 0 : index
      %c0_24 = arith.constant 0 : index
      %29 = vector.load %arg9[%c0_23, %c0_24] : memref<256x128xbf16, #tpu.memory_space<vmem>>, vector<256x128xbf16>
      %cst_25 = arith.constant dense<0.000000e+00> : vector<8x128xf32>
      %30 = tpu.matmul %28, %29, %cst_25 {dimension_numbers = #tpu.dot_dimension_numbers<[1], [0], [0], [1], [0, 0, 1, 1], [], []>} : vector<8x256xbf16>, vector<256x128xbf16>, vector<8x128xf32> -> vector<8x128xf32>
      %c0_26 = arith.constant 0 : index
      %c0_27 = arith.constant 0 : index
      %31 = vector.load %arg10[%c0_26, %c0_27] : memref<1x128xf32, #tpu.memory_space<vmem>>, vector<1x128xf32>
      %32 = vector.broadcast %31 : vector<1x128xf32> to vector<8x128xf32>
      %33 = arith.addf %30, %32 : vector<8x128xf32>
      %34 = arith.truncf %33 : vector<8x128xf32> to vector<8x128xbf16>
      %c0_28 = arith.constant 0 : index
      %c0_29 = arith.constant 0 : index
      %35 = vector.load %arg11[%c0_28, %c0_29] : memref<128x128xbf16, #tpu.memory_space<vmem>>, vector<128x128xbf16>
      %cst_30 = arith.constant dense<0.000000e+00> : vector<8x128xf32>
      %36 = tpu.matmul %34, %35, %cst_30 {dimension_numbers = #tpu.dot_dimension_numbers<[1], [0], [0], [1], [0, 0, 1, 1], [], []>} : vector<8x128xbf16>, vector<128x128xbf16>, vector<8x128xf32> -> vector<8x128xf32>
      %c0_31 = arith.constant 0 : index
      %c0_32 = arith.constant 0 : index
      %37 = vector.load %arg12[%c0_31, %c0_32] : memref<1x128xf32, #tpu.memory_space<vmem>>, vector<1x128xf32>
      %38 = vector.broadcast %37 : vector<1x128xf32> to vector<8x128xf32>
      %39 = arith.addf %36, %38 : vector<8x128xf32>
      %c0_33 = arith.constant 0 : index
      %c0_34 = arith.constant 0 : index
      %40 = vector.load %arg13[%c0_33, %c0_34] : memref<8x128xf32, #tpu.memory_space<vmem>>, vector<8x128xf32>
      tpu.vector_store %arg13[%c0_33, %c0_34], %39 {strides = array<i32>} : memref<8x128xf32, #tpu.memory_space<vmem>>, vector<8x128xf32>,
    } else {
    }
    return
  }
  func.func @transform_0(%arg0: i32, %arg1: i32) -> (i32, i32) {
    %c0_i32 = arith.constant 0 : i32
    return %arg0, %arg1 : i32, i32
  }
  func.func @transform_1(%arg0: i32, %arg1: i32) -> (i32, i32) {
    %c0_i32 = arith.constant 0 : i32
    %c0_i32_0 = arith.constant 0 : i32
    return %arg1, %c0_i32 : i32, i32
  }
  func.func @transform_2(%arg0: i32, %arg1: i32) -> (i32, i32) {
    %c0_i32 = arith.constant 0 : i32
    %c0_i32_0 = arith.constant 0 : i32
    %c0_i32_1 = arith.constant 0 : i32
    return %c0_i32, %c0_i32_0 : i32, i32
  }
  func.func @transform_3(%arg0: i32, %arg1: i32) -> (i32, i32) {
    %c0_i32 = arith.constant 0 : i32
    %c0_i32_0 = arith.constant 0 : i32
    %c0_i32_1 = arith.constant 0 : i32
    return %c0_i32, %c0_i32_0 : i32, i32
  }
  func.func @transform_4(%arg0: i32, %arg1: i32) -> (i32, i32) {
    %c0_i32 = arith.constant 0 : i32
    %c0_i32_0 = arith.constant 0 : i32
    %c0_i32_1 = arith.constant 0 : i32
    return %c0_i32, %c0_i32_0 : i32, i32
  }
  func.func @transform_5(%arg0: i32, %arg1: i32) -> (i32, i32) {
    %c0_i32 = arith.constant 0 : i32
    %c0_i32_0 = arith.constant 0 : i32
    %c0_i32_1 = arith.constant 0 : i32
    return %c0_i32, %c0_i32_0 : i32, i32
  }
  func.func @transform_6(%arg0: i32, %arg1: i32) -> (i32, i32) {
    %c0_i32 = arith.constant 0 : i32
    %c0_i32_0 = arith.constant 0 : i32
    %c0_i32_1 = arith.constant 0 : i32
    return %c0_i32, %c0_i32_0 : i32, i32
  }
  func.func @transform_7(%arg0: i32, %arg1: i32) -> (i32, i32) {
    %c0_i32 = arith.constant 0 : i32
    %c0_i32_0 = arith.constant 0 : i32
    %c0_i32_1 = arith.constant 0 : i32
    return %c0_i32, %c0_i32_0 : i32, i32
  }
  func.func @transform_8(%arg0: i32, %arg1: i32) -> (i32, i32) {
    %c0_i32 = arith.constant 0 : i32
    %c0_i32_0 = arith.constant 0 : i32
    %c0_i32_1 = arith.constant 0 : i32
    return %c0_i32, %c0_i32_0 : i32, i32
  }
  func.func @transform_9(%arg0: i32, %arg1: i32) -> (i32, i32) {
    %c0_i32 = arith.constant 0 : i32
    %c0_i32_0 = arith.constant 0 : i32
    %c0_i32_1 = arith.constant 0 : i32
    return %c0_i32, %c0_i32_0 : i32, i32
  }
  func.func @transform_10(%arg0: i32, %arg1: i32) -> (i32, i32) {
    %c0_i32 = arith.constant 0 : i32
    %c0_i32_0 = arith.constant 0 : i32
    %c0_i32_1 = arith.constant 0 : i32
    return %c0_i32, %c0_i32_0 : i32, i32
  }
  func.func @transform_11(%arg0: i32, %arg1: i32) -> (i32, i32) {
    %c0_i32 = arith.constant 0 : i32
    %c0_i32_0 = arith.constant 0 : i32
    return %arg0, %c0_i32 : i32, i32
  }
}

</mosaic_0001>

<bundles_post_ra>
// kernel: tpu_custom_call.1
= control target key start
LH: loop header
LB: loop body
LE: loop exit
PB: predicated region body
PF: predicated region fallthrough
CT: control target
= control target key end

     0   :  { %s7878_s0 = inlined_call_operand.hbm [shape: bf16[8,1024], index: 0, kind: input, shape index: {}]   ;;  %s7879_s1 = inlined_call_operand.hbm [shape: bf16[1024,1024], index: 1, kind: input, shape index: {}]   ;;  %s7880_s2 = inlined_call_operand.hbm [shape: f32[1,1024], index: 2, kind: input, shape index: {}]   ;;  %s7881_s3 = inlined_call_operand.hbm [shape: bf16[1024,512], index: 3, kind: input, shape index: {}]   ;;  %s7882_s4 = inlined_call_operand.hbm [shape: f32[1,512], index: 4, kind: input, shape index: {}]   ;;  %s7883_s5 = inlined_call_operand.hbm [shape: bf16[512,256], index: 5, kind: input, shape index: {}]   ;;  %s7884_s6 = inlined_call_operand.hbm [shape: f32[1,256], index: 6, kind: input, shape index: {}]   ;;  %s7885_s7 = inlined_call_operand.hbm [shape: bf16[256,128], index: 7, kind: input, shape index: {}]   ;;  %s7886_s8 = inlined_call_operand.hbm [shape: f32[1,128], index: 8, kind: input, shape index: {}]   ;;  %s7887_s9 = inlined_call_operand.hbm [shape: bf16[128,128], index: 9, kind: input, shape index: {}]   ;;  %s7888_s10 = inlined_call_operand.hbm [shape: f32[1,128], index: 10, kind: input, shape index: {}]   ;;  %s7889_s11 = inlined_call_operand.hbm [shape: f32[8,128], index: 11, kind: output, shape index: {}]  }
   0x1   :  { %7892 = sst [smem:[#allocation30_spill]] %s7878_s0 }
   0x2   :  { %7893 = sst [smem:[#allocation31_spill]] %s7880_s2 }
   0x3   :  { %7894 = sst [smem:[#allocation32_spill]] %s7881_s3 }
   0x4   :  { %7895 = sst [smem:[#allocation33_spill]] %s7882_s4 }
   0x5   :  { %7896 = sst [smem:[#allocation34_spill]] %s7883_s5 }
   0x6   :  { %7897 = sst [smem:[#allocation35_spill]] %s7884_s6 }
   0x7   :  { %7898 = sst [smem:[#allocation36_spill]] %s7889_s11 }
   0x8   :  { %16 = vsyncpa [#allocation4], 0 }
   0x9   :  { %18 = vsyncpa [#allocation4 + $0x1], 0 }
   0xa   :  { %19 = vsyncpa [#allocation7], 0 }
   0xb   :  { %21 = vsyncpa [#allocation7 + $0x1], 0 }
   0xc   :  { %22 = vsyncpa [#allocation10], 0 }
   0xd   :  { %23 = vsyncpa [#allocation13], 0 }
   0xe   :  { %24 = vsyncpa [#allocation16], 0 }
   0xf   :  { %25 = vsyncpa [#allocation19], 0 }
  0x10   :  { %26 = vsyncpa [#allocation5], 0  ;;  %s7252_s17 = smov 0   ;;  %s7254_s18 = smov 0  }
  0x11   :  { %s7256_s19 = smov 0   ;;  %s7258_s20 = smov 0  }
  0x12   :  { %s7260_s21 = smov 0   ;;  %s7262_s22 = smov 0  }
  0x13 LB: > { %s7283_s23 = sadd.s32 4294967295, %s7167_s22   ;;  %p5402_p0 = scmp.ge.s32.totalorder %s7167_s22, 1  ;;  %s7167_s22 = sphi %s7262_s22, %s32_s22   ;;  %s7163_s21 = sphi %s7260_s21, %s7928_s21   ;;  %s7159_s20 = sphi %s7258_s20, %s7927_s20   ;;  %s7155_s19 = sphi %s7256_s19, %s7926_s19   ;;  %s7151_s18 = sphi %s7254_s18, %s7925_s18   ;;  %s7147_s17 = sphi %s7252_s17, %s7924_s17  }
  0x14   : > { %p7890_p1 = scmp.eq.s32.totalorder %s7283_s23, 0  ;;  %p318_p2 = scmp.lt.s32.totalorder %s7167_s22, 3 }
  0x15   : > { %s7169_s25 = smov [#allocation8]   ;;  %s7170_s27 = smov [#allocation9]  }
  0x16   : > { %p7288_p3 = pnand %p5402_p0, %p318_p2  ;;  %s331_s26 = sshll.u32 %s7169_s25, 4  ;;  %s332_s26 = int_to_ptr.vmem [resolvable:$true] %s331_s26 }
  0x17   : > { %s341_s28 = sshll.u32 %s7170_s27, 4  ;;  %s7171_s30 = smov [#allocation12]   ;;  %s342_s28 = int_to_ptr.vmem [resolvable:$true] %s341_s28 }
  0x18   : > { %s7899_s24 = scalar_select %p7288_p3, 1, 0 }
  0x19   : > { %p6142_p4 = pneg %p7288_p3  ;;  %s365_s12 = sshll.u32 %s7171_s30, 4  ;;  %s366_s12 = int_to_ptr.vmem [resolvable:$true] %s365_s12 }
  0x1a   : > { %s6786_s14 = scalar_lea.vmem %s332_s26, 128  ;;  %p6794_p10 = scmp.lt.s32.totalorder %s332_s26, %s332_s26 }
  0x1b   : > { %p7296_p5 = pnand %p6142_p4, %p7890_p1  ;;  %p6787_p7 = scmp.ne.s32.totalorder %s332_s26, %s6786_s14 }
  0x1c   : > { %p6795_p11 = scmp.lt.s32.totalorder %s6786_s14, %s6786_s14 }
  0x1d   : > { %p7302_p6 = pneg %p7296_p5 }
  0x1e   : > { %p6796_p12 = por %p6795_p11, %p6794_p10 }
  0x1f   : > { %p6789_p8 = pnand %p6787_p7, %p7302_p6 }
  0x21   : > { %p6790_p9 = pneg %p6789_p8 }
  0x23   : > { %p6797_p13 = pnand %p6796_p12, %p6790_p9 }
  0x25   : > { %6800 = shalt.err (!%p6797_p13)
}
  0x26   : > { %s7902_s2 = sld [smem:[#allocation31_spill]]  ;;  %s6812_s25 = scalar_lea.vmem %s342_s28, 32768 }
  0x27   : > { %p6813_p0 = scmp.ne.s32.totalorder %s342_s28, %s6812_s25  ;;  %p6820_p1 = scmp.lt.s32.totalorder %s342_s28, %s342_s28 }
  0x28   : > { %p6821_p7 = scmp.lt.s32.totalorder %s6812_s25, %s6812_s25 }
  0x29   : > { %p6815_p2 = pnand %p6813_p0, %p7302_p6 }
  0x2a   : > { %p6822_p8 = por %p6821_p7, %p6820_p1 }
  0x2b   : > { %p6816_p4 = pneg %p6815_p2 }
  0x2c   : > { %6145 = dma.hbm_to_vmem [thread:$0]  (!%p7296_p5), %s7902_s2, 128, %s332_s26, [#allocation7]  }
  0x2d   : > { %p6823_p3 = pnand %p6822_p8, %p6816_p4 }
  0x2f   : > { %6826 = shalt.err (!%p6823_p3)
}
  0x30   : > { %s7172_s27 = smov 256   ;;  %s7173_s30 = smov 16  }
  0x31   : > { %s7903_s3 = sld [smem:[#allocation32_spill]]  ;;  %s6838_s26 = scalar_lea.vmem %s366_s12, 8192 }
  0x32   : > { %p6839_p9 = scmp.ne.s32.totalorder %s366_s12, %s6838_s26  ;;  %p6846_p12 = scmp.lt.s32.totalorder %s366_s12, %s366_s12 }
  0x33   : > { %p6847_p13 = scmp.lt.s32.totalorder %s6838_s26, %s6838_s26 }
  0x34   : > { %p6841_p10 = pnand %p6839_p9, %p7302_p6 }
  0x35   : > { %p6848_p1 = por %p6847_p13, %p6846_p12 }
  0x36   : > { %p6842_p11 = pneg %p6841_p10 }
  0x37   : > { %6148 = dma.hbm_to_vmem [thread:$0]  (!%p7296_p5), %s7903_s3, 32768, %s342_s28, [#allocation10], %s7172_s27, %s7172_s27, %s7173_s30  }
  0x38   : > { %p6849_p0 = pnand %p6848_p1, %p6842_p11 }
  0x3a   : > { %6852 = shalt.err (!%p6849_p0)
}
  0x3b   : > { %s7174_s15 = smov 128   ;;  %s7175_s16 = smov 8  }
  0x3c   : > { %s7904_s5 = sld [smem:[#allocation34_spill]]  ;;  %s7176_s11 = smov [#allocation15]  }
  0x3d   : > { %s389_s28 = sshll.u32 %s7176_s11, 4  ;;  %s390_s28 = int_to_ptr.vmem [resolvable:$true] %s389_s28 }
  0x3e   : > { %s6864_s27 = scalar_lea.vmem %s390_s28, 2048  ;;  %p6872_p7 = scmp.lt.s32.totalorder %s390_s28, %s390_s28 }
  0x3f   : > { %p6865_p3 = scmp.ne.s32.totalorder %s390_s28, %s6864_s27  ;;  %p6873_p8 = scmp.lt.s32.totalorder %s6864_s27, %s6864_s27 }
  0x41   : > { %p6867_p2 = pnand %p6865_p3, %p7302_p6  ;;  %p6874_p9 = por %p6873_p8, %p6872_p7 }
  0x42   : > { %6154 = dma.hbm_to_vmem [thread:$0]  (!%p7296_p5), %s7904_s5, 8192, %s366_s12, [#allocation13], %s7174_s15, %s7174_s15, %s7175_s16  }
  0x43   : > { %p6868_p4 = pneg %p6867_p2 }
  0x45   : > { %p6875_p10 = pnand %p6874_p9, %p6868_p4 }
  0x47   : > { %6878 = shalt.err (!%p6875_p10)
}
  0x48   : > { %s7177_s30 = smov 64   ;;  %s7178_s14 = smov 4  }
  0x49   : > { %6160 = dma.hbm_to_vmem [thread:$0]  (!%p7296_p5), %s7885_s7, 2048, %s390_s28, [#allocation16], %s7177_s30, %s7177_s30, %s7178_s14  }
  0x4a   : > { %s7179_s26 = smov [#allocation18]   ;;  %s7180_s16 = smov [#allocation11]  }
  0x4b   : > { %s413_s15 = sshll.u32 %s7179_s26, 4  ;;  %s355_s25 = sshll.u32 %s7180_s16, 4  ;;  %s414_s15 = int_to_ptr.vmem [resolvable:$true] %s413_s15  ;;  %s356_s25 = int_to_ptr.vmem [resolvable:$true] %s355_s25 }
  0x4c   : > { %s6890_s11 = scalar_lea.vmem %s414_s15, 1024  ;;  %p6898_p1 = scmp.lt.s32.totalorder %s414_s15, %s414_s15 }
  0x4d   : > { %p6891_p11 = scmp.ne.s32.totalorder %s414_s15, %s6890_s11  ;;  %p6899_p0 = scmp.lt.s32.totalorder %s6890_s11, %s6890_s11 }
  0x4f   : > { %p6893_p12 = pnand %p6891_p11, %p7302_p6  ;;  %p6900_p3 = por %p6899_p0, %p6898_p1 }
  0x51   : > { %p6894_p13 = pneg %p6893_p12 }
  0x53   : > { %p6901_p2 = pnand %p6900_p3, %p6894_p13 }
  0x55   : > { %6904 = shalt.err (!%p6901_p2)
}
  0x56   : > { %6166 = dma.hbm_to_vmem [thread:$0]  (!%p7296_p5), %s7887_s9, 1024, %s414_s15, [#allocation19], %s7177_s30, %s7177_s30, %s7178_s14  }
  0x57   : > { %s6916_s2 = scalar_lea.vmem %s356_s25, 64  ;;  %p6924_p9 = scmp.lt.s32.totalorder %s356_s25, %s356_s25 }
  0x58   : > { %p6917_p4 = scmp.ne.s32.totalorder %s356_s25, %s6916_s2  ;;  %p6925_p10 = scmp.lt.s32.totalorder %s6916_s2, %s6916_s2 }
  0x5a   : > { %p6919_p7 = pnand %p6917_p4, %p7302_p6  ;;  %p6926_p11 = por %p6925_p10, %p6924_p9 }
  0x5c   : > { %p6920_p8 = pneg %p6919_p7 }
  0x5e   : > { %p6927_p12 = pnand %p6926_p11, %p6920_p8 }
  0x60   : > { %6930 = shalt.err (!%p6927_p12)
}
  0x61   : > { %s7905_s4 = sld [smem:[#allocation33_spill]]  ;;  %s7181_s16 = smov [#allocation14]  }
  0x62   : > { %s379_s11 = sshll.u32 %s7181_s16, 4  ;;  %s7182_s30 = smov [#allocation17]   ;;  %s380_s11 = int_to_ptr.vmem [resolvable:$true] %s379_s11 }
  0x63   : > { %s403_s14 = sshll.u32 %s7182_s30, 4  ;;  %s6942_s15 = scalar_lea.vmem %s380_s11, 32  ;;  %s404_s14 = int_to_ptr.vmem [resolvable:$true] %s403_s14 }
  0x64   : > { %p6943_p13 = scmp.ne.s32.totalorder %s380_s11, %s6942_s15  ;;  %p6950_p3 = scmp.lt.s32.totalorder %s380_s11, %s380_s11 }
  0x65   : > { %p6951_p2 = scmp.lt.s32.totalorder %s6942_s15, %s6942_s15 }
  0x66   : > { %p6945_p1 = pnand %p6943_p13, %p7302_p6 }
  0x67   : > { %6151 = dma.hbm_to_vmem [thread:$0]  (!%p7296_p5), %s7905_s4, 64, %s356_s25, [#allocation10]  }
  0x68   : > { %p6946_p0 = pneg %p6945_p1  ;;  %p6952_p4 = por %p6951_p2, %p6950_p3 }
  0x6a   : > { %p6953_p7 = pnand %p6952_p4, %p6946_p0 }
  0x6c   : > { %6956 = shalt.err (!%p6953_p7)
}
  0x6d   : > { %s7906_s6 = sld [smem:[#allocation35_spill]]  ;;  %s6968_s28 = scalar_lea.vmem %s404_s14, 16 }
  0x6e   : > { %p6969_p8 = scmp.ne.s32.totalorder %s404_s14, %s6968_s28  ;;  %s6975_s2 = scalar_lea.vmem %s404_s14, 32 }
  0x6f   : > { %p6976_p11 = scmp.lt.s32.totalorder %s404_s14, %s404_s14  ;;  %p6977_p12 = scmp.lt.s32.totalorder %s6975_s2, %s6968_s28 }
  0x70   : > { %p6971_p9 = pnand %p6969_p8, %p7302_p6 }
  0x71   : > { %p6978_p13 = por %p6977_p12, %p6976_p11 }
  0x72   : > { %p6972_p10 = pneg %p6971_p9 }
  0x73   : > { %6157 = dma.hbm_to_vmem [thread:$0]  (!%p7296_p5), %s7906_s6, 32, %s380_s11, [#allocation13]  }
  0x74   : > { %p6979_p1 = pnand %p6978_p13, %p6972_p10 }
  0x76   : > { %6982 = shalt.err (!%p6979_p1)
}
  0x77   : > { %6163 = dma.hbm_to_vmem [thread:$0]  (!%p7296_p5), %s7886_s8, 16, %s404_s14, [#allocation16]  }
  0x78   : > { %s7183_s16 = smov [#allocation20]  }
  0x79   : > { %s427_s11 = sshll.u32 %s7183_s16, 4  ;;  %s428_s11 = int_to_ptr.vmem [resolvable:$true] %s427_s11 }
  0x7a   : > { %s6994_s30 = scalar_lea.vmem %s428_s11, 16  ;;  %s7001_s15 = scalar_lea.vmem %s428_s11, 32 }
  0x7b   : > { %p6995_p0 = scmp.ne.s32.totalorder %s428_s11, %s6994_s30  ;;  %p7002_p4 = scmp.lt.s32.totalorder %s428_s11, %s428_s11 }
  0x7c   : > { %p7003_p7 = scmp.lt.s32.totalorder %s7001_s15, %s6994_s30 }
  0x7d   : > { %p6997_p3 = pnand %p6995_p0, %p7302_p6 }
  0x7e   : > { %p7004_p8 = por %p7003_p7, %p7002_p4 }
  0x7f   : > { %p6998_p2 = pneg %p6997_p3 }
  0x81   : > { %p7005_p9 = pnand %p7004_p8, %p6998_p2 }
  0x83   : > { %7008 = shalt.err (!%p7005_p9)
}
  0x84   : > { %6169 = dma.hbm_to_vmem [thread:$0]  (!%p7296_p5), %s7888_s10, 16, %s428_s11, [#allocation19]  }
  0x85   : > { %s41_s13 = sadd.s32 1, %s7163_s21  ;;  %s53_s29 = sadd.s32 1, %s7155_s19 }
  0x86   : > { %p42_p6 = scmp.ge.s32.totalorder %s41_s13, 2  ;;  %p60_p10 = scmp.ne.s32.totalorder %s7155_s19, %s7151_s18 }
  0x87   : > { %p61_p11 = scmp.eq.s32.totalorder %s7167_s22, 0  ;;  %p66_p13 = scmp.ne.s32.totalorder %s7151_s18, %s7147_s17 }
  0x88   : > { %s7930_s13 = smov (%p42_p6, %s41_s13), 0  ;;  %p6186_p1 = scmp.lt.s32.totalorder %s7167_s22, 2 }
  0x89   : > { %p7376_p12 = por %p61_p11, %p60_p10  ;;  %s49_s28 = ssub.s32 %s7163_s21, %s7930_s13 }
  0x8a   : > { %p51_p0 = scmp.eq.s32.totalorder %s49_s28, 0  ;;  %p7908_p3 = scmp.eq.s32.totalorder %s7283_s23, 0 }
  0x8b   : > { %s438_s12 = sand.u32 1, %s7155_s19   ;;  %s6044_s26 = sshll.u32 %s7163_s21, 8 }
  0x8c   : > { %p7387_p2 = por %p7908_p3, %p66_p13  ;;  %s5413_s11 = sshll.u32 %s438_s12, 4 }
  0x8d   : > { %s7394_s16 = scalar_select %p51_p0, %s7155_s19, %s53_s29  }
  0x8e   : > { %s7910_s0 = sld [smem:[#allocation30_spill]]  ;;  %s442_s25 = scalar_lea.vmem [#allocation3], %s5413_s11 }
  0x8f   : > { %s452_s3 = sshll.u32 %s442_s25, 4  ;;  %p7401_p5 = pnand %p6186_p1, %p7376_p12  ;;  %s453_s3 = int_to_ptr.vmem [resolvable:$true] %s452_s3 }
  0x90   : > { %s5416_s28 = sshll.u32 %s438_s12, 11  ;;  %s439_s4 = scalar_lea.sflag [#allocation4], %s438_s12 }
  0x91   : > { %p7011_p4 = pneg %p7401_p5  ;;  %s7022_s29 = scalar_lea.vmem %s453_s3, 256 }
  0x92   : > { %p7023_p7 = scmp.ne.s32.totalorder %s453_s3, %s7022_s29 }
  0x94   : > { %s450_s27 = scalar_lea.hbm %s7910_s0, %s6044_s26  ;;  %p7025_p8 = pnand %p7023_p7, %p7011_p4 }
  0x95   : > { %s7184_s26 = smov [#allocation3]  }
  0x96   : > { %p7026_p9 = pneg %p7025_p8  ;;  %s7027_s11 = sshll.u32 %s7184_s26, 4  ;;  %s7028_s11 = int_to_ptr.vmem [resolvable:$false] %s7027_s11 }
  0x97   : > { %s7029_s14 = scalar_lea.vmem %s7028_s11, 512  ;;  %p7030_p6 = scmp.lt.s32.totalorder %s453_s3, %s7028_s11 }
  0x98   : > { %p7031_p10 = scmp.lt.s32.totalorder %s7029_s14, %s7022_s29 }
  0x9a   : > { %p7032_p11 = por %p7031_p10, %p7030_p6 }
  0x9c   : > { %p7033_p12 = pnand %p7032_p11, %p7026_p9 }
  0x9e   : > { %7036 = shalt.err (!%p7033_p12)
}
  0x9f   : > { %6173 = dma.hbm_to_vmem [thread:$0]  (!%p7401_p5), %s450_s27, 256, %s453_s3, %s439_s4  }
  0xa0   : > { %s6046_s12 = sshll.u32 %s7163_s21, 15  ;;  %s463_s30 = scalar_lea.vmem [#allocation6], %s5416_s28 }
  0xa1   : > { %s471_s15 = sshll.u32 %s463_s30, 4  ;;  %s459_s25 = sand.u32 1, %s7167_s22   ;;  %s472_s15 = int_to_ptr.vmem [resolvable:$true] %s471_s15 }
  0xa2   : > { %s470_s5 = scalar_lea.hbm %s7879_s1, %s6046_s12  ;;  %s460_s11 = scalar_lea.sflag [#allocation7], %s459_s25 }
  0xa3   : > { %s7050_s29 = scalar_lea.vmem %s472_s15, 32768  ;;  %s7185_s14 = smov [#allocation6]  }
  0xa4   : > { %p7051_p13 = scmp.ne.s32.totalorder %s472_s15, %s7050_s29  ;;  %s7055_s6 = sshll.u32 %s7185_s14, 4  ;;  %s7056_s6 = int_to_ptr.vmem [resolvable:$false] %s7055_s6 }
  0xa5   : > { %s7057_s3 = scalar_lea.vmem %s7056_s6, 65536  ;;  %p7058_p3 = scmp.lt.s32.totalorder %s472_s15, %s7056_s6 }
  0xa6   : > { %p7053_p1 = pnand %p7051_p13, %p7011_p4  ;;  %p7059_p7 = scmp.lt.s32.totalorder %s7057_s3, %s7050_s29 }
  0xa8   : > { %p7054_p0 = pneg %p7053_p1  ;;  %p7060_p8 = por %p7059_p7, %p7058_p3 }
  0xaa   : > { %p7061_p9 = pnand %p7060_p8, %p7054_p0 }
  0xac   : > { %7064 = shalt.err (!%p7061_p9)
}
  0xad   : > { %s7186_s4 = smov 512   ;;  %s7187_s0 = smov 32  }
  0xae   : > { %6176 = dma.hbm_to_vmem [thread:$0]  (!%p7401_p5), %s470_s5, 32768, %s472_s15, %s460_s11, %s7186_s4, %s7186_s4, %s7187_s0  }
  0xaf   : > { %p7912_p6 = scmp.ne.s32.totalorder %s7899_s24, 0 }
  0xb0   : > { %s485_s27 = sand.u32 (!%p7912_p6), 1, %s7151_s18  }
  0xb1   : > { %483 = sbr.rel (%p7912_p6) target bundleno = 1758 (0x6de), region = 64  ;;  %s5421_s28 = sshll.u32 (!%p7912_p6), %s485_s27, 4 }
  0xb2   : > { %s486_s12 = scalar_lea.sflag (!%p7912_p6), [#allocation4], %s485_s27  ;;  %s7425_s30 = scalar_lea.vmem (!%p7912_p6), [#allocation3], %s5421_s28 }
  0xb6   : > { %7114 = dma.done.wait (%p7387_p2), %s486_s12, 256  }
  0xb7   : > { %7116 = vsyncadd (%p7387_p2), %s486_s12, 4294967040  ;;  %s494_s6 = sand.u32 1, %s7283_s23   ;;  %s5422_s17 = sshll.u32 %s485_s27, 11 }
  0xb8   : > { %s495_s5 = scalar_lea.sflag [#allocation7], %s494_s6  ;;  %s7432_s15 = scalar_lea.vmem [#allocation6], %s5422_s17 }
  0xb9   : > { %7118 = dma.done.wait (%p7387_p2), %s495_s5, 32768  }
  0xba   : > { %7120 = vsyncadd (%p7387_p2), %s495_s5, 4294934528  ;;  %p7913_p5 = scmp.eq.s32.totalorder %s7283_s23, 0 }
  0xbc   : > { %7122 = dma.done.wait (%p7913_p5), [#allocation7], 128   ;;  %p7914_p4 = pmov %p7913_p5 }
  0xbe   : > { %7124 = vsyncadd (%p7914_p4), [#allocation7], 4294967168  ;;  %p7915_p10 = pmov %p7914_p4 }
  0xbf   : > { %p7916_p11 = pmov %p7914_p4 }
  0xc0   : > { %7126 = dma.done.wait (%p7915_p10), [#allocation10], 32832  }
  0xc1   : > { %7128 = vsyncadd (%p7916_p11), [#allocation10], 4294934464  ;;  %p7917_p12 = pmov %p7914_p4 }
  0xc2   : > { %p7918_p13 = pmov %p7914_p4 }
  0xc3   : > { %7130 = dma.done.wait (%p7917_p12), [#allocation13], 8224  }
  0xc4   : > { %7132 = vsyncadd (%p7918_p13), [#allocation13], 4294959072  ;;  %p7919_p2 = pmov %p7914_p4 }
  0xc6   : > { %7134 = dma.done.wait (%p7919_p2), [#allocation16], 2064   ;;  %p7920_p1 = pmov %p7919_p2 }
  0xc8   : > { %7136 = vsyncadd (%p7920_p1), [#allocation16], 4294965232  ;;  %p7921_p0 = pmov %p7920_p1 }
  0xca   : > { %7138 = dma.done.wait (%p7921_p0), [#allocation19], 1040   ;;  %p7922_p3 = pmov %p7921_p0 }
  0xcb   : > { %p5432_p7 = scmp.ne.s32.totalorder %s7159_s20, 0 }
  0xcc   : > { %7140 = vsyncadd (%p7922_p3), [#allocation19], 4294966256 }
  0xcd   : > { %579 = sbr.rel (%p5432_p7) target bundleno = 215 (0xd7), region = 112 }
  0xd2   : > { %v7188_v0 = vmov 0.0  }
  0xd3   : > { %580 = vst [vmem:[#allocation2 + $0x30] sm:$0xff] %v7188_v0  ;;  %581 = vst [vmem:[#allocation2] sm:$0xff] %v7188_v0 }
  0xd4   : > { %582 = vst [vmem:[#allocation2 + $0x18] sm:$0xff] %v7188_v0  ;;  %583 = vst [vmem:[#allocation2 + $0x10] sm:$0xff] %v7188_v0 }
  0xd5   : > { %584 = vst [vmem:[#allocation2 + $0x8] sm:$0xff] %v7188_v0  ;;  %585 = vst [vmem:[#allocation2 + $0x20] sm:$0xff] %v7188_v0 }
  0xd6   : > { %586 = vst [vmem:[#allocation2 + $0x28] sm:$0xff] %v7188_v0  ;;  %587 = vst [vmem:[#allocation2 + $0x38] sm:$0xff] %v7188_v0 }
  0xd7 PF: > { %v654_v1 = vld [vmem:[%s7432_s15 + $0x1c0] sm:$0xff]  ;;  %v7491_v55 = vld [vmem:[%s7425_s30 + $0x8] sm:$0xff]  ;;  %p5693_p8 = scmp.ne.s32.totalorder %s7159_s20, 1 }
  0xd8   : > { %v658_v2 = vld [vmem:[%s7432_s15 + $0x1e0] sm:$0xff]  ;;  %v7501_v60 = vcombine.high %v7491_v55, %v7491_v55 }
  0xd9   : > { %v782_v3 = vld [vmem:[%s7432_s15 + $0x5c0] sm:$0xff]  ;;  %v5494_v4 = vcombine.high %v654_v1, %v658_v2  ;;  %v5493_v6 = vcombine.low %v654_v1, %v658_v2 }
  0xda   : > { %v786_v5 = vld [vmem:[%s7432_s15 + $0x5e0] sm:$0xff]  ;;  %2221 = vmatprep.mubr.bf16.mxu1 %v7501_v60 }
  0xdb   : > { %v646_v7 = vld [vmem:[%s7432_s15 + $0x180] sm:$0xff]  ;;  %v5622_v9 = vcombine.high %v782_v3, %v786_v5  ;;  %v5621_v10 = vcombine.low %v782_v3, %v786_v5  ;;  %2148 = vmatprep.subr.bf16.mxu0 %v5494_v4 }
  0xdc   : > { %v650_v8 = vld [vmem:[%s7432_s15 + $0x1a0] sm:$0xff]  ;;  %2149 = vmatpush1.bf16.msra.mxu0 %v5493_v6 }
  0xdd   : > { %v5486_v11 = vcombine.high %v646_v7, %v650_v8  ;;  %v774_v12 = vld [vmem:[%s7432_s15 + $0x580] sm:$0xff]  ;;  %2189 = vmatprep.subr.bf16.mxu1 %v5622_v9  ;;  %v5485_v19 = vcombine.low %v646_v7, %v650_v8 }
  0xde   : > { %v778_v13 = vld [vmem:[%s7432_s15 + $0x5a0] sm:$0xff]  ;;  %2190 = vmatpush1.bf16.msra.mxu1 %v5621_v10 }
  0xdf   : > { %v638_v14 = vld [vmem:[%s7432_s15 + $0x140] sm:$0xff]  ;;  %v5614_v15 = vcombine.high %v774_v12, %v778_v13  ;;  %2150 = vmatprep.subr.bf16.mxu0 %v5486_v11  ;;  %v5613_v20 = vcombine.low %v774_v12, %v778_v13 }
  0xe0   : > { %v642_v16 = vld [vmem:[%s7432_s15 + $0x160] sm:$0xff]  ;;  %2151 = vmatpush1.bf16.msra.mxu0 %v5485_v19 }
  0xe1   : > { %v766_v17 = vld [vmem:[%s7432_s15 + $0x540] sm:$0xff]  ;;  %v5478_v21 = vcombine.high %v638_v14, %v642_v16  ;;  %2191 = vmatprep.subr.bf16.mxu1 %v5614_v15  ;;  %v5477_v27 = vcombine.low %v638_v14, %v642_v16 }
  0xe2   : > { %v770_v18 = vld [vmem:[%s7432_s15 + $0x560] sm:$0xff]  ;;  %2192 = vmatpush1.bf16.msra.mxu1 %v5613_v20 }
  0xe3   : > { %v5606_v22 = vcombine.high %v766_v17, %v770_v18  ;;  %v630_v23 = vld [vmem:[%s7432_s15 + $0x100] sm:$0xff]  ;;  %2152 = vmatprep.subr.bf16.mxu0 %v5478_v21  ;;  %v5605_v28 = vcombine.low %v766_v17, %v770_v18 }
  0xe4   : > { %v634_v24 = vld [vmem:[%s7432_s15 + $0x120] sm:$0xff]  ;;  %2153 = vmatpush1.bf16.msra.mxu0 %v5477_v27 }
  0xe5   : > { %v758_v25 = vld [vmem:[%s7432_s15 + $0x500] sm:$0xff]  ;;  %v5470_v29 = vcombine.high %v630_v23, %v634_v24  ;;  %2193 = vmatprep.subr.bf16.mxu1 %v5606_v22  ;;  %v5469_v35 = vcombine.low %v630_v23, %v634_v24 }
  0xe6   : > { %v762_v26 = vld [vmem:[%s7432_s15 + $0x520] sm:$0xff]  ;;  %2194 = vmatpush1.bf16.msra.mxu1 %v5605_v28 }
  0xe7   : > { %v5598_v30 = vcombine.high %v758_v25, %v762_v26  ;;  %v622_v31 = vld [vmem:[%s7432_s15 + $0xc0] sm:$0xff]  ;;  %2154 = vmatprep.subr.bf16.mxu0 %v5470_v29  ;;  %v5597_v36 = vcombine.low %v758_v25, %v762_v26 }
  0xe8   : > { %v626_v32 = vld [vmem:[%s7432_s15 + $0xe0] sm:$0xff]  ;;  %2155 = vmatpush1.bf16.msra.mxu0 %v5469_v35 }
  0xe9   : > { %v750_v33 = vld [vmem:[%s7432_s15 + $0x4c0] sm:$0xff]  ;;  %v5462_v37 = vcombine.high %v622_v31, %v626_v32  ;;  %2195 = vmatprep.subr.bf16.mxu1 %v5598_v30  ;;  %v5461_v43 = vcombine.low %v622_v31, %v626_v32 }
  0xea   : > { %v754_v34 = vld [vmem:[%s7432_s15 + $0x4e0] sm:$0xff]  ;;  %2196 = vmatpush1.bf16.msra.mxu1 %v5597_v36 }
  0xeb   : > { %v5590_v38 = vcombine.high %v750_v33, %v754_v34  ;;  %v614_v39 = vld [vmem:[%s7432_s15 + $0x80] sm:$0xff]  ;;  %2156 = vmatprep.subr.bf16.mxu0 %v5462_v37  ;;  %v5589_v44 = vcombine.low %v750_v33, %v754_v34 }
  0xec   : > { %v618_v40 = vld [vmem:[%s7432_s15 + $0xa0] sm:$0xff]  ;;  %2157 = vmatpush1.bf16.msra.mxu0 %v5461_v43 }
  0xed   : > { %v742_v41 = vld [vmem:[%s7432_s15 + $0x480] sm:$0xff]  ;;  %v5454_v45 = vcombine.high %v614_v39, %v618_v40  ;;  %2197 = vmatprep.subr.bf16.mxu1 %v5590_v38  ;;  %v5453_v51 = vcombine.low %v614_v39, %v618_v40 }
  0xee   : > { %v746_v42 = vld [vmem:[%s7432_s15 + $0x4a0] sm:$0xff]  ;;  %2198 = vmatpush1.bf16.msra.mxu1 %v5589_v44 }
  0xef   : > { %v5582_v46 = vcombine.high %v742_v41, %v746_v42  ;;  %v606_v47 = vld [vmem:[%s7432_s15 + $0x40] sm:$0xff]  ;;  %2158 = vmatprep.subr.bf16.mxu0 %v5454_v45  ;;  %v5581_v52 = vcombine.low %v742_v41, %v746_v42 }
  0xf0   : > { %v610_v48 = vld [vmem:[%s7432_s15 + $0x60] sm:$0xff]  ;;  %2159 = vmatpush1.bf16.msra.mxu0 %v5453_v51 }
  0xf1   : > { %v734_v49 = vld [vmem:[%s7432_s15 + $0x440] sm:$0xff]  ;;  %v5446_v53 = vcombine.high %v606_v47, %v610_v48  ;;  %2199 = vmatprep.subr.bf16.mxu1 %v5582_v46  ;;  %v5445_v63 = vcombine.low %v606_v47, %v610_v48 }
  0xf2   : > { %v738_v50 = vld [vmem:[%s7432_s15 + $0x460] sm:$0xff]  ;;  %2200 = vmatpush1.bf16.msra.mxu1 %v5581_v52 }
  0xf3   : > { %v7488_v54 = vld [vmem:[%s7425_s30] sm:$0xff]  ;;  %v5574_v56 = vcombine.high %v734_v49, %v738_v50  ;;  %2160 = vmatprep.subr.bf16.mxu0 %v5446_v53  ;;  %v5573_v0 = vcombine.low %v734_v49, %v738_v50 }
  0xf4   : > { %v598_v57 = vld [vmem:[%s7432_s15] sm:$0xff]  ;;  %v7497_v59 = vcombine.high %v7488_v54, %v7488_v54  ;;  %2161 = vmatpush1.bf16.msra.mxu0 %v5445_v63 }
  0xf5   : > { %v602_v58 = vld [vmem:[%s7432_s15 + $0x20] sm:$0xff]  ;;  %2201 = vmatprep.subr.bf16.mxu1 %v5574_v56 }
  0xf6   : > { %v726_v61 = vld [vmem:[%s7432_s15 + $0x400] sm:$0xff]  ;;  %2180 = vmatprep.mubr.bf16.mxu0 %v7497_v59  ;;  %v5438_v1 = vcombine.high %v598_v57, %v602_v58  ;;  %v5437_v7 = vcombine.low %v598_v57, %v602_v58  ;;  %2202 = vmatpush1.bf16.msra.mxu1 %v5573_v0 }
  0xf7   : > { %v730_v62 = vld [vmem:[%s7432_s15 + $0x420] sm:$0xff] }
  0xf8   : > { %v5566_v2 = vcombine.high %v726_v61, %v730_v62  ;;  %v718_v3 = vld [vmem:[%s7432_s15 + $0x3c0] sm:$0xff]  ;;  %2162 = vmatprep.subr.bf16.mxu0 %v5438_v1  ;;  %v5565_v8 = vcombine.low %v726_v61, %v730_v62 }
  0xf9   : > { %v722_v4 = vld [vmem:[%s7432_s15 + $0x3e0] sm:$0xff]  ;;  %2163 = vmatpush1.bf16.msra.mxu0 %v5437_v7  ;;  %v655_v7 = vld [vmem:[%s7432_s15 + $0x1c8] sm:$0xff] }
  0xfa   : > { %v846_v5 = vld [vmem:[%s7432_s15 + $0x7c0] sm:$0xff]  ;;  %v5558_v9 = vcombine.high %v718_v3, %v722_v4  ;;  %2203 = vmatprep.subr.bf16.mxu1 %v5566_v2  ;;  %v5557_v15 = vcombine.low %v718_v3, %v722_v4 }
  0xfb   : > { %v850_v6 = vld [vmem:[%s7432_s15 + $0x7e0] sm:$0xff]  ;;  %2204 = vmatpush1.bf16.msra.mxu1 %v5565_v8  ;;  %v659_v8 = vld [vmem:[%s7432_s15 + $0x1e8] sm:$0xff] }
  0xfc   : > { %v5686_v10 = vcombine.high %v846_v5, %v850_v6  ;;  %v710_v11 = vld [vmem:[%s7432_s15 + $0x380] sm:$0xff]  ;;  %2164 = vmatprep.subr.bf16.mxu0 %v5558_v9  ;;  %v5685_v16 = vcombine.low %v846_v5, %v850_v6  ;;  %v783_v9 = vld [vmem:[%s7432_s15 + $0x5c8] sm:$0xff] }
  0xfd   : > { %v714_v12 = vld [vmem:[%s7432_s15 + $0x3a0] sm:$0xff]  ;;  %2165 = vmatpush2.bf16.msra.mxu0 %v5557_v15  ;;  %v647_v15 = vld [vmem:[%s7432_s15 + $0x188] sm:$0xff] }
  0xfe   : > { %v838_v13 = vld [vmem:[%s7432_s15 + $0x780] sm:$0xff]  ;;  %v5550_v17 = vcombine.high %v710_v11, %v714_v12  ;;  %2205 = vmatprep.subr.bf16.mxu1 %v5686_v10  ;;  %v5549_v23 = vcombine.low %v710_v11, %v714_v12  ;;  %v787_v10 = vld [vmem:[%s7432_s15 + $0x5e8] sm:$0xff] }
  0xff   : > { %v842_v14 = vld [vmem:[%s7432_s15 + $0x7a0] sm:$0xff]  ;;  %2206 = vmatpush2.bf16.msra.mxu1 %v5685_v16  ;;  %v651_v16 = vld [vmem:[%s7432_s15 + $0x1a8] sm:$0xff] }
 0x100   : > { %v5678_v18 = vcombine.high %v838_v13, %v842_v14  ;;  %v702_v19 = vld [vmem:[%s7432_s15 + $0x340] sm:$0xff]  ;;  %2166 = vmatprep.subr.bf16.mxu0 %v5550_v17  ;;  %v5677_v24 = vcombine.low %v838_v13, %v842_v14  ;;  %v5496_v13 = vcombine.high %v655_v7, %v659_v8  ;;  %v5624_v14 = vcombine.high %v783_v9, %v787_v10 }
 0x101   : > { %v706_v20 = vld [vmem:[%s7432_s15 + $0x360] sm:$0xff]  ;;  %2167 = vmatpush2.bf16.msra.mxu0 %v5549_v23  ;;  %v7547_v17 = vcombine.low %v7488_v54, %v7488_v54  ;;  %v5488_v23 = vcombine.high %v647_v15, %v651_v16  ;;  %v643_v54 = vld [vmem:[%s7432_s15 + $0x168] sm:$0xff] }
 0x102   : > { %v830_v21 = vld [vmem:[%s7432_s15 + $0x740] sm:$0xff]  ;;  %v5542_v25 = vcombine.high %v702_v19, %v706_v20  ;;  %2207 = vmatprep.subr.bf16.mxu1 %v5678_v18  ;;  %v5541_v31 = vcombine.low %v702_v19, %v706_v20  ;;  %v775_v18 = vld [vmem:[%s7432_s15 + $0x588] sm:$0xff]  ;;  %v7553_v20 = vcombine.low %v7491_v55, %v7491_v55  ;;  %v5487_v55 = vcombine.low %v647_v15, %v651_v16 }
 0x103   : > { %v834_v22 = vld [vmem:[%s7432_s15 + $0x760] sm:$0xff]  ;;  %2208 = vmatpush2.bf16.msra.mxu1 %v5677_v24  ;;  %v779_v19 = vld [vmem:[%s7432_s15 + $0x5a8] sm:$0xff] }
 0x104   : > { %v5670_v26 = vcombine.high %v830_v21, %v834_v22  ;;  %v694_v27 = vld [vmem:[%s7432_s15 + $0x300] sm:$0xff]  ;;  %2168 = vmatprep.subr.bf16.mxu0 %v5542_v25  ;;  %v5669_v32 = vcombine.low %v830_v21, %v834_v22  ;;  %v5495_v21 = vcombine.low %v655_v7, %v659_v8  ;;  %v5623_v22 = vcombine.low %v783_v9, %v787_v10  ;;  %v639_v25 = vld [vmem:[%s7432_s15 + $0x148] sm:$0xff] }
 0x105   : > { %v698_v28 = vld [vmem:[%s7432_s15 + $0x320] sm:$0xff]  ;;  %2169 = vmatpush2.bf16.msra.mxu0 %v5541_v31  ;;  %v5616_v24 = vcombine.high %v775_v18, %v779_v19  ;;  %v631_v31 = vld [vmem:[%s7432_s15 + $0x108] sm:$0xff] }
 0x106   : > { %v822_v29 = vld [vmem:[%s7432_s15 + $0x700] sm:$0xff]  ;;  %v5534_v33 = vcombine.high %v694_v27, %v698_v28  ;;  %2209 = vmatprep.subr.bf16.mxu1 %v5670_v26  ;;  %v5533_v39 = vcombine.low %v694_v27, %v698_v28  ;;  %v767_v26 = vld [vmem:[%s7432_s15 + $0x548] sm:$0xff]  ;;  %v5615_v28 = vcombine.low %v775_v18, %v779_v19 }
 0x107   : > { %v826_v30 = vld [vmem:[%s7432_s15 + $0x720] sm:$0xff]  ;;  %2210 = vmatpush2.bf16.msra.mxu1 %v5669_v32  ;;  %v771_v27 = vld [vmem:[%s7432_s15 + $0x568] sm:$0xff] }
 0x108   : > { %v5662_v34 = vcombine.high %v822_v29, %v826_v30  ;;  %v686_v35 = vld [vmem:[%s7432_s15 + $0x2c0] sm:$0xff]  ;;  %2170 = vmatprep.subr.bf16.mxu0 %v5534_v33  ;;  %v5661_v40 = vcombine.low %v822_v29, %v826_v30  ;;  %v5480_v29 = vcombine.high %v639_v25, %v643_v54  ;;  %v5608_v30 = vcombine.high %v767_v26, %v771_v27  ;;  %v635_v32 = vld [vmem:[%s7432_s15 + $0x128] sm:$0xff] }
 0x109   : > { %v690_v36 = vld [vmem:[%s7432_s15 + $0x2e0] sm:$0xff]  ;;  %2171 = vmatpush2.bf16.msra.mxu0 %v5533_v39  ;;  %v759_v33 = vld [vmem:[%s7432_s15 + $0x508] sm:$0xff] }
 0x10a   : > { %v814_v37 = vld [vmem:[%s7432_s15 + $0x6c0] sm:$0xff]  ;;  %v5526_v41 = vcombine.high %v686_v35, %v690_v36  ;;  %2211 = vmatprep.subr.bf16.mxu1 %v5662_v34  ;;  %v5525_v47 = vcombine.low %v686_v35, %v690_v36  ;;  %v763_v34 = vld [vmem:[%s7432_s15 + $0x528] sm:$0xff]  ;;  %v5479_v35 = vcombine.low %v639_v25, %v643_v54  ;;  %v5607_v36 = vcombine.low %v767_v26, %v771_v27 }
 0x10b   : > { %v818_v38 = vld [vmem:[%s7432_s15 + $0x6e0] sm:$0xff]  ;;  %2212 = vmatpush2.bf16.msra.mxu1 %v5661_v40  ;;  %v623_v39 = vld [vmem:[%s7432_s15 + $0xc8] sm:$0xff] }
 0x10c   : > { %v5654_v42 = vcombine.high %v814_v37, %v818_v38  ;;  %v678_v43 = vld [vmem:[%s7432_s15 + $0x280] sm:$0xff]  ;;  %2172 = vmatprep.subr.bf16.mxu0 %v5526_v41  ;;  %v5653_v48 = vcombine.low %v814_v37, %v818_v38  ;;  %v5472_v37 = vcombine.high %v631_v31, %v635_v32  ;;  %v5600_v38 = vcombine.high %v759_v33, %v763_v34  ;;  %v627_v40 = vld [vmem:[%s7432_s15 + $0xe8] sm:$0xff] }
 0x10d   : > { %v682_v44 = vld [vmem:[%s7432_s15 + $0x2a0] sm:$0xff]  ;;  %2173 = vmatpush2.bf16.msra.mxu0 %v5525_v47  ;;  %v751_v41 = vld [vmem:[%s7432_s15 + $0x4c8] sm:$0xff] }
 0x10e   : > { %v806_v45 = vld [vmem:[%s7432_s15 + $0x680] sm:$0xff]  ;;  %v5518_v49 = vcombine.high %v678_v43, %v682_v44  ;;  %2213 = vmatprep.subr.bf16.mxu1 %v5654_v42  ;;  %v5517_v57 = vcombine.low %v678_v43, %v682_v44  ;;  %v755_v42 = vld [vmem:[%s7432_s15 + $0x4e8] sm:$0xff]  ;;  %v5471_v43 = vcombine.low %v631_v31, %v635_v32  ;;  %v5599_v44 = vcombine.low %v759_v33, %v763_v34 }
 0x10f   : > { %v810_v46 = vld [vmem:[%s7432_s15 + $0x6a0] sm:$0xff]  ;;  %2214 = vmatpush2.bf16.msra.mxu1 %v5653_v48  ;;  %v615_v47 = vld [vmem:[%s7432_s15 + $0x88] sm:$0xff] }
 0x110   : > { %v5646_v50 = vcombine.high %v806_v45, %v810_v46  ;;  %v670_v51 = vld [vmem:[%s7432_s15 + $0x240] sm:$0xff]  ;;  %2174 = vmatprep.subr.bf16.mxu0 %v5518_v49  ;;  %v5645_v58 = vcombine.low %v806_v45, %v810_v46  ;;  %v5464_v45 = vcombine.high %v623_v39, %v627_v40  ;;  %v5592_v46 = vcombine.high %v751_v41, %v755_v42  ;;  %v619_v48 = vld [vmem:[%s7432_s15 + $0xa8] sm:$0xff] }
 0x111   : > { %v674_v52 = vld [vmem:[%s7432_s15 + $0x260] sm:$0xff]  ;;  %2175 = vmatpush2.bf16.msra.mxu0 %v5517_v57  ;;  %v743_v49 = vld [vmem:[%s7432_s15 + $0x488] sm:$0xff] }
 0x112   : > { %v798_v53 = vld [vmem:[%s7432_s15 + $0x640] sm:$0xff]  ;;  %v5510_v61 = vcombine.high %v670_v51, %v674_v52  ;;  %2215 = vmatprep.subr.bf16.mxu1 %v5646_v50  ;;  %v5509_v3 = vcombine.low %v670_v51, %v674_v52  ;;  %v747_v50 = vld [vmem:[%s7432_s15 + $0x4a8] sm:$0xff]  ;;  %v5463_v51 = vcombine.low %v623_v39, %v627_v40  ;;  %v5591_v52 = vcombine.low %v751_v41, %v755_v42 }
 0x113   : > { %v802_v56 = vld [vmem:[%s7432_s15 + $0x660] sm:$0xff]  ;;  %2216 = vmatpush2.bf16.msra.mxu1 %v5645_v58  ;;  %v607_v57 = vld [vmem:[%s7432_s15 + $0x48] sm:$0xff] }
 0x114   : > { %v5638_v62 = vcombine.high %v798_v53, %v802_v56  ;;  %v662_v63 = vld [vmem:[%s7432_s15 + $0x200] sm:$0xff]  ;;  %2176 = vmatprep.subr.bf16.mxu0 %v5510_v61  ;;  %v5637_v4 = vcombine.low %v798_v53, %v802_v56  ;;  %v5456_v53 = vcombine.high %v615_v47, %v619_v48  ;;  %v5584_v56 = vcombine.high %v743_v49, %v747_v50  ;;  %v611_v58 = vld [vmem:[%s7432_s15 + $0x68] sm:$0xff] }
 0x115   : > { %v666_v0 = vld [vmem:[%s7432_s15 + $0x220] sm:$0xff]  ;;  %2177 = vmatpush2.bf16.msra.mxu0 %v5509_v3  ;;  %v735_v61 = vld [vmem:[%s7432_s15 + $0x448] sm:$0xff]  ;;  %v5447_v7 = vcombine.low %v607_v57, %v611_v58 }
 0x116   : > { %v790_v1 = vld [vmem:[%s7432_s15 + $0x600] sm:$0xff]  ;;  %v5502_v5 = vcombine.high %v662_v63, %v666_v0  ;;  %2217 = vmatprep.subr.bf16.mxu1 %v5638_v62  ;;  %v5501_v11 = vcombine.low %v662_v63, %v666_v0  ;;  %v739_v62 = vld [vmem:[%s7432_s15 + $0x468] sm:$0xff]  ;;  %v5455_v63 = vcombine.low %v615_v47, %v619_v48  ;;  %v5583_v0 = vcombine.low %v743_v49, %v747_v50 }
 0x117   : > { %v794_v2 = vld [vmem:[%s7432_s15 + $0x620] sm:$0xff]  ;;  %2218 = vmatpush2.bf16.msra.mxu1 %v5637_v4  ;;  %v599_v3 = vld [vmem:[%s7432_s15 + $0x8] sm:$0xff]  ;;  %v5575_v8 = vcombine.low %v735_v61, %v739_v62 }
 0x118   : > { %v5630_v6 = vcombine.high %v790_v1, %v794_v2  ;;  %2178 = vmatprep.subr.bf16.mxu0 %v5502_v5  ;;  %v5629_v12 = vcombine.low %v790_v1, %v794_v2  ;;  %v5448_v1 = vcombine.high %v607_v57, %v611_v58  ;;  %v5576_v2 = vcombine.high %v735_v61, %v739_v62  ;;  %v603_v4 = vld [vmem:[%s7432_s15 + $0x28] sm:$0xff] }
 0x119   : > { %2179 = vmatpush2.bf16.msra.mxu0 %v5501_v11  ;;  %v727_v5 = vld [vmem:[%s7432_s15 + $0x408] sm:$0xff]  ;;  %v5440_v9 = vcombine.high %v599_v3, %v603_v4  ;;  %v5439_v15 = vcombine.low %v599_v3, %v603_v4 }
 0x11a   : > { %2219 = vmatprep.subr.bf16.mxu1 %v5630_v6  ;;  %2230 = vmatprep.subr.bf16.mxu0 %v5496_v13  ;;  %v731_v6 = vld [vmem:[%s7432_s15 + $0x428] sm:$0xff] }
 0x11b   : > { %2220 = vmatpush2.bf16.msra.mxu1 %v5629_v12  ;;  %v5568_v10 = vcombine.high %v727_v5, %v731_v6  ;;  %v719_v11 = vld [vmem:[%s7432_s15 + $0x3c8] sm:$0xff]  ;;  %v5567_v16 = vcombine.low %v727_v5, %v731_v6 }
 0x11c   : > { %2271 = vmatprep.subr.bf16.mxu1 %v5624_v14  ;;  %2181 = vmatmul.mubr.bf16.vlgmr.msra.gmra.mxu0 %v7547_v17  ;;  %v723_v12 = vld [vmem:[%s7432_s15 + $0x3e8] sm:$0xff] }
 0x11d   : > { %2231 = vmatpush1.bf16.msra.mxu0 %v5495_v21  ;;  %2262 = vmatprep.mubr.bf16.mxu0 %v7497_v59  ;;  %v847_v13 = vld [vmem:[%s7432_s15 + $0x7c8] sm:$0xff]  ;;  %v5560_v18 = vcombine.high %v719_v11, %v723_v12  ;;  %v5559_v25 = vcombine.low %v719_v11, %v723_v12 }
 0x11e   : > { %2222 = vmatmul.mubr.bf16.vlgmr.msra.gmra.mxu1 %v7553_v20  ;;  %2232 = vmatprep.subr.bf16.mxu0 %v5488_v23  ;;  %v851_v14 = vld [vmem:[%s7432_s15 + $0x7e8] sm:$0xff] }
 0x11f   : > { %2272 = vmatpush1.bf16.msra.mxu1 %v5623_v22  ;;  %2303 = vmatprep.mubr.bf16.mxu1 %v7501_v60  ;;  %v5688_v19 = vcombine.high %v847_v13, %v851_v14  ;;  %v711_v21 = vld [vmem:[%s7432_s15 + $0x388] sm:$0xff]  ;;  %v5687_v54 = vcombine.low %v847_v13, %v851_v14 }
 0x120   : > { %2273 = vmatprep.subr.bf16.mxu1 %v5616_v24  ;;  %v715_v22 = vld [vmem:[%s7432_s15 + $0x3a8] sm:$0xff] }
 0x121   : > { %2233 = vmatpush1.bf16.msra.mxu0 %v5487_v55  ;;  %v839_v23 = vld [vmem:[%s7432_s15 + $0x788] sm:$0xff]  ;;  %v5552_v26 = vcombine.high %v711_v21, %v715_v22  ;;  %v5551_v31 = vcombine.low %v711_v21, %v715_v22 }
 0x122   : > { %2234 = vmatprep.subr.bf16.mxu0 %v5480_v29  ;;  %v843_v24 = vld [vmem:[%s7432_s15 + $0x7a8] sm:$0xff] }
 0x123   : > { %2274 = vmatpush1.bf16.msra.mxu1 %v5615_v28  ;;  %v5680_v27 = vcombine.high %v839_v23, %v843_v24  ;;  %v703_v55 = vld [vmem:[%s7432_s15 + $0x348] sm:$0xff]  ;;  %v5679_v32 = vcombine.low %v839_v23, %v843_v24 }
 0x124   : > { %2275 = vmatprep.subr.bf16.mxu1 %v5608_v30  ;;  %v707_v28 = vld [vmem:[%s7432_s15 + $0x368] sm:$0xff] }
 0x125   : > { %2235 = vmatpush1.bf16.msra.mxu0 %v5479_v35  ;;  %v831_v29 = vld [vmem:[%s7432_s15 + $0x748] sm:$0xff]  ;;  %v5544_v33 = vcombine.high %v703_v55, %v707_v28  ;;  %v5543_v39 = vcombine.low %v703_v55, %v707_v28 }
 0x126   : > { %2236 = vmatprep.subr.bf16.mxu0 %v5472_v37  ;;  %v835_v30 = vld [vmem:[%s7432_s15 + $0x768] sm:$0xff] }
 0x127   : > { %2276 = vmatpush1.bf16.msra.mxu1 %v5607_v36  ;;  %v5672_v34 = vcombine.high %v831_v29, %v835_v30  ;;  %v695_v35 = vld [vmem:[%s7432_s15 + $0x308] sm:$0xff]  ;;  %v5671_v40 = vcombine.low %v831_v29, %v835_v30 }
 0x128   : > { %2277 = vmatprep.subr.bf16.mxu1 %v5600_v38  ;;  %v699_v36 = vld [vmem:[%s7432_s15 + $0x328] sm:$0xff] }
 0x129   : > { %2237 = vmatpush1.bf16.msra.mxu0 %v5471_v43  ;;  %v823_v37 = vld [vmem:[%s7432_s15 + $0x708] sm:$0xff]  ;;  %v5536_v41 = vcombine.high %v695_v35, %v699_v36  ;;  %v5535_v47 = vcombine.low %v695_v35, %v699_v36 }
 0x12a   : > { %2238 = vmatprep.subr.bf16.mxu0 %v5464_v45  ;;  %v827_v38 = vld [vmem:[%s7432_s15 + $0x728] sm:$0xff] }
 0x12b   : > { %2278 = vmatpush1.bf16.msra.mxu1 %v5599_v44  ;;  %v5664_v42 = vcombine.high %v823_v37, %v827_v38  ;;  %v687_v43 = vld [vmem:[%s7432_s15 + $0x2c8] sm:$0xff]  ;;  %v5663_v48 = vcombine.low %v823_v37, %v827_v38 }
 0x12c   : > { %2279 = vmatprep.subr.bf16.mxu1 %v5592_v46  ;;  %v691_v44 = vld [vmem:[%s7432_s15 + $0x2e8] sm:$0xff] }
 0x12d   : > { %2239 = vmatpush1.bf16.msra.mxu0 %v5463_v51  ;;  %v815_v45 = vld [vmem:[%s7432_s15 + $0x6c8] sm:$0xff]  ;;  %v5528_v49 = vcombine.high %v687_v43, %v691_v44  ;;  %v5527_v57 = vcombine.low %v687_v43, %v691_v44 }
 0x12e   : > { %2240 = vmatprep.subr.bf16.mxu0 %v5456_v53  ;;  %v819_v46 = vld [vmem:[%s7432_s15 + $0x6e8] sm:$0xff] }
 0x12f   : > { %2280 = vmatpush1.bf16.msra.mxu1 %v5591_v52  ;;  %v5656_v50 = vcombine.high %v815_v45, %v819_v46  ;;  %v679_v51 = vld [vmem:[%s7432_s15 + $0x288] sm:$0xff]  ;;  %v5655_v58 = vcombine.low %v815_v45, %v819_v46 }
 0x130   : > { %2281 = vmatprep.subr.bf16.mxu1 %v5584_v56  ;;  %v683_v52 = vld [vmem:[%s7432_s15 + $0x2a8] sm:$0xff] }
 0x131   : > { %2241 = vmatpush1.bf16.msra.mxu0 %v5455_v63  ;;  %v807_v53 = vld [vmem:[%s7432_s15 + $0x688] sm:$0xff]  ;;  %v5520_v61 = vcombine.high %v679_v51, %v683_v52  ;;  %v5519_v3 = vcombine.low %v679_v51, %v683_v52 }
 0x132   : > { %2242 = vmatprep.subr.bf16.mxu0 %v5448_v1  ;;  %v811_v56 = vld [vmem:[%s7432_s15 + $0x6a8] sm:$0xff] }
 0x133   : > { %2282 = vmatpush1.bf16.msra.mxu1 %v5583_v0  ;;  %v5648_v62 = vcombine.high %v807_v53, %v811_v56  ;;  %v671_v63 = vld [vmem:[%s7432_s15 + $0x248] sm:$0xff]  ;;  %v5647_v4 = vcombine.low %v807_v53, %v811_v56 }
 0x134   : > { %2283 = vmatprep.subr.bf16.mxu1 %v5576_v2  ;;  %v675_v0 = vld [vmem:[%s7432_s15 + $0x268] sm:$0xff] }
 0x135   : > { %2243 = vmatpush1.bf16.msra.mxu0 %v5447_v7  ;;  %v799_v1 = vld [vmem:[%s7432_s15 + $0x648] sm:$0xff]  ;;  %v5512_v5 = vcombine.high %v671_v63, %v675_v0  ;;  %v5511_v11 = vcombine.low %v671_v63, %v675_v0 }
 0x136   : > { %2244 = vmatprep.subr.bf16.mxu0 %v5440_v9  ;;  %v803_v2 = vld [vmem:[%s7432_s15 + $0x668] sm:$0xff] }
 0x137   : > { %2284 = vmatpush1.bf16.msra.mxu1 %v5575_v8  ;;  %v5640_v6 = vcombine.high %v799_v1, %v803_v2  ;;  %v663_v7 = vld [vmem:[%s7432_s15 + $0x208] sm:$0xff]  ;;  %v5639_v12 = vcombine.low %v799_v1, %v803_v2 }
 0x138   : > { %2285 = vmatprep.subr.bf16.mxu1 %v5568_v10  ;;  %v667_v8 = vld [vmem:[%s7432_s15 + $0x228] sm:$0xff] }
 0x139   : > { %2245 = vmatpush1.bf16.msra.mxu0 %v5439_v15  ;;  %v791_v9 = vld [vmem:[%s7432_s15 + $0x608] sm:$0xff]  ;;  %v5504_v13 = vcombine.high %v663_v7, %v667_v8  ;;  %v656_v15 = vld [vmem:[%s7432_s15 + $0x1d0] sm:$0xff]  ;;  %v5503_v21 = vcombine.low %v663_v7, %v667_v8 }
 0x13a   : > { %2246 = vmatprep.subr.bf16.mxu0 %v5560_v18  ;;  %v795_v10 = vld [vmem:[%s7432_s15 + $0x628] sm:$0xff]  ;;  %v784_v18 = vld [vmem:[%s7432_s15 + $0x5d0] sm:$0xff] }
 0x13b   : > { %2286 = vmatpush1.bf16.msra.mxu1 %v5567_v16  ;;  %v5632_v14 = vcombine.high %v791_v9, %v795_v10  ;;  %v660_v16 = vld [vmem:[%s7432_s15 + $0x1f0] sm:$0xff]  ;;  %v5631_v22 = vcombine.low %v791_v9, %v795_v10 }
 0x13c   : > { %2287 = vmatprep.subr.bf16.mxu1 %v5688_v19  ;;  %v788_v19 = vld [vmem:[%s7432_s15 + $0x5f0] sm:$0xff]  ;;  %v5498_v23 = vcombine.high %v656_v15, %v660_v16  ;;  %v5497_v55 = vcombine.low %v656_v15, %v660_v16 }
 0x13d   : > { %2247 = vmatpush2.bf16.msra.mxu0 %v5559_v25  ;;  %v5626_v24 = vcombine.high %v784_v18, %v788_v19  ;;  %v648_v25 = vld [vmem:[%s7432_s15 + $0x190] sm:$0xff]  ;;  %v5625_v28 = vcombine.low %v784_v18, %v788_v19 }
 0x13e   : > { %2248 = vmatprep.subr.bf16.mxu0 %v5552_v26  ;;  %v776_v26 = vld [vmem:[%s7432_s15 + $0x590] sm:$0xff] }
 0x13f   : > { %2288 = vmatpush2.bf16.msra.mxu1 %v5687_v54  ;;  %v652_v54 = vld [vmem:[%s7432_s15 + $0x1b0] sm:$0xff] }
 0x140   : > { %2289 = vmatprep.subr.bf16.mxu1 %v5680_v27  ;;  %v780_v27 = vld [vmem:[%s7432_s15 + $0x5b0] sm:$0xff]  ;;  %v5490_v29 = vcombine.high %v648_v25, %v652_v54  ;;  %v5489_v35 = vcombine.low %v648_v25, %v652_v54 }
 0x141   : > { %2249 = vmatpush2.bf16.msra.mxu0 %v5551_v31  ;;  %v5618_v30 = vcombine.high %v776_v26, %v780_v27  ;;  %v640_v31 = vld [vmem:[%s7432_s15 + $0x150] sm:$0xff]  ;;  %v5617_v36 = vcombine.low %v776_v26, %v780_v27 }
 0x142   : > { %2250 = vmatprep.subr.bf16.mxu0 %v5544_v33  ;;  %v768_v33 = vld [vmem:[%s7432_s15 + $0x550] sm:$0xff] }
 0x143   : > { %2290 = vmatpush2.bf16.msra.mxu1 %v5679_v32  ;;  %v644_v32 = vld [vmem:[%s7432_s15 + $0x170] sm:$0xff] }
 0x144   : > { %2291 = vmatprep.subr.bf16.mxu1 %v5672_v34  ;;  %v772_v34 = vld [vmem:[%s7432_s15 + $0x570] sm:$0xff]  ;;  %v5482_v37 = vcombine.high %v640_v31, %v644_v32  ;;  %v5481_v43 = vcombine.low %v640_v31, %v644_v32 }
 0x145   : > { %2251 = vmatpush2.bf16.msra.mxu0 %v5543_v39  ;;  %v5610_v38 = vcombine.high %v768_v33, %v772_v34  ;;  %v632_v39 = vld [vmem:[%s7432_s15 + $0x110] sm:$0xff]  ;;  %v5609_v44 = vcombine.low %v768_v33, %v772_v34 }
 0x146   : > { %2252 = vmatprep.subr.bf16.mxu0 %v5536_v41  ;;  %v760_v41 = vld [vmem:[%s7432_s15 + $0x510] sm:$0xff] }
 0x147   : > { %2292 = vmatpush2.bf16.msra.mxu1 %v5671_v40  ;;  %v636_v40 = vld [vmem:[%s7432_s15 + $0x130] sm:$0xff] }
 0x148   : > { %2293 = vmatprep.subr.bf16.mxu1 %v5664_v42  ;;  %v764_v42 = vld [vmem:[%s7432_s15 + $0x530] sm:$0xff]  ;;  %v5474_v45 = vcombine.high %v632_v39, %v636_v40  ;;  %v5473_v51 = vcombine.low %v632_v39, %v636_v40 }
 0x149   : > { %2253 = vmatpush2.bf16.msra.mxu0 %v5535_v47  ;;  %v5602_v46 = vcombine.high %v760_v41, %v764_v42  ;;  %v624_v47 = vld [vmem:[%s7432_s15 + $0xd0] sm:$0xff]  ;;  %v5601_v52 = vcombine.low %v760_v41, %v764_v42 }
 0x14a   : > { %2254 = vmatprep.subr.bf16.mxu0 %v5528_v49  ;;  %v752_v49 = vld [vmem:[%s7432_s15 + $0x4d0] sm:$0xff] }
 0x14b   : > { %2294 = vmatpush2.bf16.msra.mxu1 %v5663_v48  ;;  %v628_v48 = vld [vmem:[%s7432_s15 + $0xf0] sm:$0xff] }
 0x14c   : > { %2295 = vmatprep.subr.bf16.mxu1 %v5656_v50  ;;  %v756_v50 = vld [vmem:[%s7432_s15 + $0x4f0] sm:$0xff]  ;;  %v5466_v53 = vcombine.high %v624_v47, %v628_v48  ;;  %v5465_v63 = vcombine.low %v624_v47, %v628_v48 }
 0x14d   : > { %2255 = vmatpush2.bf16.msra.mxu0 %v5527_v57  ;;  %v5594_v56 = vcombine.high %v752_v49, %v756_v50  ;;  %v616_v57 = vld [vmem:[%s7432_s15 + $0x90] sm:$0xff]  ;;  %v5593_v0 = vcombine.low %v752_v49, %v756_v50 }
 0x14e   : > { %2256 = vmatprep.subr.bf16.mxu0 %v5520_v61  ;;  %v744_v61 = vld [vmem:[%s7432_s15 + $0x490] sm:$0xff] }
 0x14f   : > { %2296 = vmatpush2.bf16.msra.mxu1 %v5655_v58  ;;  %v620_v58 = vld [vmem:[%s7432_s15 + $0xb0] sm:$0xff] }
 0x150   : > { %2297 = vmatprep.subr.bf16.mxu1 %v5648_v62  ;;  %v748_v62 = vld [vmem:[%s7432_s15 + $0x4b0] sm:$0xff]  ;;  %v5458_v1 = vcombine.high %v616_v57, %v620_v58  ;;  %v5457_v7 = vcombine.low %v616_v57, %v620_v58 }
 0x151   : > { %2257 = vmatpush2.bf16.msra.mxu0 %v5519_v3  ;;  %v5586_v2 = vcombine.high %v744_v61, %v748_v62  ;;  %v608_v3 = vld [vmem:[%s7432_s15 + $0x50] sm:$0xff]  ;;  %v5585_v8 = vcombine.low %v744_v61, %v748_v62 }
 0x152   : > { %2258 = vmatprep.subr.bf16.mxu0 %v5512_v5  ;;  %v736_v5 = vld [vmem:[%s7432_s15 + $0x450] sm:$0xff] }
 0x153   : > { %2298 = vmatpush2.bf16.msra.mxu1 %v5647_v4  ;;  %v612_v4 = vld [vmem:[%s7432_s15 + $0x70] sm:$0xff] }
 0x154   : > { %2299 = vmatprep.subr.bf16.mxu1 %v5640_v6  ;;  %v740_v6 = vld [vmem:[%s7432_s15 + $0x470] sm:$0xff]  ;;  %v5450_v9 = vcombine.high %v608_v3, %v612_v4  ;;  %v5449_v15 = vcombine.low %v608_v3, %v612_v4 }
 0x155   : > { %2259 = vmatpush2.bf16.msra.mxu0 %v5511_v11  ;;  %v5578_v10 = vcombine.high %v736_v5, %v740_v6  ;;  %v600_v11 = vld [vmem:[%s7432_s15 + $0x10] sm:$0xff]  ;;  %v5577_v16 = vcombine.low %v736_v5, %v740_v6 }
 0x156   : > { %2260 = vmatprep.subr.bf16.mxu0 %v5504_v13  ;;  %v728_v13 = vld [vmem:[%s7432_s15 + $0x410] sm:$0xff] }
 0x157   : > { %2300 = vmatpush2.bf16.msra.mxu1 %v5639_v12  ;;  %v604_v12 = vld [vmem:[%s7432_s15 + $0x30] sm:$0xff] }
 0x158   : > { %2301 = vmatprep.subr.bf16.mxu1 %v5632_v14  ;;  %v732_v14 = vld [vmem:[%s7432_s15 + $0x430] sm:$0xff]  ;;  %v5442_v18 = vcombine.high %v600_v11, %v604_v12  ;;  %v5441_v25 = vcombine.low %v600_v11, %v604_v12 }
 0x159   : > { %2261 = vmatpush2.bf16.msra.mxu0 %v5503_v21  ;;  %v5570_v19 = vcombine.high %v728_v13, %v732_v14  ;;  %v720_v21 = vld [vmem:[%s7432_s15 + $0x3d0] sm:$0xff]  ;;  %v5569_v54 = vcombine.low %v728_v13, %v732_v14 }
 0x15a   : > { %2312 = vmatprep.subr.bf16.mxu0 %v5498_v23  ;;  %v848_v23 = vld [vmem:[%s7432_s15 + $0x7d0] sm:$0xff] }
 0x15b   : > { %2302 = vmatpush2.bf16.msra.mxu1 %v5631_v22  ;;  %v724_v22 = vld [vmem:[%s7432_s15 + $0x3f0] sm:$0xff] }
 0x15c   : > { %2353 = vmatprep.subr.bf16.mxu1 %v5626_v24  ;;  %2263 = vmatmul.mubr.bf16.vlgmr.msra.gmra.mxu0 %v7547_v17  ;;  %v852_v24 = vld [vmem:[%s7432_s15 + $0x7f0] sm:$0xff]  ;;  %v5562_v26 = vcombine.high %v720_v21, %v724_v22  ;;  %v5561_v31 = vcombine.low %v720_v21, %v724_v22 }
 0x15d   : > { %2313 = vmatpush1.bf16.msra.mxu0 %v5497_v55  ;;  %2344 = vmatprep.mubr.bf16.mxu0 %v7497_v59  ;;  %v5690_v27 = vcombine.high %v848_v23, %v852_v24  ;;  %v712_v55 = vld [vmem:[%s7432_s15 + $0x390] sm:$0xff]  ;;  %v5689_v32 = vcombine.low %v848_v23, %v852_v24 }
 0x15e   : > { %2304 = vmatmul.mubr.bf16.vlgmr.msra.gmra.mxu1 %v7553_v20  ;;  %2314 = vmatprep.subr.bf16.mxu0 %v5490_v29  ;;  %v840_v29 = vld [vmem:[%s7432_s15 + $0x790] sm:$0xff] }
 0x15f   : > { %2354 = vmatpush1.bf16.msra.mxu1 %v5625_v28  ;;  %2385 = vmatprep.mubr.bf16.mxu1 %v7501_v60  ;;  %v716_v28 = vld [vmem:[%s7432_s15 + $0x3b0] sm:$0xff] }
 0x160   : > { %2355 = vmatprep.subr.bf16.mxu1 %v5618_v30  ;;  %v844_v30 = vld [vmem:[%s7432_s15 + $0x7b0] sm:$0xff]  ;;  %v5554_v33 = vcombine.high %v712_v55, %v716_v28  ;;  %v5553_v39 = vcombine.low %v712_v55, %v716_v28 }
 0x161   : > { %2315 = vmatpush1.bf16.msra.mxu0 %v5489_v35  ;;  %v5682_v34 = vcombine.high %v840_v29, %v844_v30  ;;  %v704_v35 = vld [vmem:[%s7432_s15 + $0x350] sm:$0xff]  ;;  %v5681_v40 = vcombine.low %v840_v29, %v844_v30 }
 0x162   : > { %2316 = vmatprep.subr.bf16.mxu0 %v5482_v37  ;;  %v832_v37 = vld [vmem:[%s7432_s15 + $0x750] sm:$0xff] }
 0x163   : > { %2356 = vmatpush1.bf16.msra.mxu1 %v5617_v36  ;;  %v708_v36 = vld [vmem:[%s7432_s15 + $0x370] sm:$0xff] }
 0x164   : > { %2357 = vmatprep.subr.bf16.mxu1 %v5610_v38  ;;  %v836_v38 = vld [vmem:[%s7432_s15 + $0x770] sm:$0xff]  ;;  %v5546_v41 = vcombine.high %v704_v35, %v708_v36  ;;  %v5545_v47 = vcombine.low %v704_v35, %v708_v36 }
 0x165   : > { %2317 = vmatpush1.bf16.msra.mxu0 %v5481_v43  ;;  %v5674_v42 = vcombine.high %v832_v37, %v836_v38  ;;  %v696_v43 = vld [vmem:[%s7432_s15 + $0x310] sm:$0xff]  ;;  %v5673_v48 = vcombine.low %v832_v37, %v836_v38 }
 0x166   : > { %2318 = vmatprep.subr.bf16.mxu0 %v5474_v45  ;;  %v824_v45 = vld [vmem:[%s7432_s15 + $0x710] sm:$0xff] }
 0x167   : > { %2358 = vmatpush1.bf16.msra.mxu1 %v5609_v44  ;;  %v700_v44 = vld [vmem:[%s7432_s15 + $0x330] sm:$0xff] }
 0x168   : > { %2359 = vmatprep.subr.bf16.mxu1 %v5602_v46  ;;  %v828_v46 = vld [vmem:[%s7432_s15 + $0x730] sm:$0xff]  ;;  %v5538_v49 = vcombine.high %v696_v43, %v700_v44  ;;  %v5537_v57 = vcombine.low %v696_v43, %v700_v44 }
 0x169   : > { %2319 = vmatpush1.bf16.msra.mxu0 %v5473_v51  ;;  %v5666_v50 = vcombine.high %v824_v45, %v828_v46  ;;  %v688_v51 = vld [vmem:[%s7432_s15 + $0x2d0] sm:$0xff]  ;;  %v5665_v58 = vcombine.low %v824_v45, %v828_v46 }
 0x16a   : > { %2320 = vmatprep.subr.bf16.mxu0 %v5466_v53  ;;  %v816_v53 = vld [vmem:[%s7432_s15 + $0x6d0] sm:$0xff] }
 0x16b   : > { %2360 = vmatpush1.bf16.msra.mxu1 %v5601_v52  ;;  %v692_v52 = vld [vmem:[%s7432_s15 + $0x2f0] sm:$0xff] }
 0x16c   : > { %2361 = vmatprep.subr.bf16.mxu1 %v5594_v56  ;;  %v820_v56 = vld [vmem:[%s7432_s15 + $0x6f0] sm:$0xff]  ;;  %v5530_v61 = vcombine.high %v688_v51, %v692_v52  ;;  %v5529_v3 = vcombine.low %v688_v51, %v692_v52 }
 0x16d   : > { %2321 = vmatpush1.bf16.msra.mxu0 %v5465_v63  ;;  %v5658_v62 = vcombine.high %v816_v53, %v820_v56  ;;  %v680_v63 = vld [vmem:[%s7432_s15 + $0x290] sm:$0xff]  ;;  %v5657_v4 = vcombine.low %v816_v53, %v820_v56 }
 0x16e   : > { %2322 = vmatprep.subr.bf16.mxu0 %v5458_v1  ;;  %v808_v1 = vld [vmem:[%s7432_s15 + $0x690] sm:$0xff] }
 0x16f   : > { %2362 = vmatpush1.bf16.msra.mxu1 %v5593_v0  ;;  %v684_v0 = vld [vmem:[%s7432_s15 + $0x2b0] sm:$0xff] }
 0x170   : > { %2363 = vmatprep.subr.bf16.mxu1 %v5586_v2  ;;  %v812_v2 = vld [vmem:[%s7432_s15 + $0x6b0] sm:$0xff]  ;;  %v5522_v5 = vcombine.high %v680_v63, %v684_v0  ;;  %v5521_v11 = vcombine.low %v680_v63, %v684_v0 }
 0x171   : > { %2323 = vmatpush1.bf16.msra.mxu0 %v5457_v7  ;;  %v5650_v6 = vcombine.high %v808_v1, %v812_v2  ;;  %v672_v7 = vld [vmem:[%s7432_s15 + $0x250] sm:$0xff]  ;;  %v5649_v12 = vcombine.low %v808_v1, %v812_v2  ;;  %v617_v1 = vld [vmem:[%s7432_s15 + $0x98] sm:$0xff] }
 0x172   : > { %2324 = vmatprep.subr.bf16.mxu0 %v5450_v9  ;;  %v800_v9 = vld [vmem:[%s7432_s15 + $0x650] sm:$0xff]  ;;  %v621_v2 = vld [vmem:[%s7432_s15 + $0xb8] sm:$0xff] }
 0x173   : > { %2364 = vmatpush1.bf16.msra.mxu1 %v5585_v8  ;;  %v676_v8 = vld [vmem:[%s7432_s15 + $0x270] sm:$0xff] }
 0x174   : > { %2365 = vmatprep.subr.bf16.mxu1 %v5578_v10  ;;  %v804_v10 = vld [vmem:[%s7432_s15 + $0x670] sm:$0xff]  ;;  %v5514_v13 = vcombine.high %v672_v7, %v676_v8  ;;  %v5513_v21 = vcombine.low %v672_v7, %v676_v8  ;;  %v5460_v7 = vcombine.high %v617_v1, %v621_v2 }
 0x175   : > { %2325 = vmatpush1.bf16.msra.mxu0 %v5449_v15  ;;  %v5642_v14 = vcombine.high %v800_v9, %v804_v10  ;;  %v664_v15 = vld [vmem:[%s7432_s15 + $0x210] sm:$0xff]  ;;  %v5641_v22 = vcombine.low %v800_v9, %v804_v10  ;;  %v609_v9 = vld [vmem:[%s7432_s15 + $0x58] sm:$0xff] }
 0x176   : > { %2326 = vmatprep.subr.bf16.mxu0 %v5442_v18  ;;  %v792_v18 = vld [vmem:[%s7432_s15 + $0x610] sm:$0xff]  ;;  %v613_v10 = vld [vmem:[%s7432_s15 + $0x78] sm:$0xff] }
 0x177   : > { %2366 = vmatpush1.bf16.msra.mxu1 %v5577_v16  ;;  %v668_v16 = vld [vmem:[%s7432_s15 + $0x230] sm:$0xff] }
 0x178   : > { %2367 = vmatprep.subr.bf16.mxu1 %v5570_v19  ;;  %v796_v19 = vld [vmem:[%s7432_s15 + $0x630] sm:$0xff]  ;;  %v5506_v23 = vcombine.high %v664_v15, %v668_v16  ;;  %v5505_v55 = vcombine.low %v664_v15, %v668_v16  ;;  %v5452_v15 = vcombine.high %v609_v9, %v613_v10 }
 0x179   : > { %2327 = vmatpush1.bf16.msra.mxu0 %v5441_v25  ;;  %v5634_v24 = vcombine.high %v792_v18, %v796_v19  ;;  %v657_v25 = vld [vmem:[%s7432_s15 + $0x1d8] sm:$0xff]  ;;  %v5633_v28 = vcombine.low %v792_v18, %v796_v19 }
 0x17a   : > { %2328 = vmatprep.subr.bf16.mxu0 %v5562_v26  ;;  %v785_v26 = vld [vmem:[%s7432_s15 + $0x5d8] sm:$0xff] }
 0x17b   : > { %2368 = vmatpush1.bf16.msra.mxu1 %v5569_v54  ;;  %v661_v54 = vld [vmem:[%s7432_s15 + $0x1f8] sm:$0xff] }
 0x17c   : > { %2369 = vmatprep.subr.bf16.mxu1 %v5690_v27  ;;  %v789_v27 = vld [vmem:[%s7432_s15 + $0x5f8] sm:$0xff]  ;;  %v5500_v29 = vcombine.high %v657_v25, %v661_v54  ;;  %v5499_v35 = vcombine.low %v657_v25, %v661_v54 }
 0x17d   : > { %2329 = vmatpush2.bf16.msra.mxu0 %v5561_v31  ;;  %v5628_v30 = vcombine.high %v785_v26, %v789_v27  ;;  %v649_v31 = vld [vmem:[%s7432_s15 + $0x198] sm:$0xff]  ;;  %v5627_v36 = vcombine.low %v785_v26, %v789_v27 }
 0x17e   : > { %2330 = vmatprep.subr.bf16.mxu0 %v5554_v33  ;;  %v777_v33 = vld [vmem:[%s7432_s15 + $0x598] sm:$0xff] }
 0x17f   : > { %2370 = vmatpush2.bf16.msra.mxu1 %v5689_v32  ;;  %v653_v32 = vld [vmem:[%s7432_s15 + $0x1b8] sm:$0xff] }
 0x180   : > { %2371 = vmatprep.subr.bf16.mxu1 %v5682_v34  ;;  %v781_v34 = vld [vmem:[%s7432_s15 + $0x5b8] sm:$0xff]  ;;  %v5492_v37 = vcombine.high %v649_v31, %v653_v32  ;;  %v5491_v43 = vcombine.low %v649_v31, %v653_v32 }
 0x181   : > { %2331 = vmatpush2.bf16.msra.mxu0 %v5553_v39  ;;  %v5620_v38 = vcombine.high %v777_v33, %v781_v34  ;;  %v641_v39 = vld [vmem:[%s7432_s15 + $0x158] sm:$0xff]  ;;  %v5619_v44 = vcombine.low %v777_v33, %v781_v34 }
 0x182   : > { %2332 = vmatprep.subr.bf16.mxu0 %v5546_v41  ;;  %v769_v41 = vld [vmem:[%s7432_s15 + $0x558] sm:$0xff] }
 0x183   : > { %2372 = vmatpush2.bf16.msra.mxu1 %v5681_v40  ;;  %v645_v40 = vld [vmem:[%s7432_s15 + $0x178] sm:$0xff] }
 0x184   : > { %2373 = vmatprep.subr.bf16.mxu1 %v5674_v42  ;;  %v773_v42 = vld [vmem:[%s7432_s15 + $0x578] sm:$0xff]  ;;  %v5484_v45 = vcombine.high %v641_v39, %v645_v40  ;;  %v5483_v51 = vcombine.low %v641_v39, %v645_v40 }
 0x185   : > { %2333 = vmatpush2.bf16.msra.mxu0 %v5545_v47  ;;  %v5612_v46 = vcombine.high %v769_v41, %v773_v42  ;;  %v633_v47 = vld [vmem:[%s7432_s15 + $0x118] sm:$0xff]  ;;  %v5611_v52 = vcombine.low %v769_v41, %v773_v42 }
 0x186   : > { %2334 = vmatprep.subr.bf16.mxu0 %v5538_v49  ;;  %v761_v49 = vld [vmem:[%s7432_s15 + $0x518] sm:$0xff] }
 0x187   : > { %2374 = vmatpush2.bf16.msra.mxu1 %v5673_v48  ;;  %v637_v48 = vld [vmem:[%s7432_s15 + $0x138] sm:$0xff] }
 0x188   : > { %2375 = vmatprep.subr.bf16.mxu1 %v5666_v50  ;;  %v765_v50 = vld [vmem:[%s7432_s15 + $0x538] sm:$0xff]  ;;  %v5476_v53 = vcombine.high %v633_v47, %v637_v48 }
 0x189   : > { %2335 = vmatpush2.bf16.msra.mxu0 %v5537_v57  ;;  %v5604_v56 = vcombine.high %v761_v49, %v765_v50  ;;  %v625_v57 = vld [vmem:[%s7432_s15 + $0xd8] sm:$0xff] }
 0x18a   : > { %2336 = vmatprep.subr.bf16.mxu0 %v5530_v61  ;;  %v753_v61 = vld [vmem:[%s7432_s15 + $0x4d8] sm:$0xff] }
 0x18b   : > { %2376 = vmatpush2.bf16.msra.mxu1 %v5665_v58  ;;  %v629_v58 = vld [vmem:[%s7432_s15 + $0xf8] sm:$0xff] }
 0x18c   : > { %2377 = vmatprep.subr.bf16.mxu1 %v5658_v62  ;;  %v5475_v62 = vcombine.low %v633_v47, %v637_v48  ;;  %v5468_v63 = vcombine.high %v625_v57, %v629_v58  ;;  %v601_v18 = vld [vmem:[%s7432_s15 + $0x18] sm:$0xff] }
 0x18d   : > { %2337 = vmatpush2.bf16.msra.mxu0 %v5529_v3  ;;  %v745_v3 = vld [vmem:[%s7432_s15 + $0x498] sm:$0xff] }
 0x18e   : > { %2338 = vmatprep.subr.bf16.mxu0 %v5522_v5  ;;  %v5467_v5 = vcombine.low %v625_v57, %v629_v58  ;;  %v605_v19 = vld [vmem:[%s7432_s15 + $0x38] sm:$0xff] }
 0x18f   : > { %2378 = vmatpush2.bf16.msra.mxu1 %v5657_v4  ;;  %v749_v4 = vld [vmem:[%s7432_s15 + $0x4b8] sm:$0xff]  ;;  %v5444_v25 = vcombine.high %v601_v18, %v605_v19 }
 0x190   : > { %2379 = vmatprep.subr.bf16.mxu1 %v5650_v6  ;;  %v5588_v8 = vcombine.high %v745_v3, %v749_v4  ;;  %v721_v26 = vld [vmem:[%s7432_s15 + $0x3d8] sm:$0xff] }
 0x191   : > { %2339 = vmatpush2.bf16.msra.mxu0 %v5521_v11  ;;  %v737_v11 = vld [vmem:[%s7432_s15 + $0x458] sm:$0xff] }
 0x192   : > { %2340 = vmatprep.subr.bf16.mxu0 %v5514_v13  ;;  %v5459_v13 = vcombine.low %v617_v1, %v621_v2  ;;  %v725_v27 = vld [vmem:[%s7432_s15 + $0x3f8] sm:$0xff] }
 0x193   : > { %2380 = vmatpush2.bf16.msra.mxu1 %v5649_v12  ;;  %v741_v12 = vld [vmem:[%s7432_s15 + $0x478] sm:$0xff]  ;;  %v5564_v31 = vcombine.high %v721_v26, %v725_v27 }
 0x194   : > { %2381 = vmatprep.subr.bf16.mxu1 %v5642_v14  ;;  %v5587_v14 = vcombine.low %v745_v3, %v749_v4  ;;  %v5580_v16 = vcombine.high %v737_v11, %v741_v12  ;;  %v713_v33 = vld [vmem:[%s7432_s15 + $0x398] sm:$0xff] }
 0x195   : > { %2341 = vmatpush2.bf16.msra.mxu0 %v5513_v21  ;;  %v729_v21 = vld [vmem:[%s7432_s15 + $0x418] sm:$0xff] }
 0x196   : > { %2342 = vmatprep.subr.bf16.mxu0 %v5506_v23  ;;  %v5451_v23 = vcombine.low %v609_v9, %v613_v10  ;;  %v717_v34 = vld [vmem:[%s7432_s15 + $0x3b8] sm:$0xff] }
 0x197   : > { %2382 = vmatpush2.bf16.msra.mxu1 %v5641_v22  ;;  %v733_v22 = vld [vmem:[%s7432_s15 + $0x438] sm:$0xff]  ;;  %v5556_v39 = vcombine.high %v713_v33, %v717_v34 }
 0x198   : > { %2383 = vmatprep.subr.bf16.mxu1 %v5634_v24  ;;  %v5579_v24 = vcombine.low %v737_v11, %v741_v12  ;;  %v5572_v54 = vcombine.high %v729_v21, %v733_v22  ;;  %v705_v41 = vld [vmem:[%s7432_s15 + $0x358] sm:$0xff] }
 0x199   : > { %2343 = vmatpush2.bf16.msra.mxu0 %v5505_v55  ;;  %v849_v55 = vld [vmem:[%s7432_s15 + $0x7d8] sm:$0xff] }
 0x19a   : > { %2394 = vmatprep.subr.bf16.mxu0 %v5500_v29  ;;  %v5443_v29 = vcombine.low %v601_v18, %v605_v19  ;;  %v709_v42 = vld [vmem:[%s7432_s15 + $0x378] sm:$0xff] }
 0x19b   : > { %2384 = vmatpush2.bf16.msra.mxu1 %v5633_v28  ;;  %v853_v28 = vld [vmem:[%s7432_s15 + $0x7f8] sm:$0xff]  ;;  %v5548_v47 = vcombine.high %v705_v41, %v709_v42 }
 0x19c   : > { %2435 = vmatprep.subr.bf16.mxu1 %v5628_v30  ;;  %2345 = vmatmul.mubr.bf16.vlgmr.msra.gmra.mxu0 %v7547_v17  ;;  %v5571_v30 = vcombine.low %v729_v21, %v733_v22  ;;  %v5692_v32 = vcombine.high %v849_v55, %v853_v28  ;;  %v681_v3 = vld [vmem:[%s7432_s15 + $0x298] sm:$0xff] }
 0x19d   : > { %2395 = vmatpush1.bf16.msra.mxu0 %v5499_v35  ;;  %2426 = vmatprep.mubr.bf16.mxu0 %v7497_v59  ;;  %v757_v59 = vld [vmem:[%s7432_s15 + $0x4f8] sm:$0xff] }
 0x19e   : > { %2386 = vmatmul.mubr.bf16.vlgmr.msra.gmra.mxu1 %v7553_v20  ;;  %2396 = vmatprep.subr.bf16.mxu0 %v5492_v37  ;;  %v5596_v0 = vcombine.high %v753_v61, %v757_v59  ;;  %v5595_v6 = vcombine.low %v753_v61, %v757_v59  ;;  %v841_v35 = vld [vmem:[%s7432_s15 + $0x798] sm:$0xff]  ;;  %v5563_v37 = vcombine.low %v721_v26, %v725_v27 }
 0x19f   : > { %2436 = vmatpush1.bf16.msra.mxu1 %v5627_v36  ;;  %2467 = vmatprep.mubr.bf16.mxu1 %v7501_v60  ;;  %v5603_v60 = vcombine.low %v761_v49, %v765_v50  ;;  %v845_v36 = vld [vmem:[%s7432_s15 + $0x7b8] sm:$0xff] }
 0x1a0   : > { %2437 = vmatprep.subr.bf16.mxu1 %v5620_v38  ;;  %v5691_v38 = vcombine.low %v849_v55, %v853_v28  ;;  %v5684_v40 = vcombine.high %v841_v35, %v845_v36  ;;  %v697_v49 = vld [vmem:[%s7432_s15 + $0x318] sm:$0xff] }
 0x1a1   : > { %2397 = vmatpush1.bf16.msra.mxu0 %v5491_v43  ;;  %v833_v43 = vld [vmem:[%s7432_s15 + $0x758] sm:$0xff] }
 0x1a2   : > { %2398 = vmatprep.subr.bf16.mxu0 %v5484_v45  ;;  %v5555_v45 = vcombine.low %v713_v33, %v717_v34  ;;  %v701_v50 = vld [vmem:[%s7432_s15 + $0x338] sm:$0xff]  ;;  %v589_v34 = vld [vmem:[#allocation2] sm:$0xff] }
 0x1a3   : > { %2438 = vmatpush1.bf16.msra.mxu1 %v5619_v44  ;;  %v837_v44 = vld [vmem:[%s7432_s15 + $0x778] sm:$0xff]  ;;  %v5540_v57 = vcombine.high %v697_v49, %v701_v50 }
 0x1a4   : > { %2439 = vmatprep.subr.bf16.mxu1 %v5612_v46  ;;  %v5683_v46 = vcombine.low %v841_v35, %v845_v36  ;;  %v5676_v48 = vcombine.high %v833_v43, %v837_v44  ;;  %v689_v61 = vld [vmem:[%s7432_s15 + $0x2d8] sm:$0xff] }
 0x1a5   : > { %2399 = vmatpush1.bf16.msra.mxu0 %v5483_v51  ;;  %v825_v51 = vld [vmem:[%s7432_s15 + $0x718] sm:$0xff] }
 0x1a6   : > { %2400 = vmatprep.subr.bf16.mxu0 %v5476_v53  ;;  %v5547_v53 = vcombine.low %v705_v41, %v709_v42  ;;  %v693_v59 = vld [vmem:[%s7432_s15 + $0x2f8] sm:$0xff] }
 0x1a7   : > { %2440 = vmatpush1.bf16.msra.mxu1 %v5611_v52  ;;  %v829_v52 = vld [vmem:[%s7432_s15 + $0x738] sm:$0xff]  ;;  %v5532_v1 = vcombine.high %v689_v61, %v693_v59 }
 0x1a8   : > { %2441 = vmatprep.subr.bf16.mxu1 %v5604_v56  ;;  %v5675_v56 = vcombine.low %v833_v43, %v837_v44  ;;  %v5668_v58 = vcombine.high %v825_v51, %v829_v52  ;;  %v685_v4 = vld [vmem:[%s7432_s15 + $0x2b8] sm:$0xff] }
 0x1a9   : > { %2401 = vmatpush1.bf16.msra.mxu0 %v5475_v62  ;;  %v817_v62 = vld [vmem:[%s7432_s15 + $0x6d8] sm:$0xff]  ;;  %v5524_v9 = vcombine.high %v681_v3, %v685_v4 }
 0x1aa   : > { %2402 = vmatprep.subr.bf16.mxu0 %v5468_v63  ;;  %v5539_v63 = vcombine.low %v697_v49, %v701_v50  ;;  %v673_v11 = vld [vmem:[%s7432_s15 + $0x258] sm:$0xff] }
 0x1ab   : > { %2442 = vmatpush1.bf16.msra.mxu1 %v5603_v60  ;;  %v821_v60 = vld [vmem:[%s7432_s15 + $0x6f8] sm:$0xff] }
 0x1ac   : > { %2443 = vmatprep.subr.bf16.mxu1 %v5596_v0  ;;  %v5667_v0 = vcombine.low %v825_v51, %v829_v52  ;;  %v5660_v2 = vcombine.high %v817_v62, %v821_v60  ;;  %v677_v12 = vld [vmem:[%s7432_s15 + $0x278] sm:$0xff] }
 0x1ad   : > { %2403 = vmatpush1.bf16.msra.mxu0 %v5467_v5  ;;  %v809_v5 = vld [vmem:[%s7432_s15 + $0x698] sm:$0xff]  ;;  %v5516_v18 = vcombine.high %v673_v11, %v677_v12 }
 0x1ae   : > { %2404 = vmatprep.subr.bf16.mxu0 %v5460_v7  ;;  %v5531_v7 = vcombine.low %v689_v61, %v693_v59  ;;  %v665_v21 = vld [vmem:[%s7432_s15 + $0x218] sm:$0xff] }
 0x1af   : > { %2444 = vmatpush1.bf16.msra.mxu1 %v5595_v6  ;;  %v813_v6 = vld [vmem:[%s7432_s15 + $0x6b8] sm:$0xff] }
 0x1b0   : > { %2445 = vmatprep.subr.bf16.mxu1 %v5588_v8  ;;  %v5659_v8 = vcombine.low %v817_v62, %v821_v60  ;;  %v5652_v10 = vcombine.high %v809_v5, %v813_v6  ;;  %v669_v22 = vld [vmem:[%s7432_s15 + $0x238] sm:$0xff]  ;;  %v593_v60 = vld [vmem:[#allocation2 + $0x20] sm:$0xff] }
 0x1b1   : > { %2405 = vmatpush1.bf16.msra.mxu0 %v5459_v13  ;;  %v801_v13 = vld [vmem:[%s7432_s15 + $0x658] sm:$0xff]  ;;  %v5508_v26 = vcombine.high %v665_v21, %v669_v22  ;;  %v5507_v55 = vcombine.low %v665_v21, %v669_v22 }
 0x1b2   : > { %2406 = vmatprep.subr.bf16.mxu0 %v5452_v15  ;;  %v5523_v15 = vcombine.low %v681_v3, %v685_v4  ;;  %v590_v44 = vld [vmem:[#allocation2 + $0x18] sm:$0xff] }
 0x1b3   : > { %2446 = vmatpush1.bf16.msra.mxu1 %v5587_v14  ;;  %v805_v14 = vld [vmem:[%s7432_s15 + $0x678] sm:$0xff] }
 0x1b4   : > { %2447 = vmatprep.subr.bf16.mxu1 %v5580_v16  ;;  %v5651_v16 = vcombine.low %v809_v5, %v813_v6  ;;  %v5644_v19 = vcombine.high %v801_v13, %v805_v14 }
 0x1b5   : > { %2407 = vmatpush1.bf16.msra.mxu0 %v5451_v23  ;;  %v793_v23 = vld [vmem:[%s7432_s15 + $0x618] sm:$0xff] }
 0x1b6   : > { %2408 = vmatprep.subr.bf16.mxu0 %v5444_v25  ;;  %v5515_v25 = vcombine.low %v673_v11, %v677_v12  ;;  %v595_v12 = vld [vmem:[#allocation2 + $0x38] sm:$0xff] }
 0x1b7   : > { %2448 = vmatpush1.bf16.msra.mxu1 %v5579_v24  ;;  %v797_v24 = vld [vmem:[%s7432_s15 + $0x638] sm:$0xff] }
 0x1b8   : > { %2449 = vmatprep.subr.bf16.mxu1 %v5572_v54  ;;  %v5643_v54 = vcombine.low %v801_v13, %v805_v14  ;;  %v5636_v27 = vcombine.high %v793_v23, %v797_v24  ;;  %v5635_v28 = vcombine.low %v793_v23, %v797_v24 }
 0x1b9   : > { %2409 = vmatpush1.bf16.msra.mxu0 %v5443_v29 }
 0x1ba   : > { %2410 = vmatprep.subr.bf16.mxu0 %v5564_v31 }
 0x1bb   : > { %2450 = vmatpush1.bf16.msra.mxu1 %v5571_v30  ;;  %v588_v30 = vld [vmem:[#allocation2 + $0x30] sm:$0xff] }
 0x1bc   : > { %2451 = vmatprep.subr.bf16.mxu1 %v5692_v32 }
 0x1bd   : > { %2411 = vmatpush2.bf16.msra.mxu0 %v5563_v37 }
 0x1be   : > { %2412 = vmatprep.subr.bf16.mxu0 %v5556_v39 }
 0x1bf   : > { %2452 = vmatpush2.bf16.msra.mxu1 %v5691_v38 }
 0x1c0   : > { %2453 = vmatprep.subr.bf16.mxu1 %v5684_v40 }
 0x1c1   : > { %2413 = vmatpush2.bf16.msra.mxu0 %v5555_v45 }
 0x1c2   : > { %2414 = vmatprep.subr.bf16.mxu0 %v5548_v47  ;;  %v591_v47 = vld [vmem:[#allocation2 + $0x10] sm:$0xff] }
 0x1c3   : > { %2454 = vmatpush2.bf16.msra.mxu1 %v5683_v46 }
 0x1c4   : > { %2455 = vmatprep.subr.bf16.mxu1 %v5676_v48 }
 0x1c5   : > { %2415 = vmatpush2.bf16.msra.mxu0 %v5547_v53 }
 0x1c6   : > { %2416 = vmatprep.subr.bf16.mxu0 %v5540_v57 }
 0x1c7   : > { %2456 = vmatpush2.bf16.msra.mxu1 %v5675_v56 }
 0x1c8   : > { %2457 = vmatprep.subr.bf16.mxu1 %v5668_v58  ;;  %v592_v58 = vld [vmem:[#allocation2 + $0x8] sm:$0xff] }
 0x1c9   : > { %2417 = vmatpush2.bf16.msra.mxu0 %v5539_v63 }
 0x1ca   : > { %2418 = vmatprep.subr.bf16.mxu0 %v5532_v1 }
 0x1cb   : > { %2458 = vmatpush2.bf16.msra.mxu1 %v5667_v0 }
 0x1cc   : > { %2459 = vmatprep.subr.bf16.mxu1 %v5660_v2 }
 0x1cd   : > { %2419 = vmatpush2.bf16.msra.mxu0 %v5531_v7 }
 0x1ce   : > { %2420 = vmatprep.subr.bf16.mxu0 %v5524_v9 }
 0x1cf   : > { %2460 = vmatpush2.bf16.msra.mxu1 %v5659_v8  ;;  %v594_v8 = vld [vmem:[#allocation2 + $0x28] sm:$0xff] }
 0x1d0   : > { %2461 = vmatprep.subr.bf16.mxu1 %v5652_v10 }
 0x1d1   : > { %2421 = vmatpush2.bf16.msra.mxu0 %v5523_v15 }
 0x1d2   : > { %2422 = vmatprep.subr.bf16.mxu0 %v5516_v18 }
 0x1d3   : > { %2462 = vmatpush2.bf16.msra.mxu1 %v5651_v16 }
 0x1d4   : > { %2463 = vmatprep.subr.bf16.mxu1 %v5644_v19 }
 0x1d5   : > { %2423 = vmatpush2.bf16.msra.mxu0 %v5515_v25 }
 0x1d6   : > { %2424 = vmatprep.subr.bf16.mxu0 %v5508_v26 }
 0x1d7   : > { %2464 = vmatpush2.bf16.msra.mxu1 %v5643_v54 }
 0x1d8   : > { %2465 = vmatprep.subr.bf16.mxu1 %v5636_v27 }
 0x1d9   : > { %2425 = vmatpush2.bf16.msra.mxu0 %v5507_v55 }
 0x1db   : > { %2466 = vmatpush2.bf16.msra.mxu1 %v5635_v28 }
 0x1dc   : > { %v2182_v29 = vpop.f32.mrf.mxu0  ;;  %2427 = vmatmul.mubr.bf16.vlgmr.msra.gmra.mxu0 %v7547_v17 }
 0x1de   : > { %v2223_v31 = vpop.f32.mrf.mxu1  ;;  %2468 = vmatmul.mubr.bf16.vlgmr.msra.gmra.mxu1 %v7553_v20  ;;  %v2184_v33 = vpop.f32.mrf.mxu0 }
 0x1df   : > { %v2224_v32 = vadd.f32 %v2223_v31, %v2182_v29 }
 0x1e0   : > { %v2225_v35 = vpop.f32.mrf.mxu1  ;;  %v2186_v38 = vpop.f32.mrf.mxu0 }
 0x1e1   : > { %v2476_v36 = vadd.f32 %v2224_v32, %v588_v30  ;;  %v2226_v37 = vadd.f32 %v2225_v35, %v2184_v33 }
 0x1e2   : > { %v2227_v39 = vpop.f32.mrf.mxu1  ;;  %v2187_v41 = vpop.f32.mrf.mxu0 }
 0x1e3   : > { %2484 = vst [vmem:[#allocation2 + $0x30] sm:$0xff] %v2476_v36  ;;  %v2477_v40 = vadd.f32 %v2226_v37, %v589_v34 }
 0x1e4   : > { %v2228_v42 = vpop.f32.mrf.mxu1 }
 0x1e5   : > { %2485 = vst [vmem:[#allocation2] sm:$0xff] %v2477_v40 }
 0x21c   : > { %v2264_v43 = vpop.f32.mrf.mxu0 }
 0x21e   : > { %v2305_v17 = vpop.f32.mrf.mxu1  ;;  %v2266_v46 = vpop.f32.mrf.mxu0 }
 0x21f   : > { %v2306_v45 = vadd.f32 %v2305_v17, %v2264_v43 }
 0x220   : > { %v2307_v20 = vpop.f32.mrf.mxu1  ;;  %v2268_v50 = vpop.f32.mrf.mxu0 }
 0x221   : > { %v2478_v48 = vadd.f32 %v2306_v45, %v590_v44  ;;  %v2308_v49 = vadd.f32 %v2307_v20, %v2266_v46 }
 0x222   : > { %v2309_v51 = vpop.f32.mrf.mxu1  ;;  %v2269_v53 = vpop.f32.mrf.mxu0 }
 0x223   : > { %2486 = vst [vmem:[#allocation2 + $0x18] sm:$0xff] %v2478_v48  ;;  %v2479_v52 = vadd.f32 %v2308_v49, %v591_v47 }
 0x224   : > { %v2310_v56 = vpop.f32.mrf.mxu1 }
 0x225   : > { %2487 = vst [vmem:[#allocation2 + $0x10] sm:$0xff] %v2479_v52 }
 0x25c   : > { %v2346_v57 = vpop.f32.mrf.mxu0 }
 0x25e   : > { %v2387_v61 = vpop.f32.mrf.mxu1  ;;  %v2348_v62 = vpop.f32.mrf.mxu0 }
 0x25f   : > { %v2388_v59 = vadd.f32 %v2387_v61, %v2346_v57 }
 0x260   : > { %v2389_v63 = vpop.f32.mrf.mxu1  ;;  %v2350_v2 = vpop.f32.mrf.mxu0 }
 0x261   : > { %v2480_v0 = vadd.f32 %v2388_v59, %v592_v58  ;;  %v2390_v1 = vadd.f32 %v2389_v63, %v2348_v62 }
 0x262   : > { %v2391_v3 = vpop.f32.mrf.mxu1  ;;  %v2351_v5 = vpop.f32.mrf.mxu0 }
 0x263   : > { %2488 = vst [vmem:[#allocation2 + $0x8] sm:$0xff] %v2480_v0  ;;  %v2481_v4 = vadd.f32 %v2390_v1, %v593_v60 }
 0x264   : > { %v2392_v6 = vpop.f32.mrf.mxu1 }
 0x265   : > { %2489 = vst [vmem:[#allocation2 + $0x20] sm:$0xff] %v2481_v4 }
 0x29c   : > { %v2428_v7 = vpop.f32.mrf.mxu0 }
 0x29e   : > { %v2469_v9 = vpop.f32.mrf.mxu1  ;;  %v2430_v11 = vpop.f32.mrf.mxu0 }
 0x29f   : > { %v2470_v10 = vadd.f32 %v2469_v9, %v2428_v7 }
 0x2a0   : > { %v2471_v13 = vpop.f32.mrf.mxu1  ;;  %v2432_v16 = vpop.f32.mrf.mxu0 }
 0x2a1   : > { %v2482_v14 = vadd.f32 %v2470_v10, %v594_v8  ;;  %v2472_v15 = vadd.f32 %v2471_v13, %v2430_v11  ;;  %2495 = sbr.rel (%p5693_p8) target bundleno = 1737 (0x6c9), region = 116 }
 0x2a2   : > { %v2473_v18 = vpop.f32.mrf.mxu1  ;;  %v2433_v21 = vpop.f32.mrf.mxu0 }
 0x2a3   : > { %2490 = vst [vmem:[#allocation2 + $0x28] sm:$0xff] %v2482_v14  ;;  %v2483_v19 = vadd.f32 %v2472_v15, %v595_v12 }
 0x2a4   : > { %v2474_v22 = vpop.f32.mrf.mxu1 }
 0x2a5   : > { %2491 = vst [vmem:[#allocation2 + $0x38] sm:$0xff] %v2483_v19 }
 0x2a6   : > { %v6271_v23 = vld [vmem:[#allocation9 + $0xe4] ss:$16 sps:$4 sm:$0xff]   ;;  %v6275_v25 = vld [vmem:[#allocation9 + $0xe0] ss:$16 sps:$4 sm:$0xff]   ;;  %v2506_v58 = vlaneseq  ;;  %v2497_v9 = vld [vmem:[#allocation2] sm:$0xff]  ;;  %vm7190_vm0 = vmmov 0  }
 0x2a7   : > { %v6273_v24 = vld [vmem:[#allocation9 + $0x2e4] ss:$16 sps:$4 sm:$0xff]   ;;  %4120 = vmatprep.subr.bf16.mxu0 %v6271_v23  ;;  %v6276_v54 = vld [vmem:[#allocation9 + $0x2e0] ss:$16 sps:$4 sm:$0xff]   ;;  %v7761_v10 = vld [vmem:[#allocation8] sm:$0xff] }
 0x2a8   : > { %4161 = vmatprep.subr.bf16.mxu1 %v6273_v24  ;;  %v6277_v26 = vld [vmem:[#allocation9 + $0xc4] ss:$16 sps:$4 sm:$0xff]   ;;  %4121 = vmatpush1.bf16.msra.mxu0 %v6275_v25  ;;  %v6281_v55 = vld [vmem:[#allocation9 + $0xc0] ss:$16 sps:$4 sm:$0xff]   ;;  %v7754_v63 = vshrl.u32 %v2506_v58, 7  ;;  %v2499_v11 = vld [vmem:[#allocation2 + $0x10] sm:$0xff] }
 0x2a9   : > { %4162 = vmatpush1.bf16.msra.mxu1 %v6276_v54  ;;  %v6279_v27 = vld [vmem:[#allocation9 + $0x2c4] ss:$16 sps:$4 sm:$0xff]   ;;  %4122 = vmatprep.subr.bf16.mxu0 %v6277_v26  ;;  %v6282_v28 = vld [vmem:[#allocation9 + $0x2c0] ss:$16 sps:$4 sm:$0xff]  }
 0x2aa   : > { %4163 = vmatprep.subr.bf16.mxu1 %v6279_v27  ;;  %v6283_v29 = vld [vmem:[#allocation9 + $0xa4] ss:$16 sps:$4 sm:$0xff]   ;;  %v6287_v31 = vld [vmem:[#allocation9 + $0xa0] ss:$16 sps:$4 sm:$0xff]   ;;  %v7757_v4 = vsub.s32 1, %v7754_v63  ;;  %v2520_v5 = vsub.s32 3, %v7754_v63 }
 0x2ab   : > { %v6285_v30 = vld [vmem:[#allocation9 + $0x2a4] ss:$16 sps:$4 sm:$0xff]   ;;  %v6288_v32 = vld [vmem:[#allocation9 + $0x2a0] ss:$16 sps:$4 sm:$0xff]   ;;  %v2524_v8 = vsub.s32 4, %v7754_v63  ;;  %v2532_v12 = vsub.s32 6, %v7754_v63 }
 0x2ac   : > { %4123 = vmatpush1.bf16.msra.mxu0 %v6281_v55  ;;  %v6289_v33 = vld [vmem:[#allocation9 + $0x84] ss:$16 sps:$4 sm:$0xff]   ;;  %v6293_v35 = vld [vmem:[#allocation9 + $0x80] ss:$16 sps:$4 sm:$0xff]   ;;  %v2513_v14 = vrot.slane %v7761_v10, %v7757_v4  ;;  %v2521_v15 = vrot.slane %v7761_v10, %v2520_v5 }
 0x2ad   : > { %4164 = vmatpush1.bf16.msra.mxu1 %v6282_v28  ;;  %4124 = vmatprep.subr.bf16.mxu0 %v6283_v29  ;;  %v6291_v34 = vld [vmem:[#allocation9 + $0x284] ss:$16 sps:$4 sm:$0xff]   ;;  %v6294_v36 = vld [vmem:[#allocation9 + $0x280] ss:$16 sps:$4 sm:$0xff]   ;;  %v7770_v22 = vrot.slane %v7761_v10, %v2524_v8  ;;  %v7773_v24 = vrot.slane %v7761_v10, %v2532_v12  ;;  %v7782_v29 = vsub.s32 0, %v7754_v63  ;;  %v2536_v8 = vsub.s32 7, %v7754_v63 }
 0x2ae   : > { %4165 = vmatprep.subr.bf16.mxu1 %v6285_v30  ;;  %v6295_v37 = vld [vmem:[#allocation9 + $0x64] ss:$16 sps:$4 sm:$0xff]   ;;  %v6299_v39 = vld [vmem:[#allocation9 + $0x60] ss:$16 sps:$4 sm:$0xff]   ;;  %v2547_v19 = vadd.f32 %v2513_v14, %v2497_v9  ;;  %v2549_v21 = vadd.f32 %v2521_v15, %v2499_v11  ;;  %v2516_v30 = vsub.s32 2, %v7754_v63 }
 0x2af   : > { %v6297_v38 = vld [vmem:[#allocation9 + $0x264] ss:$16 sps:$4 sm:$0xff]   ;;  %v6300_v40 = vld [vmem:[#allocation9 + $0x260] ss:$16 sps:$4 sm:$0xff]   ;;  %v2537_v15 = vrot.slane %v7761_v10, %v2536_v8 }
 0x2b0   : > { %4125 = vmatpush1.bf16.msra.mxu0 %v6287_v31  ;;  %v6301_v41 = vld [vmem:[#allocation9 + $0x44] ss:$16 sps:$4 sm:$0xff]   ;;  %v6305_v43 = vld [vmem:[#allocation9 + $0x40] ss:$16 sps:$4 sm:$0xff]   ;;  %v7775_v54 = vpack.c.bf16 %v2547_v19, %v2547_v19  ;;  %v7777_v26 = vpack.c.bf16 %v2549_v21, %v2549_v21  ;;  %v2501_v21 = vld [vmem:[#allocation2 + $0x20] sm:$0xff] }
 0x2b1   : > { %4166 = vmatpush1.bf16.msra.mxu1 %v6288_v32  ;;  %4126 = vmatprep.subr.bf16.mxu0 %v6289_v33  ;;  %v6303_v42 = vld [vmem:[#allocation9 + $0x244] ss:$16 sps:$4 sm:$0xff]   ;;  %v6306_v44 = vld [vmem:[#allocation9 + $0x240] ss:$16 sps:$4 sm:$0xff]  }
 0x2b2   : > { %4167 = vmatprep.subr.bf16.mxu1 %v6291_v34  ;;  %v6307_v17 = vld [vmem:[#allocation9 + $0x24] ss:$16 sps:$4 sm:$0xff]   ;;  %v6311_v46 = vld [vmem:[#allocation9 + $0x20] ss:$16 sps:$4 sm:$0xff]   ;;  %4152 = vmatprep.mubr.bf16.mxu0 %v7775_v54 }
 0x2b3   : > { %v6309_v45 = vld [vmem:[#allocation9 + $0x224] ss:$16 sps:$4 sm:$0xff]   ;;  %v6312_v47 = vld [vmem:[#allocation9 + $0x220] ss:$16 sps:$4 sm:$0xff]   ;;  %4193 = vmatprep.mubr.bf16.mxu1 %v7777_v26 }
 0x2b4   : > { %4127 = vmatpush1.bf16.msra.mxu0 %v6293_v35  ;;  %v6313_v20 = vld [vmem:[#allocation9 + $0x4] ss:$16 sps:$4 sm:$0xff]   ;;  %v6317_v49 = vld [vmem:[#allocation9] ss:$16 sps:$4 sm:$0xff]  }
 0x2b5   : > { %4168 = vmatpush1.bf16.msra.mxu1 %v6294_v36  ;;  %4128 = vmatprep.subr.bf16.mxu0 %v6295_v37  ;;  %v6315_v48 = vld [vmem:[#allocation9 + $0x204] ss:$16 sps:$4 sm:$0xff]   ;;  %v6318_v50 = vld [vmem:[#allocation9 + $0x200] ss:$16 sps:$4 sm:$0xff]   ;;  %v2496_v36 = vld [vmem:[#allocation2 + $0x30] sm:$0xff]  ;;  %v2509_v37 = vrot.slane %v7761_v10, %v7782_v29 }
 0x2b6   : > { %4169 = vmatprep.subr.bf16.mxu1 %v6297_v38  ;;  %v6319_v51 = vld [vmem:[#allocation9 + $0x1e4] ss:$16 sps:$4 sm:$0xff]   ;;  %v6323_v53 = vld [vmem:[#allocation9 + $0x1e0] ss:$16 sps:$4 sm:$0xff]   ;;  %v2517_v38 = vrot.slane %v7761_v10, %v2516_v30 }
 0x2b7   : > { %v6321_v52 = vld [vmem:[#allocation9 + $0x3e4] ss:$16 sps:$4 sm:$0xff]   ;;  %v6324_v56 = vld [vmem:[#allocation9 + $0x3e0] ss:$16 sps:$4 sm:$0xff]  }
 0x2b8   : > { %4129 = vmatpush1.bf16.msra.mxu0 %v6299_v39  ;;  %v6325_v57 = vld [vmem:[#allocation9 + $0x1c4] ss:$16 sps:$4 sm:$0xff]   ;;  %v6329_v59 = vld [vmem:[#allocation9 + $0x1c0] ss:$16 sps:$4 sm:$0xff]  }
 0x2b9   : > { %4170 = vmatpush1.bf16.msra.mxu1 %v6300_v40  ;;  %4130 = vmatprep.subr.bf16.mxu0 %v6301_v41  ;;  %v6327_v61 = vld [vmem:[#allocation9 + $0x3c4] ss:$16 sps:$4 sm:$0xff]   ;;  %v6330_v62 = vld [vmem:[#allocation9 + $0x3c0] ss:$16 sps:$4 sm:$0xff]  }
 0x2ba   : > { %4171 = vmatprep.subr.bf16.mxu1 %v6303_v42  ;;  %v6331_v60 = vld [vmem:[#allocation9 + $0x1a4] ss:$16 sps:$4 sm:$0xff]   ;;  %v6335_v1 = vld [vmem:[#allocation9 + $0x1a0] ss:$16 sps:$4 sm:$0xff]  }
 0x2bb   : > { %v6333_v0 = vld [vmem:[#allocation9 + $0x3a4] ss:$16 sps:$4 sm:$0xff]   ;;  %v6336_v2 = vld [vmem:[#allocation9 + $0x3a0] ss:$16 sps:$4 sm:$0xff]  }
 0x2bc   : > { %4131 = vmatpush1.bf16.msra.mxu0 %v6305_v43  ;;  %v6337_v3 = vld [vmem:[#allocation9 + $0x184] ss:$16 sps:$4 sm:$0xff]   ;;  %v6341_v7 = vld [vmem:[#allocation9 + $0x180] ss:$16 sps:$4 sm:$0xff]   ;;  %v2546_v43 = vadd.f32 %v2509_v37, %v2496_v36 }
 0x2bd   : > { %4172 = vmatpush1.bf16.msra.mxu1 %v6306_v44  ;;  %4132 = vmatprep.subr.bf16.mxu0 %v6307_v17  ;;  %v6339_v6 = vld [vmem:[#allocation9 + $0x384] ss:$16 sps:$4 sm:$0xff]   ;;  %v6342_v13 = vld [vmem:[#allocation9 + $0x380] ss:$16 sps:$4 sm:$0xff]  }
 0x2be   : > { %4173 = vmatprep.subr.bf16.mxu1 %v6309_v45  ;;  %v6343_v16 = vld [vmem:[#allocation9 + $0x164] ss:$16 sps:$4 sm:$0xff]   ;;  %v6347_v23 = vld [vmem:[#allocation9 + $0x160] ss:$16 sps:$4 sm:$0xff]  }
 0x2bf   : > { %v6345_v18 = vld [vmem:[#allocation9 + $0x364] ss:$16 sps:$4 sm:$0xff]   ;;  %v6348_v25 = vld [vmem:[#allocation9 + $0x360] ss:$16 sps:$4 sm:$0xff]  }
 0x2c0   : > { %4133 = vmatpush1.bf16.msra.mxu0 %v6311_v46  ;;  %v6349_v27 = vld [vmem:[#allocation9 + $0x144] ss:$16 sps:$4 sm:$0xff]   ;;  %v6353_v28 = vld [vmem:[#allocation9 + $0x140] ss:$16 sps:$4 sm:$0xff]  }
 0x2c1   : > { %4174 = vmatpush1.bf16.msra.mxu1 %v6312_v47  ;;  %4134 = vmatprep.subr.bf16.mxu0 %v6313_v20  ;;  %v6351_v55 = vld [vmem:[#allocation9 + $0x344] ss:$16 sps:$4 sm:$0xff]   ;;  %v6354_v31 = vld [vmem:[#allocation9 + $0x340] ss:$16 sps:$4 sm:$0xff]   ;;  %v7790_v47 = vpack.c.bf16 %v2546_v43, %v2546_v43 }
 0x2c2   : > { %4175 = vmatprep.subr.bf16.mxu1 %v6315_v48  ;;  %v6355_v32 = vld [vmem:[#allocation9 + $0x124] ss:$16 sps:$4 sm:$0xff]   ;;  %v6359_v34 = vld [vmem:[#allocation9 + $0x120] ss:$16 sps:$4 sm:$0xff]  }
 0x2c3   : > { %v6357_v33 = vld [vmem:[#allocation9 + $0x324] ss:$16 sps:$4 sm:$0xff]   ;;  %v6360_v35 = vld [vmem:[#allocation9 + $0x320] ss:$16 sps:$4 sm:$0xff]  }
 0x2c4   : > { %4135 = vmatpush1.bf16.msra.mxu0 %v6317_v49  ;;  %v2498_v39 = vld [vmem:[#allocation2 + $0x18] sm:$0xff] }
 0x2c5   : > { %4176 = vmatpush1.bf16.msra.mxu1 %v6318_v50  ;;  %4136 = vmatprep.subr.bf16.mxu0 %v6319_v51  ;;  %v6361_v40 = vld [vmem:[#allocation9 + $0x104] ss:$16 sps:$4 sm:$0xff]   ;;  %v6365_v42 = vld [vmem:[#allocation9 + $0x100] ss:$16 sps:$4 sm:$0xff]   ;;  %v2548_v44 = vadd.f32 %v2517_v38, %v2498_v39 }
 0x2c6   : > { %4177 = vmatprep.subr.bf16.mxu1 %v6321_v52  ;;  %v6363_v41 = vld [vmem:[#allocation9 + $0x304] ss:$16 sps:$4 sm:$0xff]   ;;  %v6366_v17 = vld [vmem:[#allocation9 + $0x300] ss:$16 sps:$4 sm:$0xff]  }
 0x2c7   : > { %v6369_v45 = vld [vmem:[#allocation9 + $0x4e4] ss:$16 sps:$4 sm:$0xff]   ;;  %v7792_v20 = vpack.c.bf16 %v2548_v44, %v2548_v44  ;;  %v6367_v48 = vld [vmem:[#allocation9 + $0x4e0] ss:$16 sps:$4 sm:$0xff]  }
 0x2c8   : > { %4137 = vmatpush2.bf16.msra.mxu0 %v6323_v53  ;;  %v6372_v46 = vld [vmem:[#allocation9 + $0x6e4] ss:$16 sps:$4 sm:$0xff]   ;;  %v6370_v49 = vld [vmem:[#allocation9 + $0x6e0] ss:$16 sps:$4 sm:$0xff]  }
 0x2c9   : > { %4178 = vmatpush2.bf16.msra.mxu1 %v6324_v56  ;;  %4138 = vmatprep.subr.bf16.mxu0 %v6325_v57  ;;  %v6375_v50 = vld [vmem:[#allocation9 + $0x4c4] ss:$16 sps:$4 sm:$0xff]   ;;  %v6373_v52 = vld [vmem:[#allocation9 + $0x4c0] ss:$16 sps:$4 sm:$0xff]  }
 0x2ca   : > { %4179 = vmatprep.subr.bf16.mxu1 %v6327_v61  ;;  %v6378_v51 = vld [vmem:[#allocation9 + $0x6c4] ss:$16 sps:$4 sm:$0xff]   ;;  %v6376_v53 = vld [vmem:[#allocation9 + $0x6c0] ss:$16 sps:$4 sm:$0xff]  }
 0x2cb   : > { %v6381_v56 = vld [vmem:[#allocation9 + $0x4a4] ss:$16 sps:$4 sm:$0xff]   ;;  %v6379_v58 = vld [vmem:[#allocation9 + $0x4a0] ss:$16 sps:$4 sm:$0xff]  }
 0x2cc   : > { %4139 = vmatpush2.bf16.msra.mxu0 %v6329_v59  ;;  %v6384_v57 = vld [vmem:[#allocation9 + $0x6a4] ss:$16 sps:$4 sm:$0xff]   ;;  %v6382_v61 = vld [vmem:[#allocation9 + $0x6a0] ss:$16 sps:$4 sm:$0xff]  }
 0x2cd   : > { %4180 = vmatpush2.bf16.msra.mxu1 %v6330_v62  ;;  %4140 = vmatprep.subr.bf16.mxu0 %v6331_v60  ;;  %v6387_v59 = vld [vmem:[#allocation9 + $0x484] ss:$16 sps:$4 sm:$0xff]   ;;  %v6385_v60 = vld [vmem:[#allocation9 + $0x480] ss:$16 sps:$4 sm:$0xff]  }
 0x2ce   : > { %4181 = vmatprep.subr.bf16.mxu1 %v6333_v0  ;;  %v6390_v62 = vld [vmem:[#allocation9 + $0x684] ss:$16 sps:$4 sm:$0xff]   ;;  %v6388_v0 = vld [vmem:[#allocation9 + $0x680] ss:$16 sps:$4 sm:$0xff]  }
 0x2cf   : > { %v6399_v9 = vld [vmem:[#allocation9 + $0x444] ss:$16 sps:$4 sm:$0xff]   ;;  %v6397_v12 = vld [vmem:[#allocation9 + $0x440] ss:$16 sps:$4 sm:$0xff]  }
 0x2d0   : > { %4141 = vmatpush2.bf16.msra.mxu0 %v6335_v1  ;;  %v6393_v1 = vld [vmem:[#allocation9 + $0x464] ss:$16 sps:$4 sm:$0xff]   ;;  %v6403_v19 = vld [vmem:[#allocation9 + $0x420] ss:$16 sps:$4 sm:$0xff]  }
 0x2d1   : > { %4182 = vmatpush2.bf16.msra.mxu1 %v6336_v2  ;;  %4142 = vmatprep.subr.bf16.mxu0 %v6337_v3  ;;  %v6396_v2 = vld [vmem:[#allocation9 + $0x664] ss:$16 sps:$4 sm:$0xff]   ;;  %v6391_v3 = vld [vmem:[#allocation9 + $0x460] ss:$16 sps:$4 sm:$0xff]  }
 0x2d2   : > { %4183 = vmatprep.subr.bf16.mxu1 %v6339_v6  ;;  %v6394_v6 = vld [vmem:[#allocation9 + $0x660] ss:$16 sps:$4 sm:$0xff]   ;;  %v6402_v11 = vld [vmem:[#allocation9 + $0x644] ss:$16 sps:$4 sm:$0xff]  }
 0x2d3   : > { %v6420_v36 = vld [vmem:[#allocation9 + $0x7e4] ss:$16 sps:$4 sm:$0xff]   ;;  %v6415_v37 = vld [vmem:[#allocation9 + $0x5e0] ss:$16 sps:$4 sm:$0xff]  }
 0x2d4   : > { %4143 = vmatpush2.bf16.msra.mxu0 %v6341_v7  ;;  %v2528_v7 = vsub.s32 5, %v7754_v63  ;;  %v6418_v38 = vld [vmem:[#allocation9 + $0x7e0] ss:$16 sps:$4 sm:$0xff]   ;;  %v6423_v39 = vld [vmem:[#allocation9 + $0x5c4] ss:$16 sps:$4 sm:$0xff]  }
 0x2d5   : > { %4184 = vmatpush2.bf16.msra.mxu1 %v6342_v13  ;;  %4144 = vmatprep.subr.bf16.mxu0 %v6343_v16  ;;  %v6400_v13 = vld [vmem:[#allocation9 + $0x640] ss:$16 sps:$4 sm:$0xff]   ;;  %v6405_v16 = vld [vmem:[#allocation9 + $0x424] ss:$16 sps:$4 sm:$0xff]  }
 0x2d6   : > { %4185 = vmatprep.subr.bf16.mxu1 %v6345_v18  ;;  %v2529_v14 = vrot.slane %v7761_v10, %v2528_v7  ;;  %v6408_v18 = vld [vmem:[#allocation9 + $0x624] ss:$16 sps:$4 sm:$0xff]   ;;  %v6409_v10 = vld [vmem:[#allocation9 + $0x400] ss:$16 sps:$4 sm:$0xff]  }
 0x2d7   : > { %v6429_v43 = vld [vmem:[#allocation9 + $0x5a4] ss:$16 sps:$4 sm:$0xff]   ;;  %v6457_v8 = vld [vmem:[#allocation9 + $0x500] ss:$16 sps:$4 sm:$0xff]  }
 0x2d8   : > { %4145 = vmatpush2.bf16.msra.mxu0 %v6347_v23  ;;  %v2503_v23 = vld [vmem:[#allocation2 + $0x38] sm:$0xff] }
 0x2d9   : > { %4186 = vmatpush2.bf16.msra.mxu1 %v6348_v25  ;;  %4146 = vmatprep.subr.bf16.mxu0 %v6349_v27  ;;  %v6406_v25 = vld [vmem:[#allocation9 + $0x620] ss:$16 sps:$4 sm:$0xff]   ;;  %v2551_v27 = vadd.f32 %v2529_v14, %v2501_v21  ;;  %v6432_v44 = vld [vmem:[#allocation9 + $0x7a4] ss:$16 sps:$4 sm:$0xff]   ;;  %v6468_v14 = vld [vmem:[#allocation9 + $0x2ec] ss:$16 sps:$4 sm:$0xff]  }
 0x2da   : > { %4187 = vmatprep.subr.bf16.mxu1 %v6351_v55  ;;  %v2553_v55 = vadd.f32 %v2537_v15, %v2503_v23  ;;  %v6462_v7 = vld [vmem:[#allocation9 + $0x704] ss:$16 sps:$4 sm:$0xff]   ;;  %v6474_v21 = vld [vmem:[#allocation9 + $0x2cc] ss:$16 sps:$4 sm:$0xff]   ;;  %v6472_v23 = vld [vmem:[#allocation9 + $0x2c8] ss:$16 sps:$4 sm:$0xff]  }
 0x2dc   : > { %4147 = vmatpush2.bf16.msra.mxu0 %v6353_v28  ;;  %v6411_v28 = vld [vmem:[#allocation9 + $0x404] ss:$16 sps:$4 sm:$0xff]  }
 0x2dd   : > { %4188 = vmatpush2.bf16.msra.mxu1 %v6354_v31  ;;  %4148 = vmatprep.subr.bf16.mxu0 %v6355_v32  ;;  %v6414_v31 = vld [vmem:[#allocation9 + $0x604] ss:$16 sps:$4 sm:$0xff]   ;;  %v7800_v32 = vpack.c.bf16 %v2551_v27, %v2551_v27  ;;  %v6480_v27 = vld [vmem:[#allocation9 + $0x2ac] ss:$16 sps:$4 sm:$0xff]  }
 0x2de   : > { %4189 = vmatprep.subr.bf16.mxu1 %v6357_v33  ;;  %v7802_v33 = vpack.c.bf16 %v2553_v55, %v2553_v55  ;;  %v6475_v55 = vld [vmem:[#allocation9 + $0xa8] ss:$16 sps:$4 sm:$0xff]  }
 0x2e0   : > { %4149 = vmatpush2.bf16.msra.mxu0 %v6359_v34  ;;  %v6412_v34 = vld [vmem:[#allocation9 + $0x600] ss:$16 sps:$4 sm:$0xff]  }
 0x2e1   : > { %4190 = vmatpush2.bf16.msra.mxu1 %v6360_v35  ;;  %4150 = vmatprep.subr.bf16.mxu0 %v6361_v40  ;;  %v6417_v35 = vld [vmem:[#allocation9 + $0x5e4] ss:$16 sps:$4 sm:$0xff]  }
 0x2e2   : > { %4191 = vmatprep.subr.bf16.mxu1 %v6363_v41  ;;  %v6426_v40 = vld [vmem:[#allocation9 + $0x7c4] ss:$16 sps:$4 sm:$0xff]   ;;  %v6421_v41 = vld [vmem:[#allocation9 + $0x5c0] ss:$16 sps:$4 sm:$0xff]  }
 0x2e4   : > { %4151 = vmatpush2.bf16.msra.mxu0 %v6365_v42  ;;  %v6424_v42 = vld [vmem:[#allocation9 + $0x7c0] ss:$16 sps:$4 sm:$0xff]  }
 0x2e5   : > { %4192 = vmatpush2.bf16.msra.mxu1 %v6366_v17  ;;  %4202 = vmatprep.subr.bf16.mxu0 %v6369_v45  ;;  %v6427_v17 = vld [vmem:[#allocation9 + $0x5a0] ss:$16 sps:$4 sm:$0xff]  }
 0x2e6   : > { %4243 = vmatprep.subr.bf16.mxu1 %v6372_v46  ;;  %v6430_v45 = vld [vmem:[#allocation9 + $0x7a0] ss:$16 sps:$4 sm:$0xff]   ;;  %v6435_v46 = vld [vmem:[#allocation9 + $0x584] ss:$16 sps:$4 sm:$0xff]  }
 0x2e7   : > { %4153 = vmatmul.mubr.bf16.vlgmr.msra.gmra.mxu0 %v7790_v47 }
 0x2e8   : > { %4194 = vmatmul.mubr.bf16.vlgmr.msra.gmra.mxu1 %v7792_v20  ;;  %4203 = vmatpush1.bf16.msra.mxu0 %v6367_v48  ;;  %v6438_v48 = vld [vmem:[#allocation9 + $0x784] ss:$16 sps:$4 sm:$0xff]  }
 0x2e9   : > { %4244 = vmatpush1.bf16.msra.mxu1 %v6370_v49  ;;  %4204 = vmatprep.subr.bf16.mxu0 %v6375_v50  ;;  %v6433_v49 = vld [vmem:[#allocation9 + $0x580] ss:$16 sps:$4 sm:$0xff]  }
 0x2ea   : > { %4245 = vmatprep.subr.bf16.mxu1 %v6378_v51  ;;  %4234 = vmatprep.mubr.bf16.mxu0 %v7800_v32  ;;  %v6436_v50 = vld [vmem:[#allocation9 + $0x780] ss:$16 sps:$4 sm:$0xff]   ;;  %v6441_v51 = vld [vmem:[#allocation9 + $0x564] ss:$16 sps:$4 sm:$0xff]  }
 0x2eb   : > { %4275 = vmatprep.mubr.bf16.mxu1 %v7802_v33 }
 0x2ec   : > { %4205 = vmatpush1.bf16.msra.mxu0 %v6373_v52  ;;  %v6444_v52 = vld [vmem:[#allocation9 + $0x764] ss:$16 sps:$4 sm:$0xff]  }
 0x2ed   : > { %4246 = vmatpush1.bf16.msra.mxu1 %v6376_v53  ;;  %4206 = vmatprep.subr.bf16.mxu0 %v6381_v56  ;;  %v6439_v53 = vld [vmem:[#allocation9 + $0x560] ss:$16 sps:$4 sm:$0xff]  }
 0x2ee   : > { %4247 = vmatprep.subr.bf16.mxu1 %v6384_v57  ;;  %v6442_v56 = vld [vmem:[#allocation9 + $0x760] ss:$16 sps:$4 sm:$0xff]   ;;  %v6447_v57 = vld [vmem:[#allocation9 + $0x544] ss:$16 sps:$4 sm:$0xff]  }
 0x2f0   : > { %4207 = vmatpush1.bf16.msra.mxu0 %v6379_v58  ;;  %v6450_v58 = vld [vmem:[#allocation9 + $0x744] ss:$16 sps:$4 sm:$0xff]  }
 0x2f1   : > { %4248 = vmatpush1.bf16.msra.mxu1 %v6382_v61  ;;  %4208 = vmatprep.subr.bf16.mxu0 %v6387_v59  ;;  %v6445_v61 = vld [vmem:[#allocation9 + $0x540] ss:$16 sps:$4 sm:$0xff]  }
 0x2f2   : > { %4249 = vmatprep.subr.bf16.mxu1 %v6390_v62  ;;  %v6448_v59 = vld [vmem:[#allocation9 + $0x740] ss:$16 sps:$4 sm:$0xff]   ;;  %v6453_v62 = vld [vmem:[#allocation9 + $0x524] ss:$16 sps:$4 sm:$0xff]  }
 0x2f4   : > { %4209 = vmatpush1.bf16.msra.mxu0 %v6385_v60  ;;  %v6456_v60 = vld [vmem:[#allocation9 + $0x724] ss:$16 sps:$4 sm:$0xff]  }
 0x2f5   : > { %4250 = vmatpush1.bf16.msra.mxu1 %v6388_v0  ;;  %4210 = vmatprep.subr.bf16.mxu0 %v6393_v1  ;;  %v6451_v0 = vld [vmem:[#allocation9 + $0x520] ss:$16 sps:$4 sm:$0xff]  }
 0x2f6   : > { %4251 = vmatprep.subr.bf16.mxu1 %v6396_v2  ;;  %v6454_v1 = vld [vmem:[#allocation9 + $0x720] ss:$16 sps:$4 sm:$0xff]  }
 0x2f7   : > { %v2500_v2 = vld [vmem:[#allocation2 + $0x8] sm:$0xff] }
 0x2f8   : > { %4211 = vmatpush1.bf16.msra.mxu0 %v6391_v3  ;;  %v2502_v3 = vld [vmem:[#allocation2 + $0x28] sm:$0xff] }
 0x2f9   : > { %4252 = vmatpush1.bf16.msra.mxu1 %v6394_v6  ;;  %4212 = vmatprep.subr.bf16.mxu0 %v6399_v9  ;;  %v6459_v6 = vld [vmem:[#allocation9 + $0x504] ss:$16 sps:$4 sm:$0xff]   ;;  %v2550_v9 = vadd.f32 %v7770_v22, %v2500_v2  ;;  %v6471_v22 = vld [vmem:[#allocation9 + $0xcc] ss:$16 sps:$4 sm:$0xff]  }
 0x2fa   : > { %4253 = vmatprep.subr.bf16.mxu1 %v6402_v11  ;;  %v2552_v11 = vadd.f32 %v7773_v24, %v2502_v3  ;;  %v6469_v24 = vld [vmem:[#allocation9 + $0xc8] ss:$16 sps:$4 sm:$0xff]   ;;  %v6534_v2 = vld [vmem:[#allocation9 + $0x38c] ss:$16 sps:$4 sm:$0xff]  }
 0x2fb   : > { %v7808_v15 = vpack.c.bf16 %v2550_v9, %v2550_v9  ;;  %v6529_v3 = vld [vmem:[#allocation9 + $0x188] ss:$16 sps:$4 sm:$0xff]  }
 0x2fc   : > { %4213 = vmatpush1.bf16.msra.mxu0 %v6397_v12  ;;  %v6460_v12 = vld [vmem:[#allocation9 + $0x700] ss:$16 sps:$4 sm:$0xff]   ;;  %v6535_v9 = vld [vmem:[#allocation9 + $0x168] ss:$16 sps:$4 sm:$0xff]  }
 0x2fd   : > { %4254 = vmatpush1.bf16.msra.mxu1 %v6400_v13  ;;  %4214 = vmatprep.subr.bf16.mxu0 %v6405_v16  ;;  %v6465_v13 = vld [vmem:[#allocation9 + $0xec] ss:$16 sps:$4 sm:$0xff]   ;;  %v7810_v16 = vpack.c.bf16 %v2552_v11, %v2552_v11  ;;  %v6538_v11 = vld [vmem:[#allocation9 + $0x368] ss:$16 sps:$4 sm:$0xff]  }
 0x2fe   : > { %4255 = vmatprep.subr.bf16.mxu1 %v6408_v18  ;;  %v6463_v18 = vld [vmem:[#allocation9 + $0xe8] ss:$16 sps:$4 sm:$0xff]  }
 0x300   : > { %4215 = vmatpush1.bf16.msra.mxu0 %v6403_v19  ;;  %v6466_v19 = vld [vmem:[#allocation9 + $0x2e8] ss:$16 sps:$4 sm:$0xff]  }
 0x301   : > { %4256 = vmatpush1.bf16.msra.mxu1 %v6406_v25  ;;  %4216 = vmatprep.subr.bf16.mxu0 %v6411_v28  ;;  %v6477_v25 = vld [vmem:[#allocation9 + $0xac] ss:$16 sps:$4 sm:$0xff]   ;;  %v6478_v28 = vld [vmem:[#allocation9 + $0x2a8] ss:$16 sps:$4 sm:$0xff]  }
 0x302   : > { %4257 = vmatprep.subr.bf16.mxu1 %v6414_v31  ;;  %v6483_v31 = vld [vmem:[#allocation9 + $0x8c] ss:$16 sps:$4 sm:$0xff]  }
 0x304   : > { %4217 = vmatpush1.bf16.msra.mxu0 %v6409_v10  ;;  %v6486_v10 = vld [vmem:[#allocation9 + $0x28c] ss:$16 sps:$4 sm:$0xff]  }
 0x305   : > { %4258 = vmatpush1.bf16.msra.mxu1 %v6412_v34  ;;  %4218 = vmatprep.subr.bf16.mxu0 %v6417_v35  ;;  %v6481_v34 = vld [vmem:[#allocation9 + $0x88] ss:$16 sps:$4 sm:$0xff]  }
 0x306   : > { %4259 = vmatprep.subr.bf16.mxu1 %v6420_v36  ;;  %v6484_v35 = vld [vmem:[#allocation9 + $0x288] ss:$16 sps:$4 sm:$0xff]   ;;  %v6489_v36 = vld [vmem:[#allocation9 + $0x6c] ss:$16 sps:$4 sm:$0xff]  }
 0x308   : > { %4219 = vmatpush2.bf16.msra.mxu0 %v6415_v37  ;;  %v6492_v37 = vld [vmem:[#allocation9 + $0x26c] ss:$16 sps:$4 sm:$0xff]  }
 0x309   : > { %4260 = vmatpush2.bf16.msra.mxu1 %v6418_v38  ;;  %4220 = vmatprep.subr.bf16.mxu0 %v6423_v39  ;;  %v6487_v38 = vld [vmem:[#allocation9 + $0x68] ss:$16 sps:$4 sm:$0xff]   ;;  %v6498_v39 = vld [vmem:[#allocation9 + $0x24c] ss:$16 sps:$4 sm:$0xff]  }
 0x30a   : > { %4261 = vmatprep.subr.bf16.mxu1 %v6426_v40  ;;  %v6493_v40 = vld [vmem:[#allocation9 + $0x48] ss:$16 sps:$4 sm:$0xff]  }
 0x30c   : > { %4221 = vmatpush2.bf16.msra.mxu0 %v6421_v41  ;;  %v6496_v41 = vld [vmem:[#allocation9 + $0x248] ss:$16 sps:$4 sm:$0xff]  }
 0x30d   : > { %4262 = vmatpush2.bf16.msra.mxu1 %v6424_v42  ;;  %4222 = vmatprep.subr.bf16.mxu0 %v6429_v43  ;;  %v6501_v42 = vld [vmem:[#allocation9 + $0x2c] ss:$16 sps:$4 sm:$0xff]  }
 0x30e   : > { %4263 = vmatprep.subr.bf16.mxu1 %v6432_v44  ;;  %v6504_v43 = vld [vmem:[#allocation9 + $0x22c] ss:$16 sps:$4 sm:$0xff]   ;;  %v6499_v44 = vld [vmem:[#allocation9 + $0x28] ss:$16 sps:$4 sm:$0xff]  }
 0x310   : > { %4223 = vmatpush2.bf16.msra.mxu0 %v6427_v17  ;;  %v6502_v17 = vld [vmem:[#allocation9 + $0x228] ss:$16 sps:$4 sm:$0xff]  }
 0x311   : > { %4264 = vmatpush2.bf16.msra.mxu1 %v6430_v45  ;;  %4224 = vmatprep.subr.bf16.mxu0 %v6435_v46  ;;  %v6507_v45 = vld [vmem:[#allocation9 + $0xc] ss:$16 sps:$4 sm:$0xff]  }
 0x312   : > { %4265 = vmatprep.subr.bf16.mxu1 %v6438_v48  ;;  %v6510_v46 = vld [vmem:[#allocation9 + $0x20c] ss:$16 sps:$4 sm:$0xff]   ;;  %v6505_v48 = vld [vmem:[#allocation9 + $0x8] ss:$16 sps:$4 sm:$0xff]  }
 0x314   : > { %4225 = vmatpush2.bf16.msra.mxu0 %v6433_v49  ;;  %v6508_v49 = vld [vmem:[#allocation9 + $0x208] ss:$16 sps:$4 sm:$0xff]  }
 0x315   : > { %4266 = vmatpush2.bf16.msra.mxu1 %v6436_v50  ;;  %4226 = vmatprep.subr.bf16.mxu0 %v6441_v51  ;;  %v6513_v50 = vld [vmem:[#allocation9 + $0x1ec] ss:$16 sps:$4 sm:$0xff]  }
 0x316   : > { %4267 = vmatprep.subr.bf16.mxu1 %v6444_v52  ;;  %v6516_v51 = vld [vmem:[#allocation9 + $0x3ec] ss:$16 sps:$4 sm:$0xff]   ;;  %v6511_v52 = vld [vmem:[#allocation9 + $0x1e8] ss:$16 sps:$4 sm:$0xff]  }
 0x318   : > { %4227 = vmatpush2.bf16.msra.mxu0 %v6439_v53  ;;  %v6514_v53 = vld [vmem:[#allocation9 + $0x3e8] ss:$16 sps:$4 sm:$0xff]  }
 0x319   : > { %4268 = vmatpush2.bf16.msra.mxu1 %v6442_v56  ;;  %4228 = vmatprep.subr.bf16.mxu0 %v6447_v57  ;;  %v6519_v56 = vld [vmem:[#allocation9 + $0x1cc] ss:$16 sps:$4 sm:$0xff]  }
 0x31a   : > { %4269 = vmatprep.subr.bf16.mxu1 %v6450_v58  ;;  %v6522_v57 = vld [vmem:[#allocation9 + $0x3cc] ss:$16 sps:$4 sm:$0xff]   ;;  %v6517_v58 = vld [vmem:[#allocation9 + $0x1c8] ss:$16 sps:$4 sm:$0xff]  }
 0x31c   : > { %4229 = vmatpush2.bf16.msra.mxu0 %v6445_v61  ;;  %v6520_v61 = vld [vmem:[#allocation9 + $0x3c8] ss:$16 sps:$4 sm:$0xff]  }
 0x31d   : > { %4270 = vmatpush2.bf16.msra.mxu1 %v6448_v59  ;;  %4230 = vmatprep.subr.bf16.mxu0 %v6453_v62  ;;  %v6525_v59 = vld [vmem:[#allocation9 + $0x1ac] ss:$16 sps:$4 sm:$0xff]  }
 0x31e   : > { %4271 = vmatprep.subr.bf16.mxu1 %v6456_v60  ;;  %v6528_v62 = vld [vmem:[#allocation9 + $0x3ac] ss:$16 sps:$4 sm:$0xff]   ;;  %v6523_v60 = vld [vmem:[#allocation9 + $0x1a8] ss:$16 sps:$4 sm:$0xff]  }
 0x320   : > { %4231 = vmatpush2.bf16.msra.mxu0 %v6451_v0  ;;  %v6526_v0 = vld [vmem:[#allocation9 + $0x3a8] ss:$16 sps:$4 sm:$0xff]  }
 0x321   : > { %4272 = vmatpush2.bf16.msra.mxu1 %v6454_v1  ;;  %4232 = vmatprep.subr.bf16.mxu0 %v6459_v6  ;;  %v6531_v1 = vld [vmem:[#allocation9 + $0x18c] ss:$16 sps:$4 sm:$0xff]   ;;  %v6532_v6 = vld [vmem:[#allocation9 + $0x388] ss:$16 sps:$4 sm:$0xff]  }
 0x322   : > { %4273 = vmatprep.subr.bf16.mxu1 %v6462_v7  ;;  %v6537_v7 = vld [vmem:[#allocation9 + $0x16c] ss:$16 sps:$4 sm:$0xff]  }
 0x324   : > { %4233 = vmatpush2.bf16.msra.mxu0 %v6457_v8  ;;  %v6540_v8 = vld [vmem:[#allocation9 + $0x36c] ss:$16 sps:$4 sm:$0xff]  }
 0x325   : > { %4274 = vmatpush2.bf16.msra.mxu1 %v6460_v12  ;;  %4284 = vmatprep.subr.bf16.mxu0 %v6465_v13  ;;  %v6543_v12 = vld [vmem:[#allocation9 + $0x14c] ss:$16 sps:$4 sm:$0xff]  }
 0x326   : > { %4325 = vmatprep.subr.bf16.mxu1 %v6468_v14  ;;  %v6546_v13 = vld [vmem:[#allocation9 + $0x34c] ss:$16 sps:$4 sm:$0xff]   ;;  %v6541_v14 = vld [vmem:[#allocation9 + $0x148] ss:$16 sps:$4 sm:$0xff]  }
 0x327   : > { %4235 = vmatmul.mubr.bf16.vlgmr.msra.gmra.mxu0 %v7808_v15 }
 0x328   : > { %4276 = vmatmul.mubr.bf16.vlgmr.msra.gmra.mxu1 %v7810_v16  ;;  %4285 = vmatpush1.bf16.msra.mxu0 %v6463_v18  ;;  %v6544_v18 = vld [vmem:[#allocation9 + $0x348] ss:$16 sps:$4 sm:$0xff]  }
 0x329   : > { %4326 = vmatpush1.bf16.msra.mxu1 %v6466_v19  ;;  %4286 = vmatprep.subr.bf16.mxu0 %v6471_v22  ;;  %v6549_v19 = vld [vmem:[#allocation9 + $0x12c] ss:$16 sps:$4 sm:$0xff]  }
 0x32a   : > { %4327 = vmatprep.subr.bf16.mxu1 %v6474_v21  ;;  %4316 = vmatprep.mubr.bf16.mxu0 %v7775_v54  ;;  %v6490_v54 = vld [vmem:[#allocation9 + $0x268] ss:$16 sps:$4 sm:$0xff]   ;;  %v6552_v22 = vld [vmem:[#allocation9 + $0x32c] ss:$16 sps:$4 sm:$0xff]  }
 0x32b   : > { %4357 = vmatprep.mubr.bf16.mxu1 %v7777_v26  ;;  %v6495_v26 = vld [vmem:[#allocation9 + $0x4c] ss:$16 sps:$4 sm:$0xff]   ;;  %v6547_v21 = vld [vmem:[#allocation9 + $0x128] ss:$16 sps:$4 sm:$0xff]  }
 0x32c   : > { %4287 = vmatpush1.bf16.msra.mxu0 %v6469_v24  ;;  %v6550_v24 = vld [vmem:[#allocation9 + $0x328] ss:$16 sps:$4 sm:$0xff]  }
 0x32d   : > { %4328 = vmatpush1.bf16.msra.mxu1 %v6472_v23  ;;  %4288 = vmatprep.subr.bf16.mxu0 %v6477_v25  ;;  %v6555_v23 = vld [vmem:[#allocation9 + $0x10c] ss:$16 sps:$4 sm:$0xff]  }
 0x32e   : > { %4329 = vmatprep.subr.bf16.mxu1 %v6480_v27  ;;  %v6558_v25 = vld [vmem:[#allocation9 + $0x30c] ss:$16 sps:$4 sm:$0xff]   ;;  %v6553_v27 = vld [vmem:[#allocation9 + $0x108] ss:$16 sps:$4 sm:$0xff]  }
 0x330   : > { %4289 = vmatpush1.bf16.msra.mxu0 %v6475_v55  ;;  %v6556_v55 = vld [vmem:[#allocation9 + $0x308] ss:$16 sps:$4 sm:$0xff]  }
 0x331   : > { %4330 = vmatpush1.bf16.msra.mxu1 %v6478_v28  ;;  %4290 = vmatprep.subr.bf16.mxu0 %v6483_v31  ;;  %v6561_v28 = vld [vmem:[#allocation9 + $0x4ec] ss:$16 sps:$4 sm:$0xff]  }
 0x332   : > { %4331 = vmatprep.subr.bf16.mxu1 %v6486_v10  ;;  %v6564_v31 = vld [vmem:[#allocation9 + $0x6ec] ss:$16 sps:$4 sm:$0xff]   ;;  %v6559_v10 = vld [vmem:[#allocation9 + $0x4e8] ss:$16 sps:$4 sm:$0xff]  }
 0x334   : > { %4291 = vmatpush1.bf16.msra.mxu0 %v6481_v34  ;;  %v6562_v34 = vld [vmem:[#allocation9 + $0x6e8] ss:$16 sps:$4 sm:$0xff]  }
 0x335   : > { %4332 = vmatpush1.bf16.msra.mxu1 %v6484_v35  ;;  %4292 = vmatprep.subr.bf16.mxu0 %v6489_v36  ;;  %v6567_v35 = vld [vmem:[#allocation9 + $0x4cc] ss:$16 sps:$4 sm:$0xff]  }
 0x336   : > { %4333 = vmatprep.subr.bf16.mxu1 %v6492_v37  ;;  %v6570_v36 = vld [vmem:[#allocation9 + $0x6cc] ss:$16 sps:$4 sm:$0xff]   ;;  %v6565_v37 = vld [vmem:[#allocation9 + $0x4c8] ss:$16 sps:$4 sm:$0xff]  }
 0x338   : > { %4293 = vmatpush1.bf16.msra.mxu0 %v6487_v38  ;;  %v6568_v38 = vld [vmem:[#allocation9 + $0x6c8] ss:$16 sps:$4 sm:$0xff]  }
 0x339   : > { %4334 = vmatpush1.bf16.msra.mxu1 %v6490_v54  ;;  %4294 = vmatprep.subr.bf16.mxu0 %v6495_v26  ;;  %v6573_v54 = vld [vmem:[#allocation9 + $0x4ac] ss:$16 sps:$4 sm:$0xff]  }
 0x33a   : > { %4335 = vmatprep.subr.bf16.mxu1 %v6498_v39  ;;  %v6576_v26 = vld [vmem:[#allocation9 + $0x6ac] ss:$16 sps:$4 sm:$0xff]   ;;  %v6571_v39 = vld [vmem:[#allocation9 + $0x4a8] ss:$16 sps:$4 sm:$0xff]  }
 0x33c   : > { %4295 = vmatpush1.bf16.msra.mxu0 %v6493_v40  ;;  %v6574_v40 = vld [vmem:[#allocation9 + $0x6a8] ss:$16 sps:$4 sm:$0xff]  }
 0x33d   : > { %4336 = vmatpush1.bf16.msra.mxu1 %v6496_v41  ;;  %4296 = vmatprep.subr.bf16.mxu0 %v6501_v42  ;;  %v6579_v41 = vld [vmem:[#allocation9 + $0x48c] ss:$16 sps:$4 sm:$0xff]  }
 0x33e   : > { %4337 = vmatprep.subr.bf16.mxu1 %v6504_v43  ;;  %v6582_v42 = vld [vmem:[#allocation9 + $0x68c] ss:$16 sps:$4 sm:$0xff]  }
 0x33f   : > { %v6585_v43 = vld [vmem:[#allocation9 + $0x46c] ss:$16 sps:$4 sm:$0xff]  }
 0x340   : > { %4297 = vmatpush1.bf16.msra.mxu0 %v6499_v44  ;;  %v6588_v44 = vld [vmem:[#allocation9 + $0x66c] ss:$16 sps:$4 sm:$0xff]  }
 0x341   : > { %4338 = vmatpush1.bf16.msra.mxu1 %v6502_v17  ;;  %4298 = vmatprep.subr.bf16.mxu0 %v6507_v45  ;;  %v6583_v17 = vld [vmem:[#allocation9 + $0x468] ss:$16 sps:$4 sm:$0xff]  }
 0x342   : > { %4339 = vmatprep.subr.bf16.mxu1 %v6510_v46  ;;  %v6586_v45 = vld [vmem:[#allocation9 + $0x668] ss:$16 sps:$4 sm:$0xff]   ;;  %v6591_v46 = vld [vmem:[#allocation9 + $0x44c] ss:$16 sps:$4 sm:$0xff]  }
 0x344   : > { %4299 = vmatpush1.bf16.msra.mxu0 %v6505_v48  ;;  %v6592_v48 = vld [vmem:[#allocation9 + $0x648] ss:$16 sps:$4 sm:$0xff]  }
 0x345   : > { %4340 = vmatpush1.bf16.msra.mxu1 %v6508_v49  ;;  %4300 = vmatprep.subr.bf16.mxu0 %v6513_v50  ;;  %v6597_v49 = vld [vmem:[#allocation9 + $0x42c] ss:$16 sps:$4 sm:$0xff]  }
 0x346   : > { %4341 = vmatprep.subr.bf16.mxu1 %v6516_v51  ;;  %v6600_v50 = vld [vmem:[#allocation9 + $0x62c] ss:$16 sps:$4 sm:$0xff]   ;;  %v6595_v51 = vld [vmem:[#allocation9 + $0x428] ss:$16 sps:$4 sm:$0xff]  }
 0x348   : > { %4301 = vmatpush2.bf16.msra.mxu0 %v6511_v52  ;;  %v6598_v52 = vld [vmem:[#allocation9 + $0x628] ss:$16 sps:$4 sm:$0xff]  }
 0x349   : > { %4342 = vmatpush2.bf16.msra.mxu1 %v6514_v53  ;;  %4302 = vmatprep.subr.bf16.mxu0 %v6519_v56  ;;  %v6603_v53 = vld [vmem:[#allocation9 + $0x40c] ss:$16 sps:$4 sm:$0xff]  }
 0x34a   : > { %4343 = vmatprep.subr.bf16.mxu1 %v6522_v57  ;;  %v6606_v56 = vld [vmem:[#allocation9 + $0x60c] ss:$16 sps:$4 sm:$0xff]   ;;  %v6601_v57 = vld [vmem:[#allocation9 + $0x408] ss:$16 sps:$4 sm:$0xff]  }
 0x34c   : > { %4303 = vmatpush2.bf16.msra.mxu0 %v6517_v58  ;;  %v6604_v58 = vld [vmem:[#allocation9 + $0x608] ss:$16 sps:$4 sm:$0xff]  }
 0x34d   : > { %4344 = vmatpush2.bf16.msra.mxu1 %v6520_v61  ;;  %4304 = vmatprep.subr.bf16.mxu0 %v6525_v59  ;;  %v6609_v61 = vld [vmem:[#allocation9 + $0x5ec] ss:$16 sps:$4 sm:$0xff]  }
 0x34e   : > { %4345 = vmatprep.subr.bf16.mxu1 %v6528_v62  ;;  %v6612_v59 = vld [vmem:[#allocation9 + $0x7ec] ss:$16 sps:$4 sm:$0xff]   ;;  %v6607_v62 = vld [vmem:[#allocation9 + $0x5e8] ss:$16 sps:$4 sm:$0xff]  }
 0x350   : > { %4305 = vmatpush2.bf16.msra.mxu0 %v6523_v60  ;;  %v6610_v60 = vld [vmem:[#allocation9 + $0x7e8] ss:$16 sps:$4 sm:$0xff]  }
 0x351   : > { %4346 = vmatpush2.bf16.msra.mxu1 %v6526_v0  ;;  %4306 = vmatprep.subr.bf16.mxu0 %v6531_v1  ;;  %v6615_v0 = vld [vmem:[#allocation9 + $0x5cc] ss:$16 sps:$4 sm:$0xff]  }
 0x352   : > { %4347 = vmatprep.subr.bf16.mxu1 %v6534_v2  ;;  %v6618_v1 = vld [vmem:[#allocation9 + $0x7cc] ss:$16 sps:$4 sm:$0xff]   ;;  %v6613_v2 = vld [vmem:[#allocation9 + $0x5c8] ss:$16 sps:$4 sm:$0xff]  }
 0x354   : > { %4307 = vmatpush2.bf16.msra.mxu0 %v6529_v3  ;;  %v6616_v3 = vld [vmem:[#allocation9 + $0x7c8] ss:$16 sps:$4 sm:$0xff]  }
 0x355   : > { %4348 = vmatpush2.bf16.msra.mxu1 %v6532_v6  ;;  %4308 = vmatprep.subr.bf16.mxu0 %v6537_v7  ;;  %v6621_v6 = vld [vmem:[#allocation9 + $0x5ac] ss:$16 sps:$4 sm:$0xff]  }
 0x356   : > { %4349 = vmatprep.subr.bf16.mxu1 %v6540_v8  ;;  %v6624_v7 = vld [vmem:[#allocation9 + $0x7ac] ss:$16 sps:$4 sm:$0xff]   ;;  %v6619_v8 = vld [vmem:[#allocation9 + $0x5a8] ss:$16 sps:$4 sm:$0xff]  }
 0x358   : > { %4309 = vmatpush2.bf16.msra.mxu0 %v6535_v9  ;;  %v6622_v9 = vld [vmem:[#allocation9 + $0x7a8] ss:$16 sps:$4 sm:$0xff]  }
 0x359   : > { %4350 = vmatpush2.bf16.msra.mxu1 %v6538_v11  ;;  %4310 = vmatprep.subr.bf16.mxu0 %v6543_v12  ;;  %v6627_v11 = vld [vmem:[#allocation9 + $0x58c] ss:$16 sps:$4 sm:$0xff]  }
 0x35a   : > { %4351 = vmatprep.subr.bf16.mxu1 %v6546_v13  ;;  %v6630_v12 = vld [vmem:[#allocation9 + $0x78c] ss:$16 sps:$4 sm:$0xff]   ;;  %v6625_v13 = vld [vmem:[#allocation9 + $0x588] ss:$16 sps:$4 sm:$0xff]  }
 0x35c   : > { %4311 = vmatpush2.bf16.msra.mxu0 %v6541_v14  ;;  %v6628_v14 = vld [vmem:[#allocation9 + $0x788] ss:$16 sps:$4 sm:$0xff]  }
 0x35d   : > { %4352 = vmatpush2.bf16.msra.mxu1 %v6544_v18  ;;  %4312 = vmatprep.subr.bf16.mxu0 %v6549_v19  ;;  %v6633_v18 = vld [vmem:[#allocation9 + $0x56c] ss:$16 sps:$4 sm:$0xff]  }
 0x35e   : > { %4353 = vmatprep.subr.bf16.mxu1 %v6552_v22  ;;  %v6636_v19 = vld [vmem:[#allocation9 + $0x76c] ss:$16 sps:$4 sm:$0xff]   ;;  %v6631_v22 = vld [vmem:[#allocation9 + $0x568] ss:$16 sps:$4 sm:$0xff]  }
 0x360   : > { %4313 = vmatpush2.bf16.msra.mxu0 %v6547_v21  ;;  %v6634_v21 = vld [vmem:[#allocation9 + $0x768] ss:$16 sps:$4 sm:$0xff]  }
 0x361   : > { %4354 = vmatpush2.bf16.msra.mxu1 %v6550_v24  ;;  %4314 = vmatprep.subr.bf16.mxu0 %v6555_v23  ;;  %v6639_v24 = vld [vmem:[#allocation9 + $0x54c] ss:$16 sps:$4 sm:$0xff]  }
 0x362   : > { %4355 = vmatprep.subr.bf16.mxu1 %v6558_v25  ;;  %v6642_v23 = vld [vmem:[#allocation9 + $0x74c] ss:$16 sps:$4 sm:$0xff]   ;;  %v6637_v25 = vld [vmem:[#allocation9 + $0x548] ss:$16 sps:$4 sm:$0xff]  }
 0x364   : > { %4315 = vmatpush2.bf16.msra.mxu0 %v6553_v27  ;;  %v6640_v27 = vld [vmem:[#allocation9 + $0x748] ss:$16 sps:$4 sm:$0xff]  }
 0x365   : > { %4356 = vmatpush2.bf16.msra.mxu1 %v6556_v55  ;;  %4366 = vmatprep.subr.bf16.mxu0 %v6561_v28  ;;  %v6645_v55 = vld [vmem:[#allocation9 + $0x52c] ss:$16 sps:$4 sm:$0xff]  }
 0x366   : > { %4407 = vmatprep.subr.bf16.mxu1 %v6564_v31  ;;  %v6648_v28 = vld [vmem:[#allocation9 + $0x72c] ss:$16 sps:$4 sm:$0xff]   ;;  %v6643_v31 = vld [vmem:[#allocation9 + $0x528] ss:$16 sps:$4 sm:$0xff]  }
 0x367   : > { %4317 = vmatmul.mubr.bf16.vlgmr.msra.gmra.mxu0 %v7790_v47  ;;  %v6577_v47 = vld [vmem:[#allocation9 + $0x488] ss:$16 sps:$4 sm:$0xff]  }
 0x368   : > { %4358 = vmatmul.mubr.bf16.vlgmr.msra.gmra.mxu1 %v7792_v20  ;;  %4367 = vmatpush1.bf16.msra.mxu0 %v6559_v10  ;;  %v6580_v20 = vld [vmem:[#allocation9 + $0x688] ss:$16 sps:$4 sm:$0xff]  }
 0x369   : > { %4408 = vmatpush1.bf16.msra.mxu1 %v6562_v34  ;;  %4368 = vmatprep.subr.bf16.mxu0 %v6567_v35  ;;  %v6646_v10 = vld [vmem:[#allocation9 + $0x728] ss:$16 sps:$4 sm:$0xff]   ;;  %v6651_v34 = vld [vmem:[#allocation9 + $0x50c] ss:$16 sps:$4 sm:$0xff]  }
 0x36a   : > { %4409 = vmatprep.subr.bf16.mxu1 %v6570_v36  ;;  %4398 = vmatprep.mubr.bf16.mxu0 %v7800_v32  ;;  %v6594_v32 = vld [vmem:[#allocation9 + $0x64c] ss:$16 sps:$4 sm:$0xff]   ;;  %v6649_v36 = vld [vmem:[#allocation9 + $0x508] ss:$16 sps:$4 sm:$0xff]  }
 0x36b   : > { %4439 = vmatprep.mubr.bf16.mxu1 %v7802_v33  ;;  %v6589_v33 = vld [vmem:[#allocation9 + $0x448] ss:$16 sps:$4 sm:$0xff]   ;;  %v6654_v35 = vld [vmem:[#allocation9 + $0x70c] ss:$16 sps:$4 sm:$0xff]  }
 0x36c   : > { %4369 = vmatpush1.bf16.msra.mxu0 %v6565_v37  ;;  %v6652_v37 = vld [vmem:[#allocation9 + $0x708] ss:$16 sps:$4 sm:$0xff]  }
 0x36d   : > { %4410 = vmatpush1.bf16.msra.mxu1 %v6568_v38  ;;  %4370 = vmatprep.subr.bf16.mxu0 %v6573_v54  ;;  %v6657_v38 = vld [vmem:[#allocation12 + $0x74] ss:$8 sps:$4 sm:$0xff]   ;;  %v6655_v54 = vld [vmem:[#allocation12 + $0x70] ss:$8 sps:$4 sm:$0xff]  }
 0x36e   : > { %4411 = vmatprep.subr.bf16.mxu1 %v6576_v26  ;;  %v6660_v26 = vld [vmem:[#allocation12 + $0x64] ss:$8 sps:$4 sm:$0xff]  }
 0x370   : > { %4371 = vmatpush1.bf16.msra.mxu0 %v6571_v39 }
 0x371   : > { %4412 = vmatpush1.bf16.msra.mxu1 %v6574_v40  ;;  %4372 = vmatprep.subr.bf16.mxu0 %v6579_v41  ;;  %v6658_v41 = vld [vmem:[#allocation12 + $0x60] ss:$8 sps:$4 sm:$0xff]  }
 0x372   : > { %4413 = vmatprep.subr.bf16.mxu1 %v6582_v42 }
 0x374   : > { %4373 = vmatpush1.bf16.msra.mxu0 %v6577_v47 }
 0x375   : > { %4414 = vmatpush1.bf16.msra.mxu1 %v6580_v20  ;;  %4374 = vmatprep.subr.bf16.mxu0 %v6585_v43  ;;  %v6663_v20 = vld [vmem:[#allocation12 + $0x54] ss:$8 sps:$4 sm:$0xff]  }
 0x376   : > { %4415 = vmatprep.subr.bf16.mxu1 %v6588_v44 }
 0x378   : > { %4375 = vmatpush1.bf16.msra.mxu0 %v6583_v17  ;;  %v6661_v17 = vld [vmem:[#allocation12 + $0x50] ss:$8 sps:$4 sm:$0xff]  }
 0x379   : > { %4416 = vmatpush1.bf16.msra.mxu1 %v6586_v45  ;;  %4376 = vmatprep.subr.bf16.mxu0 %v6591_v46 }
 0x37a   : > { %4417 = vmatprep.subr.bf16.mxu1 %v6594_v32  ;;  %v6666_v32 = vld [vmem:[#allocation12 + $0x44] ss:$8 sps:$4 sm:$0xff]  }
 0x37c   : > { %4377 = vmatpush1.bf16.msra.mxu0 %v6589_v33  ;;  %v6703_v33 = vld [vmem:[#allocation12 + $0x170] ss:$8 sps:$4 sm:$0xff]  }
 0x37d   : > { %4418 = vmatpush1.bf16.msra.mxu1 %v6592_v48  ;;  %4378 = vmatprep.subr.bf16.mxu0 %v6597_v49  ;;  %v6708_v48 = vld [vmem:[#allocation12 + $0x164] ss:$8 sps:$4 sm:$0xff]   ;;  %v6706_v49 = vld [vmem:[#allocation12 + $0x160] ss:$8 sps:$4 sm:$0xff]  }
 0x37e   : > { %4419 = vmatprep.subr.bf16.mxu1 %v6600_v50  ;;  %v6669_v50 = vld [vmem:[#allocation12 + $0x34] ss:$8 sps:$4 sm:$0xff]  }
 0x380   : > { %4379 = vmatpush1.bf16.msra.mxu0 %v6595_v51  ;;  %v6711_v51 = vld [vmem:[#allocation12 + $0x154] ss:$8 sps:$4 sm:$0xff]  }
 0x381   : > { %4420 = vmatpush1.bf16.msra.mxu1 %v6598_v52  ;;  %4380 = vmatprep.subr.bf16.mxu0 %v6603_v53  ;;  %v6667_v52 = vld [vmem:[#allocation12 + $0x30] ss:$8 sps:$4 sm:$0xff]  }
 0x382   : > { %4421 = vmatprep.subr.bf16.mxu1 %v6606_v56  ;;  %v6709_v53 = vld [vmem:[#allocation12 + $0x150] ss:$8 sps:$4 sm:$0xff]   ;;  %v6672_v56 = vld [vmem:[#allocation12 + $0x24] ss:$8 sps:$4 sm:$0xff]  }
 0x384   : > { %4381 = vmatpush1.bf16.msra.mxu0 %v6601_v57  ;;  %v6714_v57 = vld [vmem:[#allocation12 + $0x144] ss:$8 sps:$4 sm:$0xff]  }
 0x385   : > { %4422 = vmatpush1.bf16.msra.mxu1 %v6604_v58  ;;  %4382 = vmatprep.subr.bf16.mxu0 %v6609_v61  ;;  %v6670_v58 = vld [vmem:[#allocation12 + $0x20] ss:$8 sps:$4 sm:$0xff]  }
 0x386   : > { %4423 = vmatprep.subr.bf16.mxu1 %v6612_v59  ;;  %v6712_v61 = vld [vmem:[#allocation12 + $0x140] ss:$8 sps:$4 sm:$0xff]   ;;  %v6675_v59 = vld [vmem:[#allocation12 + $0x14] ss:$8 sps:$4 sm:$0xff]  }
 0x388   : > { %4383 = vmatpush2.bf16.msra.mxu0 %v6607_v62  ;;  %v6717_v62 = vld [vmem:[#allocation12 + $0x134] ss:$8 sps:$4 sm:$0xff]  }
 0x389   : > { %4424 = vmatpush2.bf16.msra.mxu1 %v6610_v60  ;;  %4384 = vmatprep.subr.bf16.mxu0 %v6615_v0  ;;  %v6673_v60 = vld [vmem:[#allocation12 + $0x10] ss:$8 sps:$4 sm:$0xff]  }
 0x38a   : > { %4425 = vmatprep.subr.bf16.mxu1 %v6618_v1  ;;  %v6715_v0 = vld [vmem:[#allocation12 + $0x130] ss:$8 sps:$4 sm:$0xff]   ;;  %v6678_v1 = vld [vmem:[#allocation12 + $0x4] ss:$8 sps:$4 sm:$0xff]  }
 0x38c   : > { %4385 = vmatpush2.bf16.msra.mxu0 %v6613_v2  ;;  %v6720_v2 = vld [vmem:[#allocation12 + $0x124] ss:$8 sps:$4 sm:$0xff]  }
 0x38d   : > { %4426 = vmatpush2.bf16.msra.mxu1 %v6616_v3  ;;  %4386 = vmatprep.subr.bf16.mxu0 %v6621_v6  ;;  %v6676_v3 = vld [vmem:[#allocation12] ss:$8 sps:$4 sm:$0xff]  }
 0x38e   : > { %4427 = vmatprep.subr.bf16.mxu1 %v6624_v7  ;;  %v6718_v6 = vld [vmem:[#allocation12 + $0x120] ss:$8 sps:$4 sm:$0xff]   ;;  %v6681_v7 = vld [vmem:[#allocation12 + $0xf4] ss:$8 sps:$4 sm:$0xff]  }
 0x390   : > { %4387 = vmatpush2.bf16.msra.mxu0 %v6619_v8  ;;  %v6723_v8 = vld [vmem:[#allocation12 + $0x114] ss:$8 sps:$4 sm:$0xff]  }
 0x391   : > { %4428 = vmatpush2.bf16.msra.mxu1 %v6622_v9  ;;  %4388 = vmatprep.subr.bf16.mxu0 %v6627_v11  ;;  %v6679_v9 = vld [vmem:[#allocation12 + $0xf0] ss:$8 sps:$4 sm:$0xff]  }
 0x392   : > { %4429 = vmatprep.subr.bf16.mxu1 %v6630_v12  ;;  %v6721_v11 = vld [vmem:[#allocation12 + $0x110] ss:$8 sps:$4 sm:$0xff]   ;;  %v6684_v12 = vld [vmem:[#allocation12 + $0xe4] ss:$8 sps:$4 sm:$0xff]  }
 0x394   : > { %4389 = vmatpush2.bf16.msra.mxu0 %v6625_v13  ;;  %v6726_v13 = vld [vmem:[#allocation12 + $0x104] ss:$8 sps:$4 sm:$0xff]  }
 0x395   : > { %4430 = vmatpush2.bf16.msra.mxu1 %v6628_v14  ;;  %4390 = vmatprep.subr.bf16.mxu0 %v6633_v18  ;;  %v6682_v14 = vld [vmem:[#allocation12 + $0xe0] ss:$8 sps:$4 sm:$0xff]  }
 0x396   : > { %4431 = vmatprep.subr.bf16.mxu1 %v6636_v19  ;;  %v6724_v18 = vld [vmem:[#allocation12 + $0x100] ss:$8 sps:$4 sm:$0xff]   ;;  %v6687_v19 = vld [vmem:[#allocation12 + $0xd4] ss:$8 sps:$4 sm:$0xff]  }
 0x398   : > { %4391 = vmatpush2.bf16.msra.mxu0 %v6631_v22  ;;  %v6729_v22 = vld [vmem:[#allocation12 + $0x1f4] ss:$8 sps:$4 sm:$0xff]  }
 0x399   : > { %4432 = vmatpush2.bf16.msra.mxu1 %v6634_v21  ;;  %4392 = vmatprep.subr.bf16.mxu0 %v6639_v24  ;;  %v6685_v21 = vld [vmem:[#allocation12 + $0xd0] ss:$8 sps:$4 sm:$0xff]  }
 0x39a   : > { %4433 = vmatprep.subr.bf16.mxu1 %v6642_v23  ;;  %v6727_v24 = vld [vmem:[#allocation12 + $0x1f0] ss:$8 sps:$4 sm:$0xff]   ;;  %v6690_v23 = vld [vmem:[#allocation12 + $0xc4] ss:$8 sps:$4 sm:$0xff]  }
 0x39c   : > { %4393 = vmatpush2.bf16.msra.mxu0 %v6637_v25  ;;  %v6732_v25 = vld [vmem:[#allocation12 + $0x1e4] ss:$8 sps:$4 sm:$0xff]  }
 0x39d   : > { %4434 = vmatpush2.bf16.msra.mxu1 %v6640_v27  ;;  %4394 = vmatprep.subr.bf16.mxu0 %v6645_v55  ;;  %v6688_v27 = vld [vmem:[#allocation12 + $0xc0] ss:$8 sps:$4 sm:$0xff]  }
 0x39e   : > { %4435 = vmatprep.subr.bf16.mxu1 %v6648_v28  ;;  %v6730_v55 = vld [vmem:[#allocation12 + $0x1e0] ss:$8 sps:$4 sm:$0xff]   ;;  %v6693_v28 = vld [vmem:[#allocation12 + $0xb4] ss:$8 sps:$4 sm:$0xff]  }
 0x3a0   : > { %4395 = vmatpush2.bf16.msra.mxu0 %v6643_v31  ;;  %v6735_v31 = vld [vmem:[#allocation12 + $0x1d4] ss:$8 sps:$4 sm:$0xff]  }
 0x3a1   : > { %4436 = vmatpush2.bf16.msra.mxu1 %v6646_v10  ;;  %4396 = vmatprep.subr.bf16.mxu0 %v6651_v34  ;;  %v6691_v10 = vld [vmem:[#allocation12 + $0xb0] ss:$8 sps:$4 sm:$0xff]  }
 0x3a2   : > { %4437 = vmatprep.subr.bf16.mxu1 %v6654_v35  ;;  %v6733_v34 = vld [vmem:[#allocation12 + $0x1d0] ss:$8 sps:$4 sm:$0xff]   ;;  %v6696_v35 = vld [vmem:[#allocation12 + $0xa4] ss:$8 sps:$4 sm:$0xff]  }
 0x3a4   : > { %4397 = vmatpush2.bf16.msra.mxu0 %v6649_v36  ;;  %v6738_v36 = vld [vmem:[#allocation12 + $0x1c4] ss:$8 sps:$4 sm:$0xff]  }
 0x3a5   : > { %4438 = vmatpush2.bf16.msra.mxu1 %v6652_v37  ;;  %4848 = vmatprep.subr.bf16.mxu0 %v6657_v38  ;;  %v6694_v37 = vld [vmem:[#allocation12 + $0xa0] ss:$8 sps:$4 sm:$0xff]  }
 0x3a6   : > { %v6736_v38 = vld [vmem:[#allocation12 + $0x1c0] ss:$8 sps:$4 sm:$0xff]  }
 0x3a7   : > { %v7820_v39 = vpop.f32.mrf.mxu0  ;;  %4399 = vmatmul.mubr.bf16.vlgmr.msra.gmra.mxu0 %v7808_v15  ;;  %v6705_v15 = vld [vmem:[#allocation12 + $0x174] ss:$8 sps:$4 sm:$0xff]  }
 0x3a8   : > { %v7822_v40 = vpop.f32.mrf.mxu1  ;;  %4440 = vmatmul.mubr.bf16.vlgmr.msra.gmra.mxu1 %v7810_v16  ;;  %4849 = vmatpush1.bf16.msra.mxu0 %v6655_v54  ;;  %v6664_v16 = vld [vmem:[#allocation12 + $0x40] ss:$8 sps:$4 sm:$0xff]   ;;  %v6699_v54 = vld [vmem:[#allocation12 + $0x94] ss:$8 sps:$4 sm:$0xff]  }
 0x3a9   : > { %v7826_v42 = vpop.f32.mrf.mxu0  ;;  %4850 = vmatprep.subr.bf16.mxu0 %v6660_v26  ;;  %4889 = vmatprep.subr.bf16.mxu1 %v6705_v15  ;;  %v6741_v26 = vld [vmem:[#allocation12 + $0x1b4] ss:$8 sps:$4 sm:$0xff]  }
 0x3aa   : > { %v7828_v47 = vpop.f32.mrf.mxu1  ;;  %4890 = vmatpush1.bf16.msra.mxu1 %v6703_v33  ;;  %v6742_v33 = vld [vmem:[#allocation12 + $0x1a0] ss:$8 sps:$4 sm:$0xff]  }
 0x3ab   : > { %v4158_v43 = vpop.f32.mrf.mxu0  ;;  %4891 = vmatprep.subr.bf16.mxu1 %v6708_v48 }
 0x3ac   : > { %v4199_v44 = vpop.f32.mrf.mxu1  ;;  %4851 = vmatpush1.bf16.msra.mxu0 %v6658_v41  ;;  %v7830_v41 = vld [vmem:[#allocation11] sm:$0xf]  ;;  %v6739_v43 = vld [vmem:[#allocation12 + $0x1b0] ss:$8 sps:$4 sm:$0xff]  }
 0x3ad   : > { %v4159_v45 = vpop.f32.mrf.mxu0  ;;  %4852 = vmatprep.subr.bf16.mxu0 %v6663_v20  ;;  %v6697_v20 = vld [vmem:[#allocation12 + $0x90] ss:$8 sps:$4 sm:$0xff]   ;;  %v6702_v44 = vld [vmem:[#allocation12 + $0x84] ss:$8 sps:$4 sm:$0xff]  }
 0x3ae   : > { %v4200_v46 = vpop.f32.mrf.mxu1  ;;  %4892 = vmatpush1.bf16.msra.mxu1 %v6706_v49  ;;  %v2823_v45 = vrot.slane %v7830_v41, %v7782_v29 }
 0x3af   : > { %4893 = vmatprep.subr.bf16.mxu1 %v6711_v51  ;;  %v2827_v46 = vrot.slane %v7830_v41, %v7757_v4  ;;  %v6747_v51 = vld [vmem:[#allocation12 + $0x194] ss:$8 sps:$4 sm:$0xff]  }
 0x3b0   : > { %4853 = vmatpush1.bf16.msra.mxu0 %v6661_v17  ;;  %v6744_v17 = vld [vmem:[#allocation12 + $0x1a4] ss:$8 sps:$4 sm:$0xff]   ;;  %v4155_v15 = vadd.f32 %v7820_v39, %v2823_v45 }
 0x3b1   : > { %4854 = vmatprep.subr.bf16.mxu0 %v6666_v32  ;;  %v6700_v32 = vld [vmem:[#allocation12 + $0x80] ss:$8 sps:$4 sm:$0xff]   ;;  %v4157_v48 = vadd.f32 %v7826_v42, %v2827_v46  ;;  %v6750_v42 = vld [vmem:[#allocation12 + $0x184] ss:$8 sps:$4 sm:$0xff]  }
 0x3b2   : > { %4894 = vmatpush1.bf16.msra.mxu1 %v6709_v53 }
 0x3b3   : > { %4895 = vmatprep.subr.bf16.mxu1 %v6714_v57 }
 0x3b4   : > { %4855 = vmatpush1.bf16.msra.mxu0 %v6664_v16  ;;  %v4196_v16 = vadd.f32 %v7822_v40, %v4155_v15 }
 0x3b5   : > { %4856 = vmatprep.subr.bf16.mxu0 %v6669_v50 }
 0x3b6   : > { %4896 = vmatpush1.bf16.msra.mxu1 %v6712_v61 }
 0x3b7   : > { %4897 = vmatprep.subr.bf16.mxu1 %v6717_v62 }
 0x3b8   : > { %4857 = vmatpush1.bf16.msra.mxu0 %v6667_v52  ;;  %v4198_v52 = vadd.f32 %v7828_v47, %v4157_v48 }
 0x3b9   : > { %4858 = vmatprep.subr.bf16.mxu0 %v6672_v56  ;;  %v6745_v56 = vld [vmem:[#allocation12 + $0x190] ss:$8 sps:$4 sm:$0xff]  }
 0x3ba   : > { %4898 = vmatpush1.bf16.msra.mxu1 %v6715_v0  ;;  %v6748_v0 = vld [vmem:[#allocation12 + $0x180] ss:$8 sps:$4 sm:$0xff]  }
 0x3bb   : > { %4899 = vmatprep.subr.bf16.mxu1 %v6720_v2 }
 0x3bc   : > { %4859 = vmatpush1.bf16.msra.mxu0 %v6670_v58 }
 0x3bd   : > { %4860 = vmatprep.subr.bf16.mxu0 %v6675_v59 }
 0x3be   : > { %4900 = vmatpush1.bf16.msra.mxu1 %v6718_v6 }
 0x3bf   : > { %4901 = vmatprep.subr.bf16.mxu1 %v6723_v8 }
 0x3c0   : > { %4861 = vmatpush1.bf16.msra.mxu0 %v6673_v60 }
 0x3c1   : > { %4862 = vmatprep.subr.bf16.mxu0 %v6678_v1 }
 0x3c2   : > { %4902 = vmatpush1.bf16.msra.mxu1 %v6721_v11 }
 0x3c3   : > { %4903 = vmatprep.subr.bf16.mxu1 %v6726_v13 }
 0x3c4   : > { %4863 = vmatpush1.bf16.msra.mxu0 %v6676_v3 }
 0x3c5   : > { %4864 = vmatprep.subr.bf16.mxu0 %v6681_v7 }
 0x3c6   : > { %4904 = vmatpush1.bf16.msra.mxu1 %v6724_v18  ;;  %v6752_v18 = vld [vmem:[#allocation15 + $0x38] sm:$0xff]  }
 0x3c7   : > { %4905 = vmatprep.subr.bf16.mxu1 %v6729_v22  ;;  %v6754_v22 = vld [vmem:[#allocation15 + $0x30] sm:$0xff]  }
 0x3c8   : > { %4865 = vmatpush2.bf16.msra.mxu0 %v6679_v9 }
 0x3c9   : > { %4866 = vmatprep.subr.bf16.mxu0 %v6684_v12 }
 0x3ca   : > { %4906 = vmatpush2.bf16.msra.mxu1 %v6727_v24  ;;  %v6756_v24 = vld [vmem:[#allocation15 + $0x28] sm:$0xff]  }
 0x3cb   : > { %4907 = vmatprep.subr.bf16.mxu1 %v6732_v25  ;;  %v6758_v25 = vld [vmem:[#allocation15 + $0x20] sm:$0xff]  }
 0x3cc   : > { %4867 = vmatpush2.bf16.msra.mxu0 %v6682_v14  ;;  %v6751_v14 = vld [vmem:[#allocation15 + $0x78] sm:$0xff]  }
 0x3cd   : > { %4868 = vmatprep.subr.bf16.mxu0 %v6687_v19  ;;  %v6753_v19 = vld [vmem:[#allocation15 + $0x70] sm:$0xff]  }
 0x3ce   : > { %4908 = vmatpush2.bf16.msra.mxu1 %v6730_v55  ;;  %v6760_v55 = vld [vmem:[#allocation15 + $0x18] sm:$0xff]  }
 0x3cf   : > { %4909 = vmatprep.subr.bf16.mxu1 %v6735_v31  ;;  %v6762_v31 = vld [vmem:[#allocation15 + $0x10] sm:$0xff]  }
 0x3d0   : > { %4869 = vmatpush2.bf16.msra.mxu0 %v6685_v21  ;;  %v6755_v21 = vld [vmem:[#allocation15 + $0x68] sm:$0xff]  }
 0x3d1   : > { %4870 = vmatprep.subr.bf16.mxu0 %v6690_v23  ;;  %v6757_v23 = vld [vmem:[#allocation15 + $0x60] sm:$0xff]  }
 0x3d2   : > { %4910 = vmatpush2.bf16.msra.mxu1 %v6733_v34  ;;  %v2835_v34 = vrot.slane %v7830_v41, %v2520_v5  ;;  %v6763_v5 = vld [vmem:[#allocation15 + $0x48] sm:$0xff]  }
 0x3d3   : > { %4911 = vmatprep.subr.bf16.mxu1 %v6738_v36 }
 0x3d4   : > { %4871 = vmatpush2.bf16.msra.mxu0 %v6688_v27  ;;  %v6759_v27 = vld [vmem:[#allocation15 + $0x58] sm:$0xff]  }
 0x3d5   : > { %4872 = vmatprep.subr.bf16.mxu0 %v6693_v28  ;;  %v6761_v28 = vld [vmem:[#allocation15 + $0x50] sm:$0xff]  }
 0x3d6   : > { %4912 = vmatpush2.bf16.msra.mxu1 %v6736_v38 }
 0x3d7   : > { %4913 = vmatprep.subr.bf16.mxu1 %v6741_v26 }
 0x3d8   : > { %4873 = vmatpush2.bf16.msra.mxu0 %v6691_v10  ;;  %v2831_v10 = vrot.slane %v7830_v41, %v2516_v30  ;;  %v6764_v41 = vld [vmem:[#allocation15 + $0x8] sm:$0xff]  }
 0x3d9   : > { %4874 = vmatprep.subr.bf16.mxu0 %v6696_v35 }
 0x3da   : > { %4914 = vmatpush2.bf16.msra.mxu1 %v6739_v43 }
 0x3db   : > { %4915 = vmatprep.subr.bf16.mxu1 %v6744_v17 }
 0x3dc   : > { %4875 = vmatpush2.bf16.msra.mxu0 %v6694_v37 }
 0x3dd   : > { %4876 = vmatprep.subr.bf16.mxu0 %v6699_v54 }
 0x3de   : > { %4916 = vmatpush2.bf16.msra.mxu1 %v6742_v33 }
 0x3df   : > { %4917 = vmatprep.subr.bf16.mxu1 %v6747_v51  ;;  %v6766_v51 = vld [vmem:[#allocation15] sm:$0xff]  }
 0x3e0   : > { %4877 = vmatpush2.bf16.msra.mxu0 %v6697_v20 }
 0x3e1   : > { %4878 = vmatprep.subr.bf16.mxu0 %v6702_v44 }
 0x3e2   : > { %4918 = vmatpush2.bf16.msra.mxu1 %v6745_v56  ;;  %v6767_v56 = vld [vmem:[#allocation18 + $0x38] sm:$0xff]  }
 0x3e3   : > { %4919 = vmatprep.subr.bf16.mxu1 %v6750_v42  ;;  %v4516_v42 = vld [vmem:[#allocation14] sm:$0x3] }
 0x3e4   : > { %4879 = vmatpush2.bf16.msra.mxu0 %v6700_v32 }
 0x3e5   : > { %6047 = vmatprep.subr.bf16.mxu0 %v6751_v14 }
 0x3e6   : > { %4920 = vmatpush2.bf16.msra.mxu1 %v6748_v0  ;;  %v4525_v0 = vrot.slane %v4516_v42, %v7757_v4 }
 0x3e7   : > { %v4236_v49 = vpop.f32.mrf.mxu0 }
 0x3e8   : > { %v4277_v50 = vpop.f32.mrf.mxu1  ;;  %v4237_v53 = vadd.f32 %v4236_v49, %v4196_v16 }
 0x3e9   : > { %v4238_v57 = vpop.f32.mrf.mxu0 }
 0x3ea   : > { %v4279_v58 = vpop.f32.mrf.mxu1  ;;  %v4239_v61 = vadd.f32 %v4238_v57, %v4198_v52  ;;  %v4278_v59 = vadd.f32 %v4277_v50, %v4237_v53  ;;  %v6765_v50 = vld [vmem:[#allocation15 + $0x40] sm:$0xff]   ;;  %v7189_v57 = vmov 0.0  }
 0x3eb   : > { %v4240_v39 = vpop.f32.mrf.mxu0  ;;  %6078 = vmatprep.subr.bf16.mxu1 %v7189_v57 }
 0x3ec   : > { %v4281_v62 = vpop.f32.mrf.mxu1  ;;  %v4280_v60 = vadd.f32 %v4279_v58, %v4239_v61  ;;  %v4448_v3 = vpack.c.bf16 %v4278_v59, %v4278_v59  ;;  %v6768_v58 = vld [vmem:[#allocation18 + $0x30] sm:$0xff]   ;;  %v6769_v61 = vld [vmem:[#allocation18 + $0x28] sm:$0xff]   ;;  %v6770_v59 = vld [vmem:[#allocation18 + $0x20] sm:$0xff]  }
 0x3ed   : > { %v4241_v1 = vpop.f32.mrf.mxu0  ;;  %v6771_v39 = vld [vmem:[#allocation18 + $0x18] sm:$0xff]   ;;  %v6772_v62 = vld [vmem:[#allocation18 + $0x10] sm:$0xff]  }
 0x3ee   : > { %v4282_v40 = vpop.f32.mrf.mxu1  ;;  %v4449_v2 = vpack.c.bf16 %v4280_v60, %v4280_v60  ;;  %v4521_v60 = vrot.slane %v4516_v42, %v7782_v29  ;;  %v6014_v29 = vld [vmem:[#allocation17] ss:$0 sm:$0xff] }
 0x3f0   : > { %4880 = vmatprep.mubr.bf16.mxu0 %v4449_v2 }
 0x3f1   : > { %4881 = vmatmul.mubr.bf16.vlgmr.msra.gmra.mxu0 %v4448_v3 }
 0x3f2   : > { %6048 = vmatpush3.bf16.msra.mxu0 %v6752_v18 }
 0x3f3   : > { %6049 = vmatprep.subr.bf16.mxu0 %v6753_v19 }
 0x3f6   : > { %6050 = vmatpush3.bf16.msra.mxu0 %v6754_v22 }
 0x3f7   : > { %6051 = vmatprep.subr.bf16.mxu0 %v6755_v21 }
 0x3fa   : > { %6052 = vmatpush3.bf16.msra.mxu0 %v6756_v24 }
 0x3fb   : > { %6053 = vmatprep.subr.bf16.mxu0 %v6757_v23  ;;  %v6031_v23 = vld [vmem:[#allocation20] ss:$0 sm:$0xff] }
 0x3fe   : > { %6054 = vmatpush3.bf16.msra.mxu0 %v6758_v25 }
 0x3ff   : > { %6055 = vmatprep.subr.bf16.mxu0 %v6759_v27 }
 0x402   : > { %6056 = vmatpush3.bf16.msra.mxu0 %v6760_v55 }
 0x403   : > { %6057 = vmatprep.subr.bf16.mxu0 %v6761_v28 }
 0x406   : > { %6058 = vmatpush3.bf16.msra.mxu0 %v6762_v31 }
 0x407   : > { %6059 = vmatprep.subr.bf16.mxu0 %v6763_v5 }
 0x40a   : > { %6060 = vmatpush3.bf16.msra.mxu0 %v6764_v41 }
 0x40b   : > { %6061 = vmatprep.subr.bf16.mxu0 %v6765_v50 }
 0x40e   : > { %6062 = vmatpush3.bf16.msra.mxu0 %v6766_v51 }
 0x427   : > { %v4318_v47 = vpop.f32.mrf.mxu0 }
 0x428   : > { %v4359_v6 = vpop.f32.mrf.mxu1  ;;  %v4319_v35 = vadd.f32 %v4318_v47, %v2831_v10 }
 0x429   : > { %v4320_v7 = vpop.f32.mrf.mxu0 }
 0x42a   : > { %v4361_v8 = vpop.f32.mrf.mxu1  ;;  %v4321_v36 = vadd.f32 %v4320_v7, %v2835_v34  ;;  %v4360_v37 = vadd.f32 %v4359_v6, %v4319_v35 }
 0x42b   : > { %v4322_v9 = vpop.f32.mrf.mxu0 }
 0x42c   : > { %v4363_v11 = vpop.f32.mrf.mxu1  ;;  %v4362_v26 = vadd.f32 %v4361_v8, %v4321_v36 }
 0x42d   : > { %v4323_v12 = vpop.f32.mrf.mxu0 }
 0x42e   : > { %v4364_v13 = vpop.f32.mrf.mxu1  ;;  %v6773_v12 = vld [vmem:[#allocation18 + $0x8] sm:$0xff]  }
 0x42f   : > { %v6774_v13 = vld [vmem:[#allocation18] sm:$0xff]  }
 0x467   : > { %v4400_v38 = vpop.f32.mrf.mxu0 }
 0x468   : > { %v4441_v54 = vpop.f32.mrf.mxu1  ;;  %v4401_v20 = vadd.f32 %v4400_v38, %v4360_v37 }
 0x469   : > { %v4402_v43 = vpop.f32.mrf.mxu0 }
 0x46a   : > { %v4443_v44 = vpop.f32.mrf.mxu1  ;;  %v4403_v17 = vadd.f32 %v4402_v43, %v4362_v26  ;;  %v4442_v45 = vadd.f32 %v4441_v54, %v4401_v20 }
 0x46b   : > { %v4404_v46 = vpop.f32.mrf.mxu0 }
 0x46c   : > { %v4445_v32 = vpop.f32.mrf.mxu1  ;;  %v4444_v33 = vadd.f32 %v4443_v44, %v4403_v17  ;;  %v4450_v63 = vpack.c.bf16 %v4442_v45, %v4442_v45 }
 0x46d   : > { %v4405_v15 = vpop.f32.mrf.mxu0 }
 0x46e   : > { %v4446_v30 = vpop.f32.mrf.mxu1  ;;  %v4451_v48 = vpack.c.bf16 %v4444_v33, %v4444_v33 }
 0x470   : > { %4921 = vmatprep.mubr.bf16.mxu1 %v4451_v48 }
 0x471   : > { %4922 = vmatmul.mubr.bf16.vlgmr.msra.gmra.mxu1 %v4450_v63 }
 0x472   : > { %6079 = vmatpush3.bf16.msra.mxu1 %v6767_v56  ;;  %6094 = vmatprep.mubr.msk.bf16.mxu1 %vm7190_vm0, %v7189_v57 }
 0x473   : > { %6080 = vmatprep.subr.bf16.mxu1 %v7189_v57 }
 0x476   : > { %6081 = vmatpush3.bf16.msra.mxu1 %v6768_v58 }
 0x477   : > { %6082 = vmatprep.subr.bf16.mxu1 %v7189_v57 }
 0x47a   : > { %6083 = vmatpush3.bf16.msra.mxu1 %v6769_v61 }
 0x47b   : > { %6084 = vmatprep.subr.bf16.mxu1 %v7189_v57 }
 0x47e   : > { %6085 = vmatpush3.bf16.msra.mxu1 %v6770_v59 }
 0x47f   : > { %6086 = vmatprep.subr.bf16.mxu1 %v7189_v57 }
 0x482   : > { %6087 = vmatpush3.bf16.msra.mxu1 %v6771_v39 }
 0x483   : > { %6088 = vmatprep.subr.bf16.mxu1 %v7189_v57 }
 0x486   : > { %6089 = vmatpush3.bf16.msra.mxu1 %v6772_v62 }
 0x487   : > { %6090 = vmatprep.subr.bf16.mxu1 %v7189_v57 }
 0x48a   : > { %6091 = vmatpush3.bf16.msra.mxu1 %v6773_v12 }
 0x48b   : > { %6092 = vmatprep.subr.bf16.mxu1 %v7189_v57 }
 0x48e   : > { %6093 = vmatpush3.bf16.msra.mxu1 %v6774_v13 }
 0x4b1   : > { %v4882_v16 = vpop.f32.mrf.mxu0 }
 0x4b2   : > { %v4883_v1 = vadd.f32 %v4882_v16, %v4521_v60 }
 0x4b3   : > { %v4884_v49 = vpop.f32.mrf.mxu0 }
 0x4b4   : > { %v4885_v2 = vadd.f32 %v4884_v49, %v4525_v0 }
 0x4b5   : > { %v4886_v52 = vpop.f32.mrf.mxu0 }
 0x4b7   : > { %v4887_v53 = vpop.f32.mrf.mxu0 }
 0x531   : > { %v4923_v40 = vpop.f32.mrf.mxu1 }
 0x532   : > { %v4924_v3 = vadd.f32 %v4923_v40, %v4883_v1 }
 0x533   : > { %v4925_v47 = vpop.f32.mrf.mxu1 }
 0x534   : > { %v4926_v6 = vadd.f32 %v4925_v47, %v4885_v2  ;;  %v4930_v9 = vpack.c.bf16 %v4924_v3, %v4924_v3 }
 0x535   : > { %v4927_v7 = vpop.f32.mrf.mxu1 }
 0x536   : > { %v4931_v8 = vpack.c.bf16 %v4926_v6, %v4926_v6 }
 0x537   : > { %v4928_v11 = vpop.f32.mrf.mxu1 }
 0x538   : > { %5099 = vmatprep.mubr.bf16.mxu0 %v4931_v8 }
 0x539   : > { %5100 = vmatmul.mubr.bf16.vlgmr.msra.gmra.mxu0 %v4930_v9 }
 0x5f9   : > { %v6063_v4 = vpop.f32.mrf.mxu0 }
 0x5fb   : > { %v6064_v14 = vpop.f32.mrf.mxu0 }
 0x5fc   : > { %v6065_v18 = vadd.f32 %v6064_v14, %v6063_v4 }
 0x5fd   : > { %v6066_v19 = vpop.f32.mrf.mxu0 }
 0x5fe   : > { %v5102_v22 = vadd.f32 %v6065_v18, %v6014_v29 }
 0x5ff   : > { %v6067_v21 = vpop.f32.mrf.mxu0 }
 0x600   : > { %v5107_v24 = vpack.c.bf16 %v5102_v22, %v5102_v22 }
 0x602   : > { %6095 = vmatmul.mubr.bf16.vlgmr.msra.gmra.mxu1 %v5107_v24 }
 0x6c2   : > { %v5213_v25 = vpop.f32.mrf.mxu1 }
 0x6c3   : > { %v5214_v27 = vadd.f32 %v6031_v23, %v5213_v25 }
 0x6c4   : > { %v6096_v55 = vpop.f32.mrf.mxu1 }
 0x6c5   : > { %5219 = vst [vmem:[#allocation21] sm:$0xff] %v5214_v27 }
 0x6c6   : > { %v5216_v28 = vpop.f32.mrf.mxu1 }
 0x6c8   : > { %v6097_v31 = vpop.f32.mrf.mxu1 }
 0x6c9 PF: > { %p6196_p9 = scmp.eq.s32.totalorder %s7283_s23, 1  ;;  %s7191_s20 = smov [#allocation21]  }
 0x6ca   : > { %s5229_s24 = sshll.u32 %s7191_s20, 4  ;;  %s5230_s24 = int_to_ptr.vmem [resolvable:$true] %s5229_s24 }
 0x6cb   : > { %s7065_s2 = scalar_lea.vmem %s5230_s24, 128  ;;  %p7072_p10 = scmp.lt.s32.totalorder %s5230_s24, %s5230_s24 }
 0x6cc   : > { %p7066_p6 = scmp.ne.s32.totalorder %s5230_s24, %s7065_s2  ;;  %p7073_p11 = scmp.lt.s32.totalorder %s7065_s2, %s7065_s2 }
 0x6ce   : > { %p7067_p5 = pnand %p7066_p6, %p6196_p9  ;;  %p7074_p12 = por %p7073_p11, %p7072_p10 }
 0x6d0   : > { %p7068_p4 = pneg %p7067_p5 }
 0x6d2   : > { %p7075_p13 = pnand %p7074_p12, %p7068_p4 }
 0x6d4   : > { %7078 = shalt.err (!%p7075_p13)
}
 0x6d5   : > { %s7923_s11 = sld [smem:[#allocation36_spill]] }
 0x6db   : > { %6139 = dma.vmem_to_hbm [thread:$0]  (%p6196_p9), %s5230_s24, 128, %s7923_s11, [#allocation5]  }
 0x6dc   : > { %7142 = dma.done.wait (%p6196_p9), [#allocation5], 128  }
 0x6dd   : > { %7144 = vsyncadd (%p6196_p9), [#allocation5], 4294967168 }
 0x6de PF: > { %s32_s22 = sadd.s32 1, %s7167_s22   ;;  %s7924_s17 = smov %s7151_s18 }
 0x6df   : > { %p29_p2 = scmp.ge.s32.totalorder %s32_s22, 4   ;;  %s7925_s18 = smov %s7155_s19 }
 0x6e0   : > { %s7926_s19 = smov %s7394_s16  ;;  %s7927_s20 = smov %s7163_s21 }
 0x6e1   : > { %s7928_s21 = smov %s7930_s13  ;;  %31 = sbr.rel (!%p29_p2) target bundleno = 19 (0x13), region = 159 }
 0x6e6   :  { %5242 = vsyncpa [#allocation4], 1 }
 0x6e7   :  { %5244 = vsyncpa [#allocation4 + $0x1], 1 }
 0x6e8   :  { %5245 = vsyncpa [#allocation7], 1 }
 0x6e9   :  { %5247 = vsyncpa [#allocation7 + $0x1], 1 }
 0x6ea   :  { %5248 = vsyncpa [#allocation10], 1 }
 0x6eb   :  { %5249 = vsyncpa [#allocation13], 1 }
 0x6ec   :  { %5250 = vsyncpa [#allocation16], 1 }
 0x6ed   :  { %5251 = vsyncpa [#allocation19], 1 }
 0x6ee   :  { %5252 = vsyncpa [#allocation5], 1 }
 0x6ef   :  { %5254 = vsyncpa [#allocation5 + $0x1], 1 }

// kernel: tpu_custom_call.1
= control target key start
LH: loop header
LB: loop body
LE: loop exit
PB: predicated region body
PF: predicated region fallthrough
CT: control target
= control target key end

     0   :  { %s7878_s0 = inlined_call_operand.hbm [shape: bf16[8,1024], index: 0, kind: input, shape index: {}]   ;;  %s7879_s1 = inlined_call_operand.hbm [shape: bf16[1024,1024], index: 1, kind: input, shape index: {}]   ;;  %s7880_s2 = inlined_call_operand.hbm [shape: f32[1,1024], index: 2, kind: input, shape index: {}]   ;;  %s7881_s3 = inlined_call_operand.hbm [shape: bf16[1024,512], index: 3, kind: input, shape index: {}]   ;;  %s7882_s4 = inlined_call_operand.hbm [shape: f32[1,512], index: 4, kind: input, shape index: {}]   ;;  %s7883_s5 = inlined_call_operand.hbm [shape: bf16[512,256], index: 5, kind: input, shape index: {}]   ;;  %s7884_s6 = inlined_call_operand.hbm [shape: f32[1,256], index: 6, kind: input, shape index: {}]   ;;  %s7885_s7 = inlined_call_operand.hbm [shape: bf16[256,128], index: 7, kind: input, shape index: {}]   ;;  %s7886_s8 = inlined_call_operand.hbm [shape: f32[1,128], index: 8, kind: input, shape index: {}]   ;;  %s7887_s9 = inlined_call_operand.hbm [shape: bf16[128,128], index: 9, kind: input, shape index: {}]   ;;  %s7888_s10 = inlined_call_operand.hbm [shape: f32[1,128], index: 10, kind: input, shape index: {}]   ;;  %s7889_s11 = inlined_call_operand.hbm [shape: f32[8,128], index: 11, kind: output, shape index: {}]  }
   0x1   :  { %7892 = sst [smem:[#allocation30_spill]] %s7878_s0 }
   0x2   :  { %7893 = sst [smem:[#allocation31_spill]] %s7880_s2 }
   0x3   :  { %7894 = sst [smem:[#allocation32_spill]] %s7881_s3 }
   0x4   :  { %7895 = sst [smem:[#allocation33_spill]] %s7882_s4 }
   0x5   :  { %7896 = sst [smem:[#allocation34_spill]] %s7883_s5 }
   0x6   :  { %7897 = sst [smem:[#allocation35_spill]] %s7884_s6 }
   0x7   :  { %7898 = sst [smem:[#allocation36_spill]] %s7889_s11 }
   0x8   :  { %16 = vsyncpa [#allocation4], 0 }
   0x9   :  { %18 = vsyncpa [#allocation4 + $0x1], 0 }
   0xa   :  { %19 = vsyncpa [#allocation7], 0 }
   0xb   :  { %21 = vsyncpa [#allocation7 + $0x1], 0 }
   0xc   :  { %22 = vsyncpa [#allocation10], 0 }
   0xd   :  { %23 = vsyncpa [#allocation13], 0 }
   0xe   :  { %24 = vsyncpa [#allocation16], 0 }
   0xf   :  { %25 = vsyncpa [#allocation19], 0 }
  0x10   :  { %26 = vsyncpa [#allocation5], 0  ;;  %s7252_s17 = smov 0   ;;  %s7254_s18 = smov 0  }
  0x11   :  { %s7256_s19 = smov 0   ;;  %s7258_s20 = smov 0  }
  0x12   :  { %s7260_s21 = smov 0   ;;  %s7262_s22 = smov 0  }
  0x13 LB: > { %s7283_s23 = sadd.s32 4294967295, %s7167_s22   ;;  %p5402_p0 = scmp.ge.s32.totalorder %s7167_s22, 1  ;;  %s7167_s22 = sphi %s7262_s22, %s32_s22   ;;  %s7163_s21 = sphi %s7260_s21, %s7928_s21   ;;  %s7159_s20 = sphi %s7258_s20, %s7927_s20   ;;  %s7155_s19 = sphi %s7256_s19, %s7926_s19   ;;  %s7151_s18 = sphi %s7254_s18, %s7925_s18   ;;  %s7147_s17 = sphi %s7252_s17, %s7924_s17  }
  0x14   : > { %p7890_p1 = scmp.eq.s32.totalorder %s7283_s23, 0  ;;  %p318_p2 = scmp.lt.s32.totalorder %s7167_s22, 3 }
  0x15   : > { %s7169_s25 = smov [#allocation8]   ;;  %s7170_s27 = smov [#allocation9]  }
  0x16   : > { %p7288_p3 = pnand %p5402_p0, %p318_p2  ;;  %s331_s26 = sshll.u32 %s7169_s25, 4  ;;  %s332_s26 = int_to_ptr.vmem [resolvable:$true] %s331_s26 }
  0x17   : > { %s341_s28 = sshll.u32 %s7170_s27, 4  ;;  %s7171_s30 = smov [#allocation12]   ;;  %s342_s28 = int_to_ptr.vmem [resolvable:$true] %s341_s28 }
  0x18   : > { %s7899_s24 = scalar_select %p7288_p3, 1, 0 }
  0x19   : > { %p6142_p4 = pneg %p7288_p3  ;;  %s365_s12 = sshll.u32 %s7171_s30, 4  ;;  %s366_s12 = int_to_ptr.vmem [resolvable:$true] %s365_s12 }
  0x1a   : > { %s6786_s14 = scalar_lea.vmem %s332_s26, 128  ;;  %p6794_p10 = scmp.lt.s32.totalorder %s332_s26, %s332_s26 }
  0x1b   : > { %p7296_p5 = pnand %p6142_p4, %p7890_p1  ;;  %p6787_p7 = scmp.ne.s32.totalorder %s332_s26, %s6786_s14 }
  0x1c   : > { %p6795_p11 = scmp.lt.s32.totalorder %s6786_s14, %s6786_s14 }
  0x1d   : > { %p7302_p6 = pneg %p7296_p5 }
  0x1e   : > { %p6796_p12 = por %p6795_p11, %p6794_p10 }
  0x1f   : > { %p6789_p8 = pnand %p6787_p7, %p7302_p6 }
  0x21   : > { %p6790_p9 = pneg %p6789_p8 }
  0x23   : > { %p6797_p13 = pnand %p6796_p12, %p6790_p9 }
  0x25   : > { %6800 = shalt.err (!%p6797_p13)
}
  0x26   : > { %s7902_s2 = sld [smem:[#allocation31_spill]]  ;;  %s6812_s25 = scalar_lea.vmem %s342_s28, 32768 }
  0x27   : > { %p6813_p0 = scmp.ne.s32.totalorder %s342_s28, %s6812_s25  ;;  %p6820_p1 = scmp.lt.s32.totalorder %s342_s28, %s342_s28 }
  0x28   : > { %p6821_p7 = scmp.lt.s32.totalorder %s6812_s25, %s6812_s25 }
  0x29   : > { %p6815_p2 = pnand %p6813_p0, %p7302_p6 }
  0x2a   : > { %p6822_p8 = por %p6821_p7, %p6820_p1 }
  0x2b   : > { %p6816_p4 = pneg %p6815_p2 }
  0x2c   : > { %6145 = dma.hbm_to_vmem [thread:$0]  (!%p7296_p5), %s7902_s2, 128, %s332_s26, [#allocation7]  }
  0x2d   : > { %p6823_p3 = pnand %p6822_p8, %p6816_p4 }
  0x2f   : > { %6826 = shalt.err (!%p6823_p3)
}
  0x30   : > { %s7172_s27 = smov 256   ;;  %s7173_s30 = smov 16  }
  0x31   : > { %s7903_s3 = sld [smem:[#allocation32_spill]]  ;;  %s6838_s26 = scalar_lea.vmem %s366_s12, 8192 }
  0x32   : > { %p6839_p9 = scmp.ne.s32.totalorder %s366_s12, %s6838_s26  ;;  %p6846_p12 = scmp.lt.s32.totalorder %s366_s12, %s366_s12 }
  0x33   : > { %p6847_p13 = scmp.lt.s32.totalorder %s6838_s26, %s6838_s26 }
  0x34   : > { %p6841_p10 = pnand %p6839_p9, %p7302_p6 }
  0x35   : > { %p6848_p1 = por %p6847_p13, %p6846_p12 }
  0x36   : > { %p6842_p11 = pneg %p6841_p10 }
  0x37   : > { %6148 = dma.hbm_to_vmem [thread:$0]  (!%p7296_p5), %s7903_s3, 32768, %s342_s28, [#allocation10], %s7172_s27, %s7172_s27, %s7173_s30  }
  0x38   : > { %p6849_p0 = pnand %p6848_p1, %p6842_p11 }
  0x3a   : > { %6852 = shalt.err (!%p6849_p0)
}
  0x3b   : > { %s7174_s15 = smov 128   ;;  %s7175_s16 = smov 8  }
  0x3c   : > { %s7904_s5 = sld [smem:[#allocation34_spill]]  ;;  %s7176_s11 = smov [#allocation15]  }
  0x3d   : > { %s389_s28 = sshll.u32 %s7176_s11, 4  ;;  %s390_s28 = int_to_ptr.vmem [resolvable:$true] %s389_s28 }
  0x3e   : > { %s6864_s27 = scalar_lea.vmem %s390_s28, 2048  ;;  %p6872_p7 = scmp.lt.s32.totalorder %s390_s28, %s390_s28 }
  0x3f   : > { %p6865_p3 = scmp.ne.s32.totalorder %s390_s28, %s6864_s27  ;;  %p6873_p8 = scmp.lt.s32.totalorder %s6864_s27, %s6864_s27 }
  0x41   : > { %p6867_p2 = pnand %p6865_p3, %p7302_p6  ;;  %p6874_p9 = por %p6873_p8, %p6872_p7 }
  0x42   : > { %6154 = dma.hbm_to_vmem [thread:$0]  (!%p7296_p5), %s7904_s5, 8192, %s366_s12, [#allocation13], %s7174_s15, %s7174_s15, %s7175_s16  }
  0x43   : > { %p6868_p4 = pneg %p6867_p2 }
  0x45   : > { %p6875_p10 = pnand %p6874_p9, %p6868_p4 }
  0x47   : > { %6878 = shalt.err (!%p6875_p10)
}
  0x48   : > { %s7177_s30 = smov 64   ;;  %s7178_s14 = smov 4  }
  0x49   : > { %6160 = dma.hbm_to_vmem [thread:$0]  (!%p7296_p5), %s7885_s7, 2048, %s390_s28, [#allocation16], %s7177_s30, %s7177_s30, %s7178_s14  }
  0x4a   : > { %s7179_s26 = smov [#allocation18]   ;;  %s7180_s16 = smov [#allocation11]  }
  0x4b   : > { %s413_s15 = sshll.u32 %s7179_s26, 4  ;;  %s355_s25 = sshll.u32 %s7180_s16, 4  ;;  %s414_s15 = int_to_ptr.vmem [resolvable:$true] %s413_s15  ;;  %s356_s25 = int_to_ptr.vmem [resolvable:$true] %s355_s25 }
  0x4c   : > { %s6890_s11 = scalar_lea.vmem %s414_s15, 1024  ;;  %p6898_p1 = scmp.lt.s32.totalorder %s414_s15, %s414_s15 }
  0x4d   : > { %p6891_p11 = scmp.ne.s32.totalorder %s414_s15, %s6890_s11  ;;  %p6899_p0 = scmp.lt.s32.totalorder %s6890_s11, %s6890_s11 }
  0x4f   : > { %p6893_p12 = pnand %p6891_p11, %p7302_p6  ;;  %p6900_p3 = por %p6899_p0, %p6898_p1 }
  0x51   : > { %p6894_p13 = pneg %p6893_p12 }
  0x53   : > { %p6901_p2 = pnand %p6900_p3, %p6894_p13 }
  0x55   : > { %6904 = shalt.err (!%p6901_p2)
}
  0x56   : > { %6166 = dma.hbm_to_vmem [thread:$0]  (!%p7296_p5), %s7887_s9, 1024, %s414_s15, [#allocation19], %s7177_s30, %s7177_s30, %s7178_s14  }
  0x57   : > { %s6916_s2 = scalar_lea.vmem %s356_s25, 64  ;;  %p6924_p9 = scmp.lt.s32.totalorder %s356_s25, %s356_s25 }
  0x58   : > { %p6917_p4 = scmp.ne.s32.totalorder %s356_s25, %s6916_s2  ;;  %p6925_p10 = scmp.lt.s32.totalorder %s6916_s2, %s6916_s2 }
  0x5a   : > { %p6919_p7 = pnand %p6917_p4, %p7302_p6  ;;  %p6926_p11 = por %p6925_p10, %p6924_p9 }
  0x5c   : > { %p6920_p8 = pneg %p6919_p7 }
  0x5e   : > { %p6927_p12 = pnand %p6926_p11, %p6920_p8 }
  0x60   : > { %6930 = shalt.err (!%p6927_p12)
}
  0x61   : > { %s7905_s4 = sld [smem:[#allocation33_spill]]  ;;  %s7181_s16 = smov [#allocation14]  }
  0x62   : > { %s379_s11 = sshll.u32 %s7181_s16, 4  ;;  %s7182_s30 = smov [#allocation17]   ;;  %s380_s11 = int_to_ptr.vmem [resolvable:$true] %s379_s11 }
  0x63   : > { %s403_s14 = sshll.u32 %s7182_s30, 4  ;;  %s6942_s15 = scalar_lea.vmem %s380_s11, 32  ;;  %s404_s14 = int_to_ptr.vmem [resolvable:$true] %s403_s14 }
  0x64   : > { %p6943_p13 = scmp.ne.s32.totalorder %s380_s11, %s6942_s15  ;;  %p6950_p3 = scmp.lt.s32.totalorder %s380_s11, %s380_s11 }
  0x65   : > { %p6951_p2 = scmp.lt.s32.totalorder %s6942_s15, %s6942_s15 }
  0x66   : > { %p6945_p1 = pnand %p6943_p13, %p7302_p6 }
  0x67   : > { %6151 = dma.hbm_to_vmem [thread:$0]  (!%p7296_p5), %s7905_s4, 64, %s356_s25, [#allocation10]  }
  0x68   : > { %p6946_p0 = pneg %p6945_p1  ;;  %p6952_p4 = por %p6951_p2, %p6950_p3 }
  0x6a   : > { %p6953_p7 = pnand %p6952_p4, %p6946_p0 }
  0x6c   : > { %6956 = shalt.err (!%p6953_p7)
}
  0x6d   : > { %s7906_s6 = sld [smem:[#allocation35_spill]]  ;;  %s6968_s28 = scalar_lea.vmem %s404_s14, 16 }
  0x6e   : > { %p6969_p8 = scmp.ne.s32.totalorder %s404_s14, %s6968_s28  ;;  %s6975_s2 = scalar_lea.vmem %s404_s14, 32 }
  0x6f   : > { %p6976_p11 = scmp.lt.s32.totalorder %s404_s14, %s404_s14  ;;  %p6977_p12 = scmp.lt.s32.totalorder %s6975_s2, %s6968_s28 }
  0x70   : > { %p6971_p9 = pnand %p6969_p8, %p7302_p6 }
  0x71   : > { %p6978_p13 = por %p6977_p12, %p6976_p11 }
  0x72   : > { %p6972_p10 = pneg %p6971_p9 }
  0x73   : > { %6157 = dma.hbm_to_vmem [thread:$0]  (!%p7296_p5), %s7906_s6, 32, %s380_s11, [#allocation13]  }
  0x74   : > { %p6979_p1 = pnand %p6978_p13, %p6972_p10 }
  0x76   : > { %6982 = shalt.err (!%p6979_p1)
}
  0x77   : > { %6163 = dma.hbm_to_vmem [thread:$0]  (!%p7296_p5), %s7886_s8, 16, %s404_s14, [#allocation16]  }
  0x78   : > { %s7183_s16 = smov [#allocation20]  }
  0x79   : > { %s427_s11 = sshll.u32 %s7183_s16, 4  ;;  %s428_s11 = int_to_ptr.vmem [resolvable:$true] %s427_s11 }
  0x7a   : > { %s6994_s30 = scalar_lea.vmem %s428_s11, 16  ;;  %s7001_s15 = scalar_lea.vmem %s428_s11, 32 }
  0x7b   : > { %p6995_p0 = scmp.ne.s32.totalorder %s428_s11, %s6994_s30  ;;  %p7002_p4 = scmp.lt.s32.totalorder %s428_s11, %s428_s11 }
  0x7c   : > { %p7003_p7 = scmp.lt.s32.totalorder %s7001_s15, %s6994_s30 }
  0x7d   : > { %p6997_p3 = pnand %p6995_p0, %p7302_p6 }
  0x7e   : > { %p7004_p8 = por %p7003_p7, %p7002_p4 }
  0x7f   : > { %p6998_p2 = pneg %p6997_p3 }
  0x81   : > { %p7005_p9 = pnand %p7004_p8, %p6998_p2 }
  0x83   : > { %7008 = shalt.err (!%p7005_p9)
}
  0x84   : > { %6169 = dma.hbm_to_vmem [thread:$0]  (!%p7296_p5), %s7888_s10, 16, %s428_s11, [#allocation19]  }
  0x85   : > { %s41_s13 = sadd.s32 1, %s7163_s21  ;;  %s53_s29 = sadd.s32 1, %s7155_s19 }
  0x86   : > { %p42_p6 = scmp.ge.s32.totalorder %s41_s13, 2  ;;  %p60_p10 = scmp.ne.s32.totalorder %s7155_s19, %s7151_s18 }
  0x87   : > { %p61_p11 = scmp.eq.s32.totalorder %s7167_s22, 0  ;;  %p66_p13 = scmp.ne.s32.totalorder %s7151_s18, %s7147_s17 }
  0x88   : > { %s7930_s13 = smov (%p42_p6, %s41_s13), 0  ;;  %p6186_p1 = scmp.lt.s32.totalorder %s7167_s22, 2 }
  0x89   : > { %p7376_p12 = por %p61_p11, %p60_p10  ;;  %s49_s28 = ssub.s32 %s7163_s21, %s7930_s13 }
  0x8a   : > { %p51_p0 = scmp.eq.s32.totalorder %s49_s28, 0  ;;  %p7908_p3 = scmp.eq.s32.totalorder %s7283_s23, 0 }
  0x8b   : > { %s438_s12 = sand.u32 1, %s7155_s19   ;;  %s6044_s26 = sshll.u32 %s7163_s21, 8 }
  0x8c   : > { %p7387_p2 = por %p7908_p3, %p66_p13  ;;  %s5413_s11 = sshll.u32 %s438_s12, 4 }
  0x8d   : > { %s7394_s16 = scalar_select %p51_p0, %s7155_s19, %s53_s29  }
  0x8e   : > { %s7910_s0 = sld [smem:[#allocation30_spill]]  ;;  %s442_s25 = scalar_lea.vmem [#allocation3], %s5413_s11 }
  0x8f   : > { %s452_s3 = sshll.u32 %s442_s25, 4  ;;  %p7401_p5 = pnand %p6186_p1, %p7376_p12  ;;  %s453_s3 = int_to_ptr.vmem [resolvable:$true] %s452_s3 }
  0x90   : > { %s5416_s28 = sshll.u32 %s438_s12, 11  ;;  %s439_s4 = scalar_lea.sflag [#allocation4], %s438_s12 }
  0x91   : > { %p7011_p4 = pneg %p7401_p5  ;;  %s7022_s29 = scalar_lea.vmem %s453_s3, 256 }
  0x92   : > { %p7023_p7 = scmp.ne.s32.totalorder %s453_s3, %s7022_s29 }
  0x94   : > { %s450_s27 = scalar_lea.hbm %s7910_s0, %s6044_s26  ;;  %p7025_p8 = pnand %p7023_p7, %p7011_p4 }
  0x95   : > { %s7184_s26 = smov [#allocation3]  }
  0x96   : > { %p7026_p9 = pneg %p7025_p8  ;;  %s7027_s11 = sshll.u32 %s7184_s26, 4  ;;  %s7028_s11 = int_to_ptr.vmem [resolvable:$false] %s7027_s11 }
  0x97   : > { %s7029_s14 = scalar_lea.vmem %s7028_s11, 512  ;;  %p7030_p6 = scmp.lt.s32.totalorder %s453_s3, %s7028_s11 }
  0x98   : > { %p7031_p10 = scmp.lt.s32.totalorder %s7029_s14, %s7022_s29 }
  0x9a   : > { %p7032_p11 = por %p7031_p10, %p7030_p6 }
  0x9c   : > { %p7033_p12 = pnand %p7032_p11, %p7026_p9 }
  0x9e   : > { %7036 = shalt.err (!%p7033_p12)
}
  0x9f   : > { %6173 = dma.hbm_to_vmem [thread:$0]  (!%p7401_p5), %s450_s27, 256, %s453_s3, %s439_s4  }
  0xa0   : > { %s6046_s12 = sshll.u32 %s7163_s21, 15  ;;  %s463_s30 = scalar_lea.vmem [#allocation6], %s5416_s28 }
  0xa1   : > { %s471_s15 = sshll.u32 %s463_s30, 4  ;;  %s459_s25 = sand.u32 1, %s7167_s22   ;;  %s472_s15 = int_to_ptr.vmem [resolvable:$true] %s471_s15 }
  0xa2   : > { %s470_s5 = scalar_lea.hbm %s7879_s1, %s6046_s12  ;;  %s460_s11 = scalar_lea.sflag [#allocation7], %s459_s25 }
  0xa3   : > { %s7050_s29 = scalar_lea.vmem %s472_s15, 32768  ;;  %s7185_s14 = smov [#allocation6]  }
  0xa4   : > { %p7051_p13 = scmp.ne.s32.totalorder %s472_s15, %s7050_s29  ;;  %s7055_s6 = sshll.u32 %s7185_s14, 4  ;;  %s7056_s6 = int_to_ptr.vmem [resolvable:$false] %s7055_s6 }
  0xa5   : > { %s7057_s3 = scalar_lea.vmem %s7056_s6, 65536  ;;  %p7058_p3 = scmp.lt.s32.totalorder %s472_s15, %s7056_s6 }
  0xa6   : > { %p7053_p1 = pnand %p7051_p13, %p7011_p4  ;;  %p7059_p7 = scmp.lt.s32.totalorder %s7057_s3, %s7050_s29 }
  0xa8   : > { %p7054_p0 = pneg %p7053_p1  ;;  %p7060_p8 = por %p7059_p7, %p7058_p3 }
  0xaa   : > { %p7061_p9 = pnand %p7060_p8, %p7054_p0 }
  0xac   : > { %7064 = shalt.err (!%p7061_p9)
}
  0xad   : > { %s7186_s4 = smov 512   ;;  %s7187_s0 = smov 32  }
  0xae   : > { %6176 = dma.hbm_to_vmem [thread:$0]  (!%p7401_p5), %s470_s5, 32768, %s472_s15, %s460_s11, %s7186_s4, %s7186_s4, %s7187_s0  }
  0xaf   : > { %p7912_p6 = scmp.ne.s32.totalorder %s7899_s24, 0 }
  0xb0   : > { %s485_s27 = sand.u32 (!%p7912_p6), 1, %s7151_s18  }
  0xb1   : > { %483 = sbr.rel (%p7912_p6) target bundleno = 1758 (0x6de), region = 64  ;;  %s5421_s28 = sshll.u32 (!%p7912_p6), %s485_s27, 4 }
  0xb2   : > { %s486_s12 = scalar_lea.sflag (!%p7912_p6), [#allocation4], %s485_s27  ;;  %s7425_s30 = scalar_lea.vmem (!%p7912_p6), [#allocation3], %s5421_s28 }
  0xb6   : > { %7114 = dma.done.wait (%p7387_p2), %s486_s12, 256  }
  0xb7   : > { %7116 = vsyncadd (%p7387_p2), %s486_s12, 4294967040  ;;  %s494_s6 = sand.u32 1, %s7283_s23   ;;  %s5422_s17 = sshll.u32 %s485_s27, 11 }
  0xb8   : > { %s495_s5 = scalar_lea.sflag [#allocation7], %s494_s6  ;;  %s7432_s15 = scalar_lea.vmem [#allocation6], %s5422_s17 }
  0xb9   : > { %7118 = dma.done.wait (%p7387_p2), %s495_s5, 32768  }
  0xba   : > { %7120 = vsyncadd (%p7387_p2), %s495_s5, 4294934528  ;;  %p7913_p5 = scmp.eq.s32.totalorder %s7283_s23, 0 }
  0xbc   : > { %7122 = dma.done.wait (%p7913_p5), [#allocation7], 128   ;;  %p7914_p4 = pmov %p7913_p5 }
  0xbe   : > { %7124 = vsyncadd (%p7914_p4), [#allocation7], 4294967168  ;;  %p7915_p10 = pmov %p7914_p4 }
  0xbf   : > { %p7916_p11 = pmov %p7914_p4 }
  0xc0   : > { %7126 = dma.done.wait (%p7915_p10), [#allocation10], 32832  }
  0xc1   : > { %7128 = vsyncadd (%p7916_p11), [#allocation10], 4294934464  ;;  %p7917_p12 = pmov %p7914_p4 }
  0xc2   : > { %p7918_p13 = pmov %p7914_p4 }
  0xc3   : > { %7130 = dma.done.wait (%p7917_p12), [#allocation13], 8224  }
  0xc4   : > { %7132 = vsyncadd (%p7918_p13), [#allocation13], 4294959072  ;;  %p7919_p2 = pmov %p7914_p4 }
  0xc6   : > { %7134 = dma.done.wait (%p7919_p2), [#allocation16], 2064   ;;  %p7920_p1 = pmov %p7919_p2 }
  0xc8   : > { %7136 = vsyncadd (%p7920_p1), [#allocation16], 4294965232  ;;  %p7921_p0 = pmov %p7920_p1 }
  0xca   : > { %7138 = dma.done.wait (%p7921_p0), [#allocation19], 1040   ;;  %p7922_p3 = pmov %p7921_p0 }
  0xcb   : > { %p5432_p7 = scmp.ne.s32.totalorder %s7159_s20, 0 }
  0xcc   : > { %7140 = vsyncadd (%p7922_p3), [#allocation19], 4294966256 }
  0xcd   : > { %579 = sbr.rel (%p5432_p7) target bundleno = 215 (0xd7), region = 112 }
  0xd2   : > { %v7188_v0 = vmov 0.0  }
  0xd3   : > { %580 = vst [vmem:[#allocation2 + $0x30] sm:$0xff] %v7188_v0  ;;  %581 = vst [vmem:[#allocation2] sm:$0xff] %v7188_v0 }
  0xd4   : > { %582 = vst [vmem:[#allocation2 + $0x18] sm:$0xff] %v7188_v0  ;;  %583 = vst [vmem:[#allocation2 + $0x10] sm:$0xff] %v7188_v0 }
  0xd5   : > { %584 = vst [vmem:[#allocation2 + $0x8] sm:$0xff] %v7188_v0  ;;  %585 = vst [vmem:[#allocation2 + $0x20] sm:$0xff] %v7188_v0 }
  0xd6   : > { %586 = vst [vmem:[#allocation2 + $0x28] sm:$0xff] %v7188_v0  ;;  %587 = vst [vmem:[#allocation2 + $0x38] sm:$0xff] %v7188_v0 }
  0xd7 PF: > { %v654_v1 = vld [vmem:[%s7432_s15 + $0x1c0] sm:$0xff]  ;;  %v7491_v55 = vld [vmem:[%s7425_s30 + $0x8] sm:$0xff]  ;;  %p5693_p8 = scmp.ne.s32.totalorder %s7159_s20, 1 }
  0xd8   : > { %v658_v2 = vld [vmem:[%s7432_s15 + $0x1e0] sm:$0xff]  ;;  %v7501_v60 = vcombine.high %v7491_v55, %v7491_v55 }
  0xd9   : > { %v782_v3 = vld [vmem:[%s7432_s15 + $0x5c0] sm:$0xff]  ;;  %v5494_v4 = vcombine.high %v654_v1, %v658_v2  ;;  %v5493_v6 = vcombine.low %v654_v1, %v658_v2 }
  0xda   : > { %v786_v5 = vld [vmem:[%s7432_s15 + $0x5e0] sm:$0xff]  ;;  %2221 = vmatprep.mubr.bf16.mxu1 %v7501_v60 }
  0xdb   : > { %v646_v7 = vld [vmem:[%s7432_s15 + $0x180] sm:$0xff]  ;;  %v5622_v9 = vcombine.high %v782_v3, %v786_v5  ;;  %v5621_v10 = vcombine.low %v782_v3, %v786_v5  ;;  %2148 = vmatprep.subr.bf16.mxu0 %v5494_v4 }
  0xdc   : > { %v650_v8 = vld [vmem:[%s7432_s15 + $0x1a0] sm:$0xff]  ;;  %2149 = vmatpush1.bf16.msra.mxu0 %v5493_v6 }
  0xdd   : > { %v5486_v11 = vcombine.high %v646_v7, %v650_v8  ;;  %v774_v12 = vld [vmem:[%s7432_s15 + $0x580] sm:$0xff]  ;;  %2189 = vmatprep.subr.bf16.mxu1 %v5622_v9  ;;  %v5485_v19 = vcombine.low %v646_v7, %v650_v8 }
  0xde   : > { %v778_v13 = vld [vmem:[%s7432_s15 + $0x5a0] sm:$0xff]  ;;  %2190 = vmatpush1.bf16.msra.mxu1 %v5621_v10 }
  0xdf   : > { %v638_v14 = vld [vmem:[%s7432_s15 + $0x140] sm:$0xff]  ;;  %v5614_v15 = vcombine.high %v774_v12, %v778_v13  ;;  %2150 = vmatprep.subr.bf16.mxu0 %v5486_v11  ;;  %v5613_v20 = vcombine.low %v774_v12, %v778_v13 }
  0xe0   : > { %v642_v16 = vld [vmem:[%s7432_s15 + $0x160] sm:$0xff]  ;;  %2151 = vmatpush1.bf16.msra.mxu0 %v5485_v19 }
  0xe1   : > { %v766_v17 = vld [vmem:[%s7432_s15 + $0x540] sm:$0xff]  ;;  %v5478_v21 = vcombine.high %v638_v14, %v642_v16  ;;  %2191 = vmatprep.subr.bf16.mxu1 %v5614_v15  ;;  %v5477_v27 = vcombine.low %v638_v14, %v642_v16 }
  0xe2   : > { %v770_v18 = vld [vmem:[%s7432_s15 + $0x560] sm:$0xff]  ;;  %2192 = vmatpush1.bf16.msra.mxu1 %v5613_v20 }
  0xe3   : > { %v5606_v22 = vcombine.high %v766_v17, %v770_v18  ;;  %v630_v23 = vld [vmem:[%s7432_s15 + $0x100] sm:$0xff]  ;;  %2152 = vmatprep.subr.bf16.mxu0 %v5478_v21  ;;  %v5605_v28 = vcombine.low %v766_v17, %v770_v18 }
  0xe4   : > { %v634_v24 = vld [vmem:[%s7432_s15 + $0x120] sm:$0xff]  ;;  %2153 = vmatpush1.bf16.msra.mxu0 %v5477_v27 }
  0xe5   : > { %v758_v25 = vld [vmem:[%s7432_s15 + $0x500] sm:$0xff]  ;;  %v5470_v29 = vcombine.high %v630_v23, %v634_v24  ;;  %2193 = vmatprep.subr.bf16.mxu1 %v5606_v22  ;;  %v5469_v35 = vcombine.low %v630_v23, %v634_v24 }
  0xe6   : > { %v762_v26 = vld [vmem:[%s7432_s15 + $0x520] sm:$0xff]  ;;  %2194 = vmatpush1.bf16.msra.mxu1 %v5605_v28 }
  0xe7   : > { %v5598_v30 = vcombine.high %v758_v25, %v762_v26  ;;  %v622_v31 = vld [vmem:[%s7432_s15 + $0xc0] sm:$0xff]  ;;  %2154 = vmatprep.subr.bf16.mxu0 %v5470_v29  ;;  %v5597_v36 = vcombine.low %v758_v25, %v762_v26 }
  0xe8   : > { %v626_v32 = vld [vmem:[%s7432_s15 + $0xe0] sm:$0xff]  ;;  %2155 = vmatpush1.bf16.msra.mxu0 %v5469_v35 }
  0xe9   : > { %v750_v33 = vld [vmem:[%s7432_s15 + $0x4c0] sm:$0xff]  ;;  %v5462_v37 = vcombine.high %v622_v31, %v626_v32  ;;  %2195 = vmatprep.subr.bf16.mxu1 %v5598_v30  ;;  %v5461_v43 = vcombine.low %v622_v31, %v626_v32 }
  0xea   : > { %v754_v34 = vld [vmem:[%s7432_s15 + $0x4e0] sm:$0xff]  ;;  %2196 = vmatpush1.bf16.msra.mxu1 %v5597_v36 }
  0xeb   : > { %v5590_v38 = vcombine.high %v750_v33, %v754_v34  ;;  %v614_v39 = vld [vmem:[%s7432_s15 + $0x80] sm:$0xff]  ;;  %2156 = vmatprep.subr.bf16.mxu0 %v5462_v37  ;;  %v5589_v44 = vcombine.low %v750_v33, %v754_v34 }
  0xec   : > { %v618_v40 = vld [vmem:[%s7432_s15 + $0xa0] sm:$0xff]  ;;  %2157 = vmatpush1.bf16.msra.mxu0 %v5461_v43 }
  0xed   : > { %v742_v41 = vld [vmem:[%s7432_s15 + $0x480] sm:$0xff]  ;;  %v5454_v45 = vcombine.high %v614_v39, %v618_v40  ;;  %2197 = vmatprep.subr.bf16.mxu1 %v5590_v38  ;;  %v5453_v51 = vcombine.low %v614_v39, %v618_v40 }
  0xee   : > { %v746_v42 = vld [vmem:[%s7432_s15 + $0x4a0] sm:$0xff]  ;;  %2198 = vmatpush1.bf16.msra.mxu1 %v5589_v44 }
  0xef   : > { %v5582_v46 = vcombine.high %v742_v41, %v746_v42  ;;  %v606_v47 = vld [vmem:[%s7432_s15 + $0x40] sm:$0xff]  ;;  %2158 = vmatprep.subr.bf16.mxu0 %v5454_v45  ;;  %v5581_v52 = vcombine.low %v742_v41, %v746_v42 }
  0xf0   : > { %v610_v48 = vld [vmem:[%s7432_s15 + $0x60] sm:$0xff]  ;;  %2159 = vmatpush1.bf16.msra.mxu0 %v5453_v51 }
  0xf1   : > { %v734_v49 = vld [vmem:[%s7432_s15 + $0x440] sm:$0xff]  ;;  %v5446_v53 = vcombine.high %v606_v47, %v610_v48  ;;  %2199 = vmatprep.subr.bf16.mxu1 %v5582_v46  ;;  %v5445_v63 = vcombine.low %v606_v47, %v610_v48 }
  0xf2   : > { %v738_v50 = vld [vmem:[%s7432_s15 + $0x460] sm:$0xff]  ;;  %2200 = vmatpush1.bf16.msra.mxu1 %v5581_v52 }
  0xf3   : > { %v7488_v54 = vld [vmem:[%s7425_s30] sm:$0xff]  ;;  %v5574_v56 = vcombine.high %v734_v49, %v738_v50  ;;  %2160 = vmatprep.subr.bf16.mxu0 %v5446_v53  ;;  %v5573_v0 = vcombine.low %v734_v49, %v738_v50 }
  0xf4   : > { %v598_v57 = vld [vmem:[%s7432_s15] sm:$0xff]  ;;  %v7497_v59 = vcombine.high %v7488_v54, %v7488_v54  ;;  %2161 = vmatpush1.bf16.msra.mxu0 %v5445_v63 }
  0xf5   : > { %v602_v58 = vld [vmem:[%s7432_s15 + $0x20] sm:$0xff]  ;;  %2201 = vmatprep.subr.bf16.mxu1 %v5574_v56 }
  0xf6   : > { %v726_v61 = vld [vmem:[%s7432_s15 + $0x400] sm:$0xff]  ;;  %2180 = vmatprep.mubr.bf16.mxu0 %v7497_v59  ;;  %v5438_v1 = vcombine.high %v598_v57, %v602_v58  ;;  %v5437_v7 = vcombine.low %v598_v57, %v602_v58  ;;  %2202 = vmatpush1.bf16.msra.mxu1 %v5573_v0 }
  0xf7   : > { %v730_v62 = vld [vmem:[%s7432_s15 + $0x420] sm:$0xff] }
  0xf8   : > { %v5566_v2 = vcombine.high %v726_v61, %v730_v62  ;;  %v718_v3 = vld [vmem:[%s7432_s15 + $0x3c0] sm:$0xff]  ;;  %2162 = vmatprep.subr.bf16.mxu0 %v5438_v1  ;;  %v5565_v8 = vcombine.low %v726_v61, %v730_v62 }
  0xf9   : > { %v722_v4 = vld [vmem:[%s7432_s15 + $0x3e0] sm:$0xff]  ;;  %2163 = vmatpush1.bf16.msra.mxu0 %v5437_v7  ;;  %v655_v7 = vld [vmem:[%s7432_s15 + $0x1c8] sm:$0xff] }
  0xfa   : > { %v846_v5 = vld [vmem:[%s7432_s15 + $0x7c0] sm:$0xff]  ;;  %v5558_v9 = vcombine.high %v718_v3, %v722_v4  ;;  %2203 = vmatprep.subr.bf16.mxu1 %v5566_v2  ;;  %v5557_v15 = vcombine.low %v718_v3, %v722_v4 }
  0xfb   : > { %v850_v6 = vld [vmem:[%s7432_s15 + $0x7e0] sm:$0xff]  ;;  %2204 = vmatpush1.bf16.msra.mxu1 %v5565_v8  ;;  %v659_v8 = vld [vmem:[%s7432_s15 + $0x1e8] sm:$0xff] }
  0xfc   : > { %v5686_v10 = vcombine.high %v846_v5, %v850_v6  ;;  %v710_v11 = vld [vmem:[%s7432_s15 + $0x380] sm:$0xff]  ;;  %2164 = vmatprep.subr.bf16.mxu0 %v5558_v9  ;;  %v5685_v16 = vcombine.low %v846_v5, %v850_v6  ;;  %v783_v9 = vld [vmem:[%s7432_s15 + $0x5c8] sm:$0xff] }
  0xfd   : > { %v714_v12 = vld [vmem:[%s7432_s15 + $0x3a0] sm:$0xff]  ;;  %2165 = vmatpush2.bf16.msra.mxu0 %v5557_v15  ;;  %v647_v15 = vld [vmem:[%s7432_s15 + $0x188] sm:$0xff] }
  0xfe   : > { %v838_v13 = vld [vmem:[%s7432_s15 + $0x780] sm:$0xff]  ;;  %v5550_v17 = vcombine.high %v710_v11, %v714_v12  ;;  %2205 = vmatprep.subr.bf16.mxu1 %v5686_v10  ;;  %v5549_v23 = vcombine.low %v710_v11, %v714_v12  ;;  %v787_v10 = vld [vmem:[%s7432_s15 + $0x5e8] sm:$0xff] }
  0xff   : > { %v842_v14 = vld [vmem:[%s7432_s15 + $0x7a0] sm:$0xff]  ;;  %2206 = vmatpush2.bf16.msra.mxu1 %v5685_v16  ;;  %v651_v16 = vld [vmem:[%s7432_s15 + $0x1a8] sm:$0xff] }
 0x100   : > { %v5678_v18 = vcombine.high %v838_v13, %v842_v14  ;;  %v702_v19 = vld [vmem:[%s7432_s15 + $0x340] sm:$0xff]  ;;  %2166 = vmatprep.subr.bf16.mxu0 %v5550_v17  ;;  %v5677_v24 = vcombine.low %v838_v13, %v842_v14  ;;  %v5496_v13 = vcombine.high %v655_v7, %v659_v8  ;;  %v5624_v14 = vcombine.high %v783_v9, %v787_v10 }
 0x101   : > { %v706_v20 = vld [vmem:[%s7432_s15 + $0x360] sm:$0xff]  ;;  %2167 = vmatpush2.bf16.msra.mxu0 %v5549_v23  ;;  %v7547_v17 = vcombine.low %v7488_v54, %v7488_v54  ;;  %v5488_v23 = vcombine.high %v647_v15, %v651_v16  ;;  %v643_v54 = vld [vmem:[%s7432_s15 + $0x168] sm:$0xff] }
 0x102   : > { %v830_v21 = vld [vmem:[%s7432_s15 + $0x740] sm:$0xff]  ;;  %v5542_v25 = vcombine.high %v702_v19, %v706_v20  ;;  %2207 = vmatprep.subr.bf16.mxu1 %v5678_v18  ;;  %v5541_v31 = vcombine.low %v702_v19, %v706_v20  ;;  %v775_v18 = vld [vmem:[%s7432_s15 + $0x588] sm:$0xff]  ;;  %v7553_v20 = vcombine.low %v7491_v55, %v7491_v55  ;;  %v5487_v55 = vcombine.low %v647_v15, %v651_v16 }
 0x103   : > { %v834_v22 = vld [vmem:[%s7432_s15 + $0x760] sm:$0xff]  ;;  %2208 = vmatpush2.bf16.msra.mxu1 %v5677_v24  ;;  %v779_v19 = vld [vmem:[%s7432_s15 + $0x5a8] sm:$0xff] }
 0x104   : > { %v5670_v26 = vcombine.high %v830_v21, %v834_v22  ;;  %v694_v27 = vld [vmem:[%s7432_s15 + $0x300] sm:$0xff]  ;;  %2168 = vmatprep.subr.bf16.mxu0 %v5542_v25  ;;  %v5669_v32 = vcombine.low %v830_v21, %v834_v22  ;;  %v5495_v21 = vcombine.low %v655_v7, %v659_v8  ;;  %v5623_v22 = vcombine.low %v783_v9, %v787_v10  ;;  %v639_v25 = vld [vmem:[%s7432_s15 + $0x148] sm:$0xff] }
 0x105   : > { %v698_v28 = vld [vmem:[%s7432_s15 + $0x320] sm:$0xff]  ;;  %2169 = vmatpush2.bf16.msra.mxu0 %v5541_v31  ;;  %v5616_v24 = vcombine.high %v775_v18, %v779_v19  ;;  %v631_v31 = vld [vmem:[%s7432_s15 + $0x108] sm:$0xff] }
 0x106   : > { %v822_v29 = vld [vmem:[%s7432_s15 + $0x700] sm:$0xff]  ;;  %v5534_v33 = vcombine.high %v694_v27, %v698_v28  ;;  %2209 = vmatprep.subr.bf16.mxu1 %v5670_v26  ;;  %v5533_v39 = vcombine.low %v694_v27, %v698_v28  ;;  %v767_v26 = vld [vmem:[%s7432_s15 + $0x548] sm:$0xff]  ;;  %v5615_v28 = vcombine.low %v775_v18, %v779_v19 }
 0x107   : > { %v826_v30 = vld [vmem:[%s7432_s15 + $0x720] sm:$0xff]  ;;  %2210 = vmatpush2.bf16.msra.mxu1 %v5669_v32  ;;  %v771_v27 = vld [vmem:[%s7432_s15 + $0x568] sm:$0xff] }
 0x108   : > { %v5662_v34 = vcombine.high %v822_v29, %v826_v30  ;;  %v686_v35 = vld [vmem:[%s7432_s15 + $0x2c0] sm:$0xff]  ;;  %2170 = vmatprep.subr.bf16.mxu0 %v5534_v33  ;;  %v5661_v40 = vcombine.low %v822_v29, %v826_v30  ;;  %v5480_v29 = vcombine.high %v639_v25, %v643_v54  ;;  %v5608_v30 = vcombine.high %v767_v26, %v771_v27  ;;  %v635_v32 = vld [vmem:[%s7432_s15 + $0x128] sm:$0xff] }
 0x109   : > { %v690_v36 = vld [vmem:[%s7432_s15 + $0x2e0] sm:$0xff]  ;;  %2171 = vmatpush2.bf16.msra.mxu0 %v5533_v39  ;;  %v759_v33 = vld [vmem:[%s7432_s15 + $0x508] sm:$0xff] }
 0x10a   : > { %v814_v37 = vld [vmem:[%s7432_s15 + $0x6c0] sm:$0xff]  ;;  %v5526_v41 = vcombine.high %v686_v35, %v690_v36  ;;  %2211 = vmatprep.subr.bf16.mxu1 %v5662_v34  ;;  %v5525_v47 = vcombine.low %v686_v35, %v690_v36  ;;  %v763_v34 = vld [vmem:[%s7432_s15 + $0x528] sm:$0xff]  ;;  %v5479_v35 = vcombine.low %v639_v25, %v643_v54  ;;  %v5607_v36 = vcombine.low %v767_v26, %v771_v27 }
 0x10b   : > { %v818_v38 = vld [vmem:[%s7432_s15 + $0x6e0] sm:$0xff]  ;;  %2212 = vmatpush2.bf16.msra.mxu1 %v5661_v40  ;;  %v623_v39 = vld [vmem:[%s7432_s15 + $0xc8] sm:$0xff] }
 0x10c   : > { %v5654_v42 = vcombine.high %v814_v37, %v818_v38  ;;  %v678_v43 = vld [vmem:[%s7432_s15 + $0x280] sm:$0xff]  ;;  %2172 = vmatprep.subr.bf16.mxu0 %v5526_v41  ;;  %v5653_v48 = vcombine.low %v814_v37, %v818_v38  ;;  %v5472_v37 = vcombine.high %v631_v31, %v635_v32  ;;  %v5600_v38 = vcombine.high %v759_v33, %v763_v34  ;;  %v627_v40 = vld [vmem:[%s7432_s15 + $0xe8] sm:$0xff] }
 0x10d   : > { %v682_v44 = vld [vmem:[%s7432_s15 + $0x2a0] sm:$0xff]  ;;  %2173 = vmatpush2.bf16.msra.mxu0 %v5525_v47  ;;  %v751_v41 = vld [vmem:[%s7432_s15 + $0x4c8] sm:$0xff] }
 0x10e   : > { %v806_v45 = vld [vmem:[%s7432_s15 + $0x680] sm:$0xff]  ;;  %v5518_v49 = vcombine.high %v678_v43, %v682_v44  ;;  %2213 = vmatprep.subr.bf16.mxu1 %v5654_v42  ;;  %v5517_v57 = vcombine.low %v678_v43, %v682_v44  ;;  %v755_v42 = vld [vmem:[%s7432_s15 + $0x4e8] sm:$0xff]  ;;  %v5471_v43 = vcombine.low %v631_v31, %v635_v32  ;;  %v5599_v44 = vcombine.low %v759_v33, %v763_v34 }
 0x10f   : > { %v810_v46 = vld [vmem:[%s7432_s15 + $0x6a0] sm:$0xff]  ;;  %2214 = vmatpush2.bf16.msra.mxu1 %v5653_v48  ;;  %v615_v47 = vld [vmem:[%s7432_s15 + $0x88] sm:$0xff] }
 0x110   : > { %v5646_v50 = vcombine.high %v806_v45, %v810_v46  ;;  %v670_v51 = vld [vmem:[%s7432_s15 + $0x240] sm:$0xff]  ;;  %2174 = vmatprep.subr.bf16.mxu0 %v5518_v49  ;;  %v5645_v58 = vcombine.low %v806_v45, %v810_v46  ;;  %v5464_v45 = vcombine.high %v623_v39, %v627_v40  ;;  %v5592_v46 = vcombine.high %v751_v41, %v755_v42  ;;  %v619_v48 = vld [vmem:[%s7432_s15 + $0xa8] sm:$0xff] }
 0x111   : > { %v674_v52 = vld [vmem:[%s7432_s15 + $0x260] sm:$0xff]  ;;  %2175 = vmatpush2.bf16.msra.mxu0 %v5517_v57  ;;  %v743_v49 = vld [vmem:[%s7432_s15 + $0x488] sm:$0xff] }
 0x112   : > { %v798_v53 = vld [vmem:[%s7432_s15 + $0x640] sm:$0xff]  ;;  %v5510_v61 = vcombine.high %v670_v51, %v674_v52  ;;  %2215 = vmatprep.subr.bf16.mxu1 %v5646_v50  ;;  %v5509_v3 = vcombine.low %v670_v51, %v674_v52  ;;  %v747_v50 = vld [vmem:[%s7432_s15 + $0x4a8] sm:$0xff]  ;;  %v5463_v51 = vcombine.low %v623_v39, %v627_v40  ;;  %v5591_v52 = vcombine.low %v751_v41, %v755_v42 }
 0x113   : > { %v802_v56 = vld [vmem:[%s7432_s15 + $0x660] sm:$0xff]  ;;  %2216 = vmatpush2.bf16.msra.mxu1 %v5645_v58  ;;  %v607_v57 = vld [vmem:[%s7432_s15 + $0x48] sm:$0xff] }
 0x114   : > { %v5638_v62 = vcombine.high %v798_v53, %v802_v56  ;;  %v662_v63 = vld [vmem:[%s7432_s15 + $0x200] sm:$0xff]  ;;  %2176 = vmatprep.subr.bf16.mxu0 %v5510_v61  ;;  %v5637_v4 = vcombine.low %v798_v53, %v802_v56  ;;  %v5456_v53 = vcombine.high %v615_v47, %v619_v48  ;;  %v5584_v56 = vcombine.high %v743_v49, %v747_v50  ;;  %v611_v58 = vld [vmem:[%s7432_s15 + $0x68] sm:$0xff] }
 0x115   : > { %v666_v0 = vld [vmem:[%s7432_s15 + $0x220] sm:$0xff]  ;;  %2177 = vmatpush2.bf16.msra.mxu0 %v5509_v3  ;;  %v735_v61 = vld [vmem:[%s7432_s15 + $0x448] sm:$0xff]  ;;  %v5447_v7 = vcombine.low %v607_v57, %v611_v58 }
 0x116   : > { %v790_v1 = vld [vmem:[%s7432_s15 + $0x600] sm:$0xff]  ;;  %v5502_v5 = vcombine.high %v662_v63, %v666_v0  ;;  %2217 = vmatprep.subr.bf16.mxu1 %v5638_v62  ;;  %v5501_v11 = vcombine.low %v662_v63, %v666_v0  ;;  %v739_v62 = vld [vmem:[%s7432_s15 + $0x468] sm:$0xff]  ;;  %v5455_v63 = vcombine.low %v615_v47, %v619_v48  ;;  %v5583_v0 = vcombine.low %v743_v49, %v747_v50 }
 0x117   : > { %v794_v2 = vld [vmem:[%s7432_s15 + $0x620] sm:$0xff]  ;;  %2218 = vmatpush2.bf16.msra.mxu1 %v5637_v4  ;;  %v599_v3 = vld [vmem:[%s7432_s15 + $0x8] sm:$0xff]  ;;  %v5575_v8 = vcombine.low %v735_v61, %v739_v62 }
 0x118   : > { %v5630_v6 = vcombine.high %v790_v1, %v794_v2  ;;  %2178 = vmatprep.subr.bf16.mxu0 %v5502_v5  ;;  %v5629_v12 = vcombine.low %v790_v1, %v794_v2  ;;  %v5448_v1 = vcombine.high %v607_v57, %v611_v58  ;;  %v5576_v2 = vcombine.high %v735_v61, %v739_v62  ;;  %v603_v4 = vld [vmem:[%s7432_s15 + $0x28] sm:$0xff] }
 0x119   : > { %2179 = vmatpush2.bf16.msra.mxu0 %v5501_v11  ;;  %v727_v5 = vld [vmem:[%s7432_s15 + $0x408] sm:$0xff]  ;;  %v5440_v9 = vcombine.high %v599_v3, %v603_v4  ;;  %v5439_v15 = vcombine.low %v599_v3, %v603_v4 }
 0x11a   : > { %2219 = vmatprep.subr.bf16.mxu1 %v5630_v6  ;;  %2230 = vmatprep.subr.bf16.mxu0 %v5496_v13  ;;  %v731_v6 = vld [vmem:[%s7432_s15 + $0x428] sm:$0xff] }
 0x11b   : > { %2220 = vmatpush2.bf16.msra.mxu1 %v5629_v12  ;;  %v5568_v10 = vcombine.high %v727_v5, %v731_v6  ;;  %v719_v11 = vld [vmem:[%s7432_s15 + $0x3c8] sm:$0xff]  ;;  %v5567_v16 = vcombine.low %v727_v5, %v731_v6 }
 0x11c   : > { %2271 = vmatprep.subr.bf16.mxu1 %v5624_v14  ;;  %2181 = vmatmul.mubr.bf16.vlgmr.msra.gmra.mxu0 %v7547_v17  ;;  %v723_v12 = vld [vmem:[%s7432_s15 + $0x3e8] sm:$0xff] }
 0x11d   : > { %2231 = vmatpush1.bf16.msra.mxu0 %v5495_v21  ;;  %2262 = vmatprep.mubr.bf16.mxu0 %v7497_v59  ;;  %v847_v13 = vld [vmem:[%s7432_s15 + $0x7c8] sm:$0xff]  ;;  %v5560_v18 = vcombine.high %v719_v11, %v723_v12  ;;  %v5559_v25 = vcombine.low %v719_v11, %v723_v12 }
 0x11e   : > { %2222 = vmatmul.mubr.bf16.vlgmr.msra.gmra.mxu1 %v7553_v20  ;;  %2232 = vmatprep.subr.bf16.mxu0 %v5488_v23  ;;  %v851_v14 = vld [vmem:[%s7432_s15 + $0x7e8] sm:$0xff] }
 0x11f   : > { %2272 = vmatpush1.bf16.msra.mxu1 %v5623_v22  ;;  %2303 = vmatprep.mubr.bf16.mxu1 %v7501_v60  ;;  %v5688_v19 = vcombine.high %v847_v13, %v851_v14  ;;  %v711_v21 = vld [vmem:[%s7432_s15 + $0x388] sm:$0xff]  ;;  %v5687_v54 = vcombine.low %v847_v13, %v851_v14 }
 0x120   : > { %2273 = vmatprep.subr.bf16.mxu1 %v5616_v24  ;;  %v715_v22 = vld [vmem:[%s7432_s15 + $0x3a8] sm:$0xff] }
 0x121   : > { %2233 = vmatpush1.bf16.msra.mxu0 %v5487_v55  ;;  %v839_v23 = vld [vmem:[%s7432_s15 + $0x788] sm:$0xff]  ;;  %v5552_v26 = vcombine.high %v711_v21, %v715_v22  ;;  %v5551_v31 = vcombine.low %v711_v21, %v715_v22 }
 0x122   : > { %2234 = vmatprep.subr.bf16.mxu0 %v5480_v29  ;;  %v843_v24 = vld [vmem:[%s7432_s15 + $0x7a8] sm:$0xff] }
 0x123   : > { %2274 = vmatpush1.bf16.msra.mxu1 %v5615_v28  ;;  %v5680_v27 = vcombine.high %v839_v23, %v843_v24  ;;  %v703_v55 = vld [vmem:[%s7432_s15 + $0x348] sm:$0xff]  ;;  %v5679_v32 = vcombine.low %v839_v23, %v843_v24 }
 0x124   : > { %2275 = vmatprep.subr.bf16.mxu1 %v5608_v30  ;;  %v707_v28 = vld [vmem:[%s7432_s15 + $0x368] sm:$0xff] }
 0x125   : > { %2235 = vmatpush1.bf16.msra.mxu0 %v5479_v35  ;;  %v831_v29 = vld [vmem:[%s7432_s15 + $0x748] sm:$0xff]  ;;  %v5544_v33 = vcombine.high %v703_v55, %v707_v28  ;;  %v5543_v39 = vcombine.low %v703_v55, %v707_v28 }
 0x126   : > { %2236 = vmatprep.subr.bf16.mxu0 %v5472_v37  ;;  %v835_v30 = vld [vmem:[%s7432_s15 + $0x768] sm:$0xff] }
 0x127   : > { %2276 = vmatpush1.bf16.msra.mxu1 %v5607_v36  ;;  %v5672_v34 = vcombine.high %v831_v29, %v835_v30  ;;  %v695_v35 = vld [vmem:[%s7432_s15 + $0x308] sm:$0xff]  ;;  %v5671_v40 = vcombine.low %v831_v29, %v835_v30 }
 0x128   : > { %2277 = vmatprep.subr.bf16.mxu1 %v5600_v38  ;;  %v699_v36 = vld [vmem:[%s7432_s15 + $0x328] sm:$0xff] }
 0x129   : > { %2237 = vmatpush1.bf16.msra.mxu0 %v5471_v43  ;;  %v823_v37 = vld [vmem:[%s7432_s15 + $0x708] sm:$0xff]  ;;  %v5536_v41 = vcombine.high %v695_v35, %v699_v36  ;;  %v5535_v47 = vcombine.low %v695_v35, %v699_v36 }
 0x12a   : > { %2238 = vmatprep.subr.bf16.mxu0 %v5464_v45  ;;  %v827_v38 = vld [vmem:[%s7432_s15 + $0x728] sm:$0xff] }
 0x12b   : > { %2278 = vmatpush1.bf16.msra.mxu1 %v5599_v44  ;;  %v5664_v42 = vcombine.high %v823_v37, %v827_v38  ;;  %v687_v43 = vld [vmem:[%s7432_s15 + $0x2c8] sm:$0xff]  ;;  %v5663_v48 = vcombine.low %v823_v37, %v827_v38 }
 0x12c   : > { %2279 = vmatprep.subr.bf16.mxu1 %v5592_v46  ;;  %v691_v44 = vld [vmem:[%s7432_s15 + $0x2e8] sm:$0xff] }
 0x12d   : > { %2239 = vmatpush1.bf16.msra.mxu0 %v5463_v51  ;;  %v815_v45 = vld [vmem:[%s7432_s15 + $0x6c8] sm:$0xff]  ;;  %v5528_v49 = vcombine.high %v687_v43, %v691_v44  ;;  %v5527_v57 = vcombine.low %v687_v43, %v691_v44 }
 0x12e   : > { %2240 = vmatprep.subr.bf16.mxu0 %v5456_v53  ;;  %v819_v46 = vld [vmem:[%s7432_s15 + $0x6e8] sm:$0xff] }
 0x12f   : > { %2280 = vmatpush1.bf16.msra.mxu1 %v5591_v52  ;;  %v5656_v50 = vcombine.high %v815_v45, %v819_v46  ;;  %v679_v51 = vld [vmem:[%s7432_s15 + $0x288] sm:$0xff]  ;;  %v5655_v58 = vcombine.low %v815_v45, %v819_v46 }
 0x130   : > { %2281 = vmatprep.subr.bf16.mxu1 %v5584_v56  ;;  %v683_v52 = vld [vmem:[%s7432_s15 + $0x2a8] sm:$0xff] }
 0x131   : > { %2241 = vmatpush1.bf16.msra.mxu0 %v5455_v63  ;;  %v807_v53 = vld [vmem:[%s7432_s15 + $0x688] sm:$0xff]  ;;  %v5520_v61 = vcombine.high %v679_v51, %v683_v52  ;;  %v5519_v3 = vcombine.low %v679_v51, %v683_v52 }
 0x132   : > { %2242 = vmatprep.subr.bf16.mxu0 %v5448_v1  ;;  %v811_v56 = vld [vmem:[%s7432_s15 + $0x6a8] sm:$0xff] }
 0x133   : > { %2282 = vmatpush1.bf16.msra.mxu1 %v5583_v0  ;;  %v5648_v62 = vcombine.high %v807_v53, %v811_v56  ;;  %v671_v63 = vld [vmem:[%s7432_s15 + $0x248] sm:$0xff]  ;;  %v5647_v4 = vcombine.low %v807_v53, %v811_v56 }
 0x134   : > { %2283 = vmatprep.subr.bf16.mxu1 %v5576_v2  ;;  %v675_v0 = vld [vmem:[%s7432_s15 + $0x268] sm:$0xff] }
 0x135   : > { %2243 = vmatpush1.bf16.msra.mxu0 %v5447_v7  ;;  %v799_v1 = vld [vmem:[%s7432_s15 + $0x648] sm:$0xff]  ;;  %v5512_v5 = vcombine.high %v671_v63, %v675_v0  ;;  %v5511_v11 = vcombine.low %v671_v63, %v675_v0 }
 0x136   : > { %2244 = vmatprep.subr.bf16.mxu0 %v5440_v9  ;;  %v803_v2 = vld [vmem:[%s7432_s15 + $0x668] sm:$0xff] }
 0x137   : > { %2284 = vmatpush1.bf16.msra.mxu1 %v5575_v8  ;;  %v5640_v6 = vcombine.high %v799_v1, %v803_v2  ;;  %v663_v7 = vld [vmem:[%s7432_s15 + $0x208] sm:$0xff]  ;;  %v5639_v12 = vcombine.low %v799_v1, %v803_v2 }
 0x138   : > { %2285 = vmatprep.subr.bf16.mxu1 %v5568_v10  ;;  %v667_v8 = vld [vmem:[%s7432_s15 + $0x228] sm:$0xff] }
 0x139   : > { %2245 = vmatpush1.bf16.msra.mxu0 %v5439_v15  ;;  %v791_v9 = vld [vmem:[%s7432_s15 + $0x608] sm:$0xff]  ;;  %v5504_v13 = vcombine.high %v663_v7, %v667_v8  ;;  %v656_v15 = vld [vmem:[%s7432_s15 + $0x1d0] sm:$0xff]  ;;  %v5503_v21 = vcombine.low %v663_v7, %v667_v8 }
 0x13a   : > { %2246 = vmatprep.subr.bf16.mxu0 %v5560_v18  ;;  %v795_v10 = vld [vmem:[%s7432_s15 + $0x628] sm:$0xff]  ;;  %v784_v18 = vld [vmem:[%s7432_s15 + $0x5d0] sm:$0xff] }
 0x13b   : > { %2286 = vmatpush1.bf16.msra.mxu1 %v5567_v16  ;;  %v5632_v14 = vcombine.high %v791_v9, %v795_v10  ;;  %v660_v16 = vld [vmem:[%s7432_s15 + $0x1f0] sm:$0xff]  ;;  %v5631_v22 = vcombine.low %v791_v9, %v795_v10 }
 0x13c   : > { %2287 = vmatprep.subr.bf16.mxu1 %v5688_v19  ;;  %v788_v19 = vld [vmem:[%s7432_s15 + $0x5f0] sm:$0xff]  ;;  %v5498_v23 = vcombine.high %v656_v15, %v660_v16  ;;  %v5497_v55 = vcombine.low %v656_v15, %v660_v16 }
 0x13d   : > { %2247 = vmatpush2.bf16.msra.mxu0 %v5559_v25  ;;  %v5626_v24 = vcombine.high %v784_v18, %v788_v19  ;;  %v648_v25 = vld [vmem:[%s7432_s15 + $0x190] sm:$0xff]  ;;  %v5625_v28 = vcombine.low %v784_v18, %v788_v19 }
 0x13e   : > { %2248 = vmatprep.subr.bf16.mxu0 %v5552_v26  ;;  %v776_v26 = vld [vmem:[%s7432_s15 + $0x590] sm:$0xff] }
 0x13f   : > { %2288 = vmatpush2.bf16.msra.mxu1 %v5687_v54  ;;  %v652_v54 = vld [vmem:[%s7432_s15 + $0x1b0] sm:$0xff] }
 0x140   : > { %2289 = vmatprep.subr.bf16.mxu1 %v5680_v27  ;;  %v780_v27 = vld [vmem:[%s7432_s15 + $0x5b0] sm:$0xff]  ;;  %v5490_v29 = vcombine.high %v648_v25, %v652_v54  ;;  %v5489_v35 = vcombine.low %v648_v25, %v652_v54 }
 0x141   : > { %2249 = vmatpush2.bf16.msra.mxu0 %v5551_v31  ;;  %v5618_v30 = vcombine.high %v776_v26, %v780_v27  ;;  %v640_v31 = vld [vmem:[%s7432_s15 + $0x150] sm:$0xff]  ;;  %v5617_v36 = vcombine.low %v776_v26, %v780_v27 }
 0x142   : > { %2250 = vmatprep.subr.bf16.mxu0 %v5544_v33  ;;  %v768_v33 = vld [vmem:[%s7432_s15 + $0x550] sm:$0xff] }
 0x143   : > { %2290 = vmatpush2.bf16.msra.mxu1 %v5679_v32  ;;  %v644_v32 = vld [vmem:[%s7432_s15 + $0x170] sm:$0xff] }
 0x144   : > { %2291 = vmatprep.subr.bf16.mxu1 %v5672_v34  ;;  %v772_v34 = vld [vmem:[%s7432_s15 + $0x570] sm:$0xff]  ;;  %v5482_v37 = vcombine.high %v640_v31, %v644_v32  ;;  %v5481_v43 = vcombine.low %v640_v31, %v644_v32 }
 0x145   : > { %2251 = vmatpush2.bf16.msra.mxu0 %v5543_v39  ;;  %v5610_v38 = vcombine.high %v768_v33, %v772_v34  ;;  %v632_v39 = vld [vmem:[%s7432_s15 + $0x110] sm:$0xff]  ;;  %v5609_v44 = vcombine.low %v768_v33, %v772_v34 }
 0x146   : > { %2252 = vmatprep.subr.bf16.mxu0 %v5536_v41  ;;  %v760_v41 = vld [vmem:[%s7432_s15 + $0x510] sm:$0xff] }
 0x147   : > { %2292 = vmatpush2.bf16.msra.mxu1 %v5671_v40  ;;  %v636_v40 = vld [vmem:[%s7432_s15 + $0x130] sm:$0xff] }
 0x148   : > { %2293 = vmatprep.subr.bf16.mxu1 %v5664_v42  ;;  %v764_v42 = vld [vmem:[%s7432_s15 + $0x530] sm:$0xff]  ;;  %v5474_v45 = vcombine.high %v632_v39, %v636_v40  ;;  %v5473_v51 = vcombine.low %v632_v39, %v636_v40 }
 0x149   : > { %2253 = vmatpush2.bf16.msra.mxu0 %v5535_v47  ;;  %v5602_v46 = vcombine.high %v760_v41, %v764_v42  ;;  %v624_v47 = vld [vmem:[%s7432_s15 + $0xd0] sm:$0xff]  ;;  %v5601_v52 = vcombine.low %v760_v41, %v764_v42 }
 0x14a   : > { %2254 = vmatprep.subr.bf16.mxu0 %v5528_v49  ;;  %v752_v49 = vld [vmem:[%s7432_s15 + $0x4d0] sm:$0xff] }
 0x14b   : > { %2294 = vmatpush2.bf16.msra.mxu1 %v5663_v48  ;;  %v628_v48 = vld [vmem:[%s7432_s15 + $0xf0] sm:$0xff] }
 0x14c   : > { %2295 = vmatprep.subr.bf16.mxu1 %v5656_v50  ;;  %v756_v50 = vld [vmem:[%s7432_s15 + $0x4f0] sm:$0xff]  ;;  %v5466_v53 = vcombine.high %v624_v47, %v628_v48  ;;  %v5465_v63 = vcombine.low %v624_v47, %v628_v48 }
 0x14d   : > { %2255 = vmatpush2.bf16.msra.mxu0 %v5527_v57  ;;  %v5594_v56 = vcombine.high %v752_v49, %v756_v50  ;;  %v616_v57 = vld [vmem:[%s7432_s15 + $0x90] sm:$0xff]  ;;  %v5593_v0 = vcombine.low %v752_v49, %v756_v50 }
 0x14e   : > { %2256 = vmatprep.subr.bf16.mxu0 %v5520_v61  ;;  %v744_v61 = vld [vmem:[%s7432_s15 + $0x490] sm:$0xff] }
 0x14f   : > { %2296 = vmatpush2.bf16.msra.mxu1 %v5655_v58  ;;  %v620_v58 = vld [vmem:[%s7432_s15 + $0xb0] sm:$0xff] }
 0x150   : > { %2297 = vmatprep.subr.bf16.mxu1 %v5648_v62  ;;  %v748_v62 = vld [vmem:[%s7432_s15 + $0x4b0] sm:$0xff]  ;;  %v5458_v1 = vcombine.high %v616_v57, %v620_v58  ;;  %v5457_v7 = vcombine.low %v616_v57, %v620_v58 }
 0x151   : > { %2257 = vmatpush2.bf16.msra.mxu0 %v5519_v3  ;;  %v5586_v2 = vcombine.high %v744_v61, %v748_v62  ;;  %v608_v3 = vld [vmem:[%s7432_s15 + $0x50] sm:$0xff]  ;;  %v5585_v8 = vcombine.low %v744_v61, %v748_v62 }
 0x152   : > { %2258 = vmatprep.subr.bf16.mxu0 %v5512_v5  ;;  %v736_v5 = vld [vmem:[%s7432_s15 + $0x450] sm:$0xff] }
 0x153   : > { %2298 = vmatpush2.bf16.msra.mxu1 %v5647_v4  ;;  %v612_v4 = vld [vmem:[%s7432_s15 + $0x70] sm:$0xff] }
 0x154   : > { %2299 = vmatprep.subr.bf16.mxu1 %v5640_v6  ;;  %v740_v6 = vld [vmem:[%s7432_s15 + $0x470] sm:$0xff]  ;;  %v5450_v9 = vcombine.high %v608_v3, %v612_v4  ;;  %v5449_v15 = vcombine.low %v608_v3, %v612_v4 }
 0x155   : > { %2259 = vmatpush2.bf16.msra.mxu0 %v5511_v11  ;;  %v5578_v10 = vcombine.high %v736_v5, %v740_v6  ;;  %v600_v11 = vld [vmem:[%s7432_s15 + $0x10] sm:$0xff]  ;;  %v5577_v16 = vcombine.low %v736_v5, %v740_v6 }
 0x156   : > { %2260 = vmatprep.subr.bf16.mxu0 %v5504_v13  ;;  %v728_v13 = vld [vmem:[%s7432_s15 + $0x410] sm:$0xff] }
 0x157   : > { %2300 = vmatpush2.bf16.msra.mxu1 %v5639_v12  ;;  %v604_v12 = vld [vmem:[%s7432_s15 + $0x30] sm:$0xff] }
 0x158   : > { %2301 = vmatprep.subr.bf16.mxu1 %v5632_v14  ;;  %v732_v14 = vld [vmem:[%s7432_s15 + $0x430] sm:$0xff]  ;;  %v5442_v18 = vcombine.high %v600_v11, %v604_v12  ;;  %v5441_v25 = vcombine.low %v600_v11, %v604_v12 }
 0x159   : > { %2261 = vmatpush2.bf16.msra.mxu0 %v5503_v21  ;;  %v5570_v19 = vcombine.high %v728_v13, %v732_v14  ;;  %v720_v21 = vld [vmem:[%s7432_s15 + $0x3d0] sm:$0xff]  ;;  %v5569_v54 = vcombine.low %v728_v13, %v732_v14 }
 0x15a   : > { %2312 = vmatprep.subr.bf16.mxu0 %v5498_v23  ;;  %v848_v23 = vld [vmem:[%s7432_s15 + $0x7d0] sm:$0xff] }
 0x15b   : > { %2302 = vmatpush2.bf16.msra.mxu1 %v5631_v22  ;;  %v724_v22 = vld [vmem:[%s7432_s15 + $0x3f0] sm:$0xff] }
 0x15c   : > { %2353 = vmatprep.subr.bf16.mxu1 %v5626_v24  ;;  %2263 = vmatmul.mubr.bf16.vlgmr.msra.gmra.mxu0 %v7547_v17  ;;  %v852_v24 = vld [vmem:[%s7432_s15 + $0x7f0] sm:$0xff]  ;;  %v5562_v26 = vcombine.high %v720_v21, %v724_v22  ;;  %v5561_v31 = vcombine.low %v720_v21, %v724_v22 }
 0x15d   : > { %2313 = vmatpush1.bf16.msra.mxu0 %v5497_v55  ;;  %2344 = vmatprep.mubr.bf16.mxu0 %v7497_v59  ;;  %v5690_v27 = vcombine.high %v848_v23, %v852_v24  ;;  %v712_v55 = vld [vmem:[%s7432_s15 + $0x390] sm:$0xff]  ;;  %v5689_v32 = vcombine.low %v848_v23, %v852_v24 }
 0x15e   : > { %2304 = vmatmul.mubr.bf16.vlgmr.msra.gmra.mxu1 %v7553_v20  ;;  %2314 = vmatprep.subr.bf16.mxu0 %v5490_v29  ;;  %v840_v29 = vld [vmem:[%s7432_s15 + $0x790] sm:$0xff] }
 0x15f   : > { %2354 = vmatpush1.bf16.msra.mxu1 %v5625_v28  ;;  %2385 = vmatprep.mubr.bf16.mxu1 %v7501_v60  ;;  %v716_v28 = vld [vmem:[%s7432_s15 + $0x3b0] sm:$0xff] }
 0x160   : > { %2355 = vmatprep.subr.bf16.mxu1 %v5618_v30  ;;  %v844_v30 = vld [vmem:[%s7432_s15 + $0x7b0] sm:$0xff]  ;;  %v5554_v33 = vcombine.high %v712_v55, %v716_v28  ;;  %v5553_v39 = vcombine.low %v712_v55, %v716_v28 }
 0x161   : > { %2315 = vmatpush1.bf16.msra.mxu0 %v5489_v35  ;;  %v5682_v34 = vcombine.high %v840_v29, %v844_v30  ;;  %v704_v35 = vld [vmem:[%s7432_s15 + $0x350] sm:$0xff]  ;;  %v5681_v40 = vcombine.low %v840_v29, %v844_v30 }
 0x162   : > { %2316 = vmatprep.subr.bf16.mxu0 %v5482_v37  ;;  %v832_v37 = vld [vmem:[%s7432_s15 + $0x750] sm:$0xff] }
 0x163   : > { %2356 = vmatpush1.bf16.msra.mxu1 %v5617_v36  ;;  %v708_v36 = vld [vmem:[%s7432_s15 + $0x370] sm:$0xff] }
 0x164   : > { %2357 = vmatprep.subr.bf16.mxu1 %v5610_v38  ;;  %v836_v38 = vld [vmem:[%s7432_s15 + $0x770] sm:$0xff]  ;;  %v5546_v41 = vcombine.high %v704_v35, %v708_v36  ;;  %v5545_v47 = vcombine.low %v704_v35, %v708_v36 }
 0x165   : > { %2317 = vmatpush1.bf16.msra.mxu0 %v5481_v43  ;;  %v5674_v42 = vcombine.high %v832_v37, %v836_v38  ;;  %v696_v43 = vld [vmem:[%s7432_s15 + $0x310] sm:$0xff]  ;;  %v5673_v48 = vcombine.low %v832_v37, %v836_v38 }
 0x166   : > { %2318 = vmatprep.subr.bf16.mxu0 %v5474_v45  ;;  %v824_v45 = vld [vmem:[%s7432_s15 + $0x710] sm:$0xff] }
 0x167   : > { %2358 = vmatpush1.bf16.msra.mxu1 %v5609_v44  ;;  %v700_v44 = vld [vmem:[%s7432_s15 + $0x330] sm:$0xff] }
 0x168   : > { %2359 = vmatprep.subr.bf16.mxu1 %v5602_v46  ;;  %v828_v46 = vld [vmem:[%s7432_s15 + $0x730] sm:$0xff]  ;;  %v5538_v49 = vcombine.high %v696_v43, %v700_v44  ;;  %v5537_v57 = vcombine.low %v696_v43, %v700_v44 }
 0x169   : > { %2319 = vmatpush1.bf16.msra.mxu0 %v5473_v51  ;;  %v5666_v50 = vcombine.high %v824_v45, %v828_v46  ;;  %v688_v51 = vld [vmem:[%s7432_s15 + $0x2d0] sm:$0xff]  ;;  %v5665_v58 = vcombine.low %v824_v45, %v828_v46 }
 0x16a   : > { %2320 = vmatprep.subr.bf16.mxu0 %v5466_v53  ;;  %v816_v53 = vld [vmem:[%s7432_s15 + $0x6d0] sm:$0xff] }
 0x16b   : > { %2360 = vmatpush1.bf16.msra.mxu1 %v5601_v52  ;;  %v692_v52 = vld [vmem:[%s7432_s15 + $0x2f0] sm:$0xff] }
 0x16c   : > { %2361 = vmatprep.subr.bf16.mxu1 %v5594_v56  ;;  %v820_v56 = vld [vmem:[%s7432_s15 + $0x6f0] sm:$0xff]  ;;  %v5530_v61 = vcombine.high %v688_v51, %v692_v52  ;;  %v5529_v3 = vcombine.low %v688_v51, %v692_v52 }
 0x16d   : > { %2321 = vmatpush1.bf16.msra.mxu0 %v5465_v63  ;;  %v5658_v62 = vcombine.high %v816_v53, %v820_v56  ;;  %v680_v63 = vld [vmem:[%s7432_s15 + $0x290] sm:$0xff]  ;;  %v5657_v4 = vcombine.low %v816_v53, %v820_v56 }
 0x16e   : > { %2322 = vmatprep.subr.bf16.mxu0 %v5458_v1  ;;  %v808_v1 = vld [vmem:[%s7432_s15 + $0x690] sm:$0xff] }
 0x16f   : > { %2362 = vmatpush1.bf16.msra.mxu1 %v5593_v0  ;;  %v684_v0 = vld [vmem:[%s7432_s15 + $0x2b0] sm:$0xff] }
 0x170   : > { %2363 = vmatprep.subr.bf16.mxu1 %v5586_v2  ;;  %v812_v2 = vld [vmem:[%s7432_s15 + $0x6b0] sm:$0xff]  ;;  %v5522_v5 = vcombine.high %v680_v63, %v684_v0  ;;  %v5521_v11 = vcombine.low %v680_v63, %v684_v0 }
 0x171   : > { %2323 = vmatpush1.bf16.msra.mxu0 %v5457_v7  ;;  %v5650_v6 = vcombine.high %v808_v1, %v812_v2  ;;  %v672_v7 = vld [vmem:[%s7432_s15 + $0x250] sm:$0xff]  ;;  %v5649_v12 = vcombine.low %v808_v1, %v812_v2  ;;  %v617_v1 = vld [vmem:[%s7432_s15 + $0x98] sm:$0xff] }
 0x172   : > { %2324 = vmatprep.subr.bf16.mxu0 %v5450_v9  ;;  %v800_v9 = vld [vmem:[%s7432_s15 + $0x650] sm:$0xff]  ;;  %v621_v2 = vld [vmem:[%s7432_s15 + $0xb8] sm:$0xff] }
 0x173   : > { %2364 = vmatpush1.bf16.msra.mxu1 %v5585_v8  ;;  %v676_v8 = vld [vmem:[%s7432_s15 + $0x270] sm:$0xff] }
 0x174   : > { %2365 = vmatprep.subr.bf16.mxu1 %v5578_v10  ;;  %v804_v10 = vld [vmem:[%s7432_s15 + $0x670] sm:$0xff]  ;;  %v5514_v13 = vcombine.high %v672_v7, %v676_v8  ;;  %v5513_v21 = vcombine.low %v672_v7, %v676_v8  ;;  %v5460_v7 = vcombine.high %v617_v1, %v621_v2 }
 0x175   : > { %2325 = vmatpush1.bf16.msra.mxu0 %v5449_v15  ;;  %v5642_v14 = vcombine.high %v800_v9, %v804_v10  ;;  %v664_v15 = vld [vmem:[%s7432_s15 + $0x210] sm:$0xff]  ;;  %v5641_v22 = vcombine.low %v800_v9, %v804_v10  ;;  %v609_v9 = vld [vmem:[%s7432_s15 + $0x58] sm:$0xff] }
 0x176   : > { %2326 = vmatprep.subr.bf16.mxu0 %v5442_v18  ;;  %v792_v18 = vld [vmem:[%s7432_s15 + $0x610] sm:$0xff]  ;;  %v613_v10 = vld [vmem:[%s7432_s15 + $0x78] sm:$0xff] }
 0x177   : > { %2366 = vmatpush1.bf16.msra.mxu1 %v5577_v16  ;;  %v668_v16 = vld [vmem:[%s7432_s15 + $0x230] sm:$0xff] }
 0x178   : > { %2367 = vmatprep.subr.bf16.mxu1 %v5570_v19  ;;  %v796_v19 = vld [vmem:[%s7432_s15 + $0x630] sm:$0xff]  ;;  %v5506_v23 = vcombine.high %v664_v15, %v668_v16  ;;  %v5505_v55 = vcombine.low %v664_v15, %v668_v16  ;;  %v5452_v15 = vcombine.high %v609_v9, %v613_v10 }
 0x179   : > { %2327 = vmatpush1.bf16.msra.mxu0 %v5441_v25  ;;  %v5634_v24 = vcombine.high %v792_v18, %v796_v19  ;;  %v657_v25 = vld [vmem:[%s7432_s15 + $0x1d8] sm:$0xff]  ;;  %v5633_v28 = vcombine.low %v792_v18, %v796_v19 }
 0x17a   : > { %2328 = vmatprep.subr.bf16.mxu0 %v5562_v26  ;;  %v785_v26 = vld [vmem:[%s7432_s15 + $0x5d8] sm:$0xff] }
 0x17b   : > { %2368 = vmatpush1.bf16.msra.mxu1 %v5569_v54  ;;  %v661_v54 = vld [vmem:[%s7432_s15 + $0x1f8] sm:$0xff] }
 0x17c   : > { %2369 = vmatprep.subr.bf16.mxu1 %v5690_v27  ;;  %v789_v27 = vld [vmem:[%s7432_s15 + $0x5f8] sm:$0xff]  ;;  %v5500_v29 = vcombine.high %v657_v25, %v661_v54  ;;  %v5499_v35 = vcombine.low %v657_v25, %v661_v54 }
 0x17d   : > { %2329 = vmatpush2.bf16.msra.mxu0 %v5561_v31  ;;  %v5628_v30 = vcombine.high %v785_v26, %v789_v27  ;;  %v649_v31 = vld [vmem:[%s7432_s15 + $0x198] sm:$0xff]  ;;  %v5627_v36 = vcombine.low %v785_v26, %v789_v27 }
 0x17e   : > { %2330 = vmatprep.subr.bf16.mxu0 %v5554_v33  ;;  %v777_v33 = vld [vmem:[%s7432_s15 + $0x598] sm:$0xff] }
 0x17f   : > { %2370 = vmatpush2.bf16.msra.mxu1 %v5689_v32  ;;  %v653_v32 = vld [vmem:[%s7432_s15 + $0x1b8] sm:$0xff] }
 0x180   : > { %2371 = vmatprep.subr.bf16.mxu1 %v5682_v34  ;;  %v781_v34 = vld [vmem:[%s7432_s15 + $0x5b8] sm:$0xff]  ;;  %v5492_v37 = vcombine.high %v649_v31, %v653_v32  ;;  %v5491_v43 = vcombine.low %v649_v31, %v653_v32 }
 0x181   : > { %2331 = vmatpush2.bf16.msra.mxu0 %v5553_v39  ;;  %v5620_v38 = vcombine.high %v777_v33, %v781_v34  ;;  %v641_v39 = vld [vmem:[%s7432_s15 + $0x158] sm:$0xff]  ;;  %v5619_v44 = vcombine.low %v777_v33, %v781_v34 }
 0x182   : > { %2332 = vmatprep.subr.bf16.mxu0 %v5546_v41  ;;  %v769_v41 = vld [vmem:[%s7432_s15 + $0x558] sm:$0xff] }
 0x183   : > { %2372 = vmatpush2.bf16.msra.mxu1 %v5681_v40  ;;  %v645_v40 = vld [vmem:[%s7432_s15 + $0x178] sm:$0xff] }
 0x184   : > { %2373 = vmatprep.subr.bf16.mxu1 %v5674_v42  ;;  %v773_v42 = vld [vmem:[%s7432_s15 + $0x578] sm:$0xff]  ;;  %v5484_v45 = vcombine.high %v641_v39, %v645_v40  ;;  %v5483_v51 = vcombine.low %v641_v39, %v645_v40 }
 0x185   : > { %2333 = vmatpush2.bf16.msra.mxu0 %v5545_v47  ;;  %v5612_v46 = vcombine.high %v769_v41, %v773_v42  ;;  %v633_v47 = vld [vmem:[%s7432_s15 + $0x118] sm:$0xff]  ;;  %v5611_v52 = vcombine.low %v769_v41, %v773_v42 }
 0x186   : > { %2334 = vmatprep.subr.bf16.mxu0 %v5538_v49  ;;  %v761_v49 = vld [vmem:[%s7432_s15 + $0x518] sm:$0xff] }
 0x187   : > { %2374 = vmatpush2.bf16.msra.mxu1 %v5673_v48  ;;  %v637_v48 = vld [vmem:[%s7432_s15 + $0x138] sm:$0xff] }
 0x188   : > { %2375 = vmatprep.subr.bf16.mxu1 %v5666_v50  ;;  %v765_v50 = vld [vmem:[%s7432_s15 + $0x538] sm:$0xff]  ;;  %v5476_v53 = vcombine.high %v633_v47, %v637_v48 }
 0x189   : > { %2335 = vmatpush2.bf16.msra.mxu0 %v5537_v57  ;;  %v5604_v56 = vcombine.high %v761_v49, %v765_v50  ;;  %v625_v57 = vld [vmem:[%s7432_s15 + $0xd8] sm:$0xff] }
 0x18a   : > { %2336 = vmatprep.subr.bf16.mxu0 %v5530_v61  ;;  %v753_v61 = vld [vmem:[%s7432_s15 + $0x4d8] sm:$0xff] }
 0x18b   : > { %2376 = vmatpush2.bf16.msra.mxu1 %v5665_v58  ;;  %v629_v58 = vld [vmem:[%s7432_s15 + $0xf8] sm:$0xff] }
 0x18c   : > { %2377 = vmatprep.subr.bf16.mxu1 %v5658_v62  ;;  %v5475_v62 = vcombine.low %v633_v47, %v637_v48  ;;  %v5468_v63 = vcombine.high %v625_v57, %v629_v58  ;;  %v601_v18 = vld [vmem:[%s7432_s15 + $0x18] sm:$0xff] }
 0x18d   : > { %2337 = vmatpush2.bf16.msra.mxu0 %v5529_v3  ;;  %v745_v3 = vld [vmem:[%s7432_s15 + $0x498] sm:$0xff] }
 0x18e   : > { %2338 = vmatprep.subr.bf16.mxu0 %v5522_v5  ;;  %v5467_v5 = vcombine.low %v625_v57, %v629_v58  ;;  %v605_v19 = vld [vmem:[%s7432_s15 + $0x38] sm:$0xff] }
 0x18f   : > { %2378 = vmatpush2.bf16.msra.mxu1 %v5657_v4  ;;  %v749_v4 = vld [vmem:[%s7432_s15 + $0x4b8] sm:$0xff]  ;;  %v5444_v25 = vcombine.high %v601_v18, %v605_v19 }
 0x190   : > { %2379 = vmatprep.subr.bf16.mxu1 %v5650_v6  ;;  %v5588_v8 = vcombine.high %v745_v3, %v749_v4  ;;  %v721_v26 = vld [vmem:[%s7432_s15 + $0x3d8] sm:$0xff] }
 0x191   : > { %2339 = vmatpush2.bf16.msra.mxu0 %v5521_v11  ;;  %v737_v11 = vld [vmem:[%s7432_s15 + $0x458] sm:$0xff] }
 0x192   : > { %2340 = vmatprep.subr.bf16.mxu0 %v5514_v13  ;;  %v5459_v13 = vcombine.low %v617_v1, %v621_v2  ;;  %v725_v27 = vld [vmem:[%s7432_s15 + $0x3f8] sm:$0xff] }
 0x193   : > { %2380 = vmatpush2.bf16.msra.mxu1 %v5649_v12  ;;  %v741_v12 = vld [vmem:[%s7432_s15 + $0x478] sm:$0xff]  ;;  %v5564_v31 = vcombine.high %v721_v26, %v725_v27 }
 0x194   : > { %2381 = vmatprep.subr.bf16.mxu1 %v5642_v14  ;;  %v5587_v14 = vcombine.low %v745_v3, %v749_v4  ;;  %v5580_v16 = vcombine.high %v737_v11, %v741_v12  ;;  %v713_v33 = vld [vmem:[%s7432_s15 + $0x398] sm:$0xff] }
 0x195   : > { %2341 = vmatpush2.bf16.msra.mxu0 %v5513_v21  ;;  %v729_v21 = vld [vmem:[%s7432_s15 + $0x418] sm:$0xff] }
 0x196   : > { %2342 = vmatprep.subr.bf16.mxu0 %v5506_v23  ;;  %v5451_v23 = vcombine.low %v609_v9, %v613_v10  ;;  %v717_v34 = vld [vmem:[%s7432_s15 + $0x3b8] sm:$0xff] }
 0x197   : > { %2382 = vmatpush2.bf16.msra.mxu1 %v5641_v22  ;;  %v733_v22 = vld [vmem:[%s7432_s15 + $0x438] sm:$0xff]  ;;  %v5556_v39 = vcombine.high %v713_v33, %v717_v34 }
 0x198   : > { %2383 = vmatprep.subr.bf16.mxu1 %v5634_v24  ;;  %v5579_v24 = vcombine.low %v737_v11, %v741_v12  ;;  %v5572_v54 = vcombine.high %v729_v21, %v733_v22  ;;  %v705_v41 = vld [vmem:[%s7432_s15 + $0x358] sm:$0xff] }
 0x199   : > { %2343 = vmatpush2.bf16.msra.mxu0 %v5505_v55  ;;  %v849_v55 = vld [vmem:[%s7432_s15 + $0x7d8] sm:$0xff] }
 0x19a   : > { %2394 = vmatprep.subr.bf16.mxu0 %v5500_v29  ;;  %v5443_v29 = vcombine.low %v601_v18, %v605_v19  ;;  %v709_v42 = vld [vmem:[%s7432_s15 + $0x378] sm:$0xff] }
 0x19b   : > { %2384 = vmatpush2.bf16.msra.mxu1 %v5633_v28  ;;  %v853_v28 = vld [vmem:[%s7432_s15 + $0x7f8] sm:$0xff]  ;;  %v5548_v47 = vcombine.high %v705_v41, %v709_v42 }
 0x19c   : > { %2435 = vmatprep.subr.bf16.mxu1 %v5628_v30  ;;  %2345 = vmatmul.mubr.bf16.vlgmr.msra.gmra.mxu0 %v7547_v17  ;;  %v5571_v30 = vcombine.low %v729_v21, %v733_v22  ;;  %v5692_v32 = vcombine.high %v849_v55, %v853_v28  ;;  %v681_v3 = vld [vmem:[%s7432_s15 + $0x298] sm:$0xff] }
 0x19d   : > { %2395 = vmatpush1.bf16.msra.mxu0 %v5499_v35  ;;  %2426 = vmatprep.mubr.bf16.mxu0 %v7497_v59  ;;  %v757_v59 = vld [vmem:[%s7432_s15 + $0x4f8] sm:$0xff] }
 0x19e   : > { %2386 = vmatmul.mubr.bf16.vlgmr.msra.gmra.mxu1 %v7553_v20  ;;  %2396 = vmatprep.subr.bf16.mxu0 %v5492_v37  ;;  %v5596_v0 = vcombine.high %v753_v61, %v757_v59  ;;  %v5595_v6 = vcombine.low %v753_v61, %v757_v59  ;;  %v841_v35 = vld [vmem:[%s7432_s15 + $0x798] sm:$0xff]  ;;  %v5563_v37 = vcombine.low %v721_v26, %v725_v27 }
 0x19f   : > { %2436 = vmatpush1.bf16.msra.mxu1 %v5627_v36  ;;  %2467 = vmatprep.mubr.bf16.mxu1 %v7501_v60  ;;  %v5603_v60 = vcombine.low %v761_v49, %v765_v50  ;;  %v845_v36 = vld [vmem:[%s7432_s15 + $0x7b8] sm:$0xff] }
 0x1a0   : > { %2437 = vmatprep.subr.bf16.mxu1 %v5620_v38  ;;  %v5691_v38 = vcombine.low %v849_v55, %v853_v28  ;;  %v5684_v40 = vcombine.high %v841_v35, %v845_v36  ;;  %v697_v49 = vld [vmem:[%s7432_s15 + $0x318] sm:$0xff] }
 0x1a1   : > { %2397 = vmatpush1.bf16.msra.mxu0 %v5491_v43  ;;  %v833_v43 = vld [vmem:[%s7432_s15 + $0x758] sm:$0xff] }
 0x1a2   : > { %2398 = vmatprep.subr.bf16.mxu0 %v5484_v45  ;;  %v5555_v45 = vcombine.low %v713_v33, %v717_v34  ;;  %v701_v50 = vld [vmem:[%s7432_s15 + $0x338] sm:$0xff]  ;;  %v589_v34 = vld [vmem:[#allocation2] sm:$0xff] }
 0x1a3   : > { %2438 = vmatpush1.bf16.msra.mxu1 %v5619_v44  ;;  %v837_v44 = vld [vmem:[%s7432_s15 + $0x778] sm:$0xff]  ;;  %v5540_v57 = vcombine.high %v697_v49, %v701_v50 }
 0x1a4   : > { %2439 = vmatprep.subr.bf16.mxu1 %v5612_v46  ;;  %v5683_v46 = vcombine.low %v841_v35, %v845_v36  ;;  %v5676_v48 = vcombine.high %v833_v43, %v837_v44  ;;  %v689_v61 = vld [vmem:[%s7432_s15 + $0x2d8] sm:$0xff] }
 0x1a5   : > { %2399 = vmatpush1.bf16.msra.mxu0 %v5483_v51  ;;  %v825_v51 = vld [vmem:[%s7432_s15 + $0x718] sm:$0xff] }
 0x1a6   : > { %2400 = vmatprep.subr.bf16.mxu0 %v5476_v53  ;;  %v5547_v53 = vcombine.low %v705_v41, %v709_v42  ;;  %v693_v59 = vld [vmem:[%s7432_s15 + $0x2f8] sm:$0xff] }
 0x1a7   : > { %2440 = vmatpush1.bf16.msra.mxu1 %v5611_v52  ;;  %v829_v52 = vld [vmem:[%s7432_s15 + $0x738] sm:$0xff]  ;;  %v5532_v1 = vcombine.high %v689_v61, %v693_v59 }
 0x1a8   : > { %2441 = vmatprep.subr.bf16.mxu1 %v5604_v56  ;;  %v5675_v56 = vcombine.low %v833_v43, %v837_v44  ;;  %v5668_v58 = vcombine.high %v825_v51, %v829_v52  ;;  %v685_v4 = vld [vmem:[%s7432_s15 + $0x2b8] sm:$0xff] }
 0x1a9   : > { %2401 = vmatpush1.bf16.msra.mxu0 %v5475_v62  ;;  %v817_v62 = vld [vmem:[%s7432_s15 + $0x6d8] sm:$0xff]  ;;  %v5524_v9 = vcombine.high %v681_v3, %v685_v4 }
 0x1aa   : > { %2402 = vmatprep.subr.bf16.mxu0 %v5468_v63  ;;  %v5539_v63 = vcombine.low %v697_v49, %v701_v50  ;;  %v673_v11 = vld [vmem:[%s7432_s15 + $0x258] sm:$0xff] }
 0x1ab   : > { %2442 = vmatpush1.bf16.msra.mxu1 %v5603_v60  ;;  %v821_v60 = vld [vmem:[%s7432_s15 + $0x6f8] sm:$0xff] }
 0x1ac   : > { %2443 = vmatprep.subr.bf16.mxu1 %v5596_v0  ;;  %v5667_v0 = vcombine.low %v825_v51, %v829_v52  ;;  %v5660_v2 = vcombine.high %v817_v62, %v821_v60  ;;  %v677_v12 = vld [vmem:[%s7432_s15 + $0x278] sm:$0xff] }
 0x1ad   : > { %2403 = vmatpush1.bf16.msra.mxu0 %v5467_v5  ;;  %v809_v5 = vld [vmem:[%s7432_s15 + $0x698] sm:$0xff]  ;;  %v5516_v18 = vcombine.high %v673_v11, %v677_v12 }
 0x1ae   : > { %2404 = vmatprep.subr.bf16.mxu0 %v5460_v7  ;;  %v5531_v7 = vcombine.low %v689_v61, %v693_v59  ;;  %v665_v21 = vld [vmem:[%s7432_s15 + $0x218] sm:$0xff] }
 0x1af   : > { %2444 = vmatpush1.bf16.msra.mxu1 %v5595_v6  ;;  %v813_v6 = vld [vmem:[%s7432_s15 + $0x6b8] sm:$0xff] }
 0x1b0   : > { %2445 = vmatprep.subr.bf16.mxu1 %v5588_v8  ;;  %v5659_v8 = vcombine.low %v817_v62, %v821_v60  ;;  %v5652_v10 = vcombine.high %v809_v5, %v813_v6  ;;  %v669_v22 = vld [vmem:[%s7432_s15 + $0x238] sm:$0xff]  ;;  %v593_v60 = vld [vmem:[#allocation2 + $0x20] sm:$0xff] }
 0x1b1   : > { %2405 = vmatpush1.bf16.msra.mxu0 %v5459_v13  ;;  %v801_v13 = vld [vmem:[%s7432_s15 + $0x658] sm:$0xff]  ;;  %v5508_v26 = vcombine.high %v665_v21, %v669_v22  ;;  %v5507_v55 = vcombine.low %v665_v21, %v669_v22 }
 0x1b2   : > { %2406 = vmatprep.subr.bf16.mxu0 %v5452_v15  ;;  %v5523_v15 = vcombine.low %v681_v3, %v685_v4  ;;  %v590_v44 = vld [vmem:[#allocation2 + $0x18] sm:$0xff] }
 0x1b3   : > { %2446 = vmatpush1.bf16.msra.mxu1 %v5587_v14  ;;  %v805_v14 = vld [vmem:[%s7432_s15 + $0x678] sm:$0xff] }
 0x1b4   : > { %2447 = vmatprep.subr.bf16.mxu1 %v5580_v16  ;;  %v5651_v16 = vcombine.low %v809_v5, %v813_v6  ;;  %v5644_v19 = vcombine.high %v801_v13, %v805_v14 }
 0x1b5   : > { %2407 = vmatpush1.bf16.msra.mxu0 %v5451_v23  ;;  %v793_v23 = vld [vmem:[%s7432_s15 + $0x618] sm:$0xff] }
 0x1b6   : > { %2408 = vmatprep.subr.bf16.mxu0 %v5444_v25  ;;  %v5515_v25 = vcombine.low %v673_v11, %v677_v12  ;;  %v595_v12 = vld [vmem:[#allocation2 + $0x38] sm:$0xff] }
 0x1b7   : > { %2448 = vmatpush1.bf16.msra.mxu1 %v5579_v24  ;;  %v797_v24 = vld [vmem:[%s7432_s15 + $0x638] sm:$0xff] }
 0x1b8   : > { %2449 = vmatprep.subr.bf16.mxu1 %v5572_v54  ;;  %v5643_v54 = vcombine.low %v801_v13, %v805_v14  ;;  %v5636_v27 = vcombine.high %v793_v23, %v797_v24  ;;  %v5635_v28 = vcombine.low %v793_v23, %v797_v24 }
 0x1b9   : > { %2409 = vmatpush1.bf16.msra.mxu0 %v5443_v29 }
 0x1ba   : > { %2410 = vmatprep.subr.bf16.mxu0 %v5564_v31 }
 0x1bb   : > { %2450 = vmatpush1.bf16.msra.mxu1 %v5571_v30  ;;  %v588_v30 = vld [vmem:[#allocation2 + $0x30] sm:$0xff] }
 0x1bc   : > { %2451 = vmatprep.subr.bf16.mxu1 %v5692_v32 }
 0x1bd   : > { %2411 = vmatpush2.bf16.msra.mxu0 %v5563_v37 }
 0x1be   : > { %2412 = vmatprep.subr.bf16.mxu0 %v5556_v39 }
 0x1bf   : > { %2452 = vmatpush2.bf16.msra.mxu1 %v5691_v38 }
 0x1c0   : > { %2453 = vmatprep.subr.bf16.mxu1 %v5684_v40 }
 0x1c1   : > { %2413 = vmatpush2.bf16.msra.mxu0 %v5555_v45 }
 0x1c2   : > { %2414 = vmatprep.subr.bf16.mxu0 %v5548_v47  ;;  %v591_v47 = vld [vmem:[#allocation2 + $0x10] sm:$0xff] }
 0x1c3   : > { %2454 = vmatpush2.bf16.msra.mxu1 %v5683_v46 }
 0x1c4   : > { %2455 = vmatprep.subr.bf16.mxu1 %v5676_v48 }
 0x1c5   : > { %2415 = vmatpush2.bf16.msra.mxu0 %v5547_v53 }
 0x1c6   : > { %2416 = vmatprep.subr.bf16.mxu0 %v5540_v57 }
 0x1c7   : > { %2456 = vmatpush2.bf16.msra.mxu1 %v5675_v56 }
 0x1c8   : > { %2457 = vmatprep.subr.bf16.mxu1 %v5668_v58  ;;  %v592_v58 = vld [vmem:[#allocation2 + $0x8] sm:$0xff] }
 0x1c9   : > { %2417 = vmatpush2.bf16.msra.mxu0 %v5539_v63 }
 0x1ca   : > { %2418 = vmatprep.subr.bf16.mxu0 %v5532_v1 }
 0x1cb   : > { %2458 = vmatpush2.bf16.msra.mxu1 %v5667_v0 }
 0x1cc   : > { %2459 = vmatprep.subr.bf16.mxu1 %v5660_v2 }
 0x1cd   : > { %2419 = vmatpush2.bf16.msra.mxu0 %v5531_v7 }
 0x1ce   : > { %2420 = vmatprep.subr.bf16.mxu0 %v5524_v9 }
 0x1cf   : > { %2460 = vmatpush2.bf16.msra.mxu1 %v5659_v8  ;;  %v594_v8 = vld [vmem:[#allocation2 + $0x28] sm:$0xff] }
 0x1d0   : > { %2461 = vmatprep.subr.bf16.mxu1 %v5652_v10 }
 0x1d1   : > { %2421 = vmatpush2.bf16.msra.mxu0 %v5523_v15 }
 0x1d2   : > { %2422 = vmatprep.subr.bf16.mxu0 %v5516_v18 }
 0x1d3   : > { %2462 = vmatpush2.bf16.msra.mxu1 %v5651_v16 }
 0x1d4   : > { %2463 = vmatprep.subr.bf16.mxu1 %v5644_v19 }
 0x1d5   : > { %2423 = vmatpush2.bf16.msra.mxu0 %v5515_v25 }
 0x1d6   : > { %2424 = vmatprep.subr.bf16.mxu0 %v5508_v26 }
 0x1d7   : > { %2464 = vmatpush2.bf16.msra.mxu1 %v5643_v54 }
 0x1d8   : > { %2465 = vmatprep.subr.bf16.mxu1 %v5636_v27 }
 0x1d9   : > { %2425 = vmatpush2.bf16.msra.mxu0 %v5507_v55 }
 0x1db   : > { %2466 = vmatpush2.bf16.msra.mxu1 %v5635_v28 }
 0x1dc   : > { %v2182_v29 = vpop.f32.mrf.mxu0  ;;  %2427 = vmatmul.mubr.bf16.vlgmr.msra.gmra.mxu0 %v7547_v17 }
 0x1de   : > { %v2223_v31 = vpop.f32.mrf.mxu1  ;;  %2468 = vmatmul.mubr.bf16.vlgmr.msra.gmra.mxu1 %v7553_v20  ;;  %v2184_v33 = vpop.f32.mrf.mxu0 }
 0x1df   : > { %v2224_v32 = vadd.f32 %v2223_v31, %v2182_v29 }
 0x1e0   : > { %v2225_v35 = vpop.f32.mrf.mxu1  ;;  %v2186_v38 = vpop.f32.mrf.mxu0 }
 0x1e1   : > { %v2476_v36 = vadd.f32 %v2224_v32, %v588_v30  ;;  %v2226_v37 = vadd.f32 %v2225_v35, %v2184_v33 }
 0x1e2   : > { %v2227_v39 = vpop.f32.mrf.mxu1  ;;  %v2187_v41 = vpop.f32.mrf.mxu0 }
 0x1e3   : > { %2484 = vst [vmem:[#allocation2 + $0x30] sm:$0xff] %v2476_v36  ;;  %v2477_v40 = vadd.f32 %v2226_v37, %v589_v34 }
 0x1e4   : > { %v2228_v42 = vpop.f32.mrf.mxu1 }
 0x1e5   : > { %2485 = vst [vmem:[#allocation2] sm:$0xff] %v2477_v40 }
 0x21c   : > { %v2264_v43 = vpop.f32.mrf.mxu0 }
 0x21e   : > { %v2305_v17 = vpop.f32.mrf.mxu1  ;;  %v2266_v46 = vpop.f32.mrf.mxu0 }
 0x21f   : > { %v2306_v45 = vadd.f32 %v2305_v17, %v2264_v43 }
 0x220   : > { %v2307_v20 = vpop.f32.mrf.mxu1  ;;  %v2268_v50 = vpop.f32.mrf.mxu0 }
 0x221   : > { %v2478_v48 = vadd.f32 %v2306_v45, %v590_v44  ;;  %v2308_v49 = vadd.f32 %v2307_v20, %v2266_v46 }
 0x222   : > { %v2309_v51 = vpop.f32.mrf.mxu1  ;;  %v2269_v53 = vpop.f32.mrf.mxu0 }
 0x223   : > { %2486 = vst [vmem:[#allocation2 + $0x18] sm:$0xff] %v2478_v48  ;;  %v2479_v52 = vadd.f32 %v2308_v49, %v591_v47 }
 0x224   : > { %v2310_v56 = vpop.f32.mrf.mxu1 }
 0x225   : > { %2487 = vst [vmem:[#allocation2 + $0x10] sm:$0xff] %v2479_v52 }
 0x25c   : > { %v2346_v57 = vpop.f32.mrf.mxu0 }
 0x25e   : > { %v2387_v61 = vpop.f32.mrf.mxu1  ;;  %v2348_v62 = vpop.f32.mrf.mxu0 }
 0x25f   : > { %v2388_v59 = vadd.f32 %v2387_v61, %v2346_v57 }
 0x260   : > { %v2389_v63 = vpop.f32.mrf.mxu1  ;;  %v2350_v2 = vpop.f32.mrf.mxu0 }
 0x261   : > { %v2480_v0 = vadd.f32 %v2388_v59, %v592_v58  ;;  %v2390_v1 = vadd.f32 %v2389_v63, %v2348_v62 }
 0x262   : > { %v2391_v3 = vpop.f32.mrf.mxu1  ;;  %v2351_v5 = vpop.f32.mrf.mxu0 }
 0x263   : > { %2488 = vst [vmem:[#allocation2 + $0x8] sm:$0xff] %v2480_v0  ;;  %v2481_v4 = vadd.f32 %v2390_v1, %v593_v60 }
 0x264   : > { %v2392_v6 = vpop.f32.mrf.mxu1 }
 0x265   : > { %2489 = vst [vmem:[#allocation2 + $0x20] sm:$0xff] %v2481_v4 }
 0x29c   : > { %v2428_v7 = vpop.f32.mrf.mxu0 }
 0x29e   : > { %v2469_v9 = vpop.f32.mrf.mxu1  ;;  %v2430_v11 = vpop.f32.mrf.mxu0 }
 0x29f   : > { %v2470_v10 = vadd.f32 %v2469_v9, %v2428_v7 }
 0x2a0   : > { %v2471_v13 = vpop.f32.mrf.mxu1  ;;  %v2432_v16 = vpop.f32.mrf.mxu0 }
 0x2a1   : > { %v2482_v14 = vadd.f32 %v2470_v10, %v594_v8  ;;  %v2472_v15 = vadd.f32 %v2471_v13, %v2430_v11  ;;  %2495 = sbr.rel (%p5693_p8) target bundleno = 1737 (0x6c9), region = 116 }
 0x2a2   : > { %v2473_v18 = vpop.f32.mrf.mxu1  ;;  %v2433_v21 = vpop.f32.mrf.mxu0 }
 0x2a3   : > { %2490 = vst [vmem:[#allocation2 + $0x28] sm:$0xff] %v2482_v14  ;;  %v2483_v19 = vadd.f32 %v2472_v15, %v595_v12 }
 0x2a4   : > { %v2474_v22 = vpop.f32.mrf.mxu1 }
 0x2a5   : > { %2491 = vst [vmem:[#allocation2 + $0x38] sm:$0xff] %v2483_v19 }
 0x2a6   : > { %v6271_v23 = vld [vmem:[#allocation9 + $0xe4] ss:$16 sps:$4 sm:$0xff]   ;;  %v6275_v25 = vld [vmem:[#allocation9 + $0xe0] ss:$16 sps:$4 sm:$0xff]   ;;  %v2506_v58 = vlaneseq  ;;  %v2497_v9 = vld [vmem:[#allocation2] sm:$0xff]  ;;  %vm7190_vm0 = vmmov 0  }
 0x2a7   : > { %v6273_v24 = vld [vmem:[#allocation9 + $0x2e4] ss:$16 sps:$4 sm:$0xff]   ;;  %4120 = vmatprep.subr.bf16.mxu0 %v6271_v23  ;;  %v6276_v54 = vld [vmem:[#allocation9 + $0x2e0] ss:$16 sps:$4 sm:$0xff]   ;;  %v7761_v10 = vld [vmem:[#allocation8] sm:$0xff] }
 0x2a8   : > { %4161 = vmatprep.subr.bf16.mxu1 %v6273_v24  ;;  %v6277_v26 = vld [vmem:[#allocation9 + $0xc4] ss:$16 sps:$4 sm:$0xff]   ;;  %4121 = vmatpush1.bf16.msra.mxu0 %v6275_v25  ;;  %v6281_v55 = vld [vmem:[#allocation9 + $0xc0] ss:$16 sps:$4 sm:$0xff]   ;;  %v7754_v63 = vshrl.u32 %v2506_v58, 7  ;;  %v2499_v11 = vld [vmem:[#allocation2 + $0x10] sm:$0xff] }
 0x2a9   : > { %4162 = vmatpush1.bf16.msra.mxu1 %v6276_v54  ;;  %v6279_v27 = vld [vmem:[#allocation9 + $0x2c4] ss:$16 sps:$4 sm:$0xff]   ;;  %4122 = vmatprep.subr.bf16.mxu0 %v6277_v26  ;;  %v6282_v28 = vld [vmem:[#allocation9 + $0x2c0] ss:$16 sps:$4 sm:$0xff]  }
 0x2aa   : > { %4163 = vmatprep.subr.bf16.mxu1 %v6279_v27  ;;  %v6283_v29 = vld [vmem:[#allocation9 + $0xa4] ss:$16 sps:$4 sm:$0xff]   ;;  %v6287_v31 = vld [vmem:[#allocation9 + $0xa0] ss:$16 sps:$4 sm:$0xff]   ;;  %v7757_v4 = vsub.s32 1, %v7754_v63  ;;  %v2520_v5 = vsub.s32 3, %v7754_v63 }
 0x2ab   : > { %v6285_v30 = vld [vmem:[#allocation9 + $0x2a4] ss:$16 sps:$4 sm:$0xff]   ;;  %v6288_v32 = vld [vmem:[#allocation9 + $0x2a0] ss:$16 sps:$4 sm:$0xff]   ;;  %v2524_v8 = vsub.s32 4, %v7754_v63  ;;  %v2532_v12 = vsub.s32 6, %v7754_v63 }
 0x2ac   : > { %4123 = vmatpush1.bf16.msra.mxu0 %v6281_v55  ;;  %v6289_v33 = vld [vmem:[#allocation9 + $0x84] ss:$16 sps:$4 sm:$0xff]   ;;  %v6293_v35 = vld [vmem:[#allocation9 + $0x80] ss:$16 sps:$4 sm:$0xff]   ;;  %v2513_v14 = vrot.slane %v7761_v10, %v7757_v4  ;;  %v2521_v15 = vrot.slane %v7761_v10, %v2520_v5 }
 0x2ad   : > { %4164 = vmatpush1.bf16.msra.mxu1 %v6282_v28  ;;  %4124 = vmatprep.subr.bf16.mxu0 %v6283_v29  ;;  %v6291_v34 = vld [vmem:[#allocation9 + $0x284] ss:$16 sps:$4 sm:$0xff]   ;;  %v6294_v36 = vld [vmem:[#allocation9 + $0x280] ss:$16 sps:$4 sm:$0xff]   ;;  %v7770_v22 = vrot.slane %v7761_v10, %v2524_v8  ;;  %v7773_v24 = vrot.slane %v7761_v10, %v2532_v12  ;;  %v7782_v29 = vsub.s32 0, %v7754_v63  ;;  %v2536_v8 = vsub.s32 7, %v7754_v63 }
 0x2ae   : > { %4165 = vmatprep.subr.bf16.mxu1 %v6285_v30  ;;  %v6295_v37 = vld [vmem:[#allocation9 + $0x64] ss:$16 sps:$4 sm:$0xff]   ;;  %v6299_v39 = vld [vmem:[#allocation9 + $0x60] ss:$16 sps:$4 sm:$0xff]   ;;  %v2547_v19 = vadd.f32 %v2513_v14, %v2497_v9  ;;  %v2549_v21 = vadd.f32 %v2521_v15, %v2499_v11  ;;  %v2516_v30 = vsub.s32 2, %v7754_v63 }
 0x2af   : > { %v6297_v38 = vld [vmem:[#allocation9 + $0x264] ss:$16 sps:$4 sm:$0xff]   ;;  %v6300_v40 = vld [vmem:[#allocation9 + $0x260] ss:$16 sps:$4 sm:$0xff]   ;;  %v2537_v15 = vrot.slane %v7761_v10, %v2536_v8 }
 0x2b0   : > { %4125 = vmatpush1.bf16.msra.mxu0 %v6287_v31  ;;  %v6301_v41 = vld [vmem:[#allocation9 + $0x44] ss:$16 sps:$4 sm:$0xff]   ;;  %v6305_v43 = vld [vmem:[#allocation9 + $0x40] ss:$16 sps:$4 sm:$0xff]   ;;  %v7775_v54 = vpack.c.bf16 %v2547_v19, %v2547_v19  ;;  %v7777_v26 = vpack.c.bf16 %v2549_v21, %v2549_v21  ;;  %v2501_v21 = vld [vmem:[#allocation2 + $0x20] sm:$0xff] }
 0x2b1   : > { %4166 = vmatpush1.bf16.msra.mxu1 %v6288_v32  ;;  %4126 = vmatprep.subr.bf16.mxu0 %v6289_v33  ;;  %v6303_v42 = vld [vmem:[#allocation9 + $0x244] ss:$16 sps:$4 sm:$0xff]   ;;  %v6306_v44 = vld [vmem:[#allocation9 + $0x240] ss:$16 sps:$4 sm:$0xff]  }
 0x2b2   : > { %4167 = vmatprep.subr.bf16.mxu1 %v6291_v34  ;;  %v6307_v17 = vld [vmem:[#allocation9 + $0x24] ss:$16 sps:$4 sm:$0xff]   ;;  %v6311_v46 = vld [vmem:[#allocation9 + $0x20] ss:$16 sps:$4 sm:$0xff]   ;;  %4152 = vmatprep.mubr.bf16.mxu0 %v7775_v54 }
 0x2b3   : > { %v6309_v45 = vld [vmem:[#allocation9 + $0x224] ss:$16 sps:$4 sm:$0xff]   ;;  %v6312_v47 = vld [vmem:[#allocation9 + $0x220] ss:$16 sps:$4 sm:$0xff]   ;;  %4193 = vmatprep.mubr.bf16.mxu1 %v7777_v26 }
 0x2b4   : > { %4127 = vmatpush1.bf16.msra.mxu0 %v6293_v35  ;;  %v6313_v20 = vld [vmem:[#allocation9 + $0x4] ss:$16 sps:$4 sm:$0xff]   ;;  %v6317_v49 = vld [vmem:[#allocation9] ss:$16 sps:$4 sm:$0xff]  }
 0x2b5   : > { %4168 = vmatpush1.bf16.msra.mxu1 %v6294_v36  ;;  %4128 = vmatprep.subr.bf16.mxu0 %v6295_v37  ;;  %v6315_v48 = vld [vmem:[#allocation9 + $0x204] ss:$16 sps:$4 sm:$0xff]   ;;  %v6318_v50 = vld [vmem:[#allocation9 + $0x200] ss:$16 sps:$4 sm:$0xff]   ;;  %v2496_v36 = vld [vmem:[#allocation2 + $0x30] sm:$0xff]  ;;  %v2509_v37 = vrot.slane %v7761_v10, %v7782_v29 }
 0x2b6   : > { %4169 = vmatprep.subr.bf16.mxu1 %v6297_v38  ;;  %v6319_v51 = vld [vmem:[#allocation9 + $0x1e4] ss:$16 sps:$4 sm:$0xff]   ;;  %v6323_v53 = vld [vmem:[#allocation9 + $0x1e0] ss:$16 sps:$4 sm:$0xff]   ;;  %v2517_v38 = vrot.slane %v7761_v10, %v2516_v30 }
 0x2b7   : > { %v6321_v52 = vld [vmem:[#allocation9 + $0x3e4] ss:$16 sps:$4 sm:$0xff]   ;;  %v6324_v56 = vld [vmem:[#allocation9 + $0x3e0] ss:$16 sps:$4 sm:$0xff]  }
 0x2b8   : > { %4129 = vmatpush1.bf16.msra.mxu0 %v6299_v39  ;;  %v6325_v57 = vld [vmem:[#allocation9 + $0x1c4] ss:$16 sps:$4 sm:$0xff]   ;;  %v6329_v59 = vld [vmem:[#allocation9 + $0x1c0] ss:$16 sps:$4 sm:$0xff]  }
 0x2b9   : > { %4170 = vmatpush1.bf16.msra.mxu1 %v6300_v40  ;;  %4130 = vmatprep.subr.bf16.mxu0 %v6301_v41  ;;  %v6327_v61 = vld [vmem:[#allocation9 + $0x3c4] ss:$16 sps:$4 sm:$0xff]   ;;  %v6330_v62 = vld [vmem:[#allocation9 + $0x3c0] ss:$16 sps:$4 sm:$0xff]  }
 0x2ba   : > { %4171 = vmatprep.subr.bf16.mxu1 %v6303_v42  ;;  %v6331_v60 = vld [vmem:[#allocation9 + $0x1a4] ss:$16 sps:$4 sm:$0xff]   ;;  %v6335_v1 = vld [vmem:[#allocation9 + $0x1a0] ss:$16 sps:$4 sm:$0xff]  }
 0x2bb   : > { %v6333_v0 = vld [vmem:[#allocation9 + $0x3a4] ss:$16 sps:$4 sm:$0xff]   ;;  %v6336_v2 = vld [vmem:[#allocation9 + $0x3a0] ss:$16 sps:$4 sm:$0xff]  }
 0x2bc   : > { %4131 = vmatpush1.bf16.msra.mxu0 %v6305_v43  ;;  %v6337_v3 = vld [vmem:[#allocation9 + $0x184] ss:$16 sps:$4 sm:$0xff]   ;;  %v6341_v7 = vld [vmem:[#allocation9 + $0x180] ss:$16 sps:$4 sm:$0xff]   ;;  %v2546_v43 = vadd.f32 %v2509_v37, %v2496_v36 }
 0x2bd   : > { %4172 = vmatpush1.bf16.msra.mxu1 %v6306_v44  ;;  %4132 = vmatprep.subr.bf16.mxu0 %v6307_v17  ;;  %v6339_v6 = vld [vmem:[#allocation9 + $0x384] ss:$16 sps:$4 sm:$0xff]   ;;  %v6342_v13 = vld [vmem:[#allocation9 + $0x380] ss:$16 sps:$4 sm:$0xff]  }
 0x2be   : > { %4173 = vmatprep.subr.bf16.mxu1 %v6309_v45  ;;  %v6343_v16 = vld [vmem:[#allocation9 + $0x164] ss:$16 sps:$4 sm:$0xff]   ;;  %v6347_v23 = vld [vmem:[#allocation9 + $0x160] ss:$16 sps:$4 sm:$0xff]  }
 0x2bf   : > { %v6345_v18 = vld [vmem:[#allocation9 + $0x364] ss:$16 sps:$4 sm:$0xff]   ;;  %v6348_v25 = vld [vmem:[#allocation9 + $0x360] ss:$16 sps:$4 sm:$0xff]  }
 0x2c0   : > { %4133 = vmatpush1.bf16.msra.mxu0 %v6311_v46  ;;  %v6349_v27 = vld [vmem:[#allocation9 + $0x144] ss:$16 sps:$4 sm:$0xff]   ;;  %v6353_v28 = vld [vmem:[#allocation9 + $0x140] ss:$16 sps:$4 sm:$0xff]  }
 0x2c1   : > { %4174 = vmatpush1.bf16.msra.mxu1 %v6312_v47  ;;  %4134 = vmatprep.subr.bf16.mxu0 %v6313_v20  ;;  %v6351_v55 = vld [vmem:[#allocation9 + $0x344] ss:$16 sps:$4 sm:$0xff]   ;;  %v6354_v31 = vld [vmem:[#allocation9 + $0x340] ss:$16 sps:$4 sm:$0xff]   ;;  %v7790_v47 = vpack.c.bf16 %v2546_v43, %v2546_v43 }
 0x2c2   : > { %4175 = vmatprep.subr.bf16.mxu1 %v6315_v48  ;;  %v6355_v32 = vld [vmem:[#allocation9 + $0x124] ss:$16 sps:$4 sm:$0xff]   ;;  %v6359_v34 = vld [vmem:[#allocation9 + $0x120] ss:$16 sps:$4 sm:$0xff]  }
 0x2c3   : > { %v6357_v33 = vld [vmem:[#allocation9 + $0x324] ss:$16 sps:$4 sm:$0xff]   ;;  %v6360_v35 = vld [vmem:[#allocation9 + $0x320] ss:$16 sps:$4 sm:$0xff]  }
 0x2c4   : > { %4135 = vmatpush1.bf16.msra.mxu0 %v6317_v49  ;;  %v2498_v39 = vld [vmem:[#allocation2 + $0x18] sm:$0xff] }
 0x2c5   : > { %4176 = vmatpush1.bf16.msra.mxu1 %v6318_v50  ;;  %4136 = vmatprep.subr.bf16.mxu0 %v6319_v51  ;;  %v6361_v40 = vld [vmem:[#allocation9 + $0x104] ss:$16 sps:$4 sm:$0xff]   ;;  %v6365_v42 = vld [vmem:[#allocation9 + $0x100] ss:$16 sps:$4 sm:$0xff]   ;;  %v2548_v44 = vadd.f32 %v2517_v38, %v2498_v39 }
 0x2c6   : > { %4177 = vmatprep.subr.bf16.mxu1 %v6321_v52  ;;  %v6363_v41 = vld [vmem:[#allocation9 + $0x304] ss:$16 sps:$4 sm:$0xff]   ;;  %v6366_v17 = vld [vmem:[#allocation9 + $0x300] ss:$16 sps:$4 sm:$0xff]  }
 0x2c7   : > { %v6369_v45 = vld [vmem:[#allocation9 + $0x4e4] ss:$16 sps:$4 sm:$0xff]   ;;  %v7792_v20 = vpack.c.bf16 %v2548_v44, %v2548_v44  ;;  %v6367_v48 = vld [vmem:[#allocation9 + $0x4e0] ss:$16 sps:$4 sm:$0xff]  }
 0x2c8   : > { %4137 = vmatpush2.bf16.msra.mxu0 %v6323_v53  ;;  %v6372_v46 = vld [vmem:[#allocation9 + $0x6e4] ss:$16 sps:$4 sm:$0xff]   ;;  %v6370_v49 = vld [vmem:[#allocation9 + $0x6e0] ss:$16 sps:$4 sm:$0xff]  }
 0x2c9   : > { %4178 = vmatpush2.bf16.msra.mxu1 %v6324_v56  ;;  %4138 = vmatprep.subr.bf16.mxu0 %v6325_v57  ;;  %v6375_v50 = vld [vmem:[#allocation9 + $0x4c4] ss:$16 sps:$4 sm:$0xff]   ;;  %v6373_v52 = vld [vmem:[#allocation9 + $0x4c0] ss:$16 sps:$4 sm:$0xff]  }
 0x2ca   : > { %4179 = vmatprep.subr.bf16.mxu1 %v6327_v61  ;;  %v6378_v51 = vld [vmem:[#allocation9 + $0x6c4] ss:$16 sps:$4 sm:$0xff]   ;;  %v6376_v53 = vld [vmem:[#allocation9 + $0x6c0] ss:$16 sps:$4 sm:$0xff]  }
 0x2cb   : > { %v6381_v56 = vld [vmem:[#allocation9 + $0x4a4] ss:$16 sps:$4 sm:$0xff]   ;;  %v6379_v58 = vld [vmem:[#allocation9 + $0x4a0] ss:$16 sps:$4 sm:$0xff]  }
 0x2cc   : > { %4139 = vmatpush2.bf16.msra.mxu0 %v6329_v59  ;;  %v6384_v57 = vld [vmem:[#allocation9 + $0x6a4] ss:$16 sps:$4 sm:$0xff]   ;;  %v6382_v61 = vld [vmem:[#allocation9 + $0x6a0] ss:$16 sps:$4 sm:$0xff]  }
 0x2cd   : > { %4180 = vmatpush2.bf16.msra.mxu1 %v6330_v62  ;;  %4140 = vmatprep.subr.bf16.mxu0 %v6331_v60  ;;  %v6387_v59 = vld [vmem:[#allocation9 + $0x484] ss:$16 sps:$4 sm:$0xff]   ;;  %v6385_v60 = vld [vmem:[#allocation9 + $0x480] ss:$16 sps:$4 sm:$0xff]  }
 0x2ce   : > { %4181 = vmatprep.subr.bf16.mxu1 %v6333_v0  ;;  %v6390_v62 = vld [vmem:[#allocation9 + $0x684] ss:$16 sps:$4 sm:$0xff]   ;;  %v6388_v0 = vld [vmem:[#allocation9 + $0x680] ss:$16 sps:$4 sm:$0xff]  }
 0x2cf   : > { %v6399_v9 = vld [vmem:[#allocation9 + $0x444] ss:$16 sps:$4 sm:$0xff]   ;;  %v6397_v12 = vld [vmem:[#allocation9 + $0x440] ss:$16 sps:$4 sm:$0xff]  }
 0x2d0   : > { %4141 = vmatpush2.bf16.msra.mxu0 %v6335_v1  ;;  %v6393_v1 = vld [vmem:[#allocation9 + $0x464] ss:$16 sps:$4 sm:$0xff]   ;;  %v6403_v19 = vld [vmem:[#allocation9 + $0x420] ss:$16 sps:$4 sm:$0xff]  }
 0x2d1   : > { %4182 = vmatpush2.bf16.msra.mxu1 %v6336_v2  ;;  %4142 = vmatprep.subr.bf16.mxu0 %v6337_v3  ;;  %v6396_v2 = vld [vmem:[#allocation9 + $0x664] ss:$16 sps:$4 sm:$0xff]   ;;  %v6391_v3 = vld [vmem:[#allocation9 + $0x460] ss:$16 sps:$4 sm:$0xff]  }
 0x2d2   : > { %4183 = vmatprep.subr.bf16.mxu1 %v6339_v6  ;;  %v6394_v6 = vld [vmem:[#allocation9 + $0x660] ss:$16 sps:$4 sm:$0xff]   ;;  %v6402_v11 = vld [vmem:[#allocation9 + $0x644] ss:$16 sps:$4 sm:$0xff]  }
 0x2d3   : > { %v6420_v36 = vld [vmem:[#allocation9 + $0x7e4] ss:$16 sps:$4 sm:$0xff]   ;;  %v6415_v37 = vld [vmem:[#allocation9 + $0x5e0] ss:$16 sps:$4 sm:$0xff]  }
 0x2d4   : > { %4143 = vmatpush2.bf16.msra.mxu0 %v6341_v7  ;;  %v2528_v7 = vsub.s32 5, %v7754_v63  ;;  %v6418_v38 = vld [vmem:[#allocation9 + $0x7e0] ss:$16 sps:$4 sm:$0xff]   ;;  %v6423_v39 = vld [vmem:[#allocation9 + $0x5c4] ss:$16 sps:$4 sm:$0xff]  }
 0x2d5   : > { %4184 = vmatpush2.bf16.msra.mxu1 %v6342_v13  ;;  %4144 = vmatprep.subr.bf16.mxu0 %v6343_v16  ;;  %v6400_v13 = vld [vmem:[#allocation9 + $0x640] ss:$16 sps:$4 sm:$0xff]   ;;  %v6405_v16 = vld [vmem:[#allocation9 + $0x424] ss:$16 sps:$4 sm:$0xff]  }
 0x2d6   : > { %4185 = vmatprep.subr.bf16.mxu1 %v6345_v18  ;;  %v2529_v14 = vrot.slane %v7761_v10, %v2528_v7  ;;  %v6408_v18 = vld [vmem:[#allocation9 + $0x624] ss:$16 sps:$4 sm:$0xff]   ;;  %v6409_v10 = vld [vmem:[#allocation9 + $0x400] ss:$16 sps:$4 sm:$0xff]  }
 0x2d7   : > { %v6429_v43 = vld [vmem:[#allocation9 + $0x5a4] ss:$16 sps:$4 sm:$0xff]   ;;  %v6457_v8 = vld [vmem:[#allocation9 + $0x500] ss:$16 sps:$4 sm:$0xff]  }
 0x2d8   : > { %4145 = vmatpush2.bf16.msra.mxu0 %v6347_v23  ;;  %v2503_v23 = vld [vmem:[#allocation2 + $0x38] sm:$0xff] }
 0x2d9   : > { %4186 = vmatpush2.bf16.msra.mxu1 %v6348_v25  ;;  %4146 = vmatprep.subr.bf16.mxu0 %v6349_v27  ;;  %v6406_v25 = vld [vmem:[#allocation9 + $0x620] ss:$16 sps:$4 sm:$0xff]   ;;  %v2551_v27 = vadd.f32 %v2529_v14, %v2501_v21  ;;  %v6432_v44 = vld [vmem:[#allocation9 + $0x7a4] ss:$16 sps:$4 sm:$0xff]   ;;  %v6468_v14 = vld [vmem:[#allocation9 + $0x2ec] ss:$16 sps:$4 sm:$0xff]  }
 0x2da   : > { %4187 = vmatprep.subr.bf16.mxu1 %v6351_v55  ;;  %v2553_v55 = vadd.f32 %v2537_v15, %v2503_v23  ;;  %v6462_v7 = vld [vmem:[#allocation9 + $0x704] ss:$16 sps:$4 sm:$0xff]   ;;  %v6474_v21 = vld [vmem:[#allocation9 + $0x2cc] ss:$16 sps:$4 sm:$0xff]   ;;  %v6472_v23 = vld [vmem:[#allocation9 + $0x2c8] ss:$16 sps:$4 sm:$0xff]  }
 0x2dc   : > { %4147 = vmatpush2.bf16.msra.mxu0 %v6353_v28  ;;  %v6411_v28 = vld [vmem:[#allocation9 + $0x404] ss:$16 sps:$4 sm:$0xff]  }
 0x2dd   : > { %4188 = vmatpush2.bf16.msra.mxu1 %v6354_v31  ;;  %4148 = vmatprep.subr.bf16.mxu0 %v6355_v32  ;;  %v6414_v31 = vld [vmem:[#allocation9 + $0x604] ss:$16 sps:$4 sm:$0xff]   ;;  %v7800_v32 = vpack.c.bf16 %v2551_v27, %v2551_v27  ;;  %v6480_v27 = vld [vmem:[#allocation9 + $0x2ac] ss:$16 sps:$4 sm:$0xff]  }
 0x2de   : > { %4189 = vmatprep.subr.bf16.mxu1 %v6357_v33  ;;  %v7802_v33 = vpack.c.bf16 %v2553_v55, %v2553_v55  ;;  %v6475_v55 = vld [vmem:[#allocation9 + $0xa8] ss:$16 sps:$4 sm:$0xff]  }
 0x2e0   : > { %4149 = vmatpush2.bf16.msra.mxu0 %v6359_v34  ;;  %v6412_v34 = vld [vmem:[#allocation9 + $0x600] ss:$16 sps:$4 sm:$0xff]  }
 0x2e1   : > { %4190 = vmatpush2.bf16.msra.mxu1 %v6360_v35  ;;  %4150 = vmatprep.subr.bf16.mxu0 %v6361_v40  ;;  %v6417_v35 = vld [vmem:[#allocation9 + $0x5e4] ss:$16 sps:$4 sm:$0xff]  }
 0x2e2   : > { %4191 = vmatprep.subr.bf16.mxu1 %v6363_v41  ;;  %v6426_v40 = vld [vmem:[#allocation9 + $0x7c4] ss:$16 sps:$4 sm:$0xff]   ;;  %v6421_v41 = vld [vmem:[#allocation9 + $0x5c0] ss:$16 sps:$4 sm:$0xff]  }
 0x2e4   : > { %4151 = vmatpush2.bf16.msra.mxu0 %v6365_v42  ;;  %v6424_v42 = vld [vmem:[#allocation9 + $0x7c0] ss:$16 sps:$4 sm:$0xff]  }
 0x2e5   : > { %4192 = vmatpush2.bf16.msra.mxu1 %v6366_v17  ;;  %4202 = vmatprep.subr.bf16.mxu0 %v6369_v45  ;;  %v6427_v17 = vld [vmem:[#allocation9 + $0x5a0] ss:$16 sps:$4 sm:$0xff]  }
 0x2e6   : > { %4243 = vmatprep.subr.bf16.mxu1 %v6372_v46  ;;  %v6430_v45 = vld [vmem:[#allocation9 + $0x7a0] ss:$16 sps:$4 sm:$0xff]   ;;  %v6435_v46 = vld [vmem:[#allocation9 + $0x584] ss:$16 sps:$4 sm:$0xff]  }
 0x2e7   : > { %4153 = vmatmul.mubr.bf16.vlgmr.msra.gmra.mxu0 %v7790_v47 }
 0x2e8   : > { %4194 = vmatmul.mubr.bf16.vlgmr.msra.gmra.mxu1 %v7792_v20  ;;  %4203 = vmatpush1.bf16.msra.mxu0 %v6367_v48  ;;  %v6438_v48 = vld [vmem:[#allocation9 + $0x784] ss:$16 sps:$4 sm:$0xff]  }
 0x2e9   : > { %4244 = vmatpush1.bf16.msra.mxu1 %v6370_v49  ;;  %4204 = vmatprep.subr.bf16.mxu0 %v6375_v50  ;;  %v6433_v49 = vld [vmem:[#allocation9 + $0x580] ss:$16 sps:$4 sm:$0xff]  }
 0x2ea   : > { %4245 = vmatprep.subr.bf16.mxu1 %v6378_v51  ;;  %4234 = vmatprep.mubr.bf16.mxu0 %v7800_v32  ;;  %v6436_v50 = vld [vmem:[#allocation9 + $0x780] ss:$16 sps:$4 sm:$0xff]   ;;  %v6441_v51 = vld [vmem:[#allocation9 + $0x564] ss:$16 sps:$4 sm:$0xff]  }
 0x2eb   : > { %4275 = vmatprep.mubr.bf16.mxu1 %v7802_v33 }
 0x2ec   : > { %4205 = vmatpush1.bf16.msra.mxu0 %v6373_v52  ;;  %v6444_v52 = vld [vmem:[#allocation9 + $0x764] ss:$16 sps:$4 sm:$0xff]  }
 0x2ed   : > { %4246 = vmatpush1.bf16.msra.mxu1 %v6376_v53  ;;  %4206 = vmatprep.subr.bf16.mxu0 %v6381_v56  ;;  %v6439_v53 = vld [vmem:[#allocation9 + $0x560] ss:$16 sps:$4 sm:$0xff]  }
 0x2ee   : > { %4247 = vmatprep.subr.bf16.mxu1 %v6384_v57  ;;  %v6442_v56 = vld [vmem:[#allocation9 + $0x760] ss:$16 sps:$4 sm:$0xff]   ;;  %v6447_v57 = vld [vmem:[#allocation9 + $0x544] ss:$16 sps:$4 sm:$0xff]  }
 0x2f0   : > { %4207 = vmatpush1.bf16.msra.mxu0 %v6379_v58  ;;  %v6450_v58 = vld [vmem:[#allocation9 + $0x744] ss:$16 sps:$4 sm:$0xff]  }
 0x2f1   : > { %4248 = vmatpush1.bf16.msra.mxu1 %v6382_v61  ;;  %4208 = vmatprep.subr.bf16.mxu0 %v6387_v59  ;;  %v6445_v61 = vld [vmem:[#allocation9 + $0x540] ss:$16 sps:$4 sm:$0xff]  }
 0x2f2   : > { %4249 = vmatprep.subr.bf16.mxu1 %v6390_v62  ;;  %v6448_v59 = vld [vmem:[#allocation9 + $0x740] ss:$16 sps:$4 sm:$0xff]   ;;  %v6453_v62 = vld [vmem:[#allocation9 + $0x524] ss:$16 sps:$4 sm:$0xff]  }
 0x2f4   : > { %4209 = vmatpush1.bf16.msra.mxu0 %v6385_v60  ;;  %v6456_v60 = vld [vmem:[#allocation9 + $0x724] ss:$16 sps:$4 sm:$0xff]  }
 0x2f5   : > { %4250 = vmatpush1.bf16.msra.mxu1 %v6388_v0  ;;  %4210 = vmatprep.subr.bf16.mxu0 %v6393_v1  ;;  %v6451_v0 = vld [vmem:[#allocation9 + $0x520] ss:$16 sps:$4 sm:$0xff]  }
 0x2f6   : > { %4251 = vmatprep.subr.bf16.mxu1 %v6396_v2  ;;  %v6454_v1 = vld [vmem:[#allocation9 + $0x720] ss:$16 sps:$4 sm:$0xff]  }
 0x2f7   : > { %v2500_v2 = vld [vmem:[#allocation2 + $0x8] sm:$0xff] }
 0x2f8   : > { %4211 = vmatpush1.bf16.msra.mxu0 %v6391_v3  ;;  %v2502_v3 = vld [vmem:[#allocation2 + $0x28] sm:$0xff] }
 0x2f9   : > { %4252 = vmatpush1.bf16.msra.mxu1 %v6394_v6  ;;  %4212 = vmatprep.subr.bf16.mxu0 %v6399_v9  ;;  %v6459_v6 = vld [vmem:[#allocation9 + $0x504] ss:$16 sps:$4 sm:$0xff]   ;;  %v2550_v9 = vadd.f32 %v7770_v22, %v2500_v2  ;;  %v6471_v22 = vld [vmem:[#allocation9 + $0xcc] ss:$16 sps:$4 sm:$0xff]  }
 0x2fa   : > { %4253 = vmatprep.subr.bf16.mxu1 %v6402_v11  ;;  %v2552_v11 = vadd.f32 %v7773_v24, %v2502_v3  ;;  %v6469_v24 = vld [vmem:[#allocation9 + $0xc8] ss:$16 sps:$4 sm:$0xff]   ;;  %v6534_v2 = vld [vmem:[#allocation9 + $0x38c] ss:$16 sps:$4 sm:$0xff]  }
 0x2fb   : > { %v7808_v15 = vpack.c.bf16 %v2550_v9, %v2550_v9  ;;  %v6529_v3 = vld [vmem:[#allocation9 + $0x188] ss:$16 sps:$4 sm:$0xff]  }
 0x2fc   : > { %4213 = vmatpush1.bf16.msra.mxu0 %v6397_v12  ;;  %v6460_v12 = vld [vmem:[#allocation9 + $0x700] ss:$16 sps:$4 sm:$0xff]   ;;  %v6535_v9 = vld [vmem:[#allocation9 + $0x168] ss:$16 sps:$4 sm:$0xff]  }
 0x2fd   : > { %4254 = vmatpush1.bf16.msra.mxu1 %v6400_v13  ;;  %4214 = vmatprep.subr.bf16.mxu0 %v6405_v16  ;;  %v6465_v13 = vld [vmem:[#allocation9 + $0xec] ss:$16 sps:$4 sm:$0xff]   ;;  %v7810_v16 = vpack.c.bf16 %v2552_v11, %v2552_v11  ;;  %v6538_v11 = vld [vmem:[#allocation9 + $0x368] ss:$16 sps:$4 sm:$0xff]  }
 0x2fe   : > { %4255 = vmatprep.subr.bf16.mxu1 %v6408_v18  ;;  %v6463_v18 = vld [vmem:[#allocation9 + $0xe8] ss:$16 sps:$4 sm:$0xff]  }
 0x300   : > { %4215 = vmatpush1.bf16.msra.mxu0 %v6403_v19  ;;  %v6466_v19 = vld [vmem:[#allocation9 + $0x2e8] ss:$16 sps:$4 sm:$0xff]  }
 0x301   : > { %4256 = vmatpush1.bf16.msra.mxu1 %v6406_v25  ;;  %4216 = vmatprep.subr.bf16.mxu0 %v6411_v28  ;;  %v6477_v25 = vld [vmem:[#allocation9 + $0xac] ss:$16 sps:$4 sm:$0xff]   ;;  %v6478_v28 = vld [vmem:[#allocation9 + $0x2a8] ss:$16 sps:$4 sm:$0xff]  }
 0x302   : > { %4257 = vmatprep.subr.bf16.mxu1 %v6414_v31  ;;  %v6483_v31 = vld [vmem:[#allocation9 + $0x8c] ss:$16 sps:$4 sm:$0xff]  }
 0x304   : > { %4217 = vmatpush1.bf16.msra.mxu0 %v6409_v10  ;;  %v6486_v10 = vld [vmem:[#allocation9 + $0x28c] ss:$16 sps:$4 sm:$0xff]  }
 0x305   : > { %4258 = vmatpush1.bf16.msra.mxu1 %v6412_v34  ;;  %4218 = vmatprep.subr.bf16.mxu0 %v6417_v35  ;;  %v6481_v34 = vld [vmem:[#allocation9 + $0x88] ss:$16 sps:$4 sm:$0xff]  }
 0x306   : > { %4259 = vmatprep.subr.bf16.mxu1 %v6420_v36  ;;  %v6484_v35 = vld [vmem:[#allocation9 + $0x288] ss:$16 sps:$4 sm:$0xff]   ;;  %v6489_v36 = vld [vmem:[#allocation9 + $0x6c] ss:$16 sps:$4 sm:$0xff]  }
 0x308   : > { %4219 = vmatpush2.bf16.msra.mxu0 %v6415_v37  ;;  %v6492_v37 = vld [vmem:[#allocation9 + $0x26c] ss:$16 sps:$4 sm:$0xff]  }
 0x309   : > { %4260 = vmatpush2.bf16.msra.mxu1 %v6418_v38  ;;  %4220 = vmatprep.subr.bf16.mxu0 %v6423_v39  ;;  %v6487_v38 = vld [vmem:[#allocation9 + $0x68] ss:$16 sps:$4 sm:$0xff]   ;;  %v6498_v39 = vld [vmem:[#allocation9 + $0x24c] ss:$16 sps:$4 sm:$0xff]  }
 0x30a   : > { %4261 = vmatprep.subr.bf16.mxu1 %v6426_v40  ;;  %v6493_v40 = vld [vmem:[#allocation9 + $0x48] ss:$16 sps:$4 sm:$0xff]  }
 0x30c   : > { %4221 = vmatpush2.bf16.msra.mxu0 %v6421_v41  ;;  %v6496_v41 = vld [vmem:[#allocation9 + $0x248] ss:$16 sps:$4 sm:$0xff]  }
 0x30d   : > { %4262 = vmatpush2.bf16.msra.mxu1 %v6424_v42  ;;  %4222 = vmatprep.subr.bf16.mxu0 %v6429_v43  ;;  %v6501_v42 = vld [vmem:[#allocation9 + $0x2c] ss:$16 sps:$4 sm:$0xff]  }
 0x30e   : > { %4263 = vmatprep.subr.bf16.mxu1 %v6432_v44  ;;  %v6504_v43 = vld [vmem:[#allocation9 + $0x22c] ss:$16 sps:$4 sm:$0xff]   ;;  %v6499_v44 = vld [vmem:[#allocation9 + $0x28] ss:$16 sps:$4 sm:$0xff]  }
 0x310   : > { %4223 = vmatpush2.bf16.msra.mxu0 %v6427_v17  ;;  %v6502_v17 = vld [vmem:[#allocation9 + $0x228] ss:$16 sps:$4 sm:$0xff]  }
 0x311   : > { %4264 = vmatpush2.bf16.msra.mxu1 %v6430_v45  ;;  %4224 = vmatprep.subr.bf16.mxu0 %v6435_v46  ;;  %v6507_v45 = vld [vmem:[#allocation9 + $0xc] ss:$16 sps:$4 sm:$0xff]  }
 0x312   : > { %4265 = vmatprep.subr.bf16.mxu1 %v6438_v48  ;;  %v6510_v46 = vld [vmem:[#allocation9 + $0x20c] ss:$16 sps:$4 sm:$0xff]   ;;  %v6505_v48 = vld [vmem:[#allocation9 + $0x8] ss:$16 sps:$4 sm:$0xff]  }
 0x314   : > { %4225 = vmatpush2.bf16.msra.mxu0 %v6433_v49  ;;  %v6508_v49 = vld [vmem:[#allocation9 + $0x208] ss:$16 sps:$4 sm:$0xff]  }
 0x315   : > { %4266 = vmatpush2.bf16.msra.mxu1 %v6436_v50  ;;  %4226 = vmatprep.subr.bf16.mxu0 %v6441_v51  ;;  %v6513_v50 = vld [vmem:[#allocation9 + $0x1ec] ss:$16 sps:$4 sm:$0xff]  }
 0x316   : > { %4267 = vmatprep.subr.bf16.mxu1 %v6444_v52  ;;  %v6516_v51 = vld [vmem:[#allocation9 + $0x3ec] ss:$16 sps:$4 sm:$0xff]   ;;  %v6511_v52 = vld [vmem:[#allocation9 + $0x1e8] ss:$16 sps:$4 sm:$0xff]  }
 0x318   : > { %4227 = vmatpush2.bf16.msra.mxu0 %v6439_v53  ;;  %v6514_v53 = vld [vmem:[#allocation9 + $0x3e8] ss:$16 sps:$4 sm:$0xff]  }
 0x319   : > { %4268 = vmatpush2.bf16.msra.mxu1 %v6442_v56  ;;  %4228 = vmatprep.subr.bf16.mxu0 %v6447_v57  ;;  %v6519_v56 = vld [vmem:[#allocation9 + $0x1cc] ss:$16 sps:$4 sm:$0xff]  }
 0x31a   : > { %4269 = vmatprep.subr.bf16.mxu1 %v6450_v58  ;;  %v6522_v57 = vld [vmem:[#allocation9 + $0x3cc] ss:$16 sps:$4 sm:$0xff]   ;;  %v6517_v58 = vld [vmem:[#allocation9 + $0x1c8] ss:$16 sps:$4 sm:$0xff]  }
 0x31c   : > { %4229 = vmatpush2.bf16.msra.mxu0 %v6445_v61  ;;  %v6520_v61 = vld [vmem:[#allocation9 + $0x3c8] ss:$16 sps:$4 sm:$0xff]  }
 0x31d   : > { %4270 = vmatpush2.bf16.msra.mxu1 %v6448_v59  ;;  %4230 = vmatprep.subr.bf16.mxu0 %v6453_v62  ;;  %v6525_v59 = vld [vmem:[#allocation9 + $0x1ac] ss:$16 sps:$4 sm:$0xff]  }
 0x31e   : > { %4271 = vmatprep.subr.bf16.mxu1 %v6456_v60  ;;  %v6528_v62 = vld [vmem:[#allocation9 + $0x3ac] ss:$16 sps:$4 sm:$0xff]   ;;  %v6523_v60 = vld [vmem:[#allocation9 + $0x1a8] ss:$16 sps:$4 sm:$0xff]  }
 0x320   : > { %4231 = vmatpush2.bf16.msra.mxu0 %v6451_v0  ;;  %v6526_v0 = vld [vmem:[#allocation9 + $0x3a8] ss:$16 sps:$4 sm:$0xff]  }
 0x321   : > { %4272 = vmatpush2.bf16.msra.mxu1 %v6454_v1  ;;  %4232 = vmatprep.subr.bf16.mxu0 %v6459_v6  ;;  %v6531_v1 = vld [vmem:[#allocation9 + $0x18c] ss:$16 sps:$4 sm:$0xff]   ;;  %v6532_v6 = vld [vmem:[#allocation9 + $0x388] ss:$16 sps:$4 sm:$0xff]  }
 0x322   : > { %4273 = vmatprep.subr.bf16.mxu1 %v6462_v7  ;;  %v6537_v7 = vld [vmem:[#allocation9 + $0x16c] ss:$16 sps:$4 sm:$0xff]  }
 0x324   : > { %4233 = vmatpush2.bf16.msra.mxu0 %v6457_v8  ;;  %v6540_v8 = vld [vmem:[#allocation9 + $0x36c] ss:$16 sps:$4 sm:$0xff]  }
 0x325   : > { %4274 = vmatpush2.bf16.msra.mxu1 %v6460_v12  ;;  %4284 = vmatprep.subr.bf16.mxu0 %v6465_v13  ;;  %v6543_v12 = vld [vmem:[#allocation9 + $0x14c] ss:$16 sps:$4 sm:$0xff]  }
 0x326   : > { %4325 = vmatprep.subr.bf16.mxu1 %v6468_v14  ;;  %v6546_v13 = vld [vmem:[#allocation9 + $0x34c] ss:$16 sps:$4 sm:$0xff]   ;;  %v6541_v14 = vld [vmem:[#allocation9 + $0x148] ss:$16 sps:$4 sm:$0xff]  }
 0x327   : > { %4235 = vmatmul.mubr.bf16.vlgmr.msra.gmra.mxu0 %v7808_v15 }
 0x328   : > { %4276 = vmatmul.mubr.bf16.vlgmr.msra.gmra.mxu1 %v7810_v16  ;;  %4285 = vmatpush1.bf16.msra.mxu0 %v6463_v18  ;;  %v6544_v18 = vld [vmem:[#allocation9 + $0x348] ss:$16 sps:$4 sm:$0xff]  }
 0x329   : > { %4326 = vmatpush1.bf16.msra.mxu1 %v6466_v19  ;;  %4286 = vmatprep.subr.bf16.mxu0 %v6471_v22  ;;  %v6549_v19 = vld [vmem:[#allocation9 + $0x12c] ss:$16 sps:$4 sm:$0xff]  }
 0x32a   : > { %4327 = vmatprep.subr.bf16.mxu1 %v6474_v21  ;;  %4316 = vmatprep.mubr.bf16.mxu0 %v7775_v54  ;;  %v6490_v54 = vld [vmem:[#allocation9 + $0x268] ss:$16 sps:$4 sm:$0xff]   ;;  %v6552_v22 = vld [vmem:[#allocation9 + $0x32c] ss:$16 sps:$4 sm:$0xff]  }
 0x32b   : > { %4357 = vmatprep.mubr.bf16.mxu1 %v7777_v26  ;;  %v6495_v26 = vld [vmem:[#allocation9 + $0x4c] ss:$16 sps:$4 sm:$0xff]   ;;  %v6547_v21 = vld [vmem:[#allocation9 + $0x128] ss:$16 sps:$4 sm:$0xff]  }
 0x32c   : > { %4287 = vmatpush1.bf16.msra.mxu0 %v6469_v24  ;;  %v6550_v24 = vld [vmem:[#allocation9 + $0x328] ss:$16 sps:$4 sm:$0xff]  }
 0x32d   : > { %4328 = vmatpush1.bf16.msra.mxu1 %v6472_v23  ;;  %4288 = vmatprep.subr.bf16.mxu0 %v6477_v25  ;;  %v6555_v23 = vld [vmem:[#allocation9 + $0x10c] ss:$16 sps:$4 sm:$0xff]  }
 0x32e   : > { %4329 = vmatprep.subr.bf16.mxu1 %v6480_v27  ;;  %v6558_v25 = vld [vmem:[#allocation9 + $0x30c] ss:$16 sps:$4 sm:$0xff]   ;;  %v6553_v27 = vld [vmem:[#allocation9 + $0x108] ss:$16 sps:$4 sm:$0xff]  }
 0x330   : > { %4289 = vmatpush1.bf16.msra.mxu0 %v6475_v55  ;;  %v6556_v55 = vld [vmem:[#allocation9 + $0x308] ss:$16 sps:$4 sm:$0xff]  }
 0x331   : > { %4330 = vmatpush1.bf16.msra.mxu1 %v6478_v28  ;;  %4290 = vmatprep.subr.bf16.mxu0 %v6483_v31  ;;  %v6561_v28 = vld [vmem:[#allocation9 + $0x4ec] ss:$16 sps:$4 sm:$0xff]  }
 0x332   : > { %4331 = vmatprep.subr.bf16.mxu1 %v6486_v10  ;;  %v6564_v31 = vld [vmem:[#allocation9 + $0x6ec] ss:$16 sps:$4 sm:$0xff]   ;;  %v6559_v10 = vld [vmem:[#allocation9 + $0x4e8] ss:$16 sps:$4 sm:$0xff]  }
 0x334   : > { %4291 = vmatpush1.bf16.msra.mxu0 %v6481_v34  ;;  %v6562_v34 = vld [vmem:[#allocation9 + $0x6e8] ss:$16 sps:$4 sm:$0xff]  }
 0x335   : > { %4332 = vmatpush1.bf16.msra.mxu1 %v6484_v35  ;;  %4292 = vmatprep.subr.bf16.mxu0 %v6489_v36  ;;  %v6567_v35 = vld [vmem:[#allocation9 + $0x4cc] ss:$16 sps:$4 sm:$0xff]  }
 0x336   : > { %4333 = vmatprep.subr.bf16.mxu1 %v6492_v37  ;;  %v6570_v36 = vld [vmem:[#allocation9 + $0x6cc] ss:$16 sps:$4 sm:$0xff]   ;;  %v6565_v37 = vld [vmem:[#allocation9 + $0x4c8] ss:$16 sps:$4 sm:$0xff]  }
 0x338   : > { %4293 = vmatpush1.bf16.msra.mxu0 %v6487_v38  ;;  %v6568_v38 = vld [vmem:[#allocation9 + $0x6c8] ss:$16 sps:$4 sm:$0xff]  }
 0x339   : > { %4334 = vmatpush1.bf16.msra.mxu1 %v6490_v54  ;;  %4294 = vmatprep.subr.bf16.mxu0 %v6495_v26  ;;  %v6573_v54 = vld [vmem:[#allocation9 + $0x4ac] ss:$16 sps:$4 sm:$0xff]  }
 0x33a   : > { %4335 = vmatprep.subr.bf16.mxu1 %v6498_v39  ;;  %v6576_v26 = vld [vmem:[#allocation9 + $0x6ac] ss:$16 sps:$4 sm:$0xff]   ;;  %v6571_v39 = vld [vmem:[#allocation9 + $0x4a8] ss:$16 sps:$4 sm:$0xff]  }
 0x33c   : > { %4295 = vmatpush1.bf16.msra.mxu0 %v6493_v40  ;;  %v6574_v40 = vld [vmem:[#allocation9 + $0x6a8] ss:$16 sps:$4 sm:$0xff]  }
 0x33d   : > { %4336 = vmatpush1.bf16.msra.mxu1 %v6496_v41  ;;  %4296 = vmatprep.subr.bf16.mxu0 %v6501_v42  ;;  %v6579_v41 = vld [vmem:[#allocation9 + $0x48c] ss:$16 sps:$4 sm:$0xff]  }
 0x33e   : > { %4337 = vmatprep.subr.bf16.mxu1 %v6504_v43  ;;  %v6582_v42 = vld [vmem:[#allocation9 + $0x68c] ss:$16 sps:$4 sm:$0xff]  }
 0x33f   : > { %v6585_v43 = vld [vmem:[#allocation9 + $0x46c] ss:$16 sps:$4 sm:$0xff]  }
 0x340   : > { %4297 = vmatpush1.bf16.msra.mxu0 %v6499_v44  ;;  %v6588_v44 = vld [vmem:[#allocation9 + $0x66c] ss:$16 sps:$4 sm:$0xff]  }
 0x341   : > { %4338 = vmatpush1.bf16.msra.mxu1 %v6502_v17  ;;  %4298 = vmatprep.subr.bf16.mxu0 %v6507_v45  ;;  %v6583_v17 = vld [vmem:[#allocation9 + $0x468] ss:$16 sps:$4 sm:$0xff]  }
 0x342   : > { %4339 = vmatprep.subr.bf16.mxu1 %v6510_v46  ;;  %v6586_v45 = vld [vmem:[#allocation9 + $0x668] ss:$16 sps:$4 sm:$0xff]   ;;  %v6591_v46 = vld [vmem:[#allocation9 + $0x44c] ss:$16 sps:$4 sm:$0xff]  }
 0x344   : > { %4299 = vmatpush1.bf16.msra.mxu0 %v6505_v48  ;;  %v6592_v48 = vld [vmem:[#allocation9 + $0x648] ss:$16 sps:$4 sm:$0xff]  }
 0x345   : > { %4340 = vmatpush1.bf16.msra.mxu1 %v6508_v49  ;;  %4300 = vmatprep.subr.bf16.mxu0 %v6513_v50  ;;  %v6597_v49 = vld [vmem:[#allocation9 + $0x42c] ss:$16 sps:$4 sm:$0xff]  }
 0x346   : > { %4341 = vmatprep.subr.bf16.mxu1 %v6516_v51  ;;  %v6600_v50 = vld [vmem:[#allocation9 + $0x62c] ss:$16 sps:$4 sm:$0xff]   ;;  %v6595_v51 = vld [vmem:[#allocation9 + $0x428] ss:$16 sps:$4 sm:$0xff]  }
 0x348   : > { %4301 = vmatpush2.bf16.msra.mxu0 %v6511_v52  ;;  %v6598_v52 = vld [vmem:[#allocation9 + $0x628] ss:$16 sps:$4 sm:$0xff]  }
 0x349   : > { %4342 = vmatpush2.bf16.msra.mxu1 %v6514_v53  ;;  %4302 = vmatprep.subr.bf16.mxu0 %v6519_v56  ;;  %v6603_v53 = vld [vmem:[#allocation9 + $0x40c] ss:$16 sps:$4 sm:$0xff]  }
 0x34a   : > { %4343 = vmatprep.subr.bf16.mxu1 %v6522_v57  ;;  %v6606_v56 = vld [vmem:[#allocation9 + $0x60c] ss:$16 sps:$4 sm:$0xff]   ;;  %v6601_v57 = vld [vmem:[#allocation9 + $0x408] ss:$16 sps:$4 sm:$0xff]  }
 0x34c   : > { %4303 = vmatpush2.bf16.msra.mxu0 %v6517_v58  ;;  %v6604_v58 = vld [vmem:[#allocation9 + $0x608] ss:$16 sps:$4 sm:$0xff]  }
 0x34d   : > { %4344 = vmatpush2.bf16.msra.mxu1 %v6520_v61  ;;  %4304 = vmatprep.subr.bf16.mxu0 %v6525_v59  ;;  %v6609_v61 = vld [vmem:[#allocation9 + $0x5ec] ss:$16 sps:$4 sm:$0xff]  }
 0x34e   : > { %4345 = vmatprep.subr.bf16.mxu1 %v6528_v62  ;;  %v6612_v59 = vld [vmem:[#allocation9 + $0x7ec] ss:$16 sps:$4 sm:$0xff]   ;;  %v6607_v62 = vld [vmem:[#allocation9 + $0x5e8] ss:$16 sps:$4 sm:$0xff]  }
 0x350   : > { %4305 = vmatpush2.bf16.msra.mxu0 %v6523_v60  ;;  %v6610_v60 = vld [vmem:[#allocation9 + $0x7e8] ss:$16 sps:$4 sm:$0xff]  }
 0x351   : > { %4346 = vmatpush2.bf16.msra.mxu1 %v6526_v0  ;;  %4306 = vmatprep.subr.bf16.mxu0 %v6531_v1  ;;  %v6615_v0 = vld [vmem:[#allocation9 + $0x5cc] ss:$16 sps:$4 sm:$0xff]  }
 0x352   : > { %4347 = vmatprep.subr.bf16.mxu1 %v6534_v2  ;;  %v6618_v1 = vld [vmem:[#allocation9 + $0x7cc] ss:$16 sps:$4 sm:$0xff]   ;;  %v6613_v2 = vld [vmem:[#allocation9 + $0x5c8] ss:$16 sps:$4 sm:$0xff]  }
 0x354   : > { %4307 = vmatpush2.bf16.msra.mxu0 %v6529_v3  ;;  %v6616_v3 = vld [vmem:[#allocation9 + $0x7c8] ss:$16 sps:$4 sm:$0xff]  }
 0x355   : > { %4348 = vmatpush2.bf16.msra.mxu1 %v6532_v6  ;;  %4308 = vmatprep.subr.bf16.mxu0 %v6537_v7  ;;  %v6621_v6 = vld [vmem:[#allocation9 + $0x5ac] ss:$16 sps:$4 sm:$0xff]  }
 0x356   : > { %4349 = vmatprep.subr.bf16.mxu1 %v6540_v8  ;;  %v6624_v7 = vld [vmem:[#allocation9 + $0x7ac] ss:$16 sps:$4 sm:$0xff]   ;;  %v6619_v8 = vld [vmem:[#allocation9 + $0x5a8] ss:$16 sps:$4 sm:$0xff]  }
 0x358   : > { %4309 = vmatpush2.bf16.msra.mxu0 %v6535_v9  ;;  %v6622_v9 = vld [vmem:[#allocation9 + $0x7a8] ss:$16 sps:$4 sm:$0xff]  }
 0x359   : > { %4350 = vmatpush2.bf16.msra.mxu1 %v6538_v11  ;;  %4310 = vmatprep.subr.bf16.mxu0 %v6543_v12  ;;  %v6627_v11 = vld [vmem:[#allocation9 + $0x58c] ss:$16 sps:$4 sm:$0xff]  }
 0x35a   : > { %4351 = vmatprep.subr.bf16.mxu1 %v6546_v13  ;;  %v6630_v12 = vld [vmem:[#allocation9 + $0x78c] ss:$16 sps:$4 sm:$0xff]   ;;  %v6625_v13 = vld [vmem:[#allocation9 + $0x588] ss:$16 sps:$4 sm:$0xff]  }
 0x35c   : > { %4311 = vmatpush2.bf16.msra.mxu0 %v6541_v14  ;;  %v6628_v14 = vld [vmem:[#allocation9 + $0x788] ss:$16 sps:$4 sm:$0xff]  }
 0x35d   : > { %4352 = vmatpush2.bf16.msra.mxu1 %v6544_v18  ;;  %4312 = vmatprep.subr.bf16.mxu0 %v6549_v19  ;;  %v6633_v18 = vld [vmem:[#allocation9 + $0x56c] ss:$16 sps:$4 sm:$0xff]  }
 0x35e   : > { %4353 = vmatprep.subr.bf16.mxu1 %v6552_v22  ;;  %v6636_v19 = vld [vmem:[#allocation9 + $0x76c] ss:$16 sps:$4 sm:$0xff]   ;;  %v6631_v22 = vld [vmem:[#allocation9 + $0x568] ss:$16 sps:$4 sm:$0xff]  }
 0x360   : > { %4313 = vmatpush2.bf16.msra.mxu0 %v6547_v21  ;;  %v6634_v21 = vld [vmem:[#allocation9 + $0x768] ss:$16 sps:$4 sm:$0xff]  }
 0x361   : > { %4354 = vmatpush2.bf16.msra.mxu1 %v6550_v24  ;;  %4314 = vmatprep.subr.bf16.mxu0 %v6555_v23  ;;  %v6639_v24 = vld [vmem:[#allocation9 + $0x54c] ss:$16 sps:$4 sm:$0xff]  }
 0x362   : > { %4355 = vmatprep.subr.bf16.mxu1 %v6558_v25  ;;  %v6642_v23 = vld [vmem:[#allocation9 + $0x74c] ss:$16 sps:$4 sm:$0xff]   ;;  %v6637_v25 = vld [vmem:[#allocation9 + $0x548] ss:$16 sps:$4 sm:$0xff]  }
 0x364   : > { %4315 = vmatpush2.bf16.msra.mxu0 %v6553_v27  ;;  %v6640_v27 = vld [vmem:[#allocation9 + $0x748] ss:$16 sps:$4 sm:$0xff]  }
 0x365   : > { %4356 = vmatpush2.bf16.msra.mxu1 %v6556_v55  ;;  %4366 = vmatprep.subr.bf16.mxu0 %v6561_v28  ;;  %v6645_v55 = vld [vmem:[#allocation9 + $0x52c] ss:$16 sps:$4 sm:$0xff]  }
 0x366   : > { %4407 = vmatprep.subr.bf16.mxu1 %v6564_v31  ;;  %v6648_v28 = vld [vmem:[#allocation9 + $0x72c] ss:$16 sps:$4 sm:$0xff]   ;;  %v6643_v31 = vld [vmem:[#allocation9 + $0x528] ss:$16 sps:$4 sm:$0xff]  }
 0x367   : > { %4317 = vmatmul.mubr.bf16.vlgmr.msra.gmra.mxu0 %v7790_v47  ;;  %v6577_v47 = vld [vmem:[#allocation9 + $0x488] ss:$16 sps:$4 sm:$0xff]  }
 0x368   : > { %4358 = vmatmul.mubr.bf16.vlgmr.msra.gmra.mxu1 %v7792_v20  ;;  %4367 = vmatpush1.bf16.msra.mxu0 %v6559_v10  ;;  %v6580_v20 = vld [vmem:[#allocation9 + $0x688] ss:$16 sps:$4 sm:$0xff]  }
 0x369   : > { %4408 = vmatpush1.bf16.msra.mxu1 %v6562_v34  ;;  %4368 = vmatprep.subr.bf16.mxu0 %v6567_v35  ;;  %v6646_v10 = vld [vmem:[#allocation9 + $0x728] ss:$16 sps:$4 sm:$0xff]   ;;  %v6651_v34 = vld [vmem:[#allocation9 + $0x50c] ss:$16 sps:$4 sm:$0xff]  }
 0x36a   : > { %4409 = vmatprep.subr.bf16.mxu1 %v6570_v36  ;;  %4398 = vmatprep.mubr.bf16.mxu0 %v7800_v32  ;;  %v6594_v32 = vld [vmem:[#allocation9 + $0x64c] ss:$16 sps:$4 sm:$0xff]   ;;  %v6649_v36 = vld [vmem:[#allocation9 + $0x508] ss:$16 sps:$4 sm:$0xff]  }
 0x36b   : > { %4439 = vmatprep.mubr.bf16.mxu1 %v7802_v33  ;;  %v6589_v33 = vld [vmem:[#allocation9 + $0x448] ss:$16 sps:$4 sm:$0xff]   ;;  %v6654_v35 = vld [vmem:[#allocation9 + $0x70c] ss:$16 sps:$4 sm:$0xff]  }
 0x36c   : > { %4369 = vmatpush1.bf16.msra.mxu0 %v6565_v37  ;;  %v6652_v37 = vld [vmem:[#allocation9 + $0x708] ss:$16 sps:$4 sm:$0xff]  }
 0x36d   : > { %4410 = vmatpush1.bf16.msra.mxu1 %v6568_v38  ;;  %4370 = vmatprep.subr.bf16.mxu0 %v6573_v54  ;;  %v6657_v38 = vld [vmem:[#allocation12 + $0x74] ss:$8 sps:$4 sm:$0xff]   ;;  %v6655_v54 = vld [vmem:[#allocation12 + $0x70] ss:$8 sps:$4 sm:$0xff]  }
 0x36e   : > { %4411 = vmatprep.subr.bf16.mxu1 %v6576_v26  ;;  %v6660_v26 = vld [vmem:[#allocation12 + $0x64] ss:$8 sps:$4 sm:$0xff]  }
 0x370   : > { %4371 = vmatpush1.bf16.msra.mxu0 %v6571_v39 }
 0x371   : > { %4412 = vmatpush1.bf16.msra.mxu1 %v6574_v40  ;;  %4372 = vmatprep.subr.bf16.mxu0 %v6579_v41  ;;  %v6658_v41 = vld [vmem:[#allocation12 + $0x60] ss:$8 sps:$4 sm:$0xff]  }
 0x372   : > { %4413 = vmatprep.subr.bf16.mxu1 %v6582_v42 }
 0x374   : > { %4373 = vmatpush1.bf16.msra.mxu0 %v6577_v47 }
 0x375   : > { %4414 = vmatpush1.bf16.msra.mxu1 %v6580_v20  ;;  %4374 = vmatprep.subr.bf16.mxu0 %v6585_v43  ;;  %v6663_v20 = vld [vmem:[#allocation12 + $0x54] ss:$8 sps:$4 sm:$0xff]  }
 0x376   : > { %4415 = vmatprep.subr.bf16.mxu1 %v6588_v44 }
 0x378   : > { %4375 = vmatpush1.bf16.msra.mxu0 %v6583_v17  ;;  %v6661_v17 = vld [vmem:[#allocation12 + $0x50] ss:$8 sps:$4 sm:$0xff]  }
 0x379   : > { %4416 = vmatpush1.bf16.msra.mxu1 %v6586_v45  ;;  %4376 = vmatprep.subr.bf16.mxu0 %v6591_v46 }
 0x37a   : > { %4417 = vmatprep.subr.bf16.mxu1 %v6594_v32  ;;  %v6666_v32 = vld [vmem:[#allocation12 + $0x44] ss:$8 sps:$4 sm:$0xff]  }
 0x37c   : > { %4377 = vmatpush1.bf16.msra.mxu0 %v6589_v33  ;;  %v6703_v33 = vld [vmem:[#allocation12 + $0x170] ss:$8 sps:$4 sm:$0xff]  }
 0x37d   : > { %4418 = vmatpush1.bf16.msra.mxu1 %v6592_v48  ;;  %4378 = vmatprep.subr.bf16.mxu0 %v6597_v49  ;;  %v6708_v48 = vld [vmem:[#allocation12 + $0x164] ss:$8 sps:$4 sm:$0xff]   ;;  %v6706_v49 = vld [vmem:[#allocation12 + $0x160] ss:$8 sps:$4 sm:$0xff]  }
 0x37e   : > { %4419 = vmatprep.subr.bf16.mxu1 %v6600_v50  ;;  %v6669_v50 = vld [vmem:[#allocation12 + $0x34] ss:$8 sps:$4 sm:$0xff]  }
 0x380   : > { %4379 = vmatpush1.bf16.msra.mxu0 %v6595_v51  ;;  %v6711_v51 = vld [vmem:[#allocation12 + $0x154] ss:$8 sps:$4 sm:$0xff]  }
 0x381   : > { %4420 = vmatpush1.bf16.msra.mxu1 %v6598_v52  ;;  %4380 = vmatprep.subr.bf16.mxu0 %v6603_v53  ;;  %v6667_v52 = vld [vmem:[#allocation12 + $0x30] ss:$8 sps:$4 sm:$0xff]  }
 0x382   : > { %4421 = vmatprep.subr.bf16.mxu1 %v6606_v56  ;;  %v6709_v53 = vld [vmem:[#allocation12 + $0x150] ss:$8 sps:$4 sm:$0xff]   ;;  %v6672_v56 = vld [vmem:[#allocation12 + $0x24] ss:$8 sps:$4 sm:$0xff]  }
 0x384   : > { %4381 = vmatpush1.bf16.msra.mxu0 %v6601_v57  ;;  %v6714_v57 = vld [vmem:[#allocation12 + $0x144] ss:$8 sps:$4 sm:$0xff]  }
 0x385   : > { %4422 = vmatpush1.bf16.msra.mxu1 %v6604_v58  ;;  %4382 = vmatprep.subr.bf16.mxu0 %v6609_v61  ;;  %v6670_v58 = vld [vmem:[#allocation12 + $0x20] ss:$8 sps:$4 sm:$0xff]  }
 0x386   : > { %4423 = vmatprep.subr.bf16.mxu1 %v6612_v59  ;;  %v6712_v61 = vld [vmem:[#allocation12 + $0x140] ss:$8 sps:$4 sm:$0xff]   ;;  %v6675_v59 = vld [vmem:[#allocation12 + $0x14] ss:$8 sps:$4 sm:$0xff]  }
 0x388   : > { %4383 = vmatpush2.bf16.msra.mxu0 %v6607_v62  ;;  %v6717_v62 = vld [vmem:[#allocation12 + $0x134] ss:$8 sps:$4 sm:$0xff]  }
 0x389   : > { %4424 = vmatpush2.bf16.msra.mxu1 %v6610_v60  ;;  %4384 = vmatprep.subr.bf16.mxu0 %v6615_v0  ;;  %v6673_v60 = vld [vmem:[#allocation12 + $0x10] ss:$8 sps:$4 sm:$0xff]  }
 0x38a   : > { %4425 = vmatprep.subr.bf16.mxu1 %v6618_v1  ;;  %v6715_v0 = vld [vmem:[#allocation12 + $0x130] ss:$8 sps:$4 sm:$0xff]   ;;  %v6678_v1 = vld [vmem:[#allocation12 + $0x4] ss:$8 sps:$4 sm:$0xff]  }
 0x38c   : > { %4385 = vmatpush2.bf16.msra.mxu0 %v6613_v2  ;;  %v6720_v2 = vld [vmem:[#allocation12 + $0x124] ss:$8 sps:$4 sm:$0xff]  }
 0x38d   : > { %4426 = vmatpush2.bf16.msra.mxu1 %v6616_v3  ;;  %4386 = vmatprep.subr.bf16.mxu0 %v6621_v6  ;;  %v6676_v3 = vld [vmem:[#allocation12] ss:$8 sps:$4 sm:$0xff]  }
 0x38e   : > { %4427 = vmatprep.subr.bf16.mxu1 %v6624_v7  ;;  %v6718_v6 = vld [vmem:[#allocation12 + $0x120] ss:$8 sps:$4 sm:$0xff]   ;;  %v6681_v7 = vld [vmem:[#allocation12 + $0xf4] ss:$8 sps:$4 sm:$0xff]  }
 0x390   : > { %4387 = vmatpush2.bf16.msra.mxu0 %v6619_v8  ;;  %v6723_v8 = vld [vmem:[#allocation12 + $0x114] ss:$8 sps:$4 sm:$0xff]  }
 0x391   : > { %4428 = vmatpush2.bf16.msra.mxu1 %v6622_v9  ;;  %4388 = vmatprep.subr.bf16.mxu0 %v6627_v11  ;;  %v6679_v9 = vld [vmem:[#allocation12 + $0xf0] ss:$8 sps:$4 sm:$0xff]  }
 0x392   : > { %4429 = vmatprep.subr.bf16.mxu1 %v6630_v12  ;;  %v6721_v11 = vld [vmem:[#allocation12 + $0x110] ss:$8 sps:$4 sm:$0xff]   ;;  %v6684_v12 = vld [vmem:[#allocation12 + $0xe4] ss:$8 sps:$4 sm:$0xff]  }
 0x394   : > { %4389 = vmatpush2.bf16.msra.mxu0 %v6625_v13  ;;  %v6726_v13 = vld [vmem:[#allocation12 + $0x104] ss:$8 sps:$4 sm:$0xff]  }
 0x395   : > { %4430 = vmatpush2.bf16.msra.mxu1 %v6628_v14  ;;  %4390 = vmatprep.subr.bf16.mxu0 %v6633_v18  ;;  %v6682_v14 = vld [vmem:[#allocation12 + $0xe0] ss:$8 sps:$4 sm:$0xff]  }
 0x396   : > { %4431 = vmatprep.subr.bf16.mxu1 %v6636_v19  ;;  %v6724_v18 = vld [vmem:[#allocation12 + $0x100] ss:$8 sps:$4 sm:$0xff]   ;;  %v6687_v19 = vld [vmem:[#allocation12 + $0xd4] ss:$8 sps:$4 sm:$0xff]  }
 0x398   : > { %4391 = vmatpush2.bf16.msra.mxu0 %v6631_v22  ;;  %v6729_v22 = vld [vmem:[#allocation12 + $0x1f4] ss:$8 sps:$4 sm:$0xff]  }
 0x399   : > { %4432 = vmatpush2.bf16.msra.mxu1 %v6634_v21  ;;  %4392 = vmatprep.subr.bf16.mxu0 %v6639_v24  ;;  %v6685_v21 = vld [vmem:[#allocation12 + $0xd0] ss:$8 sps:$4 sm:$0xff]  }
 0x39a   : > { %4433 = vmatprep.subr.bf16.mxu1 %v6642_v23  ;;  %v6727_v24 = vld [vmem:[#allocation12 + $0x1f0] ss:$8 sps:$4 sm:$0xff]   ;;  %v6690_v23 = vld [vmem:[#allocation12 + $0xc4] ss:$8 sps:$4 sm:$0xff]  }
 0x39c   : > { %4393 = vmatpush2.bf16.msra.mxu0 %v6637_v25  ;;  %v6732_v25 = vld [vmem:[#allocation12 + $0x1e4] ss:$8 sps:$4 sm:$0xff]  }
 0x39d   : > { %4434 = vmatpush2.bf16.msra.mxu1 %v6640_v27  ;;  %4394 = vmatprep.subr.bf16.mxu0 %v6645_v55  ;;  %v6688_v27 = vld [vmem:[#allocation12 + $0xc0] ss:$8 sps:$4 sm:$0xff]  }
 0x39e   : > { %4435 = vmatprep.subr.bf16.mxu1 %v6648_v28  ;;  %v6730_v55 = vld [vmem:[#allocation12 + $0x1e0] ss:$8 sps:$4 sm:$0xff]   ;;  %v6693_v28 = vld [vmem:[#allocation12 + $0xb4] ss:$8 sps:$4 sm:$0xff]  }
 0x3a0   : > { %4395 = vmatpush2.bf16.msra.mxu0 %v6643_v31  ;;  %v6735_v31 = vld [vmem:[#allocation12 + $0x1d4] ss:$8 sps:$4 sm:$0xff]  }
 0x3a1   : > { %4436 = vmatpush2.bf16.msra.mxu1 %v6646_v10  ;;  %4396 = vmatprep.subr.bf16.mxu0 %v6651_v34  ;;  %v6691_v10 = vld [vmem:[#allocation12 + $0xb0] ss:$8 sps:$4 sm:$0xff]  }
 0x3a2   : > { %4437 = vmatprep.subr.bf16.mxu1 %v6654_v35  ;;  %v6733_v34 = vld [vmem:[#allocation12 + $0x1d0] ss:$8 sps:$4 sm:$0xff]   ;;  %v6696_v35 = vld [vmem:[#allocation12 + $0xa4] ss:$8 sps:$4 sm:$0xff]  }
 0x3a4   : > { %4397 = vmatpush2.bf16.msra.mxu0 %v6649_v36  ;;  %v6738_v36 = vld [vmem:[#allocation12 + $0x1c4] ss:$8 sps:$4 sm:$0xff]  }
 0x3a5   : > { %4438 = vmatpush2.bf16.msra.mxu1 %v6652_v37  ;;  %4848 = vmatprep.subr.bf16.mxu0 %v6657_v38  ;;  %v6694_v37 = vld [vmem:[#allocation12 + $0xa0] ss:$8 sps:$4 sm:$0xff]  }
 0x3a6   : > { %v6736_v38 = vld [vmem:[#allocation12 + $0x1c0] ss:$8 sps:$4 sm:$0xff]  }
 0x3a7   : > { %v7820_v39 = vpop.f32.mrf.mxu0  ;;  %4399 = vmatmul.mubr.bf16.vlgmr.msra.gmra.mxu0 %v7808_v15  ;;  %v6705_v15 = vld [vmem:[#allocation12 + $0x174] ss:$8 sps:$4 sm:$0xff]  }
 0x3a8   : > { %v7822_v40 = vpop.f32.mrf.mxu1  ;;  %4440 = vmatmul.mubr.bf16.vlgmr.msra.gmra.mxu1 %v7810_v16  ;;  %4849 = vmatpush1.bf16.msra.mxu0 %v6655_v54  ;;  %v6664_v16 = vld [vmem:[#allocation12 + $0x40] ss:$8 sps:$4 sm:$0xff]   ;;  %v6699_v54 = vld [vmem:[#allocation12 + $0x94] ss:$8 sps:$4 sm:$0xff]  }
 0x3a9   : > { %v7826_v42 = vpop.f32.mrf.mxu0  ;;  %4850 = vmatprep.subr.bf16.mxu0 %v6660_v26  ;;  %4889 = vmatprep.subr.bf16.mxu1 %v6705_v15  ;;  %v6741_v26 = vld [vmem:[#allocation12 + $0x1b4] ss:$8 sps:$4 sm:$0xff]  }
 0x3aa   : > { %v7828_v47 = vpop.f32.mrf.mxu1  ;;  %4890 = vmatpush1.bf16.msra.mxu1 %v6703_v33  ;;  %v6742_v33 = vld [vmem:[#allocation12 + $0x1a0] ss:$8 sps:$4 sm:$0xff]  }
 0x3ab   : > { %v4158_v43 = vpop.f32.mrf.mxu0  ;;  %4891 = vmatprep.subr.bf16.mxu1 %v6708_v48 }
 0x3ac   : > { %v4199_v44 = vpop.f32.mrf.mxu1  ;;  %4851 = vmatpush1.bf16.msra.mxu0 %v6658_v41  ;;  %v7830_v41 = vld [vmem:[#allocation11] sm:$0xf]  ;;  %v6739_v43 = vld [vmem:[#allocation12 + $0x1b0] ss:$8 sps:$4 sm:$0xff]  }
 0x3ad   : > { %v4159_v45 = vpop.f32.mrf.mxu0  ;;  %4852 = vmatprep.subr.bf16.mxu0 %v6663_v20  ;;  %v6697_v20 = vld [vmem:[#allocation12 + $0x90] ss:$8 sps:$4 sm:$0xff]   ;;  %v6702_v44 = vld [vmem:[#allocation12 + $0x84] ss:$8 sps:$4 sm:$0xff]  }
 0x3ae   : > { %v4200_v46 = vpop.f32.mrf.mxu1  ;;  %4892 = vmatpush1.bf16.msra.mxu1 %v6706_v49  ;;  %v2823_v45 = vrot.slane %v7830_v41, %v7782_v29 }
 0x3af   : > { %4893 = vmatprep.subr.bf16.mxu1 %v6711_v51  ;;  %v2827_v46 = vrot.slane %v7830_v41, %v7757_v4  ;;  %v6747_v51 = vld [vmem:[#allocation12 + $0x194] ss:$8 sps:$4 sm:$0xff]  }
 0x3b0   : > { %4853 = vmatpush1.bf16.msra.mxu0 %v6661_v17  ;;  %v6744_v17 = vld [vmem:[#allocation12 + $0x1a4] ss:$8 sps:$4 sm:$0xff]   ;;  %v4155_v15 = vadd.f32 %v7820_v39, %v2823_v45 }
 0x3b1   : > { %4854 = vmatprep.subr.bf16.mxu0 %v6666_v32  ;;  %v6700_v32 = vld [vmem:[#allocation12 + $0x80] ss:$8 sps:$4 sm:$0xff]   ;;  %v4157_v48 = vadd.f32 %v7826_v42, %v2827_v46  ;;  %v6750_v42 = vld [vmem:[#allocation12 + $0x184] ss:$8 sps:$4 sm:$0xff]  }
 0x3b2   : > { %4894 = vmatpush1.bf16.msra.mxu1 %v6709_v53 }
 0x3b3   : > { %4895 = vmatprep.subr.bf16.mxu1 %v6714_v57 }
 0x3b4   : > { %4855 = vmatpush1.bf16.msra.mxu0 %v6664_v16  ;;  %v4196_v16 = vadd.f32 %v7822_v40, %v4155_v15 }
 0x3b5   : > { %4856 = vmatprep.subr.bf16.mxu0 %v6669_v50 }
 0x3b6   : > { %4896 = vmatpush1.bf16.msra.mxu1 %v6712_v61 }
 0x3b7   : > { %4897 = vmatprep.subr.bf16.mxu1 %v6717_v62 }
 0x3b8   : > { %4857 = vmatpush1.bf16.msra.mxu0 %v6667_v52  ;;  %v4198_v52 = vadd.f32 %v7828_v47, %v4157_v48 }
 0x3b9   : > { %4858 = vmatprep.subr.bf16.mxu0 %v6672_v56  ;;  %v6745_v56 = vld [vmem:[#allocation12 + $0x190] ss:$8 sps:$4 sm:$0xff]  }
 0x3ba   : > { %4898 = vmatpush1.bf16.msra.mxu1 %v6715_v0  ;;  %v6748_v0 = vld [vmem:[#allocation12 + $0x180] ss:$8 sps:$4 sm:$0xff]  }
 0x3bb   : > { %4899 = vmatprep.subr.bf16.mxu1 %v6720_v2 }
 0x3bc   : > { %4859 = vmatpush1.bf16.msra.mxu0 %v6670_v58 }
 0x3bd   : > { %4860 = vmatprep.subr.bf16.mxu0 %v6675_v59 }
 0x3be   : > { %4900 = vmatpush1.bf16.msra.mxu1 %v6718_v6 }
 0x3bf   : > { %4901 = vmatprep.subr.bf16.mxu1 %v6723_v8 }
 0x3c0   : > { %4861 = vmatpush1.bf16.msra.mxu0 %v6673_v60 }
 0x3c1   : > { %4862 = vmatprep.subr.bf16.mxu0 %v6678_v1 }
 0x3c2   : > { %4902 = vmatpush1.bf16.msra.mxu1 %v6721_v11 }
 0x3c3   : > { %4903 = vmatprep.subr.bf16.mxu1 %v6726_v13 }
 0x3c4   : > { %4863 = vmatpush1.bf16.msra.mxu0 %v6676_v3 }
 0x3c5   : > { %4864 = vmatprep.subr.bf16.mxu0 %v6681_v7 }
 0x3c6   : > { %4904 = vmatpush1.bf16.msra.mxu1 %v6724_v18  ;;  %v6752_v18 = vld [vmem:[#allocation15 + $0x38] sm:$0xff]  }
 0x3c7   : > { %4905 = vmatprep.subr.bf16.mxu1 %v6729_v22  ;;  %v6754_v22 = vld [vmem:[#allocation15 + $0x30] sm:$0xff]  }
 0x3c8   : > { %4865 = vmatpush2.bf16.msra.mxu0 %v6679_v9 }
 0x3c9   : > { %4866 = vmatprep.subr.bf16.mxu0 %v6684_v12 }
 0x3ca   : > { %4906 = vmatpush2.bf16.msra.mxu1 %v6727_v24  ;;  %v6756_v24 = vld [vmem:[#allocation15 + $0x28] sm:$0xff]  }
 0x3cb   : > { %4907 = vmatprep.subr.bf16.mxu1 %v6732_v25  ;;  %v6758_v25 = vld [vmem:[#allocation15 + $0x20] sm:$0xff]  }
 0x3cc   : > { %4867 = vmatpush2.bf16.msra.mxu0 %v6682_v14  ;;  %v6751_v14 = vld [vmem:[#allocation15 + $0x78] sm:$0xff]  }
 0x3cd   : > { %4868 = vmatprep.subr.bf16.mxu0 %v6687_v19  ;;  %v6753_v19 = vld [vmem:[#allocation15 + $0x70] sm:$0xff]  }
 0x3ce   : > { %4908 = vmatpush2.bf16.msra.mxu1 %v6730_v55  ;;  %v6760_v55 = vld [vmem:[#allocation15 + $0x18] sm:$0xff]  }
 0x3cf   : > { %4909 = vmatprep.subr.bf16.mxu1 %v6735_v31  ;;  %v6762_v31 = vld [vmem:[#allocation15 + $0x10] sm:$0xff]  }
 0x3d0   : > { %4869 = vmatpush2.bf16.msra.mxu0 %v6685_v21  ;;  %v6755_v21 = vld [vmem:[#allocation15 + $0x68] sm:$0xff]  }
 0x3d1   : > { %4870 = vmatprep.subr.bf16.mxu0 %v6690_v23  ;;  %v6757_v23 = vld [vmem:[#allocation15 + $0x60] sm:$0xff]  }
 0x3d2   : > { %4910 = vmatpush2.bf16.msra.mxu1 %v6733_v34  ;;  %v2835_v34 = vrot.slane %v7830_v41, %v2520_v5  ;;  %v6763_v5 = vld [vmem:[#allocation15 + $0x48] sm:$0xff]  }
 0x3d3   : > { %4911 = vmatprep.subr.bf16.mxu1 %v6738_v36 }
 0x3d4   : > { %4871 = vmatpush2.bf16.msra.mxu0 %v6688_v27  ;;  %v6759_v27 = vld [vmem:[#allocation15 + $0x58] sm:$0xff]  }
 0x3d5   : > { %4872 = vmatprep.subr.bf16.mxu0 %v6693_v28  ;;  %v6761_v28 = vld [vmem:[#allocation15 + $0x50] sm:$0xff]  }
 0x3d6   : > { %4912 = vmatpush2.bf16.msra.mxu1 %v6736_v38 }
 0x3d7   : > { %4913 = vmatprep.subr.bf16.mxu1 %v6741_v26 }
 0x3d8   : > { %4873 = vmatpush2.bf16.msra.mxu0 %v6691_v10  ;;  %v2831_v10 = vrot.slane %v7830_v41, %v2516_v30  ;;  %v6764_v41 = vld [vmem:[#allocation15 + $0x8] sm:$0xff]  }
 0x3d9   : > { %4874 = vmatprep.subr.bf16.mxu0 %v6696_v35 }
 0x3da   : > { %4914 = vmatpush2.bf16.msra.mxu1 %v6739_v43 }
 0x3db   : > { %4915 = vmatprep.subr.bf16.mxu1 %v6744_v17 }
 0x3dc   : > { %4875 = vmatpush2.bf16.msra.mxu0 %v6694_v37 }
 0x3dd   : > { %4876 = vmatprep.subr.bf16.mxu0 %v6699_v54 }
 0x3de   : > { %4916 = vmatpush2.bf16.msra.mxu1 %v6742_v33 }
 0x3df   : > { %4917 = vmatprep.subr.bf16.mxu1 %v6747_v51  ;;  %v6766_v51 = vld [vmem:[#allocation15] sm:$0xff]  }
 0x3e0   : > { %4877 = vmatpush2.bf16.msra.mxu0 %v6697_v20 }
 0x3e1   : > { %4878 = vmatprep.subr.bf16.mxu0 %v6702_v44 }
 0x3e2   : > { %4918 = vmatpush2.bf16.msra.mxu1 %v6745_v56  ;;  %v6767_v56 = vld [vmem:[#allocation18 + $0x38] sm:$0xff]  }
 0x3e3   : > { %4919 = vmatprep.subr.bf16.mxu1 %v6750_v42  ;;  %v4516_v42 = vld [vmem:[#allocation14] sm:$0x3] }
 0x3e4   : > { %4879 = vmatpush2.bf16.msra.mxu0 %v6700_v32 }
 0x3e5   : > { %6047 = vmatprep.subr.bf16.mxu0 %v6751_v14 }
 0x3e6   : > { %4920 = vmatpush2.bf16.msra.mxu1 %v6748_v0  ;;  %v4525_v0 = vrot.slane %v4516_v42, %v7757_v4 }
 0x3e7   : > { %v4236_v49 = vpop.f32.mrf.mxu0 }
 0x3e8   : > { %v4277_v50 = vpop.f32.mrf.mxu1  ;;  %v4237_v53 = vadd.f32 %v4236_v49, %v4196_v16 }
 0x3e9   : > { %v4238_v57 = vpop.f32.mrf.mxu0 }
 0x3ea   : > { %v4279_v58 = vpop.f32.mrf.mxu1  ;;  %v4239_v61 = vadd.f32 %v4238_v57, %v4198_v52  ;;  %v4278_v59 = vadd.f32 %v4277_v50, %v4237_v53  ;;  %v6765_v50 = vld [vmem:[#allocation15 + $0x40] sm:$0xff]   ;;  %v7189_v57 = vmov 0.0  }
 0x3eb   : > { %v4240_v39 = vpop.f32.mrf.mxu0  ;;  %6078 = vmatprep.subr.bf16.mxu1 %v7189_v57 }
 0x3ec   : > { %v4281_v62 = vpop.f32.mrf.mxu1  ;;  %v4280_v60 = vadd.f32 %v4279_v58, %v4239_v61  ;;  %v4448_v3 = vpack.c.bf16 %v4278_v59, %v4278_v59  ;;  %v6768_v58 = vld [vmem:[#allocation18 + $0x30] sm:$0xff]   ;;  %v6769_v61 = vld [vmem:[#allocation18 + $0x28] sm:$0xff]   ;;  %v6770_v59 = vld [vmem:[#allocation18 + $0x20] sm:$0xff]  }
 0x3ed   : > { %v4241_v1 = vpop.f32.mrf.mxu0  ;;  %v6771_v39 = vld [vmem:[#allocation18 + $0x18] sm:$0xff]   ;;  %v6772_v62 = vld [vmem:[#allocation18 + $0x10] sm:$0xff]  }
 0x3ee   : > { %v4282_v40 = vpop.f32.mrf.mxu1  ;;  %v4449_v2 = vpack.c.bf16 %v4280_v60, %v4280_v60  ;;  %v4521_v60 = vrot.slane %v4516_v42, %v7782_v29  ;;  %v6014_v29 = vld [vmem:[#allocation17] ss:$0 sm:$0xff] }
 0x3f0   : > { %4880 = vmatprep.mubr.bf16.mxu0 %v4449_v2 }
 0x3f1   : > { %4881 = vmatmul.mubr.bf16.vlgmr.msra.gmra.mxu0 %v4448_v3 }
 0x3f2   : > { %6048 = vmatpush3.bf16.msra.mxu0 %v6752_v18 }
 0x3f3   : > { %6049 = vmatprep.subr.bf16.mxu0 %v6753_v19 }
 0x3f6   : > { %6050 = vmatpush3.bf16.msra.mxu0 %v6754_v22 }
 0x3f7   : > { %6051 = vmatprep.subr.bf16.mxu0 %v6755_v21 }
 0x3fa   : > { %6052 = vmatpush3.bf16.msra.mxu0 %v6756_v24 }
 0x3fb   : > { %6053 = vmatprep.subr.bf16.mxu0 %v6757_v23  ;;  %v6031_v23 = vld [vmem:[#allocation20] ss:$0 sm:$0xff] }
 0x3fe   : > { %6054 = vmatpush3.bf16.msra.mxu0 %v6758_v25 }
 0x3ff   : > { %6055 = vmatprep.subr.bf16.mxu0 %v6759_v27 }
 0x402   : > { %6056 = vmatpush3.bf16.msra.mxu0 %v6760_v55 }
 0x403   : > { %6057 = vmatprep.subr.bf16.mxu0 %v6761_v28 }
 0x406   : > { %6058 = vmatpush3.bf16.msra.mxu0 %v6762_v31 }
 0x407   : > { %6059 = vmatprep.subr.bf16.mxu0 %v6763_v5 }
 0x40a   : > { %6060 = vmatpush3.bf16.msra.mxu0 %v6764_v41 }
 0x40b   : > { %6061 = vmatprep.subr.bf16.mxu0 %v6765_v50 }
 0x40e   : > { %6062 = vmatpush3.bf16.msra.mxu0 %v6766_v51 }
 0x427   : > { %v4318_v47 = vpop.f32.mrf.mxu0 }
 0x428   : > { %v4359_v6 = vpop.f32.mrf.mxu1  ;;  %v4319_v35 = vadd.f32 %v4318_v47, %v2831_v10 }
 0x429   : > { %v4320_v7 = vpop.f32.mrf.mxu0 }
 0x42a   : > { %v4361_v8 = vpop.f32.mrf.mxu1  ;;  %v4321_v36 = vadd.f32 %v4320_v7, %v2835_v34  ;;  %v4360_v37 = vadd.f32 %v4359_v6, %v4319_v35 }
 0x42b   : > { %v4322_v9 = vpop.f32.mrf.mxu0 }
 0x42c   : > { %v4363_v11 = vpop.f32.mrf.mxu1  ;;  %v4362_v26 = vadd.f32 %v4361_v8, %v4321_v36 }
 0x42d   : > { %v4323_v12 = vpop.f32.mrf.mxu0 }
 0x42e   : > { %v4364_v13 = vpop.f32.mrf.mxu1  ;;  %v6773_v12 = vld [vmem:[#allocation18 + $0x8] sm:$0xff]  }
 0x42f   : > { %v6774_v13 = vld [vmem:[#allocation18] sm:$0xff]  }
 0x467   : > { %v4400_v38 = vpop.f32.mrf.mxu0 }
 0x468   : > { %v4441_v54 = vpop.f32.mrf.mxu1  ;;  %v4401_v20 = vadd.f32 %v4400_v38, %v4360_v37 }
 0x469   : > { %v4402_v43 = vpop.f32.mrf.mxu0 }
 0x46a   : > { %v4443_v44 = vpop.f32.mrf.mxu1  ;;  %v4403_v17 = vadd.f32 %v4402_v43, %v4362_v26  ;;  %v4442_v45 = vadd.f32 %v4441_v54, %v4401_v20 }
 0x46b   : > { %v4404_v46 = vpop.f32.mrf.mxu0 }
 0x46c   : > { %v4445_v32 = vpop.f32.mrf.mxu1  ;;  %v4444_v33 = vadd.f32 %v4443_v44, %v4403_v17  ;;  %v4450_v63 = vpack.c.bf16 %v4442_v45, %v4442_v45 }
 0x46d   : > { %v4405_v15 = vpop.f32.mrf.mxu0 }
 0x46e   : > { %v4446_v30 = vpop.f32.mrf.mxu1  ;;  %v4451_v48 = vpack.c.bf16 %v4444_v33, %v4444_v33 }
 0x470   : > { %4921 = vmatprep.mubr.bf16.mxu1 %v4451_v48 }
 0x471   : > { %4922 = vmatmul.mubr.bf16.vlgmr.msra.gmra.mxu1 %v4450_v63 }
 0x472   : > { %6079 = vmatpush3.bf16.msra.mxu1 %v6767_v56  ;;  %6094 = vmatprep.mubr.msk.bf16.mxu1 %vm7190_vm0, %v7189_v57 }
 0x473   : > { %6080 = vmatprep.subr.bf16.mxu1 %v7189_v57 }
 0x476   : > { %6081 = vmatpush3.bf16.msra.mxu1 %v6768_v58 }
 0x477   : > { %6082 = vmatprep.subr.bf16.mxu1 %v7189_v57 }
 0x47a   : > { %6083 = vmatpush3.bf16.msra.mxu1 %v6769_v61 }
 0x47b   : > { %6084 = vmatprep.subr.bf16.mxu1 %v7189_v57 }
 0x47e   : > { %6085 = vmatpush3.bf16.msra.mxu1 %v6770_v59 }
 0x47f   : > { %6086 = vmatprep.subr.bf16.mxu1 %v7189_v57 }
 0x482   : > { %6087 = vmatpush3.bf16.msra.mxu1 %v6771_v39 }
 0x483   : > { %6088 = vmatprep.subr.bf16.mxu1 %v7189_v57 }
 0x486   : > { %6089 = vmatpush3.bf16.msra.mxu1 %v6772_v62 }
 0x487   : > { %6090 = vmatprep.subr.bf16.mxu1 %v7189_v57 }
 0x48a   : > { %6091 = vmatpush3.bf16.msra.mxu1 %v6773_v12 }
 0x48b   : > { %6092 = vmatprep.subr.bf16.mxu1 %v7189_v57 }
 0x48e   : > { %6093 = vmatpush3.bf16.msra.mxu1 %v6774_v13 }
 0x4b1   : > { %v4882_v16 = vpop.f32.mrf.mxu0 }
 0x4b2   : > { %v4883_v1 = vadd.f32 %v4882_v16, %v4521_v60 }
 0x4b3   : > { %v4884_v49 = vpop.f32.mrf.mxu0 }
 0x4b4   : > { %v4885_v2 = vadd.f32 %v4884_v49, %v4525_v0 }
 0x4b5   : > { %v4886_v52 = vpop.f32.mrf.mxu0 }
 0x4b7   : > { %v4887_v53 = vpop.f32.mrf.mxu0 }
 0x531   : > { %v4923_v40 = vpop.f32.mrf.mxu1 }
 0x532   : > { %v4924_v3 = vadd.f32 %v4923_v40, %v4883_v1 }
 0x533   : > { %v4925_v47 = vpop.f32.mrf.mxu1 }
 0x534   : > { %v4926_v6 = vadd.f32 %v4925_v47, %v4885_v2  ;;  %v4930_v9 = vpack.c.bf16 %v4924_v3, %v4924_v3 }
 0x535   : > { %v4927_v7 = vpop.f32.mrf.mxu1 }
 0x536   : > { %v4931_v8 = vpack.c.bf16 %v4926_v6, %v4926_v6 }
 0x537   : > { %v4928_v11 = vpop.f32.mrf.mxu1 }
 0x538   : > { %5099 = vmatprep.mubr.bf16.mxu0 %v4931_v8 }
 0x539   : > { %5100 = vmatmul.mubr.bf16.vlgmr.msra.gmra.mxu0 %v4930_v9 }
 0x5f9   : > { %v6063_v4 = vpop.f32.mrf.mxu0 }
 0x5fb   : > { %v6064_v14 = vpop.f32.mrf.mxu0 }
 0x5fc   : > { %v6065_v18 = vadd.f32 %v6064_v14, %v6063_v4 }
 0x5fd   : > { %v6066_v19 = vpop.f32.mrf.mxu0 }
 0x5fe   : > { %v5102_v22 = vadd.f32 %v6065_v18, %v6014_v29 }
 0x5ff   : > { %v6067_v21 = vpop.f32.mrf.mxu0 }
 0x600   : > { %v5107_v24 = vpack.c.bf16 %v5102_v22, %v5102_v22 }
 0x602   : > { %6095 = vmatmul.mubr.bf16.vlgmr.msra.gmra.mxu1 %v5107_v24 }
 0x6c2   : > { %v5213_v25 = vpop.f32.mrf.mxu1 }
 0x6c3   : > { %v5214_v27 = vadd.f32 %v6031_v23, %v5213_v25 }
 0x6c4   : > { %v6096_v55 = vpop.f32.mrf.mxu1 }
 0x6c5   : > { %5219 = vst [vmem:[#allocation21] sm:$0xff] %v5214_v27 }
 0x6c6   : > { %v5216_v28 = vpop.f32.mrf.mxu1 }
 0x6c8   : > { %v6097_v31 = vpop.f32.mrf.mxu1 }
 0x6c9 PF: > { %p6196_p9 = scmp.eq.s32.totalorder %s7283_s23, 1  ;;  %s7191_s20 = smov [#allocation21]  }
 0x6ca   : > { %s5229_s24 = sshll.u32 %s7191_s20, 4  ;;  %s5230_s24 = int_to_ptr.vmem [resolvable:$true] %s5229_s24 }
 0x6cb   : > { %s7065_s2 = scalar_lea.vmem %s5230_s24, 128  ;;  %p7072_p10 = scmp.lt.s32.totalorder %s5230_s24, %s5230_s24 }
 0x6cc   : > { %p7066_p6 = scmp.ne.s32.totalorder %s5230_s24, %s7065_s2  ;;  %p7073_p11 = scmp.lt.s32.totalorder %s7065_s2, %s7065_s2 }
 0x6ce   : > { %p7067_p5 = pnand %p7066_p6, %p6196_p9  ;;  %p7074_p12 = por %p7073_p11, %p7072_p10 }
 0x6d0   : > { %p7068_p4 = pneg %p7067_p5 }
 0x6d2   : > { %p7075_p13 = pnand %p7074_p12, %p7068_p4 }
 0x6d4   : > { %7078 = shalt.err (!%p7075_p13)
}
 0x6d5   : > { %s7923_s11 = sld [smem:[#allocation36_spill]] }
 0x6db   : > { %6139 = dma.vmem_to_hbm [thread:$0]  (%p6196_p9), %s5230_s24, 128, %s7923_s11, [#allocation5]  }
 0x6dc   : > { %7142 = dma.done.wait (%p6196_p9), [#allocation5], 128  }
 0x6dd   : > { %7144 = vsyncadd (%p6196_p9), [#allocation5], 4294967168 }
 0x6de PF: > { %s32_s22 = sadd.s32 1, %s7167_s22   ;;  %s7924_s17 = smov %s7151_s18 }
 0x6df   : > { %p29_p2 = scmp.ge.s32.totalorder %s32_s22, 4   ;;  %s7925_s18 = smov %s7155_s19 }
 0x6e0   : > { %s7926_s19 = smov %s7394_s16  ;;  %s7927_s20 = smov %s7163_s21 }
 0x6e1   : > { %s7928_s21 = smov %s7930_s13  ;;  %31 = sbr.rel (!%p29_p2) target bundleno = 19 (0x13), region = 159 }
 0x6e6   :  { %5242 = vsyncpa [#allocation4], 1 }
 0x6e7   :  { %5244 = vsyncpa [#allocation4 + $0x1], 1 }
 0x6e8   :  { %5245 = vsyncpa [#allocation7], 1 }
 0x6e9   :  { %5247 = vsyncpa [#allocation7 + $0x1], 1 }
 0x6ea   :  { %5248 = vsyncpa [#allocation10], 1 }
 0x6eb   :  { %5249 = vsyncpa [#allocation13], 1 }
 0x6ec   :  { %5250 = vsyncpa [#allocation16], 1 }
 0x6ed   :  { %5251 = vsyncpa [#allocation19], 1 }
 0x6ee   :  { %5252 = vsyncpa [#allocation5], 1 }
 0x6ef   :  { %5254 = vsyncpa [#allocation5 + $0x1], 1 }

</bundles_post_ra>
